<compile_context>
chip_gen: v5e
topology: v5e:2x2
jax: 0.10.0
libtpu: 0.0.40
codegen_flags: <defaults>
</compile_context>

<pallas_src>
import functools

import jax
import jax.numpy as jnp
import numpy as np
from jax import lax
from jax.experimental import pallas as pl
from jax.experimental.pallas import tpu as pltpu


def _softmax_last(x):
    m = jnp.max(x, axis=-1, keepdims=True)
    e = jnp.exp(x - m)
    # approx reciprocal lands on the otherwise-idle EUP slot; rows sum to
    # 1 +/- ~1e-3 (fine for inference / the 1e-2 test tolerance).
    return e * pl.reciprocal(jnp.sum(e, axis=-1, keepdims=True), approx=True)


# dot_general dimension-number shorthands (no batch dims):
_DN_TT = (((0,), (0,)), ((), ()))   # contract axis0 with axis0  ->  a^T @ b
_DN_NT = (((1,), (1,)), ((), ()))   # contract axis1 with axis1  ->  a @ b^T


def dual_cma_kernel(x_ref, y_ref,
                    w1c_ref, b1c_ref, w2c_ref, b2c_ref,
                    wl1t_ref, bl1_ref, wl2t_ref, bl2_ref,
                    wv1_ref, bv1_ref, wv2_ref, bv2_ref,
                    gamma_ref,
                    out_x_ref, out_y_ref, *, single_block):
    f32 = jnp.float32
    bf16 = jnp.bfloat16
    nr = out_x_ref.shape[2]                       # row-block size Nr

    x = x_ref[0]                                  # (C, N) f32
    y = y_ref[0]
    xb = x.astype(bf16)
    yb = y.astype(bf16)

    # Residual / row-block column slabs (kept in f32 for the residual add).
    if single_block:
        x_blk, y_blk = x, y                       # Nr == N
    else:
        col0 = pl.multiple_of(pl.program_id(1) * nr, nr)
        x_blk = x_ref[0, :, pl.ds(col0, nr)]      # (C, Nr) f32
        y_blk = y_ref[0, :, pl.ds(col0, nr)]

    # ---- key path (key_conv_share folded into key_conv1/2 on the host) ----
    # Full-width projections (RHS of both energy matmuls).  Recomputed per row
    # block; the (Ck, C, N) flops are negligible vs. the (Nr, N, N) linears.
    k1s = (jnp.dot(w1c_ref[...], xb, preferred_element_type=f32)
           + b1c_ref[...]).astype(bf16)           # (Ck, N)
    k2s = (jnp.dot(w2c_ref[...], yb, preferred_element_type=f32)
           + b2c_ref[...]).astype(bf16)
    if single_block:
        k1_blk, k2_blk = k1s, k2s
    else:
        # Row-block slices of the projections (LHS of the energy matmuls),
        # rebuilt from the x/y column slabs — cheaper and layout-safer than a
        # dynamic lane-slice of the computed (Ck, N) values.
        k1_blk = (jnp.dot(w1c_ref[...], x_blk.astype(bf16),
                          preferred_element_type=f32) + b1c_ref[...]).astype(bf16)
        k2_blk = (jnp.dot(w2c_ref[...], y_blk.astype(bf16),
                          preferred_element_type=f32) + b2c_ref[...]).astype(bf16)

    g1 = gamma_ref[0]
    g2 = gamma_ref[1]

    # ===== branch 1: rows [col0, col0+Nr) of att1 -> columns of out_x =======
    # energy1[j, m] = sum_c k1s[c, col0+j] * k2s[c, m]  (LHS-transposed MXU op)
    energy1 = lax.dot_general(k1_blk, k2s, _DN_TT, preferred_element_type=f32)   # (Nr, N)
    # linear1(energy) = energy @ wl1^T + bl1 ; wl1 pre-transposed & bf16 on host
    e1 = jnp.dot(energy1.astype(bf16), wl1t_ref[...],
                 preferred_element_type=f32) + bl1_ref[...]                       # (Nr, N)
    att1 = _softmax_last(e1)                                                      # (Nr, N) f32
    vy = (jnp.dot(wv2_ref[...], yb, preferred_element_type=f32)
          + bv2_ref[...]).astype(bf16)                                            # (C, N)
    # out_x[:, col0+j] = gamma1 * sum_n vy[:, n] * att1[j, n] + x[:, col0+j]
    out_x_ref[0] = g1 * lax.dot_general(vy, att1.astype(bf16), _DN_NT,
                                        preferred_element_type=f32) + x_blk

    # ===== branch 2: rows of att2 = softmax(linear2(energy^T)) ==============
    # energy^T row block built directly from the key projections — no (N, N)
    # transpose, no full-energy temporary kept across branches.
    energy2 = lax.dot_general(k2_blk, k1s, _DN_TT, preferred_element_type=f32)    # (Nr, N)
    e2 = jnp.dot(energy2.astype(bf16), wl2t_ref[...],
                 preferred_element_type=f32) + bl2_ref[...]
    att2 = _softmax_last(e2)
    vx = (jnp.dot(wv1_ref[...], xb, preferred_element_type=f32)
          + bv1_ref[...]).astype(bf16)
    out_y_ref[0] = g2 * lax.dot_general(vx, att2.astype(bf16), _DN_NT,
                                        preferred_element_type=f32) + y_blk


def dual_cross_modal_attention(x, y, params, *, row_block=None):
    """x, y: (B, C, H, W) float32.  Returns (out_x, out_y) with same shape."""
    B, C, H, W = x.shape
    N = H * W
    Ck = params["wk1"].shape[0]
    bf16 = jnp.bfloat16

    if row_block is None:
        row_block = N if N <= 512 else 512
    assert N % row_block == 0, "row_block must divide N"
    assert row_block == N or row_block % 128 == 0, "row_block must be lane-aligned"
    R = N // row_block

    x_f = x.reshape(B, C, N)
    y_f = y.reshape(B, C, N)

    # ---- host-side parameter prep (weights stay VMEM-resident across the
    # grid since their index maps are constant) ------------------------------
    # Fold key_conv_share into key_conv1/2:  ks(ki(t)) == (Ws@Wi) t + (Ws@bi+bs)
    w1c = jnp.dot(params["wks"], params["wk1"]).astype(bf16)            # (Ck, C)
    b1c = jnp.dot(params["wks"], params["bk1"]) + params["bks"]         # (Ck, 1) f32
    w2c = jnp.dot(params["wks"], params["wk2"]).astype(bf16)
    b2c = jnp.dot(params["wks"], params["bk2"]) + params["bks"]
    # Pre-transpose + bf16-cast the (N, N) linear weights and value convs.
    wl1_t = params["wl1"].T.astype(bf16)                                # (N, N)
    wl2_t = params["wl2"].T.astype(bf16)
    wv1 = params["wv1"].astype(bf16)                                    # (C, C)
    wv2 = params["wv2"].astype(bf16)

    kernel = functools.partial(dual_cma_kernel, single_block=(R == 1))

    def make_in_specs(single_buffer_weights):
        if single_buffer_weights:
            def wspec(shape):
                return pl.BlockSpec(shape, lambda b, r: (0,) * len(shape),
                                    pipeline_mode=pl.Buffered(1))
        else:
            def wspec(shape):
                return pl.BlockSpec(shape, lambda b, r: (0,) * len(shape))
        return [
            pl.BlockSpec((1, C, N), lambda b, r: (b, 0, 0)),   # x
            pl.BlockSpec((1, C, N), lambda b, r: (b, 0, 0)),   # y
            wspec((Ck, C)), wspec((Ck, 1)),                    # folded key conv 1
            wspec((Ck, C)), wspec((Ck, 1)),                    # folded key conv 2
            wspec((N, N)), wspec((1, N)),                      # linear1 (W^T bf16, bias f32)
            wspec((N, N)), wspec((1, N)),                      # linear2
            wspec((C, C)), wspec((C, 1)),                      # value_conv1
            wspec((C, C)), wspec((C, 1)),                      # value_conv2
            pl.BlockSpec(memory_space=pltpu.MemorySpace.SMEM),  # gammas (2,)
        ]

    out_specs = [
        pl.BlockSpec((1, C, row_block), lambda b, r: (b, 0, r)),
        pl.BlockSpec((1, C, row_block), lambda b, r: (b, 0, r)),
    ]
    out_shape = [jax.ShapeDtypeStruct((B, C, N), jnp.float32),
                 jax.ShapeDtypeStruct((B, C, N), jnp.float32)]

    flops = 4 * B * (Ck * C * N + C * C * N + Ck * N * N + N * N * N + C * N * N)
    cost = pl.CostEstimate(
        flops=flops,
        transcendentals=2 * B * N * N,
        bytes_accessed=(4 * B * C * N * 4               # x, y, out_x, out_y (f32)
                        + 2 * N * N * 2                 # wl1t, wl2t (bf16)
                        + (2 * Ck * C + 2 * C * C) * 2  # conv weights (bf16)
                        + (2 * Ck + 2 * C + 2 * N + 2) * 4),
    )

    def build(single_buffer_weights):
        return pl.pallas_call(
            kernel,
            grid_spec=pltpu.PrefetchScalarGridSpec(
                num_scalar_prefetch=0,
                grid=(B, R),
                in_specs=make_in_specs(single_buffer_weights),
                out_specs=out_specs,
            ),
            out_shape=out_shape,
            compiler_params=pltpu.CompilerParams(
                # batch and row-block axes both shard across the v7x megacore
                dimension_semantics=("parallel", "parallel")),
            cost_estimate=cost,
        )

    args = (x_f, y_f,
            w1c, b1c, w2c, b2c,
            wl1_t, params["bl1"], wl2_t, params["bl2"],
            wv1, params["bv1"], wv2, params["bv2"],
            params["gamma"])
    try:
        out_x, out_y = build(True)(*args)
    except Exception:  # pipeline_mode=pl.Buffered(1) is a newer knob; degrade gracefully.
        out_x, out_y = build(False)(*args)
    return out_x.reshape(B, C, H, W), out_y.reshape(B, C, H, W)


# ---------------------------------------------------------------------------
# Deterministic synthetic parameter init (shapes follow the module __init__).
# Conv/Linear weights use xavier_normal with gain=0.02 like the PyTorch init.
# gamma is nn.Parameter(zeros(1)) in the module; nonzero gammas here so the
# attention path actually contributes to the output of this synthetic test.
# ---------------------------------------------------------------------------
def init_params(key, C, N, ratio):
    Ck = C // ratio
    gain = 0.02

    def xavier(k, shape, fan_in, fan_out):
        std = gain * np.sqrt(2.0 / (fan_in + fan_out))
        return (std * jax.random.normal(k, shape)).astype(jnp.float32)

    ks = jax.random.split(key, 16)
    params = {
        "wk1": xavier(ks[0], (Ck, C), C, Ck),
        "bk1": (0.01 * jax.random.normal(ks[1], (Ck, 1))).astype(jnp.float32),
        "wk2": xavier(ks[2], (Ck, C), C, Ck),
        "bk2": (0.01 * jax.random.normal(ks[3], (Ck, 1))).astype(jnp.float32),
        "wks": xavier(ks[4], (Ck, Ck), Ck, Ck),
        "bks": (0.01 * jax.random.normal(ks[5], (Ck, 1))).astype(jnp.float32),
        "wl1": xavier(ks[6], (N, N), N, N),
        "bl1": (0.01 * jax.random.normal(ks[7], (1, N))).astype(jnp.float32),
        "wl2": xavier(ks[8], (N, N), N, N),
        "bl2": (0.01 * jax.random.normal(ks[9], (1, N))).astype(jnp.float32),
        "wv1": xavier(ks[10], (C, C), C, C),
        "bv1": (0.01 * jax.random.normal(ks[11], (C, 1))).astype(jnp.float32),
        "wv2": xavier(ks[12], (C, C), C, C),
        "bv2": (0.01 * jax.random.normal(ks[13], (C, 1))).astype(jnp.float32),
        "gamma": jnp.array([0.5, -0.25], dtype=jnp.float32),  # [gamma1, gamma2]
    }
    return params


# Pure-JAX reference mirroring the PyTorch forward exactly (no host folding,
# no transposed/bf16 weights) — validates both the kernel and the host prep.
def reference(x, y, p):
    B, C, H, W = x.shape
    N = H * W
    xf = x.reshape(B, C, N)
    yf = y.reshape(B, C, N)

    def conv(w, b, t):   # (Co,Ci) @ (B,Ci,N) + (Co,1)
        return jnp.einsum("oc,bcn->bon", w, t) + b[None]

    k1s = conv(p["wks"], p["bks"], conv(p["wk1"], p["bk1"], xf))
    k2s = conv(p["wks"], p["bks"], conv(p["wk2"], p["bk2"], yf))
    energy = jnp.einsum("bcn,bcm->bnm", k1s, k2s)
    att1 = jax.nn.softmax(jnp.einsum("bnm,km->bnk", energy, p["wl1"]) + p["bl1"][None], axis=-1)
    att2 = jax.nn.softmax(jnp.einsum("bmn,km->bnk", energy, p["wl2"]) + p["bl2"][None], axis=-1)
    vy = conv(p["wv2"], p["bv2"], yf)
    vx = conv(p["wv1"], p["bv1"], xf)
    out_x = p["gamma"][0] * jnp.einsum("bcn,bmn->bcm", vy, att1) + xf
    out_y = p["gamma"][1] * jnp.einsum("bcn,bmn->bcm", vx, att2) + yf
    return out_x.reshape(B, C, H, W), out_y.reshape(B, C, H, W)


if __name__ == "__main__":
    B, C, H, W = 2, 64, 16, 16          # size=16 -> N = 256, ratio=8 -> Ck = 8
    ratio = 8
    N = H * W

    root = jax.random.PRNGKey(0)
    kp, kx, ky = jax.random.split(root, 3)
    params = init_params(kp, C, N, ratio)
    x = jax.random.normal(kx, (B, C, H, W), dtype=jnp.float32)
    y = jax.random.normal(ky, (B, C, H, W), dtype=jnp.float32)

    out_x, out_y = dual_cross_modal_attention(x, y, params)
    jax.block_until_ready((out_x, out_y))

    ref_x, ref_y = reference(x, y, params)
    np.testing.assert_allclose(np.asarray(out_x), np.asarray(ref_x), rtol=1e-2, atol=1e-2)
    np.testing.assert_allclose(np.asarray(out_y), np.asarray(ref_y), rtol=1e-2, atol=1e-2)

    print("KERNEL_OK")
</pallas_src>

<mosaic_0001>
module attributes {stable_mosaic.version = 11 : i64} {
  func.func @dual_cma_kernel(%arg0: i32, %arg1: i32, %arg2: memref<1x64x256xf32, #tpu.memory_space<vmem>>, %arg3: memref<1x64x256xf32, #tpu.memory_space<vmem>>, %arg4: memref<8x64xbf16, #tpu.memory_space<vmem>>, %arg5: memref<8x1xf32, #tpu.memory_space<vmem>>, %arg6: memref<8x64xbf16, #tpu.memory_space<vmem>>, %arg7: memref<8x1xf32, #tpu.memory_space<vmem>>, %arg8: memref<256x256xbf16, #tpu.memory_space<vmem>>, %arg9: memref<1x256xf32, #tpu.memory_space<vmem>>, %arg10: memref<256x256xbf16, #tpu.memory_space<vmem>>, %arg11: memref<1x256xf32, #tpu.memory_space<vmem>>, %arg12: memref<64x64xbf16, #tpu.memory_space<vmem>>, %arg13: memref<64x1xf32, #tpu.memory_space<vmem>>, %arg14: memref<64x64xbf16, #tpu.memory_space<vmem>>, %arg15: memref<64x1xf32, #tpu.memory_space<vmem>>, %arg16: memref<2xf32, #tpu.memory_space<smem>>, %arg17: memref<1x64x256xf32, #tpu.memory_space<vmem>>, %arg18: memref<1x64x256xf32, #tpu.memory_space<vmem>>) attributes {dimension_semantics = [#tpu.dimension_semantics<parallel>, #tpu.dimension_semantics<parallel>], iteration_bounds = array<i64: 2, 1>, scalar_prefetch = 0 : i64, scratch_operands = 0 : i64, tpu.core_type = #tpu.core_type<tc>, window_params = [{transform_indices = @transform_0, window_bounds = array<i64: 1, 64, 256>}, {transform_indices = @transform_1, window_bounds = array<i64: 1, 64, 256>}, {pipeline_mode = #tpu.pipeline_mode<synchronous>, transform_indices = @transform_2, window_bounds = array<i64: 8, 64>}, {pipeline_mode = #tpu.pipeline_mode<synchronous>, transform_indices = @transform_3, window_bounds = array<i64: 8, 1>}, {pipeline_mode = #tpu.pipeline_mode<synchronous>, transform_indices = @transform_4, window_bounds = array<i64: 8, 64>}, {pipeline_mode = #tpu.pipeline_mode<synchronous>, transform_indices = @transform_5, window_bounds = array<i64: 8, 1>}, {pipeline_mode = #tpu.pipeline_mode<synchronous>, transform_indices = @transform_6, window_bounds = array<i64: 256, 256>}, {pipeline_mode = #tpu.pipeline_mode<synchronous>, transform_indices = @transform_7, window_bounds = array<i64: 1, 256>}, {pipeline_mode = #tpu.pipeline_mode<synchronous>, transform_indices = @transform_8, window_bounds = array<i64: 256, 256>}, {pipeline_mode = #tpu.pipeline_mode<synchronous>, transform_indices = @transform_9, window_bounds = array<i64: 1, 256>}, {pipeline_mode = #tpu.pipeline_mode<synchronous>, transform_indices = @transform_10, window_bounds = array<i64: 64, 64>}, {pipeline_mode = #tpu.pipeline_mode<synchronous>, transform_indices = @transform_11, window_bounds = array<i64: 64, 1>}, {pipeline_mode = #tpu.pipeline_mode<synchronous>, transform_indices = @transform_12, window_bounds = array<i64: 64, 64>}, {pipeline_mode = #tpu.pipeline_mode<synchronous>, transform_indices = @transform_13, window_bounds = array<i64: 64, 1>}, {transform_indices = @transform_14, window_bounds = array<i64: 2>}, {transform_indices = @transform_15, window_bounds = array<i64: 1, 64, 256>}, {transform_indices = @transform_16, window_bounds = array<i64: 1, 64, 256>}]} {
    %c0 = arith.constant 0 : index
    %c0_0 = arith.constant 0 : index
    %c0_1 = arith.constant 0 : index
    %0 = vector.load %arg2[%c0, %c0_0, %c0_1] : memref<1x64x256xf32, #tpu.memory_space<vmem>>, vector<1x64x256xf32>
    %1 = vector.shape_cast %0 : vector<1x64x256xf32> to vector<64x256xf32>
    %c0_2 = arith.constant 0 : index
    %c0_3 = arith.constant 0 : index
    %c0_4 = arith.constant 0 : index
    %2 = vector.load %arg3[%c0_2, %c0_3, %c0_4] : memref<1x64x256xf32, #tpu.memory_space<vmem>>, vector<1x64x256xf32>
    %3 = vector.shape_cast %2 : vector<1x64x256xf32> to vector<64x256xf32>
    %4 = arith.truncf %1 : vector<64x256xf32> to vector<64x256xbf16>
    %5 = arith.truncf %3 : vector<64x256xf32> to vector<64x256xbf16>
    %c0_5 = arith.constant 0 : index
    %c0_6 = arith.constant 0 : index
    %6 = vector.load %arg4[%c0_5, %c0_6] : memref<8x64xbf16, #tpu.memory_space<vmem>>, vector<8x64xbf16>
    %cst = arith.constant dense<0.000000e+00> : vector<8x256xf32>
    %7 = tpu.matmul %6, %4, %cst {dimension_numbers = #tpu.dot_dimension_numbers<[1], [0], [0], [1], [0, 0, 1, 1], [], []>} : vector<8x64xbf16>, vector<64x256xbf16>, vector<8x256xf32> -> vector<8x256xf32>
    %c0_7 = arith.constant 0 : index
    %c0_8 = arith.constant 0 : index
    %8 = vector.load %arg5[%c0_7, %c0_8] : memref<8x1xf32, #tpu.memory_space<vmem>>, vector<8x1xf32>
    %9 = vector.broadcast %8 : vector<8x1xf32> to vector<8x256xf32>
    %10 = arith.addf %7, %9 : vector<8x256xf32>
    %11 = arith.truncf %10 : vector<8x256xf32> to vector<8x256xbf16>
    %c0_9 = arith.constant 0 : index
    %c0_10 = arith.constant 0 : index
    %12 = vector.load %arg6[%c0_9, %c0_10] : memref<8x64xbf16, #tpu.memory_space<vmem>>, vector<8x64xbf16>
    %cst_11 = arith.constant dense<0.000000e+00> : vector<8x256xf32>
    %13 = tpu.matmul %12, %5, %cst_11 {dimension_numbers = #tpu.dot_dimension_numbers<[1], [0], [0], [1], [0, 0, 1, 1], [], []>} : vector<8x64xbf16>, vector<64x256xbf16>, vector<8x256xf32> -> vector<8x256xf32>
    %c0_12 = arith.constant 0 : index
    %c0_13 = arith.constant 0 : index
    %14 = vector.load %arg7[%c0_12, %c0_13] : memref<8x1xf32, #tpu.memory_space<vmem>>, vector<8x1xf32>
    %15 = vector.broadcast %14 : vector<8x1xf32> to vector<8x256xf32>
    %16 = arith.addf %13, %15 : vector<8x256xf32>
    %17 = arith.truncf %16 : vector<8x256xf32> to vector<8x256xbf16>
    %c0_14 = arith.constant 0 : index
    %18 = memref.load %arg16[%c0_14] : memref<2xf32, #tpu.memory_space<smem>>
    %c1 = arith.constant 1 : index
    %19 = memref.load %arg16[%c1] : memref<2xf32, #tpu.memory_space<smem>>
    %cst_15 = arith.constant dense<0.000000e+00> : vector<256x256xf32>
    %20 = tpu.matmul %11, %17, %cst_15 {dimension_numbers = #tpu.dot_dimension_numbers<[0], [0], [1], [1], [0, 1, 1, 1], [], []>} : vector<8x256xbf16>, vector<8x256xbf16>, vector<256x256xf32> -> vector<256x256xf32>
    %21 = arith.truncf %20 : vector<256x256xf32> to vector<256x256xbf16>
    %c0_16 = arith.constant 0 : index
    %c0_17 = arith.constant 0 : index
    %22 = vector.load %arg8[%c0_16, %c0_17] : memref<256x256xbf16, #tpu.memory_space<vmem>>, vector<256x256xbf16>
    %cst_18 = arith.constant dense<0.000000e+00> : vector<256x256xf32>
    %23 = tpu.matmul %21, %22, %cst_18 {dimension_numbers = #tpu.dot_dimension_numbers<[1], [0], [0], [1], [0, 0, 1, 1], [], []>} : vector<256x256xbf16>, vector<256x256xbf16>, vector<256x256xf32> -> vector<256x256xf32>
    %c0_19 = arith.constant 0 : index
    %c0_20 = arith.constant 0 : index
    %24 = vector.load %arg9[%c0_19, %c0_20] : memref<1x256xf32, #tpu.memory_space<vmem>>, vector<1x256xf32>
    %25 = vector.broadcast %24 : vector<1x256xf32> to vector<256x256xf32>
    %26 = arith.addf %23, %25 : vector<256x256xf32>
    %cst_21 = arith.constant dense<0xFF800000> : vector<256xf32>
    %27 = vector.multi_reduction <maximumf>, %26, %cst_21 [1] : vector<256x256xf32> to vector<256xf32>
    %28 = vector.shape_cast %27 : vector<256xf32> to vector<256x1xf32>
    %29 = vector.broadcast %28 : vector<256x1xf32> to vector<256x256xf32>
    %30 = arith.subf %26, %29 : vector<256x256xf32>
    %31 = math.exp %30 : vector<256x256xf32>
    %cst_22 = arith.constant dense<0.000000e+00> : vector<256xf32>
    %32 = vector.multi_reduction <add>, %31, %cst_22 [1] : vector<256x256xf32> to vector<256xf32>
    %33 = vector.shape_cast %32 : vector<256xf32> to vector<256x1xf32>
    %34 = tpu.reciprocal %33 {approx = true} : vector<256x1xf32> -> vector<256x1xf32>
    %35 = vector.broadcast %34 : vector<256x1xf32> to vector<256x256xf32>
    %36 = arith.mulf %31, %35 : vector<256x256xf32>
    %c0_23 = arith.constant 0 : index
    %c0_24 = arith.constant 0 : index
    %37 = vector.load %arg14[%c0_23, %c0_24] : memref<64x64xbf16, #tpu.memory_space<vmem>>, vector<64x64xbf16>
    %cst_25 = arith.constant dense<0.000000e+00> : vector<64x256xf32>
    %38 = tpu.matmul %37, %5, %cst_25 {dimension_numbers = #tpu.dot_dimension_numbers<[1], [0], [0], [1], [0, 0, 1, 1], [], []>} : vector<64x64xbf16>, vector<64x256xbf16>, vector<64x256xf32> -> vector<64x256xf32>
    %c0_26 = arith.constant 0 : index
    %c0_27 = arith.constant 0 : index
    %39 = vector.load %arg15[%c0_26, %c0_27] : memref<64x1xf32, #tpu.memory_space<vmem>>, vector<64x1xf32>
    %40 = vector.broadcast %39 : vector<64x1xf32> to vector<64x256xf32>
    %41 = arith.addf %38, %40 : vector<64x256xf32>
    %42 = arith.truncf %41 : vector<64x256xf32> to vector<64x256xbf16>
    %43 = arith.truncf %36 : vector<256x256xf32> to vector<256x256xbf16>
    %cst_28 = arith.constant dense<0.000000e+00> : vector<64x256xf32>
    %44 = tpu.matmul %42, %43, %cst_28 {dimension_numbers = #tpu.dot_dimension_numbers<[1], [1], [0], [0], [0, 0, 1, 0], [], []>} : vector<64x256xbf16>, vector<256x256xbf16>, vector<64x256xf32> -> vector<64x256xf32>
    %45 = vector.broadcast %18 : f32 to vector<64x256xf32>
    %46 = arith.mulf %45, %44 : vector<64x256xf32>
    %47 = arith.addf %46, %1 : vector<64x256xf32>
    %c0_29 = arith.constant 0 : index
    %c0_30 = arith.constant 0 : index
    %c0_31 = arith.constant 0 : index
    %48 = vector.load %arg17[%c0_29, %c0_30, %c0_31] : memref<1x64x256xf32, #tpu.memory_space<vmem>>, vector<1x64x256xf32>
    %49 = vector.shape_cast %48 : vector<1x64x256xf32> to vector<64x256xf32>
    %50 = vector.shape_cast %47 : vector<64x256xf32> to vector<1x64x256xf32>
    tpu.vector_store %arg17[%c0_29, %c0_30, %c0_31], %50 {strides = array<i32>} : memref<1x64x256xf32, #tpu.memory_space<vmem>>, vector<1x64x256xf32>,
    %cst_32 = arith.constant dense<0.000000e+00> : vector<256x256xf32>
    %51 = tpu.matmul %17, %11, %cst_32 {dimension_numbers = #tpu.dot_dimension_numbers<[0], [0], [1], [1], [0, 1, 1, 1], [], []>} : vector<8x256xbf16>, vector<8x256xbf16>, vector<256x256xf32> -> vector<256x256xf32>
    %52 = arith.truncf %51 : vector<256x256xf32> to vector<256x256xbf16>
    %c0_33 = arith.constant 0 : index
    %c0_34 = arith.constant 0 : index
    %53 = vector.load %arg10[%c0_33, %c0_34] : memref<256x256xbf16, #tpu.memory_space<vmem>>, vector<256x256xbf16>
    %cst_35 = arith.constant dense<0.000000e+00> : vector<256x256xf32>
    %54 = tpu.matmul %52, %53, %cst_35 {dimension_numbers = #tpu.dot_dimension_numbers<[1], [0], [0], [1], [0, 0, 1, 1], [], []>} : vector<256x256xbf16>, vector<256x256xbf16>, vector<256x256xf32> -> vector<256x256xf32>
    %c0_36 = arith.constant 0 : index
    %c0_37 = arith.constant 0 : index
    %55 = vector.load %arg11[%c0_36, %c0_37] : memref<1x256xf32, #tpu.memory_space<vmem>>, vector<1x256xf32>
    %56 = vector.broadcast %55 : vector<1x256xf32> to vector<256x256xf32>
    %57 = arith.addf %54, %56 : vector<256x256xf32>
    %cst_38 = arith.constant dense<0xFF800000> : vector<256xf32>
    %58 = vector.multi_reduction <maximumf>, %57, %cst_38 [1] : vector<256x256xf32> to vector<256xf32>
    %59 = vector.shape_cast %58 : vector<256xf32> to vector<256x1xf32>
    %60 = vector.broadcast %59 : vector<256x1xf32> to vector<256x256xf32>
    %61 = arith.subf %57, %60 : vector<256x256xf32>
    %62 = math.exp %61 : vector<256x256xf32>
    %cst_39 = arith.constant dense<0.000000e+00> : vector<256xf32>
    %63 = vector.multi_reduction <add>, %62, %cst_39 [1] : vector<256x256xf32> to vector<256xf32>
    %64 = vector.shape_cast %63 : vector<256xf32> to vector<256x1xf32>
    %65 = tpu.reciprocal %64 {approx = true} : vector<256x1xf32> -> vector<256x1xf32>
    %66 = vector.broadcast %65 : vector<256x1xf32> to vector<256x256xf32>
    %67 = arith.mulf %62, %66 : vector<256x256xf32>
    %c0_40 = arith.constant 0 : index
    %c0_41 = arith.constant 0 : index
    %68 = vector.load %arg12[%c0_40, %c0_41] : memref<64x64xbf16, #tpu.memory_space<vmem>>, vector<64x64xbf16>
    %cst_42 = arith.constant dense<0.000000e+00> : vector<64x256xf32>
    %69 = tpu.matmul %68, %4, %cst_42 {dimension_numbers = #tpu.dot_dimension_numbers<[1], [0], [0], [1], [0, 0, 1, 1], [], []>} : vector<64x64xbf16>, vector<64x256xbf16>, vector<64x256xf32> -> vector<64x256xf32>
    %c0_43 = arith.constant 0 : index
    %c0_44 = arith.constant 0 : index
    %70 = vector.load %arg13[%c0_43, %c0_44] : memref<64x1xf32, #tpu.memory_space<vmem>>, vector<64x1xf32>
    %71 = vector.broadcast %70 : vector<64x1xf32> to vector<64x256xf32>
    %72 = arith.addf %69, %71 : vector<64x256xf32>
    %73 = arith.truncf %72 : vector<64x256xf32> to vector<64x256xbf16>
    %74 = arith.truncf %67 : vector<256x256xf32> to vector<256x256xbf16>
    %cst_45 = arith.constant dense<0.000000e+00> : vector<64x256xf32>
    %75 = tpu.matmul %73, %74, %cst_45 {dimension_numbers = #tpu.dot_dimension_numbers<[1], [1], [0], [0], [0, 0, 1, 0], [], []>} : vector<64x256xbf16>, vector<256x256xbf16>, vector<64x256xf32> -> vector<64x256xf32>
    %76 = vector.broadcast %19 : f32 to vector<64x256xf32>
    %77 = arith.mulf %76, %75 : vector<64x256xf32>
    %78 = arith.addf %77, %3 : vector<64x256xf32>
    %c0_46 = arith.constant 0 : index
    %c0_47 = arith.constant 0 : index
    %c0_48 = arith.constant 0 : index
    %79 = vector.load %arg18[%c0_46, %c0_47, %c0_48] : memref<1x64x256xf32, #tpu.memory_space<vmem>>, vector<1x64x256xf32>
    %80 = vector.shape_cast %79 : vector<1x64x256xf32> to vector<64x256xf32>
    %81 = vector.shape_cast %78 : vector<64x256xf32> to vector<1x64x256xf32>
    tpu.vector_store %arg18[%c0_46, %c0_47, %c0_48], %81 {strides = array<i32>} : memref<1x64x256xf32, #tpu.memory_space<vmem>>, vector<1x64x256xf32>,
    return
  }
  func.func @transform_0(%arg0: i32, %arg1: i32) -> (i32, i32, i32) {
    %c0_i32 = arith.constant 0 : i32
    %c0_i32_0 = arith.constant 0 : i32
    %c0_i32_1 = arith.constant 0 : i32
    return %arg0, %c0_i32, %c0_i32_0 : i32, i32, i32
  }
  func.func @transform_1(%arg0: i32, %arg1: i32) -> (i32, i32, i32) {
    %c0_i32 = arith.constant 0 : i32
    %c0_i32_0 = arith.constant 0 : i32
    %c0_i32_1 = arith.constant 0 : i32
    return %arg0, %c0_i32, %c0_i32_0 : i32, i32, i32
  }
  func.func @transform_2(%arg0: i32, %arg1: i32) -> (i32, i32) {
    %c0_i32 = arith.constant 0 : i32
    %c0_i32_0 = arith.constant 0 : i32
    %c0_i32_1 = arith.constant 0 : i32
    return %c0_i32, %c0_i32_0 : i32, i32
  }
  func.func @transform_3(%arg0: i32, %arg1: i32) -> (i32, i32) {
    %c0_i32 = arith.constant 0 : i32
    %c0_i32_0 = arith.constant 0 : i32
    %c0_i32_1 = arith.constant 0 : i32
    return %c0_i32, %c0_i32_0 : i32, i32
  }
  func.func @transform_4(%arg0: i32, %arg1: i32) -> (i32, i32) {
    %c0_i32 = arith.constant 0 : i32
    %c0_i32_0 = arith.constant 0 : i32
    %c0_i32_1 = arith.constant 0 : i32
    return %c0_i32, %c0_i32_0 : i32, i32
  }
  func.func @transform_5(%arg0: i32, %arg1: i32) -> (i32, i32) {
    %c0_i32 = arith.constant 0 : i32
    %c0_i32_0 = arith.constant 0 : i32
    %c0_i32_1 = arith.constant 0 : i32
    return %c0_i32, %c0_i32_0 : i32, i32
  }
  func.func @transform_6(%arg0: i32, %arg1: i32) -> (i32, i32) {
    %c0_i32 = arith.constant 0 : i32
    %c0_i32_0 = arith.constant 0 : i32
    %c0_i32_1 = arith.constant 0 : i32
    return %c0_i32, %c0_i32_0 : i32, i32
  }
  func.func @transform_7(%arg0: i32, %arg1: i32) -> (i32, i32) {
    %c0_i32 = arith.constant 0 : i32
    %c0_i32_0 = arith.constant 0 : i32
    %c0_i32_1 = arith.constant 0 : i32
    return %c0_i32, %c0_i32_0 : i32, i32
  }
  func.func @transform_8(%arg0: i32, %arg1: i32) -> (i32, i32) {
    %c0_i32 = arith.constant 0 : i32
    %c0_i32_0 = arith.constant 0 : i32
    %c0_i32_1 = arith.constant 0 : i32
    return %c0_i32, %c0_i32_0 : i32, i32
  }
  func.func @transform_9(%arg0: i32, %arg1: i32) -> (i32, i32) {
    %c0_i32 = arith.constant 0 : i32
    %c0_i32_0 = arith.constant 0 : i32
    %c0_i32_1 = arith.constant 0 : i32
    return %c0_i32, %c0_i32_0 : i32, i32
  }
  func.func @transform_10(%arg0: i32, %arg1: i32) -> (i32, i32) {
    %c0_i32 = arith.constant 0 : i32
    %c0_i32_0 = arith.constant 0 : i32
    %c0_i32_1 = arith.constant 0 : i32
    return %c0_i32, %c0_i32_0 : i32, i32
  }
  func.func @transform_11(%arg0: i32, %arg1: i32) -> (i32, i32) {
    %c0_i32 = arith.constant 0 : i32
    %c0_i32_0 = arith.constant 0 : i32
    %c0_i32_1 = arith.constant 0 : i32
    return %c0_i32, %c0_i32_0 : i32, i32
  }
  func.func @transform_12(%arg0: i32, %arg1: i32) -> (i32, i32) {
    %c0_i32 = arith.constant 0 : i32
    %c0_i32_0 = arith.constant 0 : i32
    %c0_i32_1 = arith.constant 0 : i32
    return %c0_i32, %c0_i32_0 : i32, i32
  }
  func.func @transform_13(%arg0: i32, %arg1: i32) -> (i32, i32) {
    %c0_i32 = arith.constant 0 : i32
    %c0_i32_0 = arith.constant 0 : i32
    %c0_i32_1 = arith.constant 0 : i32
    return %c0_i32, %c0_i32_0 : i32, i32
  }
  func.func @transform_14(%arg0: i32, %arg1: i32) -> i32 {
    %c0_i32 = arith.constant 0 : i32
    %c0_i32_0 = arith.constant 0 : i32
    return %c0_i32 : i32
  }
  func.func @transform_15(%arg0: i32, %arg1: i32) -> (i32, i32, i32) {
    %c0_i32 = arith.constant 0 : i32
    %c0_i32_0 = arith.constant 0 : i32
    return %arg0, %c0_i32, %arg1 : i32, i32, i32
  }
  func.func @transform_16(%arg0: i32, %arg1: i32) -> (i32, i32, i32) {
    %c0_i32 = arith.constant 0 : i32
    %c0_i32_0 = arith.constant 0 : i32
    return %arg0, %c0_i32, %arg1 : i32, i32, i32
  }
}

module attributes {stable_mosaic.version = 11 : i64} {
  func.func @dual_cma_kernel(%arg0: i32, %arg1: i32, %arg2: memref<1x64x256xf32, #tpu.memory_space<vmem>>, %arg3: memref<1x64x256xf32, #tpu.memory_space<vmem>>, %arg4: memref<8x64xbf16, #tpu.memory_space<vmem>>, %arg5: memref<8x1xf32, #tpu.memory_space<vmem>>, %arg6: memref<8x64xbf16, #tpu.memory_space<vmem>>, %arg7: memref<8x1xf32, #tpu.memory_space<vmem>>, %arg8: memref<256x256xbf16, #tpu.memory_space<vmem>>, %arg9: memref<1x256xf32, #tpu.memory_space<vmem>>, %arg10: memref<256x256xbf16, #tpu.memory_space<vmem>>, %arg11: memref<1x256xf32, #tpu.memory_space<vmem>>, %arg12: memref<64x64xbf16, #tpu.memory_space<vmem>>, %arg13: memref<64x1xf32, #tpu.memory_space<vmem>>, %arg14: memref<64x64xbf16, #tpu.memory_space<vmem>>, %arg15: memref<64x1xf32, #tpu.memory_space<vmem>>, %arg16: memref<2xf32, #tpu.memory_space<smem>>, %arg17: memref<1x64x256xf32, #tpu.memory_space<vmem>>, %arg18: memref<1x64x256xf32, #tpu.memory_space<vmem>>) attributes {dimension_semantics = [#tpu.dimension_semantics<parallel>, #tpu.dimension_semantics<parallel>], iteration_bounds = array<i64: 2, 1>, scalar_prefetch = 0 : i64, scratch_operands = 0 : i64, tpu.core_type = #tpu.core_type<tc>, window_params = [{transform_indices = @transform_0, window_bounds = array<i64: 1, 64, 256>}, {transform_indices = @transform_1, window_bounds = array<i64: 1, 64, 256>}, {pipeline_mode = #tpu.pipeline_mode<synchronous>, transform_indices = @transform_2, window_bounds = array<i64: 8, 64>}, {pipeline_mode = #tpu.pipeline_mode<synchronous>, transform_indices = @transform_3, window_bounds = array<i64: 8, 1>}, {pipeline_mode = #tpu.pipeline_mode<synchronous>, transform_indices = @transform_4, window_bounds = array<i64: 8, 64>}, {pipeline_mode = #tpu.pipeline_mode<synchronous>, transform_indices = @transform_5, window_bounds = array<i64: 8, 1>}, {pipeline_mode = #tpu.pipeline_mode<synchronous>, transform_indices = @transform_6, window_bounds = array<i64: 256, 256>}, {pipeline_mode = #tpu.pipeline_mode<synchronous>, transform_indices = @transform_7, window_bounds = array<i64: 1, 256>}, {pipeline_mode = #tpu.pipeline_mode<synchronous>, transform_indices = @transform_8, window_bounds = array<i64: 256, 256>}, {pipeline_mode = #tpu.pipeline_mode<synchronous>, transform_indices = @transform_9, window_bounds = array<i64: 1, 256>}, {pipeline_mode = #tpu.pipeline_mode<synchronous>, transform_indices = @transform_10, window_bounds = array<i64: 64, 64>}, {pipeline_mode = #tpu.pipeline_mode<synchronous>, transform_indices = @transform_11, window_bounds = array<i64: 64, 1>}, {pipeline_mode = #tpu.pipeline_mode<synchronous>, transform_indices = @transform_12, window_bounds = array<i64: 64, 64>}, {pipeline_mode = #tpu.pipeline_mode<synchronous>, transform_indices = @transform_13, window_bounds = array<i64: 64, 1>}, {transform_indices = @transform_14, window_bounds = array<i64: 2>}, {transform_indices = @transform_15, window_bounds = array<i64: 1, 64, 256>}, {transform_indices = @transform_16, window_bounds = array<i64: 1, 64, 256>}]} {
    %c0 = arith.constant 0 : index
    %c0_0 = arith.constant 0 : index
    %c0_1 = arith.constant 0 : index
    %0 = vector.load %arg2[%c0, %c0_0, %c0_1] : memref<1x64x256xf32, #tpu.memory_space<vmem>>, vector<1x64x256xf32>
    %1 = vector.shape_cast %0 : vector<1x64x256xf32> to vector<64x256xf32>
    %c0_2 = arith.constant 0 : index
    %c0_3 = arith.constant 0 : index
    %c0_4 = arith.constant 0 : index
    %2 = vector.load %arg3[%c0_2, %c0_3, %c0_4] : memref<1x64x256xf32, #tpu.memory_space<vmem>>, vector<1x64x256xf32>
    %3 = vector.shape_cast %2 : vector<1x64x256xf32> to vector<64x256xf32>
    %4 = arith.truncf %1 : vector<64x256xf32> to vector<64x256xbf16>
    %5 = arith.truncf %3 : vector<64x256xf32> to vector<64x256xbf16>
    %c0_5 = arith.constant 0 : index
    %c0_6 = arith.constant 0 : index
    %6 = vector.load %arg4[%c0_5, %c0_6] : memref<8x64xbf16, #tpu.memory_space<vmem>>, vector<8x64xbf16>
    %cst = arith.constant dense<0.000000e+00> : vector<8x256xf32>
    %7 = tpu.matmul %6, %4, %cst {dimension_numbers = #tpu.dot_dimension_numbers<[1], [0], [0], [1], [0, 0, 1, 1], [], []>} : vector<8x64xbf16>, vector<64x256xbf16>, vector<8x256xf32> -> vector<8x256xf32>
    %c0_7 = arith.constant 0 : index
    %c0_8 = arith.constant 0 : index
    %8 = vector.load %arg5[%c0_7, %c0_8] : memref<8x1xf32, #tpu.memory_space<vmem>>, vector<8x1xf32>
    %9 = vector.broadcast %8 : vector<8x1xf32> to vector<8x256xf32>
    %10 = arith.addf %7, %9 : vector<8x256xf32>
    %11 = arith.truncf %10 : vector<8x256xf32> to vector<8x256xbf16>
    %c0_9 = arith.constant 0 : index
    %c0_10 = arith.constant 0 : index
    %12 = vector.load %arg6[%c0_9, %c0_10] : memref<8x64xbf16, #tpu.memory_space<vmem>>, vector<8x64xbf16>
    %cst_11 = arith.constant dense<0.000000e+00> : vector<8x256xf32>
    %13 = tpu.matmul %12, %5, %cst_11 {dimension_numbers = #tpu.dot_dimension_numbers<[1], [0], [0], [1], [0, 0, 1, 1], [], []>} : vector<8x64xbf16>, vector<64x256xbf16>, vector<8x256xf32> -> vector<8x256xf32>
    %c0_12 = arith.constant 0 : index
    %c0_13 = arith.constant 0 : index
    %14 = vector.load %arg7[%c0_12, %c0_13] : memref<8x1xf32, #tpu.memory_space<vmem>>, vector<8x1xf32>
    %15 = vector.broadcast %14 : vector<8x1xf32> to vector<8x256xf32>
    %16 = arith.addf %13, %15 : vector<8x256xf32>
    %17 = arith.truncf %16 : vector<8x256xf32> to vector<8x256xbf16>
    %c0_14 = arith.constant 0 : index
    %18 = memref.load %arg16[%c0_14] : memref<2xf32, #tpu.memory_space<smem>>
    %c1 = arith.constant 1 : index
    %19 = memref.load %arg16[%c1] : memref<2xf32, #tpu.memory_space<smem>>
    %cst_15 = arith.constant dense<0.000000e+00> : vector<256x256xf32>
    %20 = tpu.matmul %11, %17, %cst_15 {dimension_numbers = #tpu.dot_dimension_numbers<[0], [0], [1], [1], [0, 1, 1, 1], [], []>} : vector<8x256xbf16>, vector<8x256xbf16>, vector<256x256xf32> -> vector<256x256xf32>
    %21 = arith.truncf %20 : vector<256x256xf32> to vector<256x256xbf16>
    %c0_16 = arith.constant 0 : index
    %c0_17 = arith.constant 0 : index
    %22 = vector.load %arg8[%c0_16, %c0_17] : memref<256x256xbf16, #tpu.memory_space<vmem>>, vector<256x256xbf16>
    %cst_18 = arith.constant dense<0.000000e+00> : vector<256x256xf32>
    %23 = tpu.matmul %21, %22, %cst_18 {dimension_numbers = #tpu.dot_dimension_numbers<[1], [0], [0], [1], [0, 0, 1, 1], [], []>} : vector<256x256xbf16>, vector<256x256xbf16>, vector<256x256xf32> -> vector<256x256xf32>
    %c0_19 = arith.constant 0 : index
    %c0_20 = arith.constant 0 : index
    %24 = vector.load %arg9[%c0_19, %c0_20] : memref<1x256xf32, #tpu.memory_space<vmem>>, vector<1x256xf32>
    %25 = vector.broadcast %24 : vector<1x256xf32> to vector<256x256xf32>
    %26 = arith.addf %23, %25 : vector<256x256xf32>
    %cst_21 = arith.constant dense<0xFF800000> : vector<256xf32>
    %27 = vector.multi_reduction <maximumf>, %26, %cst_21 [1] : vector<256x256xf32> to vector<256xf32>
    %28 = vector.shape_cast %27 : vector<256xf32> to vector<256x1xf32>
    %29 = vector.broadcast %28 : vector<256x1xf32> to vector<256x256xf32>
    %30 = arith.subf %26, %29 : vector<256x256xf32>
    %31 = math.exp %30 : vector<256x256xf32>
    %cst_22 = arith.constant dense<0.000000e+00> : vector<256xf32>
    %32 = vector.multi_reduction <add>, %31, %cst_22 [1] : vector<256x256xf32> to vector<256xf32>
    %33 = vector.shape_cast %32 : vector<256xf32> to vector<256x1xf32>
    %34 = tpu.reciprocal %33 {approx = true} : vector<256x1xf32> -> vector<256x1xf32>
    %35 = vector.broadcast %34 : vector<256x1xf32> to vector<256x256xf32>
    %36 = arith.mulf %31, %35 : vector<256x256xf32>
    %c0_23 = arith.constant 0 : index
    %c0_24 = arith.constant 0 : index
    %37 = vector.load %arg14[%c0_23, %c0_24] : memref<64x64xbf16, #tpu.memory_space<vmem>>, vector<64x64xbf16>
    %cst_25 = arith.constant dense<0.000000e+00> : vector<64x256xf32>
    %38 = tpu.matmul %37, %5, %cst_25 {dimension_numbers = #tpu.dot_dimension_numbers<[1], [0], [0], [1], [0, 0, 1, 1], [], []>} : vector<64x64xbf16>, vector<64x256xbf16>, vector<64x256xf32> -> vector<64x256xf32>
    %c0_26 = arith.constant 0 : index
    %c0_27 = arith.constant 0 : index
    %39 = vector.load %arg15[%c0_26, %c0_27] : memref<64x1xf32, #tpu.memory_space<vmem>>, vector<64x1xf32>
    %40 = vector.broadcast %39 : vector<64x1xf32> to vector<64x256xf32>
    %41 = arith.addf %38, %40 : vector<64x256xf32>
    %42 = arith.truncf %41 : vector<64x256xf32> to vector<64x256xbf16>
    %43 = arith.truncf %36 : vector<256x256xf32> to vector<256x256xbf16>
    %cst_28 = arith.constant dense<0.000000e+00> : vector<64x256xf32>
    %44 = tpu.matmul %42, %43, %cst_28 {dimension_numbers = #tpu.dot_dimension_numbers<[1], [1], [0], [0], [0, 0, 1, 0], [], []>} : vector<64x256xbf16>, vector<256x256xbf16>, vector<64x256xf32> -> vector<64x256xf32>
    %45 = vector.broadcast %18 : f32 to vector<64x256xf32>
    %46 = arith.mulf %45, %44 : vector<64x256xf32>
    %47 = arith.addf %46, %1 : vector<64x256xf32>
    %c0_29 = arith.constant 0 : index
    %c0_30 = arith.constant 0 : index
    %c0_31 = arith.constant 0 : index
    %48 = vector.load %arg17[%c0_29, %c0_30, %c0_31] : memref<1x64x256xf32, #tpu.memory_space<vmem>>, vector<1x64x256xf32>
    %49 = vector.shape_cast %48 : vector<1x64x256xf32> to vector<64x256xf32>
    %50 = vector.shape_cast %47 : vector<64x256xf32> to vector<1x64x256xf32>
    tpu.vector_store %arg17[%c0_29, %c0_30, %c0_31], %50 {strides = array<i32>} : memref<1x64x256xf32, #tpu.memory_space<vmem>>, vector<1x64x256xf32>,
    %cst_32 = arith.constant dense<0.000000e+00> : vector<256x256xf32>
    %51 = tpu.matmul %17, %11, %cst_32 {dimension_numbers = #tpu.dot_dimension_numbers<[0], [0], [1], [1], [0, 1, 1, 1], [], []>} : vector<8x256xbf16>, vector<8x256xbf16>, vector<256x256xf32> -> vector<256x256xf32>
    %52 = arith.truncf %51 : vector<256x256xf32> to vector<256x256xbf16>
    %c0_33 = arith.constant 0 : index
    %c0_34 = arith.constant 0 : index
    %53 = vector.load %arg10[%c0_33, %c0_34] : memref<256x256xbf16, #tpu.memory_space<vmem>>, vector<256x256xbf16>
    %cst_35 = arith.constant dense<0.000000e+00> : vector<256x256xf32>
    %54 = tpu.matmul %52, %53, %cst_35 {dimension_numbers = #tpu.dot_dimension_numbers<[1], [0], [0], [1], [0, 0, 1, 1], [], []>} : vector<256x256xbf16>, vector<256x256xbf16>, vector<256x256xf32> -> vector<256x256xf32>
    %c0_36 = arith.constant 0 : index
    %c0_37 = arith.constant 0 : index
    %55 = vector.load %arg11[%c0_36, %c0_37] : memref<1x256xf32, #tpu.memory_space<vmem>>, vector<1x256xf32>
    %56 = vector.broadcast %55 : vector<1x256xf32> to vector<256x256xf32>
    %57 = arith.addf %54, %56 : vector<256x256xf32>
    %cst_38 = arith.constant dense<0xFF800000> : vector<256xf32>
    %58 = vector.multi_reduction <maximumf>, %57, %cst_38 [1] : vector<256x256xf32> to vector<256xf32>
    %59 = vector.shape_cast %58 : vector<256xf32> to vector<256x1xf32>
    %60 = vector.broadcast %59 : vector<256x1xf32> to vector<256x256xf32>
    %61 = arith.subf %57, %60 : vector<256x256xf32>
    %62 = math.exp %61 : vector<256x256xf32>
    %cst_39 = arith.constant dense<0.000000e+00> : vector<256xf32>
    %63 = vector.multi_reduction <add>, %62, %cst_39 [1] : vector<256x256xf32> to vector<256xf32>
    %64 = vector.shape_cast %63 : vector<256xf32> to vector<256x1xf32>
    %65 = tpu.reciprocal %64 {approx = true} : vector<256x1xf32> -> vector<256x1xf32>
    %66 = vector.broadcast %65 : vector<256x1xf32> to vector<256x256xf32>
    %67 = arith.mulf %62, %66 : vector<256x256xf32>
    %c0_40 = arith.constant 0 : index
    %c0_41 = arith.constant 0 : index
    %68 = vector.load %arg12[%c0_40, %c0_41] : memref<64x64xbf16, #tpu.memory_space<vmem>>, vector<64x64xbf16>
    %cst_42 = arith.constant dense<0.000000e+00> : vector<64x256xf32>
    %69 = tpu.matmul %68, %4, %cst_42 {dimension_numbers = #tpu.dot_dimension_numbers<[1], [0], [0], [1], [0, 0, 1, 1], [], []>} : vector<64x64xbf16>, vector<64x256xbf16>, vector<64x256xf32> -> vector<64x256xf32>
    %c0_43 = arith.constant 0 : index
    %c0_44 = arith.constant 0 : index
    %70 = vector.load %arg13[%c0_43, %c0_44] : memref<64x1xf32, #tpu.memory_space<vmem>>, vector<64x1xf32>
    %71 = vector.broadcast %70 : vector<64x1xf32> to vector<64x256xf32>
    %72 = arith.addf %69, %71 : vector<64x256xf32>
    %73 = arith.truncf %72 : vector<64x256xf32> to vector<64x256xbf16>
    %74 = arith.truncf %67 : vector<256x256xf32> to vector<256x256xbf16>
    %cst_45 = arith.constant dense<0.000000e+00> : vector<64x256xf32>
    %75 = tpu.matmul %73, %74, %cst_45 {dimension_numbers = #tpu.dot_dimension_numbers<[1], [1], [0], [0], [0, 0, 1, 0], [], []>} : vector<64x256xbf16>, vector<256x256xbf16>, vector<64x256xf32> -> vector<64x256xf32>
    %76 = vector.broadcast %19 : f32 to vector<64x256xf32>
    %77 = arith.mulf %76, %75 : vector<64x256xf32>
    %78 = arith.addf %77, %3 : vector<64x256xf32>
    %c0_46 = arith.constant 0 : index
    %c0_47 = arith.constant 0 : index
    %c0_48 = arith.constant 0 : index
    %79 = vector.load %arg18[%c0_46, %c0_47, %c0_48] : memref<1x64x256xf32, #tpu.memory_space<vmem>>, vector<1x64x256xf32>
    %80 = vector.shape_cast %79 : vector<1x64x256xf32> to vector<64x256xf32>
    %81 = vector.shape_cast %78 : vector<64x256xf32> to vector<1x64x256xf32>
    tpu.vector_store %arg18[%c0_46, %c0_47, %c0_48], %81 {strides = array<i32>} : memref<1x64x256xf32, #tpu.memory_space<vmem>>, vector<1x64x256xf32>,
    return
  }
  func.func @transform_0(%arg0: i32, %arg1: i32) -> (i32, i32, i32) {
    %c0_i32 = arith.constant 0 : i32
    %c0_i32_0 = arith.constant 0 : i32
    %c0_i32_1 = arith.constant 0 : i32
    return %arg0, %c0_i32, %c0_i32_0 : i32, i32, i32
  }
  func.func @transform_1(%arg0: i32, %arg1: i32) -> (i32, i32, i32) {
    %c0_i32 = arith.constant 0 : i32
    %c0_i32_0 = arith.constant 0 : i32
    %c0_i32_1 = arith.constant 0 : i32
    return %arg0, %c0_i32, %c0_i32_0 : i32, i32, i32
  }
  func.func @transform_2(%arg0: i32, %arg1: i32) -> (i32, i32) {
    %c0_i32 = arith.constant 0 : i32
    %c0_i32_0 = arith.constant 0 : i32
    %c0_i32_1 = arith.constant 0 : i32
    return %c0_i32, %c0_i32_0 : i32, i32
  }
  func.func @transform_3(%arg0: i32, %arg1: i32) -> (i32, i32) {
    %c0_i32 = arith.constant 0 : i32
    %c0_i32_0 = arith.constant 0 : i32
    %c0_i32_1 = arith.constant 0 : i32
    return %c0_i32, %c0_i32_0 : i32, i32
  }
  func.func @transform_4(%arg0: i32, %arg1: i32) -> (i32, i32) {
    %c0_i32 = arith.constant 0 : i32
    %c0_i32_0 = arith.constant 0 : i32
    %c0_i32_1 = arith.constant 0 : i32
    return %c0_i32, %c0_i32_0 : i32, i32
  }
  func.func @transform_5(%arg0: i32, %arg1: i32) -> (i32, i32) {
    %c0_i32 = arith.constant 0 : i32
    %c0_i32_0 = arith.constant 0 : i32
    %c0_i32_1 = arith.constant 0 : i32
    return %c0_i32, %c0_i32_0 : i32, i32
  }
  func.func @transform_6(%arg0: i32, %arg1: i32) -> (i32, i32) {
    %c0_i32 = arith.constant 0 : i32
    %c0_i32_0 = arith.constant 0 : i32
    %c0_i32_1 = arith.constant 0 : i32
    return %c0_i32, %c0_i32_0 : i32, i32
  }
  func.func @transform_7(%arg0: i32, %arg1: i32) -> (i32, i32) {
    %c0_i32 = arith.constant 0 : i32
    %c0_i32_0 = arith.constant 0 : i32
    %c0_i32_1 = arith.constant 0 : i32
    return %c0_i32, %c0_i32_0 : i32, i32
  }
  func.func @transform_8(%arg0: i32, %arg1: i32) -> (i32, i32) {
    %c0_i32 = arith.constant 0 : i32
    %c0_i32_0 = arith.constant 0 : i32
    %c0_i32_1 = arith.constant 0 : i32
    return %c0_i32, %c0_i32_0 : i32, i32
  }
  func.func @transform_9(%arg0: i32, %arg1: i32) -> (i32, i32) {
    %c0_i32 = arith.constant 0 : i32
    %c0_i32_0 = arith.constant 0 : i32
    %c0_i32_1 = arith.constant 0 : i32
    return %c0_i32, %c0_i32_0 : i32, i32
  }
  func.func @transform_10(%arg0: i32, %arg1: i32) -> (i32, i32) {
    %c0_i32 = arith.constant 0 : i32
    %c0_i32_0 = arith.constant 0 : i32
    %c0_i32_1 = arith.constant 0 : i32
    return %c0_i32, %c0_i32_0 : i32, i32
  }
  func.func @transform_11(%arg0: i32, %arg1: i32) -> (i32, i32) {
    %c0_i32 = arith.constant 0 : i32
    %c0_i32_0 = arith.constant 0 : i32
    %c0_i32_1 = arith.constant 0 : i32
    return %c0_i32, %c0_i32_0 : i32, i32
  }
  func.func @transform_12(%arg0: i32, %arg1: i32) -> (i32, i32) {
    %c0_i32 = arith.constant 0 : i32
    %c0_i32_0 = arith.constant 0 : i32
    %c0_i32_1 = arith.constant 0 : i32
    return %c0_i32, %c0_i32_0 : i32, i32
  }
  func.func @transform_13(%arg0: i32, %arg1: i32) -> (i32, i32) {
    %c0_i32 = arith.constant 0 : i32
    %c0_i32_0 = arith.constant 0 : i32
    %c0_i32_1 = arith.constant 0 : i32
    return %c0_i32, %c0_i32_0 : i32, i32
  }
  func.func @transform_14(%arg0: i32, %arg1: i32) -> i32 {
    %c0_i32 = arith.constant 0 : i32
    %c0_i32_0 = arith.constant 0 : i32
    return %c0_i32 : i32
  }
  func.func @transform_15(%arg0: i32, %arg1: i32) -> (i32, i32, i32) {
    %c0_i32 = arith.constant 0 : i32
    %c0_i32_0 = arith.constant 0 : i32
    return %arg0, %c0_i32, %arg1 : i32, i32, i32
  }
  func.func @transform_16(%arg0: i32, %arg1: i32) -> (i32, i32, i32) {
    %c0_i32 = arith.constant 0 : i32
    %c0_i32_0 = arith.constant 0 : i32
    return %arg0, %c0_i32, %arg1 : i32, i32, i32
  }
}

</mosaic_0001>

<bundles_post_ra>
// kernel: tpu_custom_call.1
= control target key start
LH: loop header
LB: loop body
LE: loop exit
PB: predicated region body
PF: predicated region fallthrough
CT: control target
= control target key end

     0   :  { %s8463_s0 = inlined_call_operand.hbm [shape: f32[2,64,256], index: 0, kind: input, shape index: {}]   ;;  %s8464_s1 = inlined_call_operand.hbm [shape: f32[2,64,256], index: 1, kind: input, shape index: {}]   ;;  %s8465_s2 = inlined_call_operand.vmem [shape: bf16[8,64], index: 2, kind: input, shape index: {}]   ;;  %s8466_s3 = inlined_call_operand.vmem [shape: f32[8,1], index: 3, kind: input, shape index: {}]   ;;  %s8467_s4 = inlined_call_operand.vmem [shape: bf16[8,64], index: 4, kind: input, shape index: {}]   ;;  %s8468_s5 = inlined_call_operand.vmem [shape: f32[8,1], index: 5, kind: input, shape index: {}]   ;;  %s8469_s6 = inlined_call_operand.hbm [shape: bf16[256,256], index: 6, kind: input, shape index: {}]   ;;  %s8470_s7 = inlined_call_operand.vmem [shape: f32[1,256], index: 7, kind: input, shape index: {}]   ;;  %s8471_s8 = inlined_call_operand.hbm [shape: bf16[256,256], index: 8, kind: input, shape index: {}]   ;;  %s8472_s9 = inlined_call_operand.vmem [shape: f32[1,256], index: 9, kind: input, shape index: {}]   ;;  %s8473_s10 = inlined_call_operand.vmem [shape: bf16[64,64], index: 10, kind: input, shape index: {}]   ;;  %s8474_s11 = inlined_call_operand.vmem [shape: f32[64,1], index: 11, kind: input, shape index: {}]   ;;  %s8475_s12 = inlined_call_operand.vmem [shape: bf16[64,64], index: 12, kind: input, shape index: {}]   ;;  %s8476_s13 = inlined_call_operand.vmem [shape: f32[64,1], index: 13, kind: input, shape index: {}]   ;;  %s8477_s14 = inlined_call_operand.vmem [shape: f32[2], index: 14, kind: input, shape index: {}]   ;;  %s8478_s15 = inlined_call_operand.hbm [shape: f32[2,64,256], index: 15, kind: output, shape index: {0}]   ;;  %s8479_s16 = inlined_call_operand.hbm [shape: f32[2,64,256], index: 16, kind: output, shape index: {1}]  }
   0x1   :  { %8568 = sst [smem:[#allocation74_spill]] %s8463_s0 }
   0x2   :  { %8569 = sst [smem:[#allocation75_spill]] %s8464_s1 }
   0x3   :  { %8570 = sst [smem:[#allocation76_spill]] %s8469_s6 }
   0x4   :  { %8571 = sst [smem:[#allocation77_spill]] %s8471_s8 }
   0x5   :  { %8572 = sst [smem:[#allocation78_spill]] %s8472_s9 }
   0x6   :  { %8573 = sst [smem:[#allocation79_spill]] %s8473_s10 }
   0x7   :  { %8574 = sst [smem:[#allocation80_spill]] %s8474_s11 }
   0x8   :  { %8575 = sst [smem:[#allocation81_spill]] %s8477_s14 }
   0x9   :  { %8576 = sst [smem:[#allocation82_spill]] %s8478_s15 }
   0xa   :  { %8577 = sst [smem:[#allocation83_spill]] %s8479_s16 }
   0xb   :  { %22 = vsyncpa [#allocation3], 0 }
   0xc   :  { %24 = vsyncpa [#allocation3 + $0x1], 0 }
   0xd   :  { %25 = vsyncpa [#allocation7], 0 }
   0xe   :  { %27 = vsyncpa [#allocation7 + $0x1], 0 }
   0xf   :  { %28 = vsyncpa [#allocation10], 0 }
  0x10   :  { %29 = vsyncpa [#allocation5], 0 }
  0x11   :  { %30 = vsyncpa [#allocation4], 0 }
  0x12   :  { %32 = vsyncpa [#allocation4 + $0x1], 0 }
  0x13   :  { %33 = vsyncpa [#allocation14], 0 }
  0x14   :  { %35 = vsyncpa [#allocation14 + $0x1], 0  ;;  %s5721_s21 = smov 0   ;;  %s5723_s22 = smov 0  }
  0x15   :  { %s5725_s23 = smov 0   ;;  %s5727_s24 = smov 0  }
  0x16   :  { %s5729_s25 = smov 0   ;;  %s5731_s26 = smov 0  }
  0x17 LB: > { %8578 = sst [smem:[#allocation22_spill]] %s5604_s21  ;;  %s5752_s27 = sadd.s32 4294967295, %s5624_s26   ;;  %s5624_s26 = sphi %s5731_s26, %s41_s26   ;;  %s5620_s25 = sphi %s5729_s25, %s8790_s25   ;;  %s5616_s24 = sphi %s5727_s24, %s8789_s24   ;;  %s5612_s23 = sphi %s5725_s23, %s8793_s23   ;;  %s5608_s22 = sphi %s5723_s22, %s8792_s22   ;;  %s5604_s21 = sphi %s5721_s21, %s8791_s21  }
  0x18   : > { %8579 = sst [smem:[#allocation23_spill]] %s5612_s23  ;;  %s4353_s28 = sadd.s32 4294967294, %s5624_s26  }
  0x19   : > { %8580 = sst [smem:[#allocation24_spill]] %s5616_s24  ;;  %p73_p0 = scmp.ne.s32.totalorder %s5608_s22, %s5604_s21 }
  0x1a   : > { %8581 = sst [smem:[#allocation25_spill]] %s5620_s25  ;;  %p74_p1 = scmp.eq.s32.totalorder %s5752_s27, 0 }
  0x1b   : > { %p398_p2 = scmp.eq.s32.totalorder %s5752_s27, 1  ;;  %p404_p3 = scmp.eq.s32.totalorder %s4353_s28, 1 }
  0x1c   : > { %p5761_p4 = por %p74_p1, %p73_p0  ;;  %p4354_p5 = scmp.ge.s32.totalorder %s5624_s26, 1 }
  0x1d   : > { %p5766_p6 = por %p404_p3, %p73_p0  ;;  %p439_p7 = scmp.lt.s32.totalorder %s5624_s26, 3 }
  0x1e   : > { %s8585_s6 = sld [smem:[#allocation76_spill]]  ;;  %s5626_s20 = smov [#allocation8]  }
  0x1f   : > { %s8583_s30 = scalar_select %p5766_p6, 1, 0 }
  0x20   : > { %p5774_p8 = pnand %p4354_p5, %p439_p7  ;;  %s464_s28 = sshll.u32 %s5626_s20, 4  ;;  %s465_s28 = int_to_ptr.vmem [resolvable:$true] %s464_s28 }
  0x21   : > { %8584 = sst [smem:[#allocation26_spill]] %s8583_s30  ;;  %p4358_p11 = scmp.ge.s32.totalorder %s5624_s26, 2 }
  0x22   : > { %p4850_p9 = pneg %p5774_p8  ;;  %s8588_s8 = sld [smem:[#allocation77_spill]] }
  0x23   : > { %s5627_s20 = smov 128   ;;  %s5628_s21 = smov 8  }
  0x24   : > { %s462_s18 = sshll.u32 %s8585_s6, 4  ;;  %p5782_p10 = pnand %p4850_p9, %p74_p1  ;;  %s463_s18 = int_to_ptr.hbm [resolvable:$true] %s462_s18 }
  0x25   : > { %s5629_s16 = smov [#allocation9]   ;;  %s8589_s14 = sld [smem:[#allocation81_spill]] }
  0x26   : > { %4853 = dma.hbm_to_vmem [thread:$0]  (!%p5782_p10), %s463_s18, 4096, %s465_s28, [#allocation7], %s5627_s20, %s5627_s20, %s5628_s21  }
  0x27   : > { %s481_s15 = sshll.u32 %s5629_s16, 4  ;;  %s5630_s0 = smov [#allocation11]   ;;  %s482_s15 = int_to_ptr.vmem [resolvable:$true] %s481_s15 }
  0x28   : > { %s479_s6 = sshll.u32 %s8588_s8, 4  ;;  %s60_s17 = sadd.s32 1, %s5612_s23  ;;  %s480_s6 = int_to_ptr.hbm [resolvable:$true] %s479_s6 }
  0x29   : > { %4856 = dma.hbm_to_vmem [thread:$0]  (!%p5782_p10), %s480_s6, 4096, %s482_s15, [#allocation10], %s5627_s20, %s5627_s20, %s5628_s21  }
  0x2a   : > { %s53_s8 = sadd.s32 1, %s5620_s25  ;;  %p67_p12 = scmp.ne.s32.totalorder %s5612_s23, %s5608_s22 }
  0x2b   : > { %s509_s10 = sshll.u32 %s8589_s14, 4  ;;  %p55_p13 = scmp.ge.s32.totalorder %s53_s8, 2  ;;  %s510_s10 = int_to_ptr.vmem [resolvable:$true] %s509_s10 }
  0x2c   : > { %4859 = dma.vmem_to_smem (!%p5782_p10), %s510_s10, 16, %s5630_s0, [#allocation5]  }
  0x2d   : > { %p68_p0 = scmp.eq.s32.totalorder %s5624_s26, 0  ;;  %p5806_p3 = por %p398_p2, %p67_p12 }
  0x2e   : > { %p4877_p5 = scmp.lt.s32.totalorder %s5624_s26, 2  ;;  %s8795_s8 = smov (%p55_p13, %s53_s8), 0 }
  0x2f   : > { %s8590_s11 = scalar_select %p5806_p3, 1, 0 }
  0x30   : > { %8592 = sst [smem:[#allocation28_spill]] %s8795_s8  ;;  %p5813_p7 = por %p68_p0, %p67_p12 }
  0x31   : > { %8591 = sst [smem:[#allocation27_spill]] %s8590_s11  ;;  %s520_s10 = sand.u32 1, %s5612_s23  }
  0x32   : > { %s57_s15 = ssub.s32 %s5620_s25, %s8795_s8  ;;  %s4359_s16 = sshll.u32 %s520_s10, 7 }
  0x33   : > { %p58_p9 = scmp.eq.s32.totalorder %s57_s15, 0  ;;  %s4754_s21 = sshll.u32 %s5620_s25, 7 }
  0x34   : > { %s8595_s28 = sld [smem:[#allocation74_spill]]  ;;  %s524_s0 = scalar_lea.vmem [#allocation2], %s4359_s16 }
  0x35   : > { %s5822_s24 = scalar_select %p58_p9, %s5612_s23, %s60_s17  }
  0x36   : > { %s532_s14 = sshll.u32 %s524_s0, 4  ;;  %p4861_p2 = pnand %p4877_p5, %p5813_p7  ;;  %s533_s14 = int_to_ptr.vmem [resolvable:$true] %s532_s14 }
  0x37   : > { %8594 = sst [smem:[#allocation29_spill]] %s5822_s24  ;;  %s521_s9 = scalar_lea.sflag [#allocation3], %s520_s10 }
  0x38   : > { %s5631_s8 = smov 256   ;;  %s5632_s15 = smov 16  }
  0x39   : > { %s8596_s1 = sld [smem:[#allocation75_spill]]  ;;  %s546_s23 = scalar_lea.vmem [#allocation6], %s4359_s16 }
  0x3a   : > { %s529_s20 = scalar_lea.hbm %s8595_s28, %s4754_s21  ;;  %s554_s30 = sshll.u32 %s546_s23, 4  ;;  %s555_s30 = int_to_ptr.vmem [resolvable:$true] %s554_s30 }
  0x3b   : > { %s530_s11 = sshll.u32 %s529_s20, 4  ;;  %s542_s28 = sand.u32 1, %s5624_s26   ;;  %s531_s11 = int_to_ptr.hbm [resolvable:$true] %s530_s11 }
  0x3c   : > { %4863 = dma.hbm_to_vmem [thread:$0]  (!%p4861_p2), %s531_s11, 2048, %s533_s14, %s521_s9, %s5631_s8, %s5631_s8, %s5632_s15  }
  0x3d   : > { %s543_s20 = scalar_lea.sflag [#allocation7], %s542_s28  ;;  %566 = sbr.rel (%p5774_p8) target bundleno = 2979 (0xba3), region = 80 }
  0x3f   : > { %s551_s24 = scalar_lea.hbm %s8596_s1, %s4754_s21 }
  0x40   : > { %s552_s18 = sshll.u32 %s551_s24, 4  ;;  %s553_s18 = int_to_ptr.hbm [resolvable:$true] %s552_s18 }
  0x41   : > { %4866 = dma.hbm_to_vmem [thread:$0]  (!%p4861_p2), %s553_s18, 2048, %s555_s30, %s543_s20, %s5631_s8, %s5631_s8, %s5632_s15  }
  0x42   : > { %s5838_s6 = sand.u32 1, %s5608_s22  }
  0x43   : > { %s5841_s9 = sshll.u32 %s5838_s6, 7  ;;  %s569_s14 = scalar_lea.sflag [#allocation3], %s5838_s6 }
  0x44   : > { %s5845_s23 = scalar_lea.vmem [#allocation2], %s5841_s9 }
  0x45   : > { %5575 = dma.done.wait (%p5761_p4), %s569_s14, 2048  }
  0x46   : > { %5577 = vsyncadd (%p5761_p4), %s569_s14, 4294965248  ;;  %s578_s8 = sand.u32 1, %s5752_s27   ;;  %s5853_s19 = scalar_lea.vmem [#allocation6], %s5841_s9 }
  0x47   : > { %s579_s25 = scalar_lea.sflag [#allocation7], %s578_s8 }
  0x48   : > { %5579 = dma.done.wait (%p5761_p4), %s579_s25, 2048  }
  0x49   : > { %5581 = vsyncadd (%p5761_p4), %s579_s25, 4294965248 }
  0x4a   : > { %5583 = dma.done.wait (%p74_p1), [#allocation7], 4096  }
  0x4b   : > { %5585 = vsyncadd (%p74_p1), [#allocation7], 4294963200 }
  0x4c   : > { %5587 = dma.done.wait (%p74_p1), [#allocation10], 4096  }
  0x4d   : > { %5589 = vsyncadd (%p74_p1), [#allocation10], 4294963200 }
  0x4e   : > { %5591 = dma.done.wait (%p74_p1), [#allocation5], 16  }
  0x4f   : > { %5593 = vsyncadd (%p74_p1), [#allocation5], 4294967280 }
  0x50   : > { %603 = sfence }
  0x51   : > { %v673_v0 = vld [vmem:[%s5845_s23 + $0x60] sm:$0xff]  ;;  %v675_v1 = vld [vmem:[%s5845_s23 + $0x70] sm:$0xff]  ;;  %v674_v2 = vld [vmem:[%s5845_s23 + $0x68] sm:$0xff]  ;;  %v5633_v7 = vmov 0   ;;  %vm716_vm0 = vcmask 523264   ;;  %vm861_vm1 = vcmask 1043456  }
  0x52   : > { %v5874_v3 = vpack.c.bf16 %v675_v1, %v673_v0  ;;  %v676_v4 = vld [vmem:[%s5845_s23 + $0x78] sm:$0xff]  ;;  %v689_v5 = vld [vmem:[%s5853_s19 + $0x60] sm:$0xff]  ;;  %v691_v6 = vld [vmem:[%s5853_s19 + $0x70] sm:$0xff]  ;;  %4940 = vset.pattern.permute.xlu0 %v5633_v7  ;;  %4941 = vset.pattern.permute.xlu2 %v5633_v7  ;;  %vm812_vm2 = vcmask 64512   ;;  %s786_s27 = sld [smem:[#allocation11]]  ;;  %s7132_s29 = scalar_lea.vmem [#allocation12], %s5841_s9 }
  0x53   : > { %v5881_v8 = vpack.c.bf16 %v676_v4, %v674_v2  ;;  %v5883_v9 = vpack.c.bf16 %v691_v6, %v689_v5  ;;  %v690_v10 = vld [vmem:[%s5853_s19 + $0x68] sm:$0xff]  ;;  %v692_v11 = vld [vmem:[%s5853_s19 + $0x78] sm:$0xff]  ;;  %v669_v12 = vld [vmem:[%s5845_s23 + $0x40] sm:$0xff]  ;;  %s8701_s10 = sld [smem:[#allocation78_spill]]  ;;  %s4156_s17 = sshll.u32 %s7132_s29, 4  ;;  %s4157_s17 = int_to_ptr.vmem [resolvable:$true] %s4156_s17 }
  0x54   : > { %8597 = vst [vmem:[#allocation30_spill] sm:$0xff] %v5874_v3  ;;  %724 = vmatpush.bf16.msra.mxu0 %v5874_v3  ;;  %v5889_v13 = vpack.c.bf16 %v692_v11, %v690_v10  ;;  %v671_v14 = vld [vmem:[%s5845_s23 + $0x50] sm:$0xff]  ;;  %v670_v15 = vld [vmem:[%s5845_s23 + $0x48] sm:$0xff]  ;;  %v672_v16 = vld [vmem:[%s5845_s23 + $0x58] sm:$0xff]  ;;  %s8707_s24 = sld [smem:[#allocation79_spill]]  ;;  %s4137_s28 = scalar_lea.sflag [#allocation4], %s5838_s6 }
  0x55   : > { %8598 = vst [vmem:[#allocation31_spill] sm:$0xff] %v5881_v8  ;;  %737 = vmatpush.bf16.msra.mxu1 %v5881_v8  ;;  %762 = vmatpush.bf16.msra.mxu2 %v5883_v9  ;;  %v5896_v17 = vpack.c.bf16 %v671_v14, %v669_v12  ;;  %v5898_v18 = vpack.c.bf16 %v672_v16, %v670_v15  ;;  %v685_v19 = vld [vmem:[%s5853_s19 + $0x40] sm:$0xff]  ;;  %v687_v20 = vld [vmem:[%s5853_s19 + $0x50] sm:$0xff]  ;;  %v686_v21 = vld [vmem:[%s5853_s19 + $0x48] sm:$0xff]  ;;  %s8713_s30 = sld [smem:[#allocation80_spill]] }
  0x56   : > { %775 = vmatpush.bf16.msra.mxu3 %v5889_v13  ;;  %v5904_v22 = vpack.c.bf16 %v687_v20, %v685_v19  ;;  %v688_v23 = vld [vmem:[%s5853_s19 + $0x58] sm:$0xff]  ;;  %v665_v24 = vld [vmem:[%s5845_s23 + $0x20] sm:$0xff]  ;;  %v667_v25 = vld [vmem:[%s5845_s23 + $0x30] sm:$0xff]  ;;  %s4377_s25 = sld [smem:[#allocation11 + $0x1]] }
  0x57   : > { %8599 = vst [vmem:[#allocation32_spill] sm:$0xff] %v5896_v17  ;;  %v5909_v26 = vpack.c.bf16 %v688_v23, %v686_v21  ;;  %v666_v27 = vld [vmem:[%s5845_s23 + $0x28] sm:$0xff]  ;;  %v668_v28 = vld [vmem:[%s5845_s23 + $0x38] sm:$0xff]  ;;  %v681_v29 = vld [vmem:[%s5853_s19 + $0x20] sm:$0xff]  ;;  %v5915_v30 = vpack.c.bf16 %v667_v25, %v665_v24  ;;  %s8781_s21 = sld [smem:[#allocation82_spill]] }
  0x58   : > { %8600 = vst [vmem:[#allocation33_spill] sm:$0xff] %v5898_v18  ;;  %725 = vmatpush.bf16.msra.mxu0 %v5896_v17  ;;  %v683_v31 = vld [vmem:[%s5853_s19 + $0x30] sm:$0xff]  ;;  %v682_v32 = vld [vmem:[%s5853_s19 + $0x28] sm:$0xff]  ;;  %v684_v33 = vld [vmem:[%s5853_s19 + $0x38] sm:$0xff]  ;;  %v5922_v34 = vpack.c.bf16 %v668_v28, %v666_v27 }
  0x59   : > { %8601 = vst [vmem:[#allocation34_spill] sm:$0xff] %v5915_v30  ;;  %738 = vmatpush.bf16.msra.mxu1 %v5898_v18  ;;  %763 = vmatpush.bf16.msra.mxu2 %v5904_v22  ;;  %v5924_v35 = vpack.c.bf16 %v683_v31, %v681_v29  ;;  %v661_v36 = vld [vmem:[%s5845_s23] sm:$0xff]  ;;  %v663_v37 = vld [vmem:[%s5845_s23 + $0x10] sm:$0xff]  ;;  %v662_v38 = vld [vmem:[%s5845_s23 + $0x8] sm:$0xff]  ;;  %v5930_v39 = vpack.c.bf16 %v684_v33, %v682_v32 }
  0x5a   : > { %8602 = vst [vmem:[#allocation35_spill] sm:$0xff] %v5922_v34  ;;  %776 = vmatpush.bf16.msra.mxu3 %v5909_v26  ;;  %v664_v40 = vld [vmem:[%s5845_s23 + $0x18] sm:$0xff]  ;;  %v677_v41 = vld [vmem:[%s5853_s19] sm:$0xff]  ;;  %v679_v42 = vld [vmem:[%s5853_s19 + $0x10] sm:$0xff]  ;;  %v5938_v45 = vpack.c.bf16 %v663_v37, %v661_v36  ;;  %s8708_s0 = smov %s8707_s24 }
  0x5b   : > { %v678_v43 = vld [vmem:[%s5853_s19 + $0x8] sm:$0xff]  ;;  %v680_v44 = vld [vmem:[%s5853_s19 + $0x18] sm:$0xff]  ;;  %v710_v46 = vld [vmem:[%s8466_s3] sm:$0xff]  ;;  %v5945_v47 = vpack.c.bf16 %v664_v40, %v662_v38  ;;  %v5947_v48 = vpack.c.bf16 %v679_v42, %v677_v41 }
  0x5c   : > { %726 = vmatpush.bf16.msra.mxu0 %v5915_v30  ;;  %8603 = vst [vmem:[#allocation36_spill] sm:$0xff] %v5938_v45  ;;  %v5950_v49 = vpack.c.bf16 %v680_v44, %v678_v43  ;;  %713 = vperm.xlu0 %4940, %v710_v46   ;;  %v709_v50 = vld [vmem:[%s8465_s2] sm:$0xf]  ;;  %v4770_v16 = vld [vmem:[#allocation8 + $0x74] sm:$0xf] }
  0x5d   : > { %739 = vmatpush.bf16.msra.mxu1 %v5922_v34  ;;  %764 = vmatpush.bf16.msra.mxu2 %v5924_v35  ;;  %8604 = vst [vmem:[#allocation37_spill] sm:$0xff] %v5945_v47  ;;  %v748_v51 = vld [vmem:[%s8467_s4] sm:$0xf]  ;;  %v4470_v19 = vld [vmem:[#allocation8 + $0x78] sm:$0xf0]  ;;  %s8782_s15 = smov %s8781_s21 }
  0x5e   : > { %777 = vmatpush.bf16.msra.mxu3 %v5930_v39  ;;  %v749_v52 = vld [vmem:[%s8468_s5] sm:$0xff]  ;;  %v4786_v20 = vld [vmem:[#allocation8 + $0xf4] sm:$0xf]  ;;  %v4473_v21 = vor.u32 %v4770_v16, %v4470_v19  ;;  %v4534_v23 = vld [vmem:[#allocation8 + $0xf8] sm:$0xf0] }
  0x5f   : > { %v4537_v24 = vor.u32 %v4786_v20, %v4534_v23  ;;  %v4768_v27 = vld [vmem:[#allocation8 + $0x64] sm:$0xf]  ;;  %v4462_v28 = vld [vmem:[#allocation8 + $0x68] sm:$0xf0]  ;;  %v4766_v40 = vld [vmem:[#allocation8 + $0x54] sm:$0xf] }
  0x60   : > { %727 = vmatpush.bf16.msra.mxu0 %v5938_v45  ;;  %v4784_v29 = vld [vmem:[#allocation8 + $0xe4] sm:$0xf]  ;;  %v4465_v31 = vor.u32 %v4768_v27, %v4462_v28  ;;  %v4526_v32 = vld [vmem:[#allocation8 + $0xe8] sm:$0xf0]  ;;  %v4454_v41 = vld [vmem:[#allocation8 + $0x58] sm:$0xf0] }
  0x61   : > { %740 = vmatpush.bf16.msra.mxu1 %v5945_v47  ;;  %765 = vmatpush.bf16.msra.mxu2 %v5947_v48  ;;  %v4782_v42 = vld [vmem:[#allocation8 + $0xd4] sm:$0xf]  ;;  %v4457_v43 = vor.u32 %v4766_v40, %v4454_v41  ;;  %v4518_v44 = vld [vmem:[#allocation8 + $0xd8] sm:$0xf0]  ;;  %v4767_v23 = vld [vmem:[#allocation8 + $0x54] sm:$0xf0] }
  0x62   : > { %778 = vmatpush.bf16.msra.mxu3 %v5950_v49  ;;  %v4521_v46 = vor.u32 %v4782_v42, %v4518_v44  ;;  %v4783_v27 = vld [vmem:[#allocation8 + $0xd4] sm:$0xf0]  ;;  %v4444_v28 = vld [vmem:[#allocation8 + $0x40] sm:$0xf]  ;;  %v4436_v40 = vld [vmem:[#allocation8 + $0x30] sm:$0xf] }
  0x63   : > { %4373 = vmatmul.msk.bf16.vlgmr.msra.gmra.mxu0 %vm716_vm0, %v709_v50  ;;  %v4763_v41 = vld [vmem:[#allocation8 + $0x34] sm:$0xf0]  ;;  %v4500_v42 = vld [vmem:[#allocation8 + $0xb0] sm:$0xf] }
  0x64   : > { %4374 = vmatmul.msk.bf16.vlgmr.msra.gmra.mxu1 %vm716_vm0, %v709_v50  ;;  %4375 = vmatmul.msk.bf16.vlgmr.msra.gmra.mxu2 %vm716_vm0, %v748_v51  ;;  %v4437_v44 = vor.u32 %v4763_v41, %v4436_v40 }
  0x65   : > { %4376 = vmatmul.msk.bf16.vlgmr.msra.gmra.mxu3 %vm716_vm0, %v748_v51  ;;  %752 = vperm.xlu0 %4940, %v749_v52  }
  0xce   : > { %v714_v53 = vpop.permute.xlu0 %713 }
  0xd7   : > { %v753_v62 = vpop.permute.xlu0 %752 }
  0xe0   : > { %v729_v54 = vpop.f32.mrf.mxu0 }
  0xe1   : > { %v730_v55 = vadd.f32 %v729_v54, %v714_v53  ;;  %v742_v56 = vpop.f32.mrf.mxu1  ;;  %v4764_v54 = vld [vmem:[#allocation8 + $0x44] sm:$0xf] }
  0xe2   : > { %v743_v57 = vadd.f32 %v742_v56, %v714_v53  ;;  %v4780_v56 = vld [vmem:[#allocation8 + $0xc4] sm:$0xf] }
  0xe3   : > { %v746_v58 = vpack.c.bf16 %v730_v55, %v730_v55  ;;  %v4446_v55 = vld [vmem:[#allocation8 + $0x48] sm:$0xf0] }
  0xe4   : > { %v747_v59 = vpack.c.bf16 %v743_v57, %v743_v57  ;;  %v4449_v57 = vor.u32 %v4764_v54, %v4446_v55  ;;  %v4761_v54 = vld [vmem:[#allocation8 + $0x24] sm:$0xf0]  ;;  %v4492_v55 = vld [vmem:[#allocation8 + $0xa0] sm:$0xf] }
  0xe5   : > { %v5970_v60 = vsel %vm861_vm1, %v746_v58, 0 }
  0xe6   : > { %8605 = vst [vmem:[#allocation38_spill] sm:$0xff] %v5970_v60  ;;  %v5973_v61 = vsel %vm861_vm1, %v747_v59, 0  ;;  %788 = vxpose.binary.xlu1.c.b16.start.end [1/2] (short) %v747_v59, %v746_v58, 128  ;;  %v4510_v58 = vld [vmem:[#allocation8 + $0xc8] sm:$0xf0] }
  0xe7   : > { %8606 = vst [vmem:[#allocation39_spill] sm:$0xff] %v5973_v61  ;;  %v767_v63 = vpop.f32.mrf.mxu2  ;;  %v4513_v59 = vor.u32 %v4780_v56, %v4510_v58 }
  0xe8   : > { %v768_v0 = vadd.f32 %v767_v63, %v753_v62  ;;  %v780_v1 = vpop.f32.mrf.mxu3  ;;  %v731_v2 = vpop.f32.mrf.mxu0  ;;  %v4468_v63 = vld [vmem:[#allocation8 + $0x70] sm:$0xf] }
  0xe9   : > { %v781_v4 = vadd.f32 %v780_v1, %v753_v62  ;;  %v744_v5 = vpop.f32.mrf.mxu1  ;;  %v4532_v1 = vld [vmem:[#allocation8 + $0xf0] sm:$0xf] }
  0xea   : > { %v5975_v6 = vpack.c.bf16 %v768_v0, %v768_v0  ;;  %v4771_v0 = vld [vmem:[#allocation8 + $0x74] sm:$0xf0]  ;;  %v4460_v5 = vld [vmem:[#allocation8 + $0x60] sm:$0xf] }
  0xeb   : > { %v5977_v10 = vpack.c.bf16 %v781_v4, %v781_v4  ;;  %v4469_v2 = vor.u32 %v4771_v0, %v4468_v63  ;;  %v4787_v4 = vld [vmem:[#allocation8 + $0xf4] sm:$0xf0]  ;;  %v4420_v63 = vld [vmem:[#allocation8 + $0x10] sm:$0xf] }
  0xec   : > { %8607 = vst [vmem:[#allocation40_spill] sm:$0xff] %v5975_v6  ;;  %v863_v11 = vsel %vm861_vm1, %v5975_v6, 0  ;;  %v4759_v0 = vld [vmem:[#allocation8 + $0x14] sm:$0xf0] }
  0xed   : > { %8608 = vst [vmem:[#allocation41_spill] sm:$0xff] %v5977_v10  ;;  %875 = vmatpush.bf16.msrb.mxu0 %v863_v11  ;;  %v866_v12 = vsel %vm861_vm1, %v5977_v10, 0  ;;  %v4769_v11 = vld [vmem:[#allocation8 + $0x64] sm:$0xf0]  ;;  %1276 = vmatpush.bf16.msrb.mxu2 %v4469_v2  ;;  %v4421_v2 = vor.u32 %v4759_v0, %v4420_v63 }
  0xee   : > { %964 = vmatpush.bf16.msrb.mxu1 %v866_v12  ;;  %v4533_v12 = vor.u32 %v4787_v4, %v4532_v1  ;;  %v4461_v16 = vor.u32 %v4769_v11, %v4460_v5  ;;  %v4484_v1 = vld [vmem:[#allocation8 + $0x90] sm:$0xf]  ;;  %v4775_v4 = vld [vmem:[#allocation8 + $0x94] sm:$0xf0]  ;;  %v4762_v5 = vld [vmem:[#allocation8 + $0x34] sm:$0xf] }
  0xef   : > { %v769_v14 = vpop.f32.mrf.mxu2  ;;  %v4438_v11 = vld [vmem:[#allocation8 + $0x38] sm:$0xf0] }
  0xf0   : > { %v782_v15 = vpop.f32.mrf.mxu3  ;;  %v4524_v14 = vld [vmem:[#allocation8 + $0xe0] sm:$0xf]  ;;  %1365 = vmatpush.bf16.msrb.mxu3 %v4533_v12  ;;  %v4485_v12 = vor.u32 %v4775_v4, %v4484_v1 }
  0xf1   : > { %1454 = vmatpush.bf16.msra.mxu0 %v4473_v21  ;;  %v4785_v15 = vld [vmem:[#allocation8 + $0xe4] sm:$0xf0]  ;;  %1277 = vmatpush.bf16.msrb.mxu2 %v4461_v16  ;;  %v4452_v21 = vld [vmem:[#allocation8 + $0x50] sm:$0xf]  ;;  %v4502_v16 = vld [vmem:[#allocation8 + $0xb8] sm:$0xf0] }
  0xf2   : > { %1543 = vmatpush.bf16.msra.mxu1 %v4537_v24  ;;  %v4525_v19 = vor.u32 %v4785_v15, %v4524_v14  ;;  %v4516_v24 = vld [vmem:[#allocation8 + $0xd0] sm:$0xf]  ;;  %v4441_v14 = vor.u32 %v4762_v5, %v4438_v11  ;;  %v4778_v15 = vld [vmem:[#allocation8 + $0xb4] sm:$0xf] }
  0xf4   : > { %1366 = vmatpush.bf16.msrb.mxu3 %v4525_v19  ;;  %v4505_v19 = vor.u32 %v4778_v15, %v4502_v16  ;;  %v4756_v15 = vld [vmem:[#allocation8 + $0x4] sm:$0xf] }
  0xf5   : > { %1455 = vmatpush.bf16.msra.mxu0 %v4465_v31  ;;  %v4517_v31 = vor.u32 %v4783_v27, %v4516_v24  ;;  %v4772_v16 = vld [vmem:[#allocation8 + $0x84] sm:$0xf] }
  0xf8   : > { %1367 = vmatpush.bf16.msrb.mxu3 %v4517_v31 }
  0xf9   : > { %1456 = vmatpush.bf16.msra.mxu0 %v4457_v43  ;;  %v4779_v43 = vld [vmem:[#allocation8 + $0xb4] sm:$0xf0] }
  0xfd   : > { %1457 = vmatpush.bf16.msra.mxu0 %v4449_v57  ;;  %v4777_v57 = vld [vmem:[#allocation8 + $0xa4] sm:$0xf0] }
  0xfe   : > { %v4493_v58 = vor.u32 %v4777_v57, %v4492_v55 }
 0x101   : > { %1458 = vmatpush.bf16.msra.mxu0 %v4441_v14 }
 0x139   : > { %4942 = vset.pattern.permute.xlu1 %v5633_v7  ;;  %v4529_v7 = vor.u32 %v4784_v29, %v4526_v32  ;;  %v4765_v29 = vld [vmem:[#allocation8 + $0x44] sm:$0xf0]  ;;  %v4508_v32 = vld [vmem:[#allocation8 + $0xc0] sm:$0xf] }
 0x13b   : > { %1544 = vmatpush.bf16.msra.mxu1 %v4529_v7  ;;  %v4781_v7 = vld [vmem:[#allocation8 + $0xc4] sm:$0xf0] }
 0x13f   : > { %1545 = vmatpush.bf16.msra.mxu1 %v4521_v46 }
 0x143   : > { %1546 = vmatpush.bf16.msra.mxu1 %v4513_v59 }
 0x147   : > { %1547 = vmatpush.bf16.msra.mxu1 %v4505_v19 }
 0x192   : > { %v796_v25 = vpop.trf.xlu1 }
 0x193   : > { %4378 = vmatmul.msk.bf16.vlgmr.msrb.gmra.mxu0 %vm812_vm2, %v796_v25  ;;  %4394 = vmatmul.msk.bf16.vlgmr.msrb.gmra.mxu1 %vm812_vm2, %v796_v25  ;;  %v4453_v25 = vor.u32 %v4767_v23, %v4452_v21  ;;  %v4757_v21 = vld [vmem:[#allocation8 + $0x4] sm:$0xf0]  ;;  %v4476_v23 = vld [vmem:[#allocation8 + $0x80] sm:$0xf] }
 0x195   : > { %1278 = vmatpush.bf16.msrb.mxu2 %v4453_v25  ;;  %v4773_v25 = vld [vmem:[#allocation8 + $0x84] sm:$0xf0] }
 0x196   : > { %v4477_v27 = vor.u32 %v4773_v25, %v4476_v23 }
 0x19a   : > { %v5986_v33 = vpop.trf.xlu1 }
 0x1a2   : > { %v798_v36 = vpop.trf.xlu1 }
 0x1a3   : > { %4379 = vmatmul.msk.bf16.gmra.mxu0 %vm812_vm2, %v798_v36  ;;  %4395 = vmatmul.msk.bf16.gmra.mxu1 %vm812_vm2, %v798_v36  ;;  %v4445_v36 = vor.u32 %v4765_v29, %v4444_v28 }
 0x1a5   : > { %1279 = vmatpush.bf16.msrb.mxu2 %v4445_v36 }
 0x1a9   : > { %1280 = vmatpush.bf16.msrb.mxu2 %v4437_v44 }
 0x1aa   : > { %v5990_v37 = vpop.trf.xlu1 }
 0x1b2   : > { %v800_v38 = vpop.trf.xlu1 }
 0x1b3   : > { %4380 = vmatmul.msk.bf16.gmra.mxu0 %vm812_vm2, %v800_v38  ;;  %4396 = vmatmul.msk.bf16.gmra.mxu1 %vm812_vm2, %v800_v38  ;;  %v4509_v38 = vor.u32 %v4781_v7, %v4508_v32  ;;  %v4494_v32 = vld [vmem:[#allocation8 + $0xa8] sm:$0xf0] }
 0x1b5   : > { %1368 = vmatpush.bf16.msrb.mxu3 %v4509_v38 }
 0x1ba   : > { %v5994_v50 = vpop.trf.xlu1 }
 0x1c2   : > { %v802_v51 = vpop.trf.xlu1 }
 0x1c3   : > { %4381 = vmatmul.msk.bf16.gmra.mxu0 %vm812_vm2, %v802_v51  ;;  %4397 = vmatmul.msk.bf16.gmra.mxu1 %vm812_vm2, %v802_v51  ;;  %v4501_v51 = vor.u32 %v4779_v43, %v4500_v42 }
 0x1c5   : > { %1369 = vmatpush.bf16.msrb.mxu3 %v4501_v51 }
 0x1c9   : > { %1370 = vmatpush.bf16.msrb.mxu3 %v4493_v58 }
 0x1ca   : > { %v5998_v52 = vpop.trf.xlu1 }
 0x1cd   : > { %1371 = vmatpush.bf16.msrb.mxu3 %v4485_v12 }
 0x1d1   : > { %1372 = vmatpush.bf16.msrb.mxu3 %v4477_v27 }
 0x1d2   : > { %v804_v53 = vpop.trf.xlu1 }
 0x1d3   : > { %4382 = vmatmul.msk.bf16.gmra.mxu0 %vm812_vm2, %v804_v53  ;;  %4398 = vmatmul.msk.bf16.gmra.mxu1 %vm812_vm2, %v804_v53  ;;  %v4428_v53 = vld [vmem:[#allocation8 + $0x20] sm:$0xf] }
 0x1d4   : > { %v4429_v56 = vor.u32 %v4761_v54, %v4428_v53  ;;  %v4758_v53 = vld [vmem:[#allocation8 + $0x14] sm:$0xf] }
 0x1d5   : > { %2233 = vmatpush.bf16.msra.mxu3 %v5889_v13  ;;  %v4760_v13 = vld [vmem:[#allocation8 + $0x24] sm:$0xf]  ;;  %v4774_v54 = vld [vmem:[#allocation8 + $0x94] sm:$0xf] }
 0x1d6   : > { %1281 = vmatpush.bf16.msrb.mxu2 %v4429_v56  ;;  %v4486_v56 = vld [vmem:[#allocation8 + $0x98] sm:$0xf0] }
 0x1d7   : > { %v4489_v57 = vor.u32 %v4774_v54, %v4486_v56 }
 0x1d9   : > { %2234 = vmatpush.bf16.msra.mxu3 %v5909_v26  ;;  %v4776_v26 = vld [vmem:[#allocation8 + $0xa4] sm:$0xf] }
 0x1da   : > { %v6002_v62 = vpop.trf.xlu1  ;;  %1282 = vmatpush.bf16.msrb.mxu2 %v4421_v2  ;;  %v4497_v7 = vor.u32 %v4776_v26, %v4494_v32 }
 0x1dc   : > { %1548 = vmatpush.bf16.msra.mxu1 %v4497_v7 }
 0x1dd   : > { %2235 = vmatpush.bf16.msra.mxu3 %v5930_v39 }
 0x1e0   : > { %1549 = vmatpush.bf16.msra.mxu1 %v4489_v57 }
 0x1e1   : > { %2236 = vmatpush.bf16.msra.mxu3 %v5950_v49 }
 0x1e2   : > { %v806_v20 = vpop.trf.xlu1 }
 0x1e3   : > { %4383 = vmatmul.msk.bf16.gmra.mxu0 %vm812_vm2, %v806_v20  ;;  %4399 = vmatmul.msk.bf16.gmra.mxu1 %vm812_vm2, %v806_v20  ;;  %v4412_v20 = vld [vmem:[#allocation8] sm:$0xf] }
 0x1e4   : > { %v4413_v24 = vor.u32 %v4757_v21, %v4412_v20  ;;  %v4478_v20 = vld [vmem:[#allocation8 + $0x88] sm:$0xf0] }
 0x1e5   : > { %v4481_v21 = vor.u32 %v4772_v16, %v4478_v20 }
 0x1e6   : > { %1283 = vmatpush.bf16.msrb.mxu2 %v4413_v24 }
 0x1e7   : > { %1550 = vmatpush.bf16.msra.mxu1 %v4481_v21 }
 0x1ea   : > { %v6006_v46 = vpop.trf.xlu1  ;;  %2204 = vmatpush.bf16.msra.mxu2 %v5883_v9 }
 0x1ee   : > { %2205 = vmatpush.bf16.msra.mxu2 %v5904_v22  ;;  %v4430_v22 = vld [vmem:[#allocation8 + $0x28] sm:$0xf0] }
 0x1f2   : > { %v808_v59 = vpop.trf.xlu1  ;;  %2206 = vmatpush.bf16.msra.mxu2 %v5924_v35  ;;  %v4433_v35 = vor.u32 %v4760_v13, %v4430_v22 }
 0x1f3   : > { %4384 = vmatmul.msk.bf16.gmra.mxu0 %vm812_vm2, %v808_v59  ;;  %4400 = vmatmul.msk.bf16.gmra.mxu1 %vm812_vm2, %v808_v59 }
 0x1f4   : > { %1459 = vmatpush.bf16.msra.mxu0 %v4433_v35 }
 0x1f6   : > { %2207 = vmatpush.bf16.msra.mxu2 %v5947_v48 }
 0x1fa   : > { %v6010_v28 = vpop.trf.xlu1 }
 0x202   : > { %v810_v29 = vpop.trf.xlu1 }
 0x203   : > { %4385 = vmatmul.msk.bf16.gmra.mxu0 %vm812_vm2, %v810_v29  ;;  %4401 = vmatmul.msk.bf16.gmra.mxu1 %vm812_vm2, %v810_v29 }
 0x210   : > { %v877_v9 = vpop.f32.mrf.mxu0  ;;  %v966_v31 = vpop.f32.mrf.mxu1 }
 0x213   : > { %4386 = vmatmul.msk.bf16.gmra.mxu0 %vm812_vm2, %v5986_v33  ;;  %4402 = vmatmul.msk.bf16.gmra.mxu1 %vm812_vm2, %v5986_v33 }
 0x218   : > { %v879_v39 = vpop.f32.mrf.mxu0  ;;  %v968_v48 = vpop.f32.mrf.mxu1 }
 0x219   : > { %v6026_v36 = vpack.c.bf16 %v879_v39, %v877_v9  ;;  %v6028_v49 = vpack.c.bf16 %v968_v48, %v966_v31  ;;  %v811_v48 = vpop.trf.xlu1 }
 0x21b   : > { %1284 = vmatmul.bf16.vlgmr.msrb.gmra.mxu2 %v6026_v36  ;;  %1373 = vmatmul.bf16.vlgmr.msrb.gmra.mxu3 %v6028_v49 }
 0x220   : > { %v882_v38 = vpop.f32.mrf.mxu0  ;;  %v971_v33 = vpop.f32.mrf.mxu1 }
 0x223   : > { %4387 = vmatmul.msk.bf16.gmra.mxu0 %vm812_vm2, %v5990_v37  ;;  %4403 = vmatmul.msk.bf16.gmra.mxu1 %vm812_vm2, %v5990_v37  ;;  %v4422_v37 = vld [vmem:[#allocation8 + $0x18] sm:$0xf0] }
 0x224   : > { %v4425_v55 = vor.u32 %v4758_v53, %v4422_v37 }
 0x226   : > { %1460 = vmatpush.bf16.msra.mxu0 %v4425_v55  ;;  %v6105_v55 = vld [vmem:[%s8470_s7] sm:$0x3] }
 0x228   : > { %v884_v40 = vpop.f32.mrf.mxu0  ;;  %v973_v41 = vpop.f32.mrf.mxu1 }
 0x229   : > { %v6036_v42 = vpack.c.bf16 %v884_v40, %v882_v38  ;;  %v6038_v43 = vpack.c.bf16 %v973_v41, %v971_v33 }
 0x22b   : > { %1289 = vmatmul.bf16.gmra.mxu2 %v6036_v42  ;;  %1378 = vmatmul.bf16.gmra.mxu3 %v6038_v43 }
 0x230   : > { %v887_v44 = vpop.f32.mrf.mxu0  ;;  %v976_v51 = vpop.f32.mrf.mxu1 }
 0x233   : > { %4388 = vmatmul.msk.bf16.gmra.mxu0 %vm812_vm2, %v5994_v50  ;;  %4404 = vmatmul.msk.bf16.gmra.mxu1 %vm812_vm2, %v5994_v50 }
 0x238   : > { %v889_v58 = vpop.f32.mrf.mxu0  ;;  %v978_v59 = vpop.f32.mrf.mxu1 }
 0x239   : > { %v6046_v63 = vpack.c.bf16 %v889_v58, %v887_v44  ;;  %v6048_v0 = vpack.c.bf16 %v978_v59, %v976_v51  ;;  %v6114_v58 = vperm.slane %v6105_v55, 0 }
 0x23b   : > { %1294 = vmatmul.bf16.gmra.mxu2 %v6046_v63  ;;  %1383 = vmatmul.bf16.gmra.mxu3 %v6048_v0 }
 0x240   : > { %v892_v1 = vpop.f32.mrf.mxu0  ;;  %v981_v50 = vpop.f32.mrf.mxu1 }
 0x243   : > { %4389 = vmatmul.msk.bf16.gmra.mxu0 %vm812_vm2, %v5998_v52  ;;  %4405 = vmatmul.msk.bf16.gmra.mxu1 %vm812_vm2, %v5998_v52  ;;  %v4414_v52 = vld [vmem:[#allocation8 + $0x8] sm:$0xf0] }
 0x244   : > { %v4417_v19 = vor.u32 %v4756_v15, %v4414_v52 }
 0x246   : > { %1461 = vmatpush.bf16.msra.mxu0 %v4417_v19 }
 0x248   : > { %v894_v2 = vpop.f32.mrf.mxu0  ;;  %v983_v4 = vpop.f32.mrf.mxu1 }
 0x249   : > { %v6056_v5 = vpack.c.bf16 %v894_v2, %v892_v1  ;;  %v6058_v11 = vpack.c.bf16 %v983_v4, %v981_v50 }
 0x24b   : > { %1299 = vmatmul.bf16.gmra.mxu2 %v6056_v5  ;;  %1388 = vmatmul.bf16.gmra.mxu3 %v6058_v11 }
 0x250   : > { %v897_v12 = vpop.f32.mrf.mxu0  ;;  %v986_v14 = vpop.f32.mrf.mxu1 }
 0x253   : > { %4390 = vmatmul.msk.bf16.gmra.mxu0 %vm812_vm2, %v6002_v62  ;;  %4406 = vmatmul.msk.bf16.gmra.mxu1 %vm812_vm2, %v6002_v62 }
 0x258   : > { %v899_v23 = vpop.f32.mrf.mxu0  ;;  %v988_v24 = vpop.f32.mrf.mxu1 }
 0x259   : > { %v6066_v25 = vpack.c.bf16 %v899_v23, %v897_v12  ;;  %v6068_v27 = vpack.c.bf16 %v988_v24, %v986_v14 }
 0x25b   : > { %1304 = vmatmul.bf16.gmra.mxu2 %v6066_v25  ;;  %1393 = vmatmul.bf16.gmra.mxu3 %v6068_v27 }
 0x260   : > { %v902_v29 = vpop.f32.mrf.mxu0  ;;  %v991_v62 = vpop.f32.mrf.mxu1 }
 0x263   : > { %4391 = vmatmul.msk.bf16.gmra.mxu0 %vm812_vm2, %v6006_v46  ;;  %4407 = vmatmul.msk.bf16.gmra.mxu1 %vm812_vm2, %v6006_v46 }
 0x268   : > { %v904_v9 = vpop.f32.mrf.mxu0  ;;  %v993_v31 = vpop.f32.mrf.mxu1 }
 0x269   : > { %v6076_v13 = vpack.c.bf16 %v904_v9, %v902_v29  ;;  %v6078_v22 = vpack.c.bf16 %v993_v31, %v991_v62 }
 0x26b   : > { %1309 = vmatmul.bf16.gmra.mxu2 %v6076_v13  ;;  %1398 = vmatmul.bf16.gmra.mxu3 %v6078_v22 }
 0x270   : > { %v907_v26 = vpop.f32.mrf.mxu0  ;;  %v996_v35 = vpop.f32.mrf.mxu1 }
 0x273   : > { %4392 = vmatmul.msk.bf16.gmra.mxu0 %vm812_vm2, %v6010_v28  ;;  %4408 = vmatmul.msk.bf16.gmra.mxu1 %vm812_vm2, %v6010_v28 }
 0x278   : > { %v909_v32 = vpop.f32.mrf.mxu0  ;;  %v998_v46 = vpop.f32.mrf.mxu1 }
 0x279   : > { %v6086_v7 = vpack.c.bf16 %v909_v32, %v907_v26  ;;  %v6088_v39 = vpack.c.bf16 %v998_v46, %v996_v35 }
 0x27b   : > { %1314 = vmatmul.bf16.gmra.mxu2 %v6086_v7  ;;  %1403 = vmatmul.bf16.gmra.mxu3 %v6088_v39 }
 0x280   : > { %v912_v38 = vpop.f32.mrf.mxu0  ;;  %v1001_v33 = vpop.f32.mrf.mxu1 }
 0x283   : > { %4393 = vmatmul.msk.bf16.gmra.mxu0 %vm812_vm2, %v811_v48  ;;  %4409 = vmatmul.msk.bf16.gmra.mxu1 %vm812_vm2, %v811_v48 }
 0x288   : > { %v914_v40 = vpop.f32.mrf.mxu0  ;;  %v1003_v41 = vpop.f32.mrf.mxu1 }
 0x289   : > { %v6094_v28 = vpack.c.bf16 %v914_v40, %v912_v38  ;;  %v6096_v44 = vpack.c.bf16 %v1003_v41, %v1001_v33 }
 0x28b   : > { %1319 = vmatmul.bf16.gmra.mxu2 %v6094_v28  ;;  %1408 = vmatmul.bf16.gmra.mxu3 %v6096_v44 }
 0x290   : > { %v917_v51 = vpop.f32.mrf.mxu0  ;;  %v1006_v53 = vpop.f32.mrf.mxu1 }
 0x293   : > { %1462 = vmatmul.bf16.vlgmr.msra.gmra.mxu0 %v6026_v36  ;;  %1551 = vmatmul.bf16.vlgmr.msra.gmra.mxu1 %v6028_v49 }
 0x298   : > { %v919_v37 = vpop.f32.mrf.mxu0  ;;  %v1008_v54 = vpop.f32.mrf.mxu1 }
 0x299   : > { %v6107_v56 = vpack.c.bf16 %v919_v37, %v917_v51  ;;  %v6109_v57 = vpack.c.bf16 %v1008_v54, %v1006_v53 }
 0x29b   : > { %1324 = vmatmul.bf16.gmra.mxu2 %v6107_v56  ;;  %1413 = vmatmul.bf16.gmra.mxu3 %v6109_v57 }
 0x29e   : > { %v1285_v36 = vpop.f32.mrf.mxu2  ;;  %v1374_v49 = vpop.f32.mrf.mxu3 }
 0x29f   : > { %v1286_v59 = vadd.f32 %v1285_v36, %v6114_v58 }
 0x2a0   : > { %v922_v1 = vpop.f32.mrf.mxu0  ;;  %v1011_v50 = vpop.f32.mrf.mxu1 }
 0x2a1   : > { %v6117_v2 = vadd.f32 %v1374_v49, %v1286_v59 }
 0x2a3   : > { %1467 = vmatmul.bf16.gmra.mxu0 %v6036_v42  ;;  %1556 = vmatmul.bf16.gmra.mxu1 %v6038_v43 }
 0x2a6   : > { %v1287_v4 = vpop.f32.mrf.mxu2  ;;  %v1376_v12 = vpop.f32.mrf.mxu3 }
 0x2a7   : > { %v1288_v14 = vadd.f32 %v1287_v4, %v6114_v58 }
 0x2a8   : > { %v924_v15 = vpop.f32.mrf.mxu0  ;;  %v1013_v52 = vpop.f32.mrf.mxu1 }
 0x2a9   : > { %v6122_v16 = vadd.f32 %v1376_v12, %v1288_v14  ;;  %v6124_v19 = vpack.c.bf16 %v924_v15, %v922_v1  ;;  %v6126_v20 = vpack.c.bf16 %v1013_v52, %v1011_v50 }
 0x2ab   : > { %1329 = vmatmul.bf16.gmra.mxu2 %v6124_v19  ;;  %1418 = vmatmul.bf16.gmra.mxu3 %v6126_v20 }
 0x2ae   : > { %v1290_v21 = vpop.f32.mrf.mxu2  ;;  %v1379_v42 = vpop.f32.mrf.mxu3 }
 0x2af   : > { %v1291_v43 = vadd.f32 %v1290_v21, %v6114_v58 }
 0x2b0   : > { %v927_v23 = vpop.f32.mrf.mxu0  ;;  %v1016_v24 = vpop.f32.mrf.mxu1 }
 0x2b1   : > { %v6131_v29 = vadd.f32 %v1379_v42, %v1291_v43 }
 0x2b3   : > { %1472 = vmatmul.bf16.gmra.mxu0 %v6046_v63  ;;  %1561 = vmatmul.bf16.gmra.mxu1 %v6048_v0 }
 0x2b6   : > { %v1292_v62 = vpop.f32.mrf.mxu2  ;;  %v1381_v9 = vpop.f32.mrf.mxu3 }
 0x2b7   : > { %v1293_v31 = vadd.f32 %v1292_v62, %v6114_v58 }
 0x2b8   : > { %v929_v26 = vpop.f32.mrf.mxu0  ;;  %v1018_v35 = vpop.f32.mrf.mxu1 }
 0x2b9   : > { %v6136_v32 = vadd.f32 %v1381_v9, %v1293_v31  ;;  %v6138_v46 = vpack.c.bf16 %v929_v26, %v927_v23  ;;  %v6140_v48 = vpack.c.bf16 %v1018_v35, %v1016_v24 }
 0x2bb   : > { %1334 = vmatmul.bf16.gmra.mxu2 %v6138_v46  ;;  %1423 = vmatmul.bf16.gmra.mxu3 %v6140_v48 }
 0x2be   : > { %v1295_v38 = vpop.f32.mrf.mxu2  ;;  %v1384_v63 = vpop.f32.mrf.mxu3 }
 0x2bf   : > { %v1296_v0 = vadd.f32 %v1295_v38, %v6114_v58 }
 0x2c0   : > { %v932_v33 = vpop.f32.mrf.mxu0  ;;  %v1021_v40 = vpop.f32.mrf.mxu1 }
 0x2c1   : > { %v6145_v41 = vadd.f32 %v1384_v63, %v1296_v0 }
 0x2c3   : > { %1477 = vmatmul.bf16.gmra.mxu0 %v6056_v5  ;;  %1566 = vmatmul.bf16.gmra.mxu1 %v6058_v11 }
 0x2c6   : > { %v1297_v51 = vpop.f32.mrf.mxu2  ;;  %v1386_v53 = vpop.f32.mrf.mxu3 }
 0x2c7   : > { %v1298_v37 = vadd.f32 %v1297_v51, %v6114_v58 }
 0x2c8   : > { %v934_v54 = vpop.f32.mrf.mxu0  ;;  %v1023_v36 = vpop.f32.mrf.mxu1 }
 0x2c9   : > { %v6150_v49 = vadd.f32 %v1386_v53, %v1298_v37  ;;  %v6152_v59 = vpack.c.bf16 %v934_v54, %v932_v33  ;;  %v6154_v1 = vpack.c.bf16 %v1023_v36, %v1021_v40  ;;  %v6197_v54 = vperm.slane %v6105_v55, 1 }
 0x2cb   : > { %1339 = vmatmul.bf16.gmra.mxu2 %v6152_v59  ;;  %1428 = vmatmul.bf16.gmra.mxu3 %v6154_v1 }
 0x2ce   : > { %v1300_v50 = vpop.f32.mrf.mxu2  ;;  %v1389_v5 = vpop.f32.mrf.mxu3 }
 0x2cf   : > { %v1301_v11 = vadd.f32 %v1300_v50, %v6114_v58 }
 0x2d0   : > { %v937_v4 = vpop.f32.mrf.mxu0  ;;  %v1026_v12 = vpop.f32.mrf.mxu1 }
 0x2d1   : > { %v6159_v14 = vadd.f32 %v1389_v5, %v1301_v11 }
 0x2d3   : > { %1482 = vmatmul.bf16.gmra.mxu0 %v6066_v25  ;;  %1571 = vmatmul.bf16.gmra.mxu1 %v6068_v27 }
 0x2d6   : > { %v1302_v15 = vpop.f32.mrf.mxu2  ;;  %v1391_v21 = vpop.f32.mrf.mxu3 }
 0x2d7   : > { %v1303_v52 = vadd.f32 %v1302_v15, %v6114_v58 }
 0x2d8   : > { %v939_v42 = vpop.f32.mrf.mxu0  ;;  %v1028_v43 = vpop.f32.mrf.mxu1 }
 0x2d9   : > { %v6164_v23 = vadd.f32 %v1391_v21, %v1303_v52  ;;  %v6166_v24 = vpack.c.bf16 %v939_v42, %v937_v4  ;;  %v6168_v62 = vpack.c.bf16 %v1028_v43, %v1026_v12 }
 0x2db   : > { %1344 = vmatmul.bf16.gmra.mxu2 %v6166_v24  ;;  %1433 = vmatmul.bf16.gmra.mxu3 %v6168_v62 }
 0x2e0   : > { %v942_v9 = vpop.f32.mrf.mxu0  ;;  %v1031_v25 = vpop.f32.mrf.mxu1 }
 0x2e3   : > { %1487 = vmatmul.bf16.gmra.mxu0 %v6076_v13  ;;  %1576 = vmatmul.bf16.gmra.mxu1 %v6078_v22 }
 0x2e8   : > { %v944_v27 = vpop.f32.mrf.mxu0  ;;  %v1033_v31 = vpop.f32.mrf.mxu1 }
 0x2e9   : > { %v6174_v26 = vpack.c.bf16 %v944_v27, %v942_v9  ;;  %v6176_v35 = vpack.c.bf16 %v1033_v31, %v1031_v25 }
 0x2eb   : > { %1349 = vmatmul.bf16.gmra.mxu2 %v6174_v26  ;;  %1438 = vmatmul.bf16.gmra.mxu3 %v6176_v35 }
 0x2f0   : > { %v947_v38 = vpop.f32.mrf.mxu0  ;;  %v1036_v63 = vpop.f32.mrf.mxu1 }
 0x2f3   : > { %1492 = vmatmul.bf16.gmra.mxu0 %v6086_v7  ;;  %1581 = vmatmul.bf16.gmra.mxu1 %v6088_v39 }
 0x2f8   : > { %v949_v0 = vpop.f32.mrf.mxu0  ;;  %v1038_v13 = vpop.f32.mrf.mxu1 }
 0x2f9   : > { %v6182_v33 = vpack.c.bf16 %v949_v0, %v947_v38  ;;  %v6184_v22 = vpack.c.bf16 %v1038_v13, %v1036_v63  ;;  %v6220_v63 = vpop.f32.mrf.mxu2  ;;  %v6225_v13 = vpop.f32.mrf.mxu3 }
 0x2fb   : > { %1354 = vmatmul.bf16.gmra.mxu2 %v6182_v33  ;;  %1443 = vmatmul.bf16.gmra.mxu3 %v6184_v22 }
 0x300   : > { %v952_v40 = vpop.f32.mrf.mxu0  ;;  %v1041_v51 = vpop.f32.mrf.mxu1 }
 0x303   : > { %1497 = vmatmul.bf16.gmra.mxu0 %v6094_v28  ;;  %1586 = vmatmul.bf16.gmra.mxu1 %v6096_v44 }
 0x308   : > { %v954_v53 = vpop.f32.mrf.mxu0  ;;  %v1043_v7 = vpop.f32.mrf.mxu1 }
 0x309   : > { %v6190_v37 = vpack.c.bf16 %v954_v53, %v952_v40  ;;  %v6192_v39 = vpack.c.bf16 %v1043_v7, %v1041_v51  ;;  %v6228_v7 = vpop.f32.mrf.mxu2 }
 0x30b   : > { %1359 = vmatmul.bf16.gmra.mxu2 %v6190_v37  ;;  %1448 = vmatmul.bf16.gmra.mxu3 %v6192_v39 }
 0x310   : > { %v1463_v36 = vpop.f32.mrf.mxu0  ;;  %v1552_v50 = vpop.f32.mrf.mxu1 }
 0x311   : > { %v1464_v5 = vadd.f32 %v1463_v36, %v6197_v54 }
 0x313   : > { %v6200_v28 = vadd.f32 %v1552_v50, %v1464_v5  ;;  %1502 = vmatmul.bf16.gmra.mxu0 %v6107_v56  ;;  %1591 = vmatmul.bf16.gmra.mxu1 %v6109_v57  ;;  %v6234_v50 = vpop.f32.mrf.mxu3 }
 0x318   : > { %v1465_v44 = vpop.f32.mrf.mxu0  ;;  %v1554_v11 = vpop.f32.mrf.mxu1 }
 0x319   : > { %v1466_v4 = vadd.f32 %v1465_v44, %v6197_v54 }
 0x31b   : > { %v6205_v12 = vadd.f32 %v1554_v11, %v1466_v4  ;;  %v1310_v11 = vpop.f32.mrf.mxu2 }
 0x320   : > { %v1468_v15 = vpop.f32.mrf.mxu0  ;;  %v1557_v52 = vpop.f32.mrf.mxu1 }
 0x321   : > { %v1469_v55 = vadd.f32 %v1468_v15, %v6197_v54 }
 0x323   : > { %v6208_v21 = vadd.f32 %v1557_v52, %v1469_v55  ;;  %1507 = vmatmul.bf16.gmra.mxu0 %v6124_v19  ;;  %1596 = vmatmul.bf16.gmra.mxu1 %v6126_v20  ;;  %v1399_v52 = vpop.f32.mrf.mxu3 }
 0x328   : > { %v1470_v42 = vpop.f32.mrf.mxu0  ;;  %v1559_v56 = vpop.f32.mrf.mxu1 }
 0x329   : > { %v1471_v57 = vadd.f32 %v1470_v42, %v6197_v54 }
 0x32b   : > { %v6213_v43 = vadd.f32 %v1559_v56, %v1471_v57  ;;  %v1401_v42 = vpop.f32.mrf.mxu3 }
 0x330   : > { %v1473_v9 = vpop.f32.mrf.mxu0  ;;  %v1562_v25 = vpop.f32.mrf.mxu1 }
 0x331   : > { %v1474_v27 = vadd.f32 %v1473_v9, %v6197_v54 }
 0x333   : > { %v6216_v31 = vadd.f32 %v1562_v25, %v1474_v27  ;;  %1512 = vmatmul.bf16.gmra.mxu0 %v6138_v46  ;;  %1601 = vmatmul.bf16.gmra.mxu1 %v6140_v48  ;;  %v1404_v25 = vpop.f32.mrf.mxu3 }
 0x338   : > { %v1475_v38 = vpop.f32.mrf.mxu0  ;;  %v1564_v19 = vpop.f32.mrf.mxu1 }
 0x339   : > { %v1476_v20 = vadd.f32 %v1475_v38, %v6197_v54 }
 0x33b   : > { %v6223_v0 = vadd.f32 %v1564_v19, %v1476_v20 }
 0x340   : > { %v1478_v40 = vpop.f32.mrf.mxu0  ;;  %v1567_v51 = vpop.f32.mrf.mxu1 }
 0x341   : > { %v1479_v53 = vadd.f32 %v1478_v40, %v6197_v54  ;;  %v1406_v40 = vpop.f32.mrf.mxu3 }
 0x343   : > { %v6230_v36 = vadd.f32 %v1567_v51, %v1479_v53  ;;  %1517 = vmatmul.bf16.gmra.mxu0 %v6152_v59  ;;  %1606 = vmatmul.bf16.gmra.mxu1 %v6154_v1  ;;  %v1312_v59 = vpop.f32.mrf.mxu2 }
 0x348   : > { %v1480_v46 = vpop.f32.mrf.mxu0  ;;  %v1569_v48 = vpop.f32.mrf.mxu1 }
 0x349   : > { %v1481_v5 = vadd.f32 %v1480_v46, %v6197_v54 }
 0x34b   : > { %v6237_v44 = vadd.f32 %v1569_v48, %v1481_v5  ;;  %v1315_v9 = vpop.f32.mrf.mxu2  ;;  %v1311_v5 = vadd.f32 %v1310_v11, %v6114_v58 }
 0x350   : > { %v1483_v4 = vpop.f32.mrf.mxu0  ;;  %v6239_v15 = vpop.f32.mrf.mxu1 }
 0x353   : > { %1522 = vmatmul.bf16.gmra.mxu0 %v6166_v24  ;;  %1611 = vmatmul.bf16.gmra.mxu1 %v6168_v62  ;;  %v1317_v19 = vpop.f32.mrf.mxu2  ;;  %v1316_v24 = vadd.f32 %v1315_v9, %v6114_v58 }
 0x354   : > { %v1318_v9 = vadd.f32 %v1317_v19, %v6114_v58 }
 0x355   : > { %v6251_v53 = vadd.f32 %v1404_v25, %v1316_v24 }
 0x358   : > { %v6243_v55 = vpop.f32.mrf.mxu0  ;;  %v6245_v1 = vpop.f32.mrf.mxu1 }
 0x360   : > { %v1488_v56 = vpop.f32.mrf.mxu0  ;;  %v1577_v57 = vpop.f32.mrf.mxu1 }
 0x363   : > { %1527 = vmatmul.bf16.gmra.mxu0 %v6174_v26  ;;  %1616 = vmatmul.bf16.gmra.mxu1 %v6176_v35  ;;  %v1320_v26 = vpop.f32.mrf.mxu2  ;;  %v1489_v35 = vadd.f32 %v1488_v56, %v6197_v54 }
 0x365   : > { %v6262_v24 = vadd.f32 %v1577_v57, %v1489_v35  ;;  %v1313_v57 = vadd.f32 %v1312_v59, %v6114_v58  ;;  %v1321_v35 = vadd.f32 %v1320_v26, %v6114_v58  ;;  %v1484_v26 = vadd.f32 %v1483_v4, %v6197_v54 }
 0x368   : > { %v1490_v27 = vpop.f32.mrf.mxu0  ;;  %v1579_v38 = vpop.f32.mrf.mxu1 }
 0x369   : > { %v1491_v47 = vadd.f32 %v1490_v27, %v6197_v54 }
 0x370   : > { %v1493_v62 = vpop.f32.mrf.mxu0  ;;  %v1582_v20 = vpop.f32.mrf.mxu1 }
 0x371   : > { %v1494_v51 = vadd.f32 %v1493_v62, %v6197_v54 }
 0x373   : > { %v6253_v46 = vadd.f32 %v1582_v20, %v1494_v51  ;;  %1532 = vmatmul.bf16.gmra.mxu0 %v6182_v33  ;;  %1621 = vmatmul.bf16.gmra.mxu1 %v6184_v22  ;;  %v6265_v33 = vadd.f32 %v1399_v52, %v1311_v5  ;;  %v6267_v22 = vadd.f32 %v1406_v40, %v1318_v9  ;;  %v1409_v51 = vpop.f32.mrf.mxu3 }
 0x374   : > { %v6280_v5 = vadd.f32 %v1579_v38, %v1491_v47  ;;  %v6283_v9 = vadd.f32 %v1401_v42, %v1313_v57  ;;  %v1644_v42 = vmax.f32 %v6145_v41, %v6216_v31 }
 0x375   : > { %v1668_v48 = vmax.f32 %v6251_v53, %v6253_v46  ;;  %8609 = vst [vmem:[#allocation42_spill] sm:$0xff] %v6267_v22  ;;  %v1662_v19 = vmax.f32 %v6265_v33, %v6262_v24 }
 0x376   : > { %v1665_v38 = vmax.f32 %v6283_v9, %v6280_v5 }
 0x377   : > { %1669 = vmax.xlane.f32.xlu2 %v1668_v48  ;;  %v6278_v48 = vpop.f32.mrf.mxu2 }
 0x378   : > { %v1495_v62 = vpop.f32.mrf.mxu0  ;;  %v1584_v25 = vpop.f32.mrf.mxu1 }
 0x379   : > { %v1496_v20 = vadd.f32 %v1495_v62, %v6197_v54  ;;  %v6285_v62 = vadd.f32 %v1409_v51, %v1321_v35  ;;  %v6303_v51 = vadd.f32 %v6239_v15, %v1484_v26  ;;  %v1308_v35 = vadd.f32 %v6228_v7, %v6114_v58 }
 0x37a   : > { %v1632_v7 = vmax.f32 %v6117_v2, %v6200_v28 }
 0x37b   : > { %v6269_v56 = vadd.f32 %v1584_v25, %v1496_v20  ;;  %v6291_v59 = vpop.f32.mrf.mxu3  ;;  %v1306_v20 = vadd.f32 %v6220_v63, %v6114_v58  ;;  %v1638_v63 = vmax.f32 %v6131_v29, %v6208_v21 }
 0x37d   : > { %8610 = vst [vmem:[#allocation43_spill] sm:$0xff] %v6269_v56  ;;  %v1671_v11 = vmax.f32 %v6267_v22, %v6269_v56 }
 0x37f   : > { %1672 = vmax.xlane.f32.xlu0 %v1671_v11  ;;  %1663 = vmax.xlane.f32.xlu2 %v1662_v19  ;;  %v1325_v4 = vpop.f32.mrf.mxu2  ;;  %v6306_v11 = vadd.f32 %v6225_v13, %v1306_v20  ;;  %v1486_v19 = vadd.f32 %v6243_v55, %v6197_v54 }
 0x380   : > { %v1498_v52 = vpop.f32.mrf.mxu0  ;;  %v1587_v40 = vpop.f32.mrf.mxu1 }
 0x381   : > { %v1499_v27 = vadd.f32 %v1498_v52, %v6197_v54  ;;  %v1656_v57 = vmax.f32 %v6306_v11, %v6303_v51  ;;  %v6317_v13 = vadd.f32 %v6245_v1, %v1486_v19 }
 0x383   : > { %v6287_v25 = vadd.f32 %v1587_v40, %v1499_v27  ;;  %1537 = vmatmul.bf16.gmra.mxu0 %v6190_v37  ;;  %1626 = vmatmul.bf16.gmra.mxu1 %v6192_v39  ;;  %v1414_v52 = vpop.f32.mrf.mxu3  ;;  %v6320_v27 = vadd.f32 %v6234_v50, %v1308_v35 }
 0x385   : > { %v1674_v47 = vmax.f32 %v6285_v62, %v6287_v25  ;;  %v1659_v26 = vmax.f32 %v6320_v27, %v6317_v13 }
 0x387   : > { %1675 = vmax.xlane.f32.xlu1 %v1674_v47  ;;  %1666 = vmax.xlane.f32.xlu2 %v1665_v38  ;;  %v1327_v55 = vpop.f32.mrf.mxu2 }
 0x388   : > { %1645 = vmax.xlane.f32.xlu0 %v1644_v42  ;;  %v1500_v37 = vpop.f32.mrf.mxu0  ;;  %v1589_v39 = vpop.f32.mrf.mxu1  ;;  %v1328_v38 = vadd.f32 %v1327_v55, %v6114_v58  ;;  %v1326_v42 = vadd.f32 %v1325_v4, %v6114_v58  ;;  %v1650_v4 = vmax.f32 %v6159_v14, %v6230_v36 }
 0x38b   : > { %v1416_v50 = vpop.f32.mrf.mxu3 }
 0x38f   : > { %1657 = vmax.xlane.f32.xlu2 %v1656_v57 }
 0x390   : > { %1639 = vmax.xlane.f32.xlu0 %v1638_v63  ;;  %v1503_v15 = vpop.f32.mrf.mxu0  ;;  %v1592_v40 = vpop.f32.mrf.mxu1  ;;  %v6332_v63 = vadd.f32 %v1416_v50, %v1328_v38  ;;  %v4788_v38 = vld [vmem:[%s8475_s12] sm:$0xff] }
 0x391   : > { %v1504_v47 = vadd.f32 %v1503_v15, %v6197_v54  ;;  %v6336_v15 = vadd.f32 %v1414_v52, %v1326_v42  ;;  %v1647_v52 = vmax.f32 %v6150_v49, %v6223_v0  ;;  %4554 = vmatmul.msk.bf16.vlgmr.msra.gmra.mxu2 %vm716_vm0, %v4788_v38  ;;  %4558 = vmatmul.msk.bf16.vlgmr.msra.gmra.mxu3 %vm716_vm0, %v4788_v38  ;;  %v2120_v42 = vld [vmem:[%s8476_s13] sm:$0xff]  ;;  %v1330_v38 = vpop.f32.mrf.mxu2 }
 0x392   : > { %8612 = vst [vmem:[#allocation45_spill] sm:$0xff] %v6332_v63 }
 0x393   : > { %v6330_v19 = vadd.f32 %v1592_v40, %v1504_v47  ;;  %8614 = vst [vmem:[#allocation47_spill] sm:$0xff] %v6336_v15  ;;  %v1653_v40 = vmax.f32 %v6164_v23, %v6237_v44  ;;  %v1641_v47 = vmax.f32 %v6136_v32, %v6213_v43  ;;  %v1419_v34 = vpop.f32.mrf.mxu3 }
 0x395   : > { %8611 = vst [vmem:[#allocation44_spill] sm:$0xff] %v6330_v19 }
 0x397   : > { %1660 = vmax.xlane.f32.xlu2 %v1659_v26  ;;  %v1680_v26 = vmax.f32 %v6336_v15, %v6330_v19 }
 0x398   : > { %1633 = vmax.xlane.f32.xlu0 %v1632_v7  ;;  %v1505_v1 = vpop.f32.mrf.mxu0  ;;  %v1594_v57 = vpop.f32.mrf.mxu1  ;;  %v1635_v7 = vmax.f32 %v6122_v16, %v6205_v12 }
 0x399   : > { %v1506_v20 = vadd.f32 %v1505_v1, %v6197_v54 }
 0x39b   : > { %v6334_v35 = vadd.f32 %v1594_v57, %v1506_v20  ;;  %v1501_v57 = vadd.f32 %v1500_v37, %v6197_v54  ;;  %v6390_v8 = vpop.f32.mrf.mxu3 }
 0x39d   : > { %8613 = vst [vmem:[#allocation46_spill] sm:$0xff] %v6334_v35  ;;  %v1683_v55 = vmax.f32 %v6332_v63, %v6334_v35 }
 0x39f   : > { %1684 = vmax.xlane.f32.xlu1 %v1683_v55  ;;  %1651 = vmax.xlane.f32.xlu2 %v1650_v4  ;;  %v1323_v55 = vadd.f32 %v6278_v48, %v6114_v58  ;;  %v6369_v4 = vadd.f32 %v1589_v39, %v1501_v57  ;;  %v6382_v39 = vpop.f32.mrf.mxu2 }
 0x3a0   : > { %1681 = vmax.xlane.f32.xlu0 %v1680_v26  ;;  %v1597_v45 = vpop.f32.mrf.mxu1 }
 0x3a1   : > { %8615 = vst [vmem:[#allocation48_spill] sm:$0xff] %v6369_v4 }
 0x3a7   : > { %1654 = vmax.xlane.f32.xlu2 %v1653_v40  ;;  %v1335_v60 = vpop.f32.mrf.mxu2 }
 0x3a8   : > { %v6388_v18 = vpop.f32.mrf.mxu1 }
 0x3af   : > { %1648 = vmax.xlane.f32.xlu2 %v1647_v52  ;;  %v6374_v52 = vadd.f32 %v6291_v59, %v1323_v55 }
 0x3b1   : > { %8616 = vst [vmem:[#allocation49_spill] sm:$0xff] %v6374_v52 }
 0x3b7   : > { %1642 = vmax.xlane.f32.xlu2 %v1641_v47  ;;  %v1508_v47 = vpop.f32.mrf.mxu0 }
 0x3bf   : > { %1636 = vmax.xlane.f32.xlu2 %v1635_v7  ;;  %v1677_v7 = vmax.f32 %v6374_v52, %v6369_v4  ;;  %v6380_v48 = vpop.f32.mrf.mxu0  ;;  %v6410_v4 = vpop.f32.mrf.mxu2 }
 0x3c7   : > { %v1513_v3 = vpop.f32.mrf.mxu0 }
 0x3cf   : > { %v6406_v35 = vpop.f32.mrf.mxu0 }
 0x3d7   : > { %2130 = vperm.xlu2 %4941, %v2120_v42  }
 0x3ea   : > { %v6360_v1 = vpop.xlane.xlu2 %1669 }
 0x3f2   : > { %v6362_v20 = vpop.xlane.xlu0 %1672  ;;  %v6364_v50 = vpop.xlane.xlu2 %1663 }
 0x3fa   : > { %v6371_v26 = vpop.xlane.xlu2 %1666 }
 0x3fb   : > { %v1646_v40 = vpop.xlane.xlu0 %1645 }
 0x400   : > { %1678 = vmax.xlane.f32.xlu2 %v1677_v7 }
 0x402   : > { %v6378_v42 = vpop.xlane.xlu2 %1657 }
 0x403   : > { %v1640_v37 = vpop.xlane.xlu0 %1639 }
 0x404   : > { %v1732_v6 = vsub.f32 %v6131_v29, %v1640_v37 }
 0x406   : > { %v1800_v15 = vmul.f32 1.442695, %v1732_v6 }
 0x40a   : > { %v6384_v57 = vpop.xlane.xlu2 %1660 }
 0x40b   : > { %v1634_v30 = vpop.xlane.xlu0 %1633 }
 0x40c   : > { %v1728_v59 = vsub.f32 %v6117_v2, %v1634_v30  ;;  %v1729_v55 = vsub.f32 %v6200_v28, %v1634_v30  ;;  %v1602_v2 = vpop.f32.mrf.mxu1  ;;  %v1733_v30 = vsub.f32 %v6208_v21, %v1640_v37  ;;  %v1509_v28 = vadd.f32 %v1508_v47, %v6197_v54 }
 0x40e   : > { %v1792_v17 = vmul.f32 1.442695, %v1728_v59  ;;  %v1794_v7 = vmul.f32 1.442695, %v1729_v55  ;;  %v1802_v29 = vmul.f32 1.442695, %v1733_v30  ;;  %v6408_v63 = vadd.f32 %v1597_v45, %v1509_v28  ;;  %v1518_v30 = vpop.f32.mrf.mxu0  ;;  %v1340_v28 = vpop.f32.mrf.mxu2 }
 0x410   : > { %4943 = vpow2.f32 %v1792_v17  ;;  %v1424_v17 = vpop.f32.mrf.mxu3  ;;  %8619 = vst [vmem:[#allocation52_spill] sm:$0xff] %v6408_v63 }
 0x411   : > { %4945 = vpow2.f32 %v1794_v7  ;;  %v1331_v7 = vadd.f32 %v1330_v38, %v6114_v58 }
 0x412   : > { %v6392_v61 = vpop.xlane.xlu2 %1651  ;;  %4947 = vpow2.f32 %v1800_v15  ;;  %v1737_v15 = vsub.f32 %v6216_v31, %v1646_v40 }
 0x413   : > { %v6412_v21 = vadd.f32 %v1419_v34, %v1331_v7  ;;  %4949 = vpow2.f32 %v1802_v29  ;;  %v1736_v34 = vsub.f32 %v6145_v41, %v1646_v40 }
 0x414   : > { %v6416_v37 = vpop.f32.mrf.mxu1 }
 0x415   : > { %8620 = vst [vmem:[#allocation53_spill] sm:$0xff] %v6412_v21  ;;  %v1686_v47 = vmax.f32 %v6412_v21, %v6408_v63  ;;  %v1810_v21 = vmul.f32 1.442695, %v1737_v15 }
 0x416   : > { %v6394_v10 = vpop.eup %4943  ;;  %v6436_v41 = vpop.f32.mrf.mxu0 }
 0x417   : > { %8617 = vst [vmem:[#allocation50_spill] sm:$0xff] %v6394_v10  ;;  %v6397_v19 = vpop.eup %4945  ;;  %v6440_v31 = vpop.f32.mrf.mxu2 }
 0x418   : > { %8618 = vst [vmem:[#allocation51_spill] sm:$0xff] %v6397_v19  ;;  %v1920_v59 = vadd.f32 %v6397_v19, %v6394_v10  ;;  %v6420_v6 = vpop.f32.mrf.mxu3  ;;  %v6422_v38 = vpop.eup %4947  ;;  %v1808_v10 = vmul.f32 1.442695, %v1736_v34 }
 0x419   : > { %8621 = vst [vmem:[#allocation54_spill] sm:$0xff] %v6422_v38  ;;  %v6424_v45 = vpop.eup %4949 }
 0x41a   : > { %v6403_v55 = vpop.xlane.xlu2 %1654  ;;  %1921 = vadd.xlane.f32.xlu0 %v1920_v59  ;;  %8622 = vst [vmem:[#allocation55_spill] sm:$0xff] %v6424_v45  ;;  %v1514_v59 = vadd.f32 %v1513_v3, %v6197_v54  ;;  %v1926_v7 = vadd.f32 %v6424_v45, %v6422_v38  ;;  %4951 = vpow2.f32 %v1808_v10 }
 0x41b   : > { %4953 = vpow2.f32 %v1810_v21  ;;  %v1740_v21 = vsub.f32 %v6159_v14, %v6392_v61 }
 0x41c   : > { %v1607_v63 = vpop.f32.mrf.mxu1  ;;  %v6432_v52 = vadd.f32 %v1602_v2, %v1514_v59 }
 0x41e   : > { %8623 = vst [vmem:[#allocation56_spill] sm:$0xff] %v6432_v52 }
 0x420   : > { %v1429_v56 = vpop.f32.mrf.mxu3  ;;  %v6444_v2 = vpop.eup %4951 }
 0x421   : > { %v6446_v59 = vpop.eup %4953 }
 0x422   : > { %v6418_v19 = vpop.xlane.xlu2 %1648  ;;  %1687 = vmax.xlane.f32.xlu0 %v1686_v47  ;;  %v1336_v47 = vadd.f32 %v1335_v60, %v6114_v58 }
 0x424   : > { %v6434_v22 = vadd.f32 %v1424_v17, %v1336_v47  ;;  %v6448_v10 = vpop.f32.mrf.mxu1  ;;  %v1741_v47 = vsub.f32 %v6230_v36, %v6392_v61 }
 0x426   : > { %8624 = vst [vmem:[#allocation57_spill] sm:$0xff] %v6434_v22  ;;  %v1692_v3 = vmax.f32 %v6434_v22, %v6432_v52  ;;  %v1818_v45 = vmul.f32 1.442695, %v1741_v47 }
 0x42a   : > { %v1643_v29 = vpop.xlane.xlu2 %1642  ;;  %1927 = vadd.xlane.f32.xlu0 %v1926_v7  ;;  %v6452_v7 = vpop.f32.mrf.mxu3 }
 0x42b   : > { %v1734_v38 = vsub.f32 %v6136_v32, %v1643_v29  ;;  %v1735_v36 = vsub.f32 %v6213_v43, %v1643_v29 }
 0x42d   : > { %v1804_v47 = vmul.f32 1.442695, %v1734_v38 }
 0x432   : > { %v1637_v40 = vpop.xlane.xlu2 %1636  ;;  %1693 = vmax.xlane.f32.xlu0 %v1692_v3  ;;  %v1523_v3 = vpop.f32.mrf.mxu0 }
 0x433   : > { %v1730_v60 = vsub.f32 %v6122_v16, %v1637_v40  ;;  %v1731_v34 = vsub.f32 %v6205_v12, %v1637_v40  ;;  %v1519_v16 = vadd.f32 %v1518_v30, %v6197_v54  ;;  %v1932_v12 = vadd.f32 %v6446_v59, %v6444_v2  ;;  %v1434_v43 = vpop.f32.mrf.mxu3 }
 0x434   : > { %v1341_v40 = vadd.f32 %v1340_v28, %v6114_v58 }
 0x435   : > { %v1796_v15 = vmul.f32 1.442695, %v1730_v60  ;;  %v1798_v17 = vmul.f32 1.442695, %v1731_v34  ;;  %v1816_v60 = vmul.f32 1.442695, %v1740_v21  ;;  %v1345_v34 = vpop.f32.mrf.mxu2  ;;  %v1612_v21 = vpop.f32.mrf.mxu1 }
 0x436   : > { %v6468_v30 = vadd.f32 %v1429_v56, %v1341_v40  ;;  %v1806_v56 = vmul.f32 1.442695, %v1735_v36  ;;  %v1745_v40 = vsub.f32 %v6303_v51, %v6378_v42 }
 0x437   : > { %4955 = vpow2.f32 %v1796_v15  ;;  %v6462_v15 = vadd.f32 %v1607_v63, %v1519_v16  ;;  %v1333_v63 = vadd.f32 %v6382_v39, %v6114_v58 }
 0x438   : > { %4957 = vpow2.f32 %v1798_v17  ;;  %v1511_v17 = vadd.f32 %v6380_v48, %v6197_v54 }
 0x439   : > { %4959 = vpow2.f32 %v1816_v60  ;;  %v1698_v32 = vmax.f32 %v6468_v30, %v6462_v15  ;;  %v1524_v60 = vadd.f32 %v1523_v3, %v6197_v54 }
 0x43a   : > { %1933 = vadd.xlane.f32.xlu0 %v1932_v12  ;;  %4961 = vpow2.f32 %v1818_v45  ;;  %v6479_v29 = vadd.f32 %v6388_v18, %v1511_v17  ;;  %v6481_v48 = vpop.f32.mrf.mxu0  ;;  %v6486_v45 = vadd.f32 %v6390_v8, %v1333_v63  ;;  %v1744_v12 = vsub.f32 %v6306_v11, %v6378_v42 }
 0x43b   : > { %4963 = vpow2.f32 %v1804_v47  ;;  %v6508_v47 = vpop.f32.mrf.mxu3  ;;  %v6510_v51 = vadd.f32 %v1612_v21, %v1524_v60  ;;  %v1738_v42 = vsub.f32 %v6150_v49, %v6418_v19  ;;  %v1338_v21 = vadd.f32 %v6410_v4, %v6114_v58 }
 0x43c   : > { %4965 = vpow2.f32 %v1806_v56  ;;  %v1689_v18 = vmax.f32 %v6486_v45, %v6479_v29  ;;  %v1824_v63 = vmul.f32 1.442695, %v1744_v12  ;;  %v1739_v56 = vsub.f32 %v6223_v0, %v6418_v19 }
 0x43d   : > { %v6460_v14 = vpop.eup %4955  ;;  %v6490_v38 = vpop.f32.mrf.mxu2  ;;  %v6532_v60 = vadd.f32 %v6420_v6, %v1338_v21 }
 0x43e   : > { %8625 = vst [vmem:[#allocation58_spill] sm:$0xff] %v6460_v14  ;;  %v6465_v61 = vpop.eup %4957  ;;  %v6501_v36 = vpop.f32.mrf.mxu1  ;;  %4967 = vpow2.f32 %v1824_v63  ;;  %v1814_v0 = vmul.f32 1.442695, %v1739_v56  ;;  %v1748_v63 = vsub.f32 %v6265_v33, %v6364_v50 }
 0x43f   : > { %8626 = vst [vmem:[#allocation59_spill] sm:$0xff] %v6465_v61  ;;  %v1923_v28 = vadd.f32 %v6465_v61, %v6460_v14  ;;  %v6483_v16 = vpop.eup %4959 }
 0x440   : > { %v6488_v39 = vpop.eup %4961  ;;  %v1832_v21 = vmul.f32 1.442695, %v1748_v63 }
 0x441   : > { %1924 = vadd.xlane.f32.xlu2 %v1923_v28  ;;  %v1938_v8 = vadd.f32 %v6488_v39, %v6483_v16  ;;  %v6503_v17 = vpop.eup %4963  ;;  %v1346_v28 = vadd.f32 %v1345_v34, %v6114_v58  ;;  %v1516_v34 = vadd.f32 %v6406_v35, %v6197_v54 }
 0x442   : > { %1699 = vmax.xlane.f32.xlu0 %v1698_v32  ;;  %8627 = vst [vmem:[#allocation60_spill] sm:$0xff] %v6503_v17  ;;  %v6506_v11 = vpop.eup %4965  ;;  %v1826_v32 = vmul.f32 1.442695, %v1745_v40  ;;  %v1528_v3 = vpop.f32.mrf.mxu0  ;;  %v1812_v40 = vmul.f32 1.442695, %v1738_v42  ;;  %v1749_v42 = vsub.f32 %v6262_v24, %v6364_v50  ;;  %v1742_v24 = vsub.f32 %v6164_v23, %v6403_v55 }
 0x443   : > { %8628 = vst [vmem:[#allocation61_spill] sm:$0xff] %v6506_v11  ;;  %v1929_v12 = vadd.f32 %v6506_v11, %v6503_v17  ;;  %v6527_v19 = vadd.f32 %v6416_v37, %v1516_v34  ;;  %v1439_v4 = vpop.f32.mrf.mxu3  ;;  %v1529_v56 = vadd.f32 %v1528_v3, %v6197_v54  ;;  %v1743_v3 = vsub.f32 %v6237_v44, %v6403_v55 }
 0x444   : > { %4969 = vpow2.f32 %v1826_v32  ;;  %v1343_v23 = vadd.f32 %v6440_v31, %v6114_v58  ;;  %v1752_v31 = vsub.f32 %v6251_v53, %v6360_v1 }
 0x445   : > { %4971 = vpow2.f32 %v1812_v40  ;;  %v1695_v32 = vmax.f32 %v6532_v60, %v6527_v19 }
 0x446   : > { %v1617_v35 = vpop.f32.mrf.mxu1  ;;  %4973 = vpow2.f32 %v1814_v0 }
 0x447   : > { %v6554_v0 = vadd.f32 %v1617_v35, %v1529_v56  ;;  %4975 = vpow2.f32 %v1832_v21  ;;  %v1820_v35 = vmul.f32 1.442695, %v1742_v24 }
 0x449   : > { %1690 = vmax.xlane.f32.xlu2 %v1689_v18  ;;  %v6516_v18 = vadd.f32 %v1434_v43, %v1346_v28  ;;  %v6529_v43 = vpop.eup %4967 }
 0x44a   : > { %1939 = vadd.xlane.f32.xlu0 %v1938_v8  ;;  %v1350_v8 = vpop.f32.mrf.mxu2  ;;  %v6534_v28 = vpop.eup %4969 }
 0x44b   : > { %v1704_v49 = vmax.f32 %v6516_v18, %v6510_v51  ;;  %v6540_v37 = vpop.f32.mrf.mxu0  ;;  %v1944_v6 = vadd.f32 %v6534_v28, %v6529_v43  ;;  %v1351_v33 = vadd.f32 %v1350_v8, %v6114_v58  ;;  %v1521_v8 = vadd.f32 %v6436_v41, %v6197_v54 }
 0x44d   : > { %v6575_v56 = vadd.f32 %v6448_v10, %v1521_v8  ;;  %v1753_v10 = vsub.f32 %v6253_v46, %v6360_v1  ;;  %v1746_v1 = vsub.f32 %v6320_v27, %v6384_v57 }
 0x44e   : > { %v6558_v50 = vpop.f32.mrf.mxu1 }
 0x451   : > { %1930 = vadd.xlane.f32.xlu2 %v1929_v12  ;;  %v6549_v12 = vpop.eup %4971 }
 0x452   : > { %1705 = vmax.xlane.f32.xlu0 %v1704_v49  ;;  %v6547_v34 = vpop.f32.mrf.mxu2  ;;  %v6552_v40 = vpop.eup %4973  ;;  %v1834_v49 = vmul.f32 1.442695, %v1749_v42 }
 0x453   : > { %v1935_v63 = vadd.f32 %v6552_v40, %v6549_v12  ;;  %v6568_v42 = vpop.f32.mrf.mxu3  ;;  %v1533_v55 = vpop.f32.mrf.mxu0 }
 0x454   : > { %4977 = vpow2.f32 %v1834_v49 }
 0x455   : > { %4979 = vpow2.f32 %v1820_v35  ;;  %v1840_v35 = vmul.f32 1.442695, %v1752_v31 }
 0x456   : > { %v1622_v24 = vpop.f32.mrf.mxu1 }
 0x459   : > { %1696 = vmax.xlane.f32.xlu2 %v1695_v32  ;;  %v6562_v32 = vadd.f32 %v1439_v4, %v1351_v33  ;;  %v1822_v4 = vmul.f32 1.442695, %v1743_v3  ;;  %v6580_v33 = vadd.f32 %v6452_v7, %v1343_v23  ;;  %v1534_v3 = vadd.f32 %v1533_v55, %v6197_v54 }
 0x45a   : > { %1945 = vadd.xlane.f32.xlu0 %v1944_v6  ;;  %v1355_v41 = vpop.f32.mrf.mxu2  ;;  %v6577_v6 = vpop.eup %4975 }
 0x45b   : > { %v1710_v44 = vmax.f32 %v6562_v32, %v6554_v0  ;;  %v6582_v21 = vpop.eup %4977  ;;  %4981 = vpow2.f32 %v1822_v4  ;;  %v1701_v49 = vmax.f32 %v6580_v33, %v6575_v56  ;;  %v1444_v8 = vpop.f32.mrf.mxu3  ;;  %v1356_v23 = vadd.f32 %v1355_v41, %v6114_v58 }
 0x45c   : > { %v1950_v7 = vadd.f32 %v6582_v21, %v6577_v6  ;;  %v6598_v4 = vpop.f32.mrf.mxu0  ;;  %v6600_v46 = vadd.f32 %v1622_v24, %v1534_v3  ;;  %v1526_v41 = vadd.f32 %v6481_v48, %v6197_v54  ;;  %4983 = vpow2.f32 %v1840_v35 }
 0x45d   : > { %v6608_v61 = vadd.f32 %v1444_v8, %v1356_v23  ;;  %v1828_v24 = vmul.f32 1.442695, %v1746_v1 }
 0x45e   : > { %v6618_v3 = vpop.f32.mrf.mxu1 }
 0x45f   : > { %v1716_v27 = vmax.f32 %v6608_v61, %v6600_v46 }
 0x461   : > { %1936 = vadd.xlane.f32.xlu2 %v1935_v63  ;;  %v6593_v63 = vpop.eup %4979 }
 0x462   : > { %1711 = vmax.xlane.f32.xlu0 %v1710_v44  ;;  %v6596_v53 = vpop.eup %4981  ;;  %v1842_v44 = vmul.f32 1.442695, %v1753_v10  ;;  %v6604_v55 = vpop.f32.mrf.mxu2  ;;  %v1348_v10 = vadd.f32 %v6490_v38, %v6114_v58 }
 0x463   : > { %v1941_v31 = vadd.f32 %v6596_v53, %v6593_v63  ;;  %v6623_v48 = vpop.f32.mrf.mxu3  ;;  %v6625_v8 = vpop.eup %4983 }
 0x464   : > { %4985 = vpow2.f32 %v1842_v44  ;;  %8629 = vst [vmem:[#allocation62_spill] sm:$0xff] %v6625_v8  ;;  %v6628_v23 = vadd.f32 %v6508_v47, %v1348_v10  ;;  %v1538_v35 = vpop.f32.mrf.mxu0 }
 0x465   : > { %4987 = vpow2.f32 %v1828_v24 }
 0x469   : > { %1702 = vmax.xlane.f32.xlu2 %v1701_v49  ;;  %v1747_v49 = vsub.f32 %v6317_v13, %v6384_v57  ;;  %v6621_v57 = vadd.f32 %v6501_v36, %v1526_v41  ;;  %v1539_v41 = vadd.f32 %v1538_v35, %v6197_v54 }
 0x46a   : > { %1951 = vadd.xlane.f32.xlu0 %v1950_v7  ;;  %v1676_v7 = vpop.xlane.xlu1 %1675  ;;  %v6630_v38 = vpop.eup %4985 }
 0x46b   : > { %v1830_v13 = vmul.f32 1.442695, %v1747_v49  ;;  %8630 = vst [vmem:[#allocation63_spill] sm:$0xff] %v6630_v38  ;;  %v1756_v44 = vsub.f32 %v6285_v62, %v1676_v7  ;;  %v1707_v36 = vmax.f32 %v6628_v23, %v6621_v57  ;;  %v1360_v1 = vpop.f32.mrf.mxu2  ;;  %v1757_v49 = vsub.f32 %v6287_v25, %v1676_v7  ;;  %v4789_v62 = vld [vmem:[%s8475_s12 + $0x8] sm:$0xff]  ;;  %v1627_v25 = vpop.f32.mrf.mxu1 }
 0x46c   : > { %v1956_v47 = vadd.f32 %v6630_v38, %v6625_v8  ;;  %v1361_v10 = vadd.f32 %v1360_v1, %v6114_v58  ;;  %v1750_v7 = vsub.f32 %v6283_v9, %v6371_v26  ;;  %v6649_v35 = vadd.f32 %v1627_v25, %v1539_v41  ;;  %4559 = vmatmul.msk.bf16.gmra.mxu3 %vm716_vm0, %v4789_v62 }
 0x46d   : > { %4989 = vpow2.f32 %v1830_v13  ;;  %v1848_v24 = vmul.f32 1.442695, %v1756_v44  ;;  %v1850_v13 = vmul.f32 1.442695, %v1757_v49  ;;  %4555 = vmatmul.msk.bf16.gmra.mxu2 %vm716_vm0, %v4789_v62  ;;  %v1751_v44 = vsub.f32 %v6280_v5, %v6371_v26 }
 0x46e   : > { %v1353_v9 = vadd.f32 %v6547_v34, %v6114_v58  ;;  %v1836_v41 = vmul.f32 1.442695, %v1750_v7  ;;  %v6675_v34 = vpop.xlane.xlu0 %1681 }
 0x46f   : > { %4991 = vpow2.f32 %v1848_v24  ;;  %v1838_v25 = vmul.f32 1.442695, %v1751_v44  ;;  %v8634_v44 = vld [vmem:[#allocation43_spill] sm:$0xff] }
 0x470   : > { %4993 = vpow2.f32 %v1850_v13 }
 0x471   : > { %1942 = vadd.xlane.f32.xlu2 %v1941_v31  ;;  %v6639_v31 = vpop.eup %4987  ;;  %4995 = vpow2.f32 %v1836_v41 }
 0x472   : > { %1717 = vmax.xlane.f32.xlu0 %v1716_v27  ;;  %4997 = vpow2.f32 %v1838_v25 }
 0x473   : > { %v6645_v27 = vpop.eup %4989 }
 0x474   : > { %v1947_v49 = vadd.f32 %v6645_v27, %v6639_v31 }
 0x475   : > { %v6668_v26 = vpop.eup %4991 }
 0x476   : > { %8631 = vst [vmem:[#allocation64_spill] sm:$0xff] %v6668_v26 }
 0x479   : > { %1708 = vmax.xlane.f32.xlu2 %v1707_v36  ;;  %v1449_v36 = vpop.f32.mrf.mxu3 }
 0x47a   : > { %1957 = vadd.xlane.f32.xlu0 %v1956_v47  ;;  %v6655_v1 = vadd.f32 %v1449_v36, %v1361_v10  ;;  %v1531_v47 = vadd.f32 %v6540_v37, %v6197_v54  ;;  %v6671_v37 = vadd.f32 %v6568_v42, %v1353_v9  ;;  %v6673_v10 = vpop.eup %4993  ;;  %v8633_v42 = vld [vmem:[#allocation42_spill] sm:$0xff]  ;;  %v1536_v9 = vadd.f32 %v6598_v4, %v6197_v54 }
 0x47b   : > { %8632 = vst [vmem:[#allocation65_spill] sm:$0xff] %v6673_v10  ;;  %v6681_v13 = vpop.eup %4995  ;;  %v1754_v36 = vsub.f32 %v8633_v42, %v6362_v20 }
 0x47c   : > { %v1722_v62 = vmax.f32 %v6655_v1, %v6649_v35  ;;  %v6666_v5 = vadd.f32 %v6558_v50, %v1531_v47  ;;  %v1962_v50 = vadd.f32 %v6673_v10, %v6668_v26  ;;  %v6683_v7 = vpop.eup %4997  ;;  %v1755_v47 = vsub.f32 %v8634_v44, %v6362_v20 }
 0x47d   : > { %v1953_v41 = vadd.f32 %v6683_v7, %v6681_v13  ;;  %v1844_v25 = vmul.f32 1.442695, %v1754_v36 }
 0x47e   : > { %v1713_v24 = vmax.f32 %v6671_v37, %v6666_v5 }
 0x47f   : > { %4999 = vpow2.f32 %v1844_v25 }
 0x481   : > { %1948 = vadd.xlane.f32.xlu2 %v1947_v49 }
 0x482   : > { %1723 = vmax.xlane.f32.xlu0 %v1722_v62  ;;  %v1358_v62 = vadd.f32 %v6604_v55, %v6114_v58 }
 0x484   : > { %v6701_v42 = vadd.f32 %v6623_v48, %v1358_v62 }
 0x485   : > { %v6707_v44 = vpop.eup %4999 }
 0x486   : > { %8636 = vst [vmem:[#allocation43_spill] sm:$0xff] %v6707_v44 }
 0x489   : > { %1714 = vmax.xlane.f32.xlu2 %v1713_v24  ;;  %v1846_v24 = vmul.f32 1.442695, %v1755_v47  ;;  %v6718_v47 = vpop.permute.xlu2 %2130 }
 0x48a   : > { %1963 = vadd.xlane.f32.xlu0 %v1962_v50  ;;  %v6698_v50 = vadd.f32 %v6618_v3, %v1536_v9  ;;  %v2121_v3 = vld [vmem:[%s8476_s13 + $0x8] sm:$0xff]  ;;  %8639 = vst [vmem:[#allocation68_spill] sm:$0xff] %v6718_v47 }
 0x48b   : > { %5001 = vpow2.f32 %v1846_v24 }
 0x48c   : > { %v1719_v4 = vmax.f32 %v6701_v42, %v6698_v50 }
 0x48d   : > { %v6689_v49 = vpop.xlane.xlu0 %1921 }
 0x48e   : > { %8635 = vst [vmem:[#allocation42_spill] sm:$0xff] %v6689_v49 }
 0x491   : > { %1954 = vadd.xlane.f32.xlu2 %v1953_v41  ;;  %v6709_v55 = vpop.eup %5001  ;;  %v1679_v41 = vpop.xlane.xlu2 %1678 }
 0x492   : > { %8637 = vst [vmem:[#allocation66_spill] sm:$0xff] %v6709_v55  ;;  %v1959_v48 = vadd.f32 %v6709_v55, %v6707_v44 }
 0x495   : > { %v6703_v20 = vpop.xlane.xlu0 %1687 }
 0x499   : > { %1720 = vmax.xlane.f32.xlu2 %v1719_v4  ;;  %v2122_v4 = vld [vmem:[%s8476_s13 + $0x10] sm:$0xff] }
 0x49d   : > { %v6714_v36 = vpop.xlane.xlu0 %1927 }
 0x49e   : > { %8638 = vst [vmem:[#allocation67_spill] sm:$0xff] %v6714_v36  ;;  %2135 = vperm.xlu0 %4940, %v2121_v3  }
 0x4a1   : > { %1960 = vadd.xlane.f32.xlu2 %v1959_v48 }
 0x4a5   : > { %v6720_v9 = vpop.xlane.xlu0 %1693 }
 0x4a6   : > { %8640 = vst [vmem:[#allocation69_spill] sm:$0xff] %v6720_v9 }
 0x4ad   : > { %v1934_v62 = vpop.xlane.xlu0 %1933 }
 0x4b4   : > { %v6722_v25 = vpop.xlane.xlu2 %1924 }
 0x4b5   : > { %8641 = vst [vmem:[#allocation70_spill] sm:$0xff] %v6722_v25  ;;  %v1700_v24 = vpop.xlane.xlu0 %1699 }
 0x4b6   : > { %v1772_v14 = vsub.f32 %v6468_v30, %v1700_v24  ;;  %v1773_v3 = vsub.f32 %v6462_v15, %v1700_v24  ;;  %v1540_v24 = vpop.f32.mrf.mxu0 }
 0x4b7   : > { %v1541_v36 = vadd.f32 %v1540_v24, %v6197_v54 }
 0x4b8   : > { %v1880_v49 = vmul.f32 1.442695, %v1772_v14  ;;  %v1882_v48 = vmul.f32 1.442695, %v1773_v3  ;;  %v8645_v3 = vld [vmem:[#allocation49_spill] sm:$0xff] }
 0x4b9   : > { %2140 = vperm.xlu2 %4941, %v2122_v4   ;;  %v1362_v4 = vpop.f32.mrf.mxu2 }
 0x4ba   : > { %5003 = vpow2.f32 %v1880_v49 }
 0x4bb   : > { %5005 = vpow2.f32 %v1882_v48  ;;  %v1758_v48 = vsub.f32 %v8645_v3, %v1679_v41 }
 0x4bc   : > { %v6729_v11 = vpop.xlane.xlu2 %1690  ;;  %5007 = vrcp.f32 %v1934_v62 }
 0x4bd   : > { %v1940_v47 = vpop.xlane.xlu0 %1939 }
 0x4c0   : > { %v6731_v17 = vpop.eup %5003 }
 0x4c1   : > { %8642 = vst [vmem:[#allocation71_spill] sm:$0xff] %v6731_v17  ;;  %v6733_v25 = vpop.eup %5005 }
 0x4c2   : > { %8643 = vst [vmem:[#allocation72_spill] sm:$0xff] %v6733_v25  ;;  %v1986_v30 = vadd.f32 %v6733_v25, %v6731_v17  ;;  %v5008_v8 = vpop.eup %5007  ;;  %v1363_v25 = vadd.f32 %v1362_v4, %v6114_v58  ;;  %v1852_v17 = vmul.f32 1.442695, %v1758_v48 }
 0x4c3   : > { %v6750_v10 = vmul.f32 %v5008_v8, %v6444_v2 }
 0x4c4   : > { %v6735_v52 = vpop.xlane.xlu2 %1930 }
 0x4c5   : > { %8644 = vst [vmem:[#allocation73_spill] sm:$0xff] %v6735_v52  ;;  %v1706_v22 = vpop.xlane.xlu0 %1705  ;;  %v8646_v52 = vld [vmem:[#allocation48_spill] sm:$0xff] }
 0x4c6   : > { %v1759_v38 = vsub.f32 %v8646_v52, %v1679_v41  ;;  %v1776_v3 = vsub.f32 %v6516_v18, %v1706_v22  ;;  %v6757_v52 = vmul.f32 %v5008_v8, %v6446_v59 }
 0x4c8   : > { %1987 = vadd.xlane.f32.xlu0 %v1986_v30  ;;  %v1629_v30 = vpop.f32.mrf.mxu1  ;;  %v1854_v62 = vmul.f32 1.442695, %v1759_v38 }
 0x4c9   : > { %v6747_v44 = vadd.f32 %v1629_v30, %v1541_v36  ;;  %v1777_v36 = vsub.f32 %v6510_v51, %v1706_v22 }
 0x4cc   : > { %v6739_v15 = vpop.xlane.xlu2 %1696 }
 0x4cd   : > { %v6741_v14 = vpop.xlane.xlu0 %1945 }
 0x4d4   : > { %v1937_v49 = vpop.xlane.xlu2 %1936 }
 0x4d5   : > { %5009 = vrcp.f32 %v1937_v49  ;;  %v1712_v9 = vpop.xlane.xlu0 %1711  ;;  %v1451_v49 = vpop.f32.mrf.mxu3 }
 0x4d6   : > { %v6762_v41 = vadd.f32 %v1451_v49, %v1363_v25  ;;  %5011 = vpow2.f32 %v1852_v17  ;;  %v1888_v17 = vmul.f32 1.442695, %v1776_v3  ;;  %v1781_v22 = vsub.f32 %v6554_v0, %v1712_v9 }
 0x4d7   : > { %5013 = vpow2.f32 %v1854_v62 }
 0x4d8   : > { %v1725_v51 = vmax.f32 %v6762_v41, %v6747_v44  ;;  %v1898_v25 = vmul.f32 1.442695, %v1781_v22 }
 0x4db   : > { %v5010_v55 = vpop.eup %5009 }
 0x4dc   : > { %v1703_v26 = vpop.xlane.xlu2 %1702  ;;  %v6754_v54 = vmul.f32 %v5010_v55, %v6549_v12  ;;  %v6760_v58 = vmul.f32 %v5010_v55, %v6552_v40  ;;  %v1780_v40 = vsub.f32 %v6562_v32, %v1712_v9 }
 0x4dd   : > { %v1774_v38 = vsub.f32 %v6580_v33, %v1703_v26  ;;  %v1775_v2 = vsub.f32 %v6575_v56, %v1703_v26  ;;  %v6767_v18 = vpop.xlane.xlu0 %1951  ;;  %v4790_v56 = vld [vmem:[%s8475_s12 + $0x10] sm:$0xff]  ;;  %v1890_v33 = vmul.f32 1.442695, %v1777_v36  ;;  %v6782_v26 = vpop.eup %5011 }
 0x4de   : > { %4556 = vmatmul.msk.bf16.gmra.mxu2 %vm716_vm0, %v4790_v56  ;;  %4560 = vmatmul.msk.bf16.gmra.mxu3 %vm716_vm0, %v4790_v56  ;;  %v1896_v32 = vmul.f32 1.442695, %v1780_v40  ;;  %v6784_v4 = vpop.eup %5013 }
 0x4df   : > { %v1884_v8 = vmul.f32 1.442695, %v1774_v38  ;;  %v1886_v55 = vmul.f32 1.442695, %v1775_v2 }
 0x4e1   : > { %5015 = vpow2.f32 %v1884_v8 }
 0x4e2   : > { %5017 = vpow2.f32 %v1886_v55  ;;  %1726 = vmax.xlane.f32.xlu2 %v1725_v51 }
 0x4e3   : > { %5019 = vrcp.f32 %v1940_v47  ;;  %v1965_v47 = vadd.f32 %v6784_v4, %v6782_v26 }
 0x4e4   : > { %5021 = vpow2.f32 %v1888_v17  ;;  %v1943_v24 = vpop.xlane.xlu2 %1942 }
 0x4e5   : > { %5023 = vrcp.f32 %v1943_v24  ;;  %v6786_v0 = vpop.xlane.xlu0 %1717 }
 0x4e6   : > { %5025 = vpow2.f32 %v1890_v33 }
 0x4e7   : > { %v6788_v9 = vpop.eup %5015  ;;  %5027 = vpow2.f32 %v1896_v32 }
 0x4e8   : > { %v6790_v48 = vpop.eup %5017  ;;  %5029 = vpow2.f32 %v1898_v25 }
 0x4e9   : > { %v5020_v30 = vpop.eup %5019  ;;  %v1989_v62 = vadd.f32 %v6790_v48, %v6788_v9  ;;  %5031 = vrcp.f32 %v6741_v14 }
 0x4ea   : > { %v6796_v49 = vpop.eup %5021  ;;  %1966 = vadd.xlane.f32.xlu2 %v1965_v47  ;;  %v6801_v36 = vmul.f32 %v5020_v30, %v6483_v16  ;;  %v6807_v8 = vmul.f32 %v5020_v30, %v6488_v39 }
 0x4eb   : > { %v5024_v3 = vpop.eup %5023  ;;  %1990 = vadd.xlane.f32.xlu0 %v1989_v62 }
 0x4ec   : > { %v6798_v38 = vpop.eup %5025  ;;  %v1709_v2 = vpop.xlane.xlu2 %1708  ;;  %v6804_v40 = vmul.f32 %v5024_v3, %v6593_v63  ;;  %v6810_v55 = vmul.f32 %v5024_v3, %v6596_v53 }
 0x4ed   : > { %v6812_v56 = vpop.eup %5027  ;;  %v1778_v17 = vsub.f32 %v6628_v23, %v1709_v2  ;;  %v1779_v22 = vsub.f32 %v6621_v57, %v1709_v2  ;;  %v6818_v33 = vpop.xlane.xlu0 %1957  ;;  %v1992_v53 = vadd.f32 %v6798_v38, %v6796_v49 }
 0x4ee   : > { %v6816_v51 = vpop.eup %5029 }
 0x4ef   : > { %v1892_v63 = vmul.f32 1.442695, %v1778_v17  ;;  %v1894_v32 = vmul.f32 1.442695, %v1779_v22  ;;  %v1998_v57 = vadd.f32 %v6816_v51, %v6812_v56  ;;  %v5032_v25 = vpop.eup %5031 }
 0x4f1   : > { %5033 = vpow2.f32 %v1892_v63  ;;  %v6838_v63 = vmul.f32 %v5032_v25, %v6529_v43 }
 0x4f2   : > { %5035 = vpow2.f32 %v1894_v32  ;;  %1993 = vadd.xlane.f32.xlu2 %v1992_v53 }
 0x4f3   : > { %1999 = vadd.xlane.f32.xlu0 %v1998_v57 }
 0x4f4   : > { %v1949_v23 = vpop.xlane.xlu2 %1948 }
 0x4f5   : > { %5037 = vrcp.f32 %v1949_v23  ;;  %v1724_v24 = vpop.xlane.xlu0 %1723 }
 0x4f6   : > { %v1788_v30 = vsub.f32 %v6655_v1, %v1724_v24  ;;  %v1789_v14 = vsub.f32 %v6649_v35, %v1724_v24  ;;  %v6844_v35 = vmul.f32 %v5032_v25, %v6534_v28  ;;  %v1785_v28 = vsub.f32 %v6600_v46, %v6786_v0 }
 0x4f7   : > { %v6829_v47 = vpop.eup %5033 }
 0x4f8   : > { %v6833_v62 = vpop.eup %5035  ;;  %v1912_v3 = vmul.f32 1.442695, %v1788_v30  ;;  %v1914_v2 = vmul.f32 1.442695, %v1789_v14 }
 0x4f9   : > { %v1995_v17 = vadd.f32 %v6833_v62, %v6829_v47 }
 0x4fa   : > { %5039 = vpow2.f32 %v1912_v3  ;;  %v1906_v3 = vmul.f32 1.442695, %v1785_v28 }
 0x4fb   : > { %v5038_v22 = vpop.eup %5037  ;;  %1996 = vadd.xlane.f32.xlu1 %v1995_v17  ;;  %5041 = vpow2.f32 %v1914_v2 }
 0x4fc   : > { %v1715_v32 = vpop.xlane.xlu2 %1714  ;;  %v6841_v53 = vmul.f32 %v5038_v22, %v6639_v31  ;;  %v6847_v1 = vmul.f32 %v5038_v22, %v6645_v27  ;;  %v1784_v31 = vsub.f32 %v6608_v61, %v6786_v0 }
 0x4fd   : > { %v1782_v57 = vsub.f32 %v6671_v37, %v1715_v32  ;;  %v1783_v23 = vsub.f32 %v6666_v5, %v1715_v32 }
 0x4fe   : > { %v1904_v5 = vmul.f32 1.442695, %v1784_v31 }
 0x4ff   : > { %v1900_v30 = vmul.f32 1.442695, %v1782_v57  ;;  %v1902_v14 = vmul.f32 1.442695, %v1783_v23 }
 0x500   : > { %v6859_v27 = vpop.eup %5039 }
 0x501   : > { %5043 = vpow2.f32 %v1900_v30  ;;  %v6861_v37 = vpop.eup %5041 }
 0x502   : > { %5045 = vpow2.f32 %v1902_v14  ;;  %v2010_v25 = vadd.f32 %v6861_v37, %v6859_v27 }
 0x503   : > { %5047 = vrcp.f32 %v6767_v18 }
 0x504   : > { %v1955_v2 = vpop.xlane.xlu2 %1954  ;;  %2011 = vadd.xlane.f32.xlu0 %v2010_v25 }
 0x505   : > { %5049 = vrcp.f32 %v1955_v2 }
 0x506   : > { %5051 = vpow2.f32 %v1904_v5 }
 0x507   : > { %v6866_v61 = vpop.eup %5043  ;;  %5053 = vpow2.f32 %v1906_v3  ;;  %v1771_v3 = vsub.f32 %v6527_v19, %v6739_v15  ;;  %v1767_v19 = vsub.f32 %v6479_v29, %v6729_v11 }
 0x508   : > { %v6868_v46 = vpop.eup %5045 }
 0x509   : > { %v5048_v0 = vpop.eup %5047  ;;  %v2001_v17 = vadd.f32 %v6868_v46, %v6866_v61  ;;  %v1878_v2 = vmul.f32 1.442695, %v1771_v3 }
 0x50a   : > { %v6873_v32 = vmul.f32 %v5048_v0, %v6577_v6  ;;  %v6879_v23 = vmul.f32 %v5048_v0, %v6582_v21  ;;  %v1770_v21 = vsub.f32 %v6532_v60, %v6739_v15  ;;  %v2125_v0 = vld [vmem:[%s8476_s13 + $0x28] sm:$0xff]  ;;  %v1766_v60 = vsub.f32 %v6486_v45, %v6729_v11 }
 0x50b   : > { %v5050_v22 = vpop.eup %5049  ;;  %2002 = vadd.xlane.f32.xlu1 %v2001_v17 }
 0x50c   : > { %v1721_v18 = vpop.xlane.xlu2 %1720  ;;  %v6876_v57 = vmul.f32 %v5050_v22, %v6681_v13  ;;  %v6882_v31 = vmul.f32 %v5050_v22, %v6683_v7  ;;  %v6884_v30 = vpop.eup %5051 }
 0x50d   : > { %v1786_v14 = vsub.f32 %v6701_v42, %v1721_v18  ;;  %v1787_v28 = vsub.f32 %v6698_v50, %v1721_v18  ;;  %v6888_v5 = vpop.eup %5053  ;;  %v1876_v42 = vmul.f32 1.442695, %v1770_v21  ;;  %v1868_v18 = vmul.f32 1.442695, %v1766_v60 }
 0x50e   : > { %v2004_v50 = vadd.f32 %v6888_v5, %v6884_v30 }
 0x50f   : > { %v1908_v25 = vmul.f32 1.442695, %v1786_v14  ;;  %v1910_v7 = vmul.f32 1.442695, %v1787_v28  ;;  %v1870_v14 = vmul.f32 1.442695, %v1767_v19 }
 0x510   : > { %v8649_v19 = vld [vmem:[#allocation45_spill] sm:$0xff] }
 0x511   : > { %5055 = vpow2.f32 %v1908_v25 }
 0x512   : > { %5057 = vpow2.f32 %v1910_v7  ;;  %v8647_v7 = vld [vmem:[#allocation53_spill] sm:$0xff] }
 0x513   : > { %2005 = vadd.xlane.f32.xlu1 %v2004_v50  ;;  %5059 = vpow2.f32 %v1876_v42  ;;  %v1764_v3 = vsub.f32 %v8647_v7, %v6703_v20  ;;  %v8648_v50 = vld [vmem:[#allocation52_spill] sm:$0xff]  ;;  %v2123_v7 = vld [vmem:[%s8476_s13 + $0x18] sm:$0xff] }
 0x514   : > { %5061 = vpow2.f32 %v1878_v2  ;;  %v1765_v42 = vsub.f32 %v8648_v50, %v6703_v20 }
 0x515   : > { %5063 = vpow2.f32 %v1868_v18  ;;  %v1864_v2 = vmul.f32 1.442695, %v1764_v3  ;;  %v8650_v18 = vld [vmem:[#allocation46_spill] sm:$0xff]  ;;  %v1961_v3 = vpop.xlane.xlu2 %1960 }
 0x516   : > { %5065 = vpow2.f32 %v1870_v14  ;;  %v1866_v60 = vmul.f32 1.442695, %v1765_v42 }
 0x517   : > { %v6903_v17 = vpop.eup %5055  ;;  %5067 = vpow2.f32 %v1864_v2 }
 0x518   : > { %v6907_v22 = vpop.eup %5057  ;;  %2155 = vperm.xlu0 %4940, %v2125_v0   ;;  %v1685_v0 = vpop.xlane.xlu1 %1684  ;;  %5069 = vpow2.f32 %v1866_v60  ;;  %v4791_v60 = vld [vmem:[%s8475_s12 + $0x18] sm:$0xff] }
 0x519   : > { %v2007_v15 = vadd.f32 %v6907_v22, %v6903_v17  ;;  %v6913_v28 = vpop.eup %5059  ;;  %v1763_v14 = vsub.f32 %v8650_v18, %v1685_v0  ;;  %4557 = vmatmul.msk.bf16.gmra.mxu2 %vm716_vm0, %v4791_v60  ;;  %4561 = vmatmul.msk.bf16.gmra.mxu3 %vm716_vm0, %v4791_v60  ;;  %v8653_v60 = vld [vmem:[#allocation47_spill] sm:$0xff] }
 0x51a   : > { %v6915_v21 = vpop.eup %5061  ;;  %v1760_v16 = vsub.f32 %v8653_v60, %v6675_v34 }
 0x51b   : > { %2008 = vadd.xlane.f32.xlu1 %v2007_v15  ;;  %v1983_v45 = vadd.f32 %v6915_v21, %v6913_v28  ;;  %v6919_v25 = vpop.eup %5063  ;;  %v1762_v15 = vsub.f32 %v8649_v19, %v1685_v0  ;;  %v1862_v59 = vmul.f32 1.442695, %v1763_v14 }
 0x51c   : > { %v6921_v29 = vpop.eup %5065  ;;  %v1856_v60 = vmul.f32 1.442695, %v1760_v16 }
 0x51d   : > { %v1977_v11 = vadd.f32 %v6921_v29, %v6919_v25  ;;  %v6931_v12 = vpop.eup %5067  ;;  %v6949_v0 = vpop.permute.xlu2 %2140 }
 0x523   : > { %1984 = vadd.xlane.f32.xlu1 %v1983_v45  ;;  %v1860_v45 = vmul.f32 1.442695, %v1762_v15 }
 0x525   : > { %5071 = vpow2.f32 %v1860_v45 }
 0x526   : > { %5073 = vpow2.f32 %v1862_v59  ;;  %v2126_v59 = vld [vmem:[%s8476_s13 + $0x30] sm:$0xff] }
 0x52b   : > { %1978 = vadd.xlane.f32.xlu1 %v1977_v11  ;;  %v6933_v11 = vpop.eup %5069 }
 0x52c   : > { %v1974_v20 = vadd.f32 %v6933_v11, %v6931_v12  ;;  %v6940_v50 = vpop.eup %5071 }
 0x52d   : > { %8651 = vst [vmem:[#allocation49_spill] sm:$0xff] %v6940_v50  ;;  %v6942_v42 = vpop.eup %5073 }
 0x52e   : > { %8652 = vst [vmem:[#allocation48_spill] sm:$0xff] %v6942_v42  ;;  %v1971_v2 = vadd.f32 %v6942_v42, %v6940_v50  ;;  %v8659_v42 = vld [vmem:[#allocation62_spill] sm:$0xff] }
 0x542   : > { %1975 = vadd.xlane.f32.xlu0 %v1974_v20  ;;  %v1964_v20 = vpop.xlane.xlu0 %1963 }
 0x544   : > { %2145 = vperm.xlu1 %4942, %v2123_v7  }
 0x54a   : > { %1972 = vadd.xlane.f32.xlu0 %v1971_v2 }
 0x54c   : > { %2160 = vperm.xlu1 %4942, %v2126_v59  }
 0x555   : > { %v1727_v19 = vpop.xlane.xlu2 %1726 }
 0x556   : > { %v1790_v15 = vsub.f32 %v6762_v41, %v1727_v19  ;;  %v1791_v18 = vsub.f32 %v6747_v44, %v1727_v19  ;;  %v8654_v41 = vld [vmem:[#allocation44_spill] sm:$0xff] }
 0x557   : > { %v1761_v19 = vsub.f32 %v8654_v41, %v6675_v34  ;;  %v8658_v41 = vld [vmem:[#allocation66_spill] sm:$0xff] }
 0x558   : > { %v1916_v14 = vmul.f32 1.442695, %v1790_v15  ;;  %v1918_v45 = vmul.f32 1.442695, %v1791_v18  ;;  %v8655_v18 = vld [vmem:[#allocation64_spill] sm:$0xff] }
 0x55a   : > { %5075 = vpow2.f32 %v1916_v14 }
 0x55b   : > { %5077 = vpow2.f32 %v1918_v45  ;;  %v8656_v45 = vld [vmem:[#allocation65_spill] sm:$0xff] }
 0x55c   : > { %5079 = vrcp.f32 %v1964_v20 }
 0x55d   : > { %v1967_v7 = vpop.xlane.xlu2 %1966 }
 0x55e   : > { %5081 = vrcp.f32 %v1967_v7 }
 0x55f   : > { %5083 = vrcp.f32 %v1961_v3  ;;  %v1858_v3 = vmul.f32 1.442695, %v1761_v19 }
 0x560   : > { %v6958_v2 = vpop.eup %5075  ;;  %5085 = vrcp.f32 %v6818_v33  ;;  %v8657_v33 = vld [vmem:[#allocation43_spill] sm:$0xff] }
 0x561   : > { %v6960_v59 = vpop.eup %5077  ;;  %5087 = vpow2.f32 %v1856_v60  ;;  %v8670_v60 = vld [vmem:[#allocation67_spill] sm:$0xff] }
 0x562   : > { %v5080_v39 = vpop.eup %5079  ;;  %v2013_v44 = vadd.f32 %v6960_v59, %v6958_v2  ;;  %5089 = vpow2.f32 %v1858_v3  ;;  %v8671_v3 = vld [vmem:[#allocation69_spill] sm:$0xff] }
 0x563   : > { %v2076_v14 = vmul.f32 %v5080_v39, %v8655_v18  ;;  %v2077_v20 = vmul.f32 %v5080_v39, %v8656_v45  ;;  %v8660_v45 = vld [vmem:[#allocation63_spill] sm:$0xff] }
 0x564   : > { %v5082_v15 = vpop.eup %5081  ;;  %2014 = vadd.xlane.f32.xlu2 %v2013_v44 }
 0x565   : > { %v2078_v7 = vmul.f32 %v5082_v15, %v6782_v26  ;;  %v2079_v43 = vmul.f32 %v5082_v15, %v6784_v4  ;;  %v5084_v6 = vpop.eup %5083 }
 0x566   : > { %v5086_v34 = vpop.eup %5085  ;;  %v2074_v44 = vmul.f32 %v5084_v6, %v8657_v33  ;;  %v2075_v18 = vmul.f32 %v5084_v6, %v8658_v41  ;;  %v8663_v6 = vpack.c.bf16 %v6876_v57, %v6873_v32  ;;  %v8667_v57 = vpack.c.bf16 %v6804_v40, %v6801_v36  ;;  %v8677_v41 = vld [vmem:[#allocation60_spill] sm:$0xff] }
 0x567   : > { %v2280_v24 = vpack.c.bf16 %v2078_v7, %v2076_v14  ;;  %v2281_v13 = vpack.c.bf16 %v2079_v43, %v2077_v20  ;;  %v2072_v39 = vmul.f32 %v5086_v34, %v8659_v42  ;;  %v2073_v26 = vmul.f32 %v5086_v34, %v8660_v45  ;;  %v6977_v16 = vpop.eup %5087  ;;  %v8662_v43 = vld [vmem:[#allocation41_spill] sm:$0xff]  ;;  %v8673_v34 = vld [vmem:[#allocation56_spill] sm:$0xff] }
 0x568   : > { %v6979_v19 = vpop.eup %5089  ;;  %v8664_v42 = vpack.c.bf16 %v6882_v31, %v6879_v23  ;;  %v8665_v20 = vpack.c.bf16 %v6841_v53, %v6838_v63  ;;  %v8666_v7 = vpack.c.bf16 %v6847_v1, %v6844_v35  ;;  %v8668_v23 = vpack.c.bf16 %v6810_v55, %v6807_v8  ;;  %v8669_v31 = vld [vmem:[#allocation73_spill] sm:$0xff]  ;;  %v8676_v55 = vld [vmem:[#allocation70_spill] sm:$0xff] }
 0x569   : > { %2298 = vmatpush.bf16.xpose.msrb.mxu2 %v2280_v24  ;;  %2327 = vmatpush.bf16.xpose.msrb.mxu3 %v2281_v13  ;;  %v2278_v50 = vpack.c.bf16 %v2074_v44, %v2072_v39  ;;  %v2279_v4 = vpack.c.bf16 %v2075_v18, %v2073_v26  ;;  %v8661_v24 = vld [vmem:[#allocation40_spill] sm:$0xff]  ;;  %v1968_v13 = vadd.f32 %v6979_v19, %v6977_v16  ;;  %5091 = vrcp.f32 %v8669_v31  ;;  %v8672_v35 = vld [vmem:[#allocation57_spill] sm:$0xff]  ;;  %v8679_v26 = vld [vmem:[#allocation42_spill] sm:$0xff] }
 0x56a   : > { %5093 = vrcp.f32 %v8670_v60  ;;  %v1768_v1 = vsub.f32 %v8672_v35, %v8671_v3  ;;  %v1769_v33 = vsub.f32 %v8673_v34, %v8671_v3  ;;  %v8674_v36 = vpack.c.bf16 %v6754_v54, %v6750_v10  ;;  %v8678_v39 = vld [vmem:[#allocation61_spill] sm:$0xff]  ;;  %v8681_v54 = vld [vmem:[#allocation55_spill] sm:$0xff] }
 0x56b   : > { %v8675_v40 = vpack.c.bf16 %v6760_v58, %v6757_v52  ;;  %v8685_v35 = vld [vmem:[#allocation51_spill] sm:$0xff] }
 0x56e   : > { %v6985_v15 = vpop.xlane.xlu1 %1996 }
 0x56f   : > { %v5092_v53 = vpop.eup %5091 }
 0x570   : > { %v5094_v8 = vpop.eup %5093  ;;  %v2054_v18 = vmul.f32 %v5092_v53, %v8677_v41  ;;  %v2055_v45 = vmul.f32 %v5092_v53, %v8678_v39  ;;  %v8684_v53 = vld [vmem:[#allocation50_spill] sm:$0xff] }
 0x571   : > { %2299 = vmatpush.bf16.xpose.msrb.mxu2 %v2278_v50  ;;  %2328 = vmatpush.bf16.xpose.msrb.mxu3 %v2279_v4  ;;  %v2124_v50 = vld [vmem:[%s8476_s13 + $0x20] sm:$0xff] }
 0x573   : > { %2463 = vxpose.binary.xlu0.c.b16.start.end [1/2] (short) %v8662_v43, %v8661_v24, 128  ;;  %v1872_v24 = vmul.f32 1.442695, %v1768_v1  ;;  %v1874_v43 = vmul.f32 1.442695, %v1769_v33 }
 0x576   : > { %1969 = vadd.xlane.f32.xlu1 %v1968_v13  ;;  %v8680_v13 = vld [vmem:[#allocation54_spill] sm:$0xff] }
 0x577   : > { %v2052_v10 = vmul.f32 %v5094_v8, %v8680_v13 }
 0x579   : > { %2300 = vmatpush.bf16.xpose.msrb.mxu2 %v8663_v6  ;;  %2329 = vmatpush.bf16.xpose.msrb.mxu3 %v8664_v42  ;;  %v2053_v6 = vmul.f32 %v5094_v8, %v8681_v54  ;;  %v2209_v42 = vpop.f32.mrf.mxu2 }
 0x57c   : > { %2150 = vperm.xlu2 %4941, %v2124_v50  }
 0x57e   : > { %v6996_v14 = vpop.xlane.xlu1 %2002 }
 0x581   : > { %2301 = vmatpush.bf16.xpose.msrb.mxu2 %v8665_v20  ;;  %2330 = vmatpush.bf16.xpose.msrb.mxu3 %v8666_v7  ;;  %v2238_v7 = vpop.f32.mrf.mxu3  ;;  %v2211_v34 = vpop.f32.mrf.mxu2 }
 0x586   : > { %v2006_v32 = vpop.xlane.xlu1 %2005 }
 0x587   : > { %5095 = vrcp.f32 %v2006_v32  ;;  %v2268_v32 = vpack.c.bf16 %v2054_v18, %v2052_v10 }
 0x589   : > { %2302 = vmatpush.bf16.xpose.msrb.mxu2 %v8667_v57  ;;  %2331 = vmatpush.bf16.xpose.msrb.mxu3 %v8668_v23  ;;  %v2269_v57 = vpack.c.bf16 %v2055_v45, %v2053_v6  ;;  %v8686_v45 = vld [vmem:[#allocation68_spill] sm:$0xff]  ;;  %v2214_v10 = vpop.f32.mrf.mxu2 }
 0x58d   : > { %v5096_v44 = vpop.eup %5095 }
 0x58e   : > { %v2009_v63 = vpop.xlane.xlu1 %2008  ;;  %v7029_v52 = vmul.f32 %v5096_v44, %v6884_v30  ;;  %v7035_v50 = vmul.f32 %v5096_v44, %v6888_v5  ;;  %v8682_v5 = vld [vmem:[#allocation58_spill] sm:$0xff] }
 0x58f   : > { %5097 = vrcp.f32 %v2009_v63  ;;  %v8683_v63 = vld [vmem:[#allocation59_spill] sm:$0xff] }
 0x590   : > { %5099 = vrcp.f32 %v8676_v55 }
 0x591   : > { %2303 = vmatpush.bf16.xpose.msrb.mxu2 %v8674_v36  ;;  %2332 = vmatpush.bf16.xpose.msrb.mxu3 %v8675_v40  ;;  %5101 = vrcp.f32 %v8679_v26  ;;  %v2240_v36 = vpop.f32.mrf.mxu3  ;;  %v2136_v40 = vpop.permute.xlu0 %2135  ;;  %v2239_v26 = vadd.f32 %v2238_v7, %v8686_v45 }
 0x592   : > { %5103 = vpow2.f32 %v1872_v24  ;;  %v2212_v41 = vadd.f32 %v2211_v34, %v2136_v40  ;;  %v2241_v18 = vadd.f32 %v2240_v36, %v2136_v40 }
 0x593   : > { %5105 = vpow2.f32 %v1874_v43 }
 0x594   : > { %v7060_v13 = vpack.c.bf16 %v2241_v18, %v2239_v26 }
 0x595   : > { %v5098_v4 = vpop.eup %5097 }
 0x596   : > { %v7032_v58 = vmul.f32 %v5098_v4, %v6903_v17  ;;  %v7038_v20 = vmul.f32 %v5098_v4, %v6907_v22  ;;  %v5100_v23 = vpop.eup %5099  ;;  %v2210_v4 = vadd.f32 %v2209_v42, %v8686_v45  ;;  %v7056_v24 = vpop.xlane.xlu1 %1984 }
 0x597   : > { %v5102_v17 = vpop.eup %5101  ;;  %v2050_v60 = vmul.f32 %v5100_v23, %v8682_v5  ;;  %v2051_v22 = vmul.f32 %v5100_v23, %v8683_v63  ;;  %v2215_v23 = vadd.f32 %v2214_v10, %v6949_v0 }
 0x598   : > { %v2294_v31 = vpack.c.bf16 %v7032_v58, %v7029_v52  ;;  %v2295_v30 = vpack.c.bf16 %v7038_v20, %v7035_v50  ;;  %v2048_v3 = vmul.f32 %v5102_v17, %v8684_v53  ;;  %v2049_v1 = vmul.f32 %v5102_v17, %v8685_v35  ;;  %v7048_v33 = vpop.eup %5103  ;;  %v2127_v53 = vld [vmem:[%s8476_s13 + $0x38] sm:$0xff] }
 0x599   : > { %2304 = vmatpush.bf16.xpose.msrb.mxu2 %v2268_v32  ;;  %2333 = vmatpush.bf16.xpose.msrb.mxu3 %v2269_v57  ;;  %v7050_v44 = vpop.eup %5105  ;;  %v7058_v43 = vpack.c.bf16 %v2212_v41, %v2210_v4  ;;  %v2243_v54 = vpop.f32.mrf.mxu3 }
 0x59a   : > { %v2266_v8 = vpack.c.bf16 %v2050_v60, %v2048_v3  ;;  %v2267_v55 = vpack.c.bf16 %v2051_v22, %v2049_v1  ;;  %v1980_v39 = vadd.f32 %v7050_v44, %v7048_v33  ;;  %v2216_v32 = vpop.f32.mrf.mxu2  ;;  %v2244_v42 = vadd.f32 %v2243_v54, %v6949_v0  ;;  %v1988_v60 = vpop.xlane.xlu0 %1987 }
 0x59b   : > { %v1994_v1 = vpop.xlane.xlu2 %1993 }
 0x59e   : > { %v7064_v6 = vpop.xlane.xlu1 %1978 }
 0x5a1   : > { %2305 = vmatpush.bf16.xpose.msrb.mxu2 %v2266_v8  ;;  %2334 = vmatpush.bf16.xpose.msrb.mxu3 %v2267_v55  ;;  %v2245_v57 = vpop.f32.mrf.mxu3 }
 0x5a2   : > { %v1991_v3 = vpop.xlane.xlu0 %1990  ;;  %v2219_v0 = vpop.f32.mrf.mxu2 }
 0x5a5   : > { %1981 = vadd.xlane.f32.xlu2 %v1980_v39 }
 0x5a8   : > { %2306 = vmatmul.bf16.vlgmr.msrb.gmra.mxu2 %v7058_v43  ;;  %2335 = vmatmul.bf16.vlgmr.msrb.gmra.mxu3 %v7060_v13 }
 0x5a9   : > { %v2248_v36 = vpop.f32.mrf.mxu3 }
 0x5aa   : > { %v2000_v35 = vpop.xlane.xlu0 %1999  ;;  %v2221_v55 = vpop.f32.mrf.mxu2 }
 0x5b1   : > { %v2250_v41 = vpop.f32.mrf.mxu3 }
 0x5b2   : > { %v2012_v34 = vpop.xlane.xlu0 %2011 }
 0x5b3   : > { %5107 = vrcp.f32 %v2012_v34 }
 0x5b6   : > { %v2146_v7 = vpop.permute.xlu1 %2145 }
 0x5b7   : > { %v2217_v17 = vadd.f32 %v2216_v32, %v2146_v7  ;;  %v2246_v5 = vadd.f32 %v2245_v57, %v2146_v7 }
 0x5b9   : > { %v7068_v63 = vpack.c.bf16 %v2217_v17, %v2215_v23  ;;  %v7070_v22 = vpack.c.bf16 %v2246_v5, %v2244_v42  ;;  %v5108_v8 = vpop.eup %5107 }
 0x5ba   : > { %v2156_v18 = vpop.permute.xlu0 %2155  ;;  %v2108_v45 = vmul.f32 %v5108_v8, %v6859_v27  ;;  %v2109_v26 = vmul.f32 %v5108_v8, %v6861_v37  ;;  %v2224_v8 = vpop.f32.mrf.mxu2 }
 0x5bb   : > { %2311 = vmatmul.bf16.gmra.mxu2 %v7068_v63  ;;  %2340 = vmatmul.bf16.gmra.mxu3 %v7070_v22  ;;  %v2222_v32 = vadd.f32 %v2221_v55, %v2156_v18  ;;  %v2251_v57 = vadd.f32 %v2250_v41, %v2156_v18 }
 0x5bd   : > { %2165 = vperm.xlu2 %4941, %v2127_v53  }
 0x5c2   : > { %v1976_v41 = vpop.xlane.xlu0 %1975 }
 0x5d7   : > { %v2015_v40 = vpop.xlane.xlu2 %2014 }
 0x5d8   : > { %5109 = vrcp.f32 %v2015_v40 }
 0x5d9   : > { %5111 = vrcp.f32 %v6996_v14 }
 0x5da   : > { %5113 = vrcp.f32 %v2000_v35 }
 0x5db   : > { %5115 = vrcp.f32 %v6985_v15 }
 0x5dc   : > { %5117 = vrcp.f32 %v1994_v1 }
 0x5dd   : > { %5119 = vrcp.f32 %v1991_v3  ;;  %v8687_v3 = vld [vmem:[#allocation71_spill] sm:$0xff] }
 0x5de   : > { %v5110_v39 = vpop.eup %5109  ;;  %5121 = vrcp.f32 %v1988_v60 }
 0x5df   : > { %v2110_v4 = vmul.f32 %v5110_v39, %v6958_v2  ;;  %v2111_v10 = vmul.f32 %v5110_v39, %v6960_v59  ;;  %v2151_v54 = vpop.permute.xlu2 %2150  ;;  %v5112_v27 = vpop.eup %5111  ;;  %5123 = vrcp.f32 %v7056_v24 }
 0x5e0   : > { %v2220_v7 = vadd.f32 %v2219_v0, %v2151_v54  ;;  %v2249_v42 = vadd.f32 %v2248_v36, %v2151_v54  ;;  %v5114_v37 = vpop.eup %5113  ;;  %v2102_v2 = vmul.f32 %v5112_v27, %v6866_v61  ;;  %v2103_v59 = vmul.f32 %v5112_v27, %v6868_v46  ;;  %v2226_v39 = vpop.f32.mrf.mxu2 }
 0x5e1   : > { %v2296_v23 = vpack.c.bf16 %v2110_v4, %v2108_v45  ;;  %v2297_v17 = vpack.c.bf16 %v2111_v10, %v2109_v26  ;;  %v2100_v14 = vmul.f32 %v5114_v37, %v6812_v56  ;;  %v2101_v35 = vmul.f32 %v5114_v37, %v6816_v51  ;;  %v5116_v52 = vpop.eup %5115 }
 0x5e2   : > { %v7081_v5 = vpack.c.bf16 %v2222_v32, %v2220_v7  ;;  %v7083_v53 = vpack.c.bf16 %v2251_v57, %v2249_v42  ;;  %v5118_v58 = vpop.eup %5117  ;;  %v2098_v50 = vmul.f32 %v5116_v52, %v6829_v47  ;;  %v2099_v15 = vmul.f32 %v5116_v52, %v6833_v62  ;;  %v8688_v47 = vld [vmem:[#allocation72_spill] sm:$0xff] }
 0x5e3   : > { %2356 = vmatpush.bf16.xpose.msra.mxu2 %v2296_v23  ;;  %2385 = vmatpush.bf16.xpose.msra.mxu3 %v2297_v17  ;;  %v2292_v0 = vpack.c.bf16 %v2102_v2, %v2100_v14  ;;  %v2293_v34 = vpack.c.bf16 %v2103_v59, %v2101_v35  ;;  %v2096_v61 = vmul.f32 %v5118_v58, %v6796_v49  ;;  %v2253_v49 = vpop.f32.mrf.mxu3 }
 0x5e4   : > { %2316 = vmatmul.bf16.gmra.mxu2 %v7081_v5  ;;  %2345 = vmatmul.bf16.gmra.mxu3 %v7083_v53  ;;  %v2097_v46 = vmul.f32 %v5118_v58, %v6798_v38  ;;  %v2161_v38 = vpop.permute.xlu1 %2160  ;;  %v7123_v58 = vstv %s786_s27  ;;  %s8341_s27 = scalar_lea.vmem [#allocation13], %s5841_s9  ;;  %s8779_s9 = sld [smem:[#allocation24_spill]] }
 0x5e5   : > { %v2290_v20 = vpack.c.bf16 %v2098_v50, %v2096_v61  ;;  %v2225_v54 = vadd.f32 %v2224_v8, %v2161_v38  ;;  %v2254_v32 = vadd.f32 %v2253_v49, %v2161_v38  ;;  %v5327_v61 = vld [vmem:[%s5845_s23] sm:$0xff] }
 0x5e6   : > { %v2291_v56 = vpack.c.bf16 %v2099_v15, %v2097_v46  ;;  %v8689_v46 = vld [vmem:[#allocation49_spill] sm:$0xff] }
 0x5ea   : > { %s4828_s11 = sshll.u32 %s8779_s9, 7 }
 0x5eb   : > { %2357 = vmatpush.bf16.xpose.msra.mxu2 %v2294_v31  ;;  %2386 = vmatpush.bf16.xpose.msra.mxu3 %v2295_v30  ;;  %v5120_v31 = vpop.eup %5119 }
 0x5ec   : > { %v5122_v51 = vpop.eup %5121  ;;  %v2094_v30 = vmul.f32 %v5120_v31, %v6788_v9  ;;  %v2095_v1 = vmul.f32 %v5120_v31, %v6790_v48  ;;  %v2255_v9 = vpop.f32.mrf.mxu3 }
 0x5ed   : > { %v2092_v36 = vmul.f32 %v5122_v51, %v8687_v3  ;;  %v2093_v40 = vmul.f32 %v5122_v51, %v8688_v47  ;;  %v5124_v18 = vpop.eup %5123  ;;  %v1970_v42 = vpop.xlane.xlu1 %1969 }
 0x5ee   : > { %v2090_v4 = vmul.f32 %v5124_v18, %v6913_v28  ;;  %v2091_v24 = vmul.f32 %v5124_v18, %v6915_v21 }
 0x5ef   : > { %v2288_v62 = vpack.c.bf16 %v2094_v30, %v2092_v36  ;;  %v2289_v60 = vpack.c.bf16 %v2095_v1, %v2093_v40  ;;  %v8692_v36 = vld [vmem:[#allocation39_spill] sm:$0xff]  ;;  %v5328_v40 = vld [vmem:[%s5845_s23 + $0x10] sm:$0xff] }
 0x5f3   : > { %2358 = vmatpush.bf16.xpose.msra.mxu2 %v2292_v0  ;;  %2387 = vmatpush.bf16.xpose.msra.mxu3 %v2293_v34 }
 0x5fb   : > { %2359 = vmatpush.bf16.xpose.msra.mxu2 %v2290_v20  ;;  %2388 = vmatpush.bf16.xpose.msra.mxu3 %v2291_v56  ;;  %v8690_v56 = vld [vmem:[#allocation48_spill] sm:$0xff] }
 0x603   : > { %2360 = vmatpush.bf16.xpose.msra.mxu2 %v2288_v62  ;;  %2389 = vmatpush.bf16.xpose.msra.mxu3 %v2289_v60 }
 0x618   : > { %v1982_v55 = vpop.xlane.xlu2 %1981 }
 0x619   : > { %5125 = vrcp.f32 %v1982_v55  ;;  %v5329_v55 = vld [vmem:[%s5845_s23 + $0x20] sm:$0xff] }
 0x61a   : > { %5127 = vrcp.f32 %v1976_v41 }
 0x61b   : > { %5129 = vrcp.f32 %v7064_v6 }
 0x61c   : > { %5131 = vrcp.f32 %v1970_v42 }
 0x61f   : > { %v5126_v48 = vpop.eup %5125 }
 0x620   : > { %v2166_v45 = vpop.permute.xlu2 %2165  ;;  %v2088_v26 = vmul.f32 %v5126_v48, %v7048_v33  ;;  %v2089_v10 = vmul.f32 %v5126_v48, %v7050_v44  ;;  %v5128_v27 = vpop.eup %5127 }
 0x621   : > { %v2227_v57 = vadd.f32 %v2226_v39, %v2166_v45  ;;  %v2256_v7 = vadd.f32 %v2255_v9, %v2166_v45  ;;  %v1973_v33 = vpop.xlane.xlu0 %1972  ;;  %v5130_v28 = vpop.eup %5129  ;;  %v2084_v21 = vmul.f32 %v5128_v27, %v6931_v12  ;;  %v2085_v44 = vmul.f32 %v5128_v27, %v6933_v11  ;;  %v5330_v45 = vld [vmem:[%s5845_s23 + $0x30] sm:$0xff] }
 0x622   : > { %v2286_v23 = vpack.c.bf16 %v2090_v4, %v2088_v26  ;;  %v2287_v17 = vpack.c.bf16 %v2091_v24, %v2089_v10  ;;  %5133 = vrcp.f32 %v1973_v33  ;;  %v2086_v2 = vmul.f32 %v5130_v28, %v6919_v25  ;;  %v5132_v0 = vpop.eup %5131  ;;  %v4654_v4 = vld [vmem:[#allocation9 + $0x78] sm:$0xf0]  ;;  %v4822_v10 = vld [vmem:[#allocation9 + $0xf4] sm:$0xf] }
 0x623   : > { %v7113_v37 = vpack.c.bf16 %v2227_v57, %v2225_v54  ;;  %v7115_v6 = vpack.c.bf16 %v2256_v7, %v2254_v32  ;;  %v2087_v59 = vmul.f32 %v5130_v28, %v6921_v29  ;;  %v2080_v15 = vmul.f32 %v5132_v0, %v6977_v16  ;;  %v4718_v54 = vld [vmem:[#allocation9 + $0xf8] sm:$0xf0]  ;;  %v4652_v32 = vld [vmem:[#allocation9 + $0x70] sm:$0xf]  ;;  %v4807_v57 = vld [vmem:[#allocation9 + $0x74] sm:$0xf0] }
 0x624   : > { %2361 = vmatpush.bf16.xpose.msra.mxu2 %v2286_v23  ;;  %2390 = vmatpush.bf16.xpose.msra.mxu3 %v2287_v17  ;;  %v2284_v14 = vpack.c.bf16 %v2086_v2, %v2084_v21  ;;  %v2081_v25 = vmul.f32 %v5132_v0, %v6979_v19  ;;  %v8691_v19 = vld [vmem:[#allocation38_spill] sm:$0xff]  ;;  %v4721_v7 = vor.u32 %v4822_v10, %v4718_v54  ;;  %v4716_v23 = vld [vmem:[#allocation9 + $0xf0] sm:$0xf] }
 0x625   : > { %2321 = vmatmul.bf16.gmra.mxu2 %v7113_v37  ;;  %2350 = vmatmul.bf16.gmra.mxu3 %v7115_v6  ;;  %v2285_v35 = vpack.c.bf16 %v2087_v59, %v2085_v44  ;;  %v4653_v42 = vor.u32 %v4807_v57, %v4652_v32  ;;  %v5331_v28 = vld [vmem:[%s5845_s23 + $0x40] sm:$0xff]  ;;  %v5332_v0 = vld [vmem:[%s5845_s23 + $0x50] sm:$0xff] }
 0x626   : > { %v4800_v57 = vld [vmem:[#allocation9 + $0x44] sm:$0xf] }
 0x627   : > { %2949 = vmatpush.bf16.msrb.mxu0 %v4653_v42 }
 0x628   : > { %v5134_v12 = vpop.eup %5133 }
 0x629   : > { %v2082_v20 = vmul.f32 %v5134_v12, %v8689_v46  ;;  %v2083_v31 = vmul.f32 %v5134_v12, %v8690_v56  ;;  %v4708_v46 = vld [vmem:[#allocation9 + $0xe0] sm:$0xf] }
 0x62b   : > { %v2307_v34 = vpop.f32.mrf.mxu2  ;;  %v2336_v52 = vpop.f32.mrf.mxu3  ;;  %v2282_v51 = vpack.c.bf16 %v2082_v20, %v2080_v15  ;;  %v2283_v30 = vpack.c.bf16 %v2083_v31, %v2081_v25  ;;  %v4644_v15 = vld [vmem:[#allocation9 + $0x60] sm:$0xf]  ;;  %v4805_v25 = vld [vmem:[#allocation9 + $0x64] sm:$0xf0] }
 0x62c   : > { %v2337_v50 = vadd.f32 %v2336_v52, %v2307_v34  ;;  %2362 = vmatpush.bf16.xpose.msra.mxu2 %v2284_v14  ;;  %2391 = vmatpush.bf16.xpose.msra.mxu3 %v2285_v35  ;;  %v4821_v20 = vld [vmem:[#allocation9 + $0xe4] sm:$0xf0] }
 0x62d   : > { %v4709_v56 = vor.u32 %v4821_v20, %v4708_v46 }
 0x62e   : > { %v2415_v11 = vmul.f32 %v7123_v58, %v2337_v50  ;;  %v4820_v50 = vld [vmem:[#allocation9 + $0xe4] sm:$0xf] }
 0x630   : > { %v2431_v29 = vadd.f32 %v5327_v61, %v2415_v11  ;;  %v4710_v11 = vld [vmem:[#allocation9 + $0xe8] sm:$0xf0] }
 0x631   : > { %v4713_v61 = vor.u32 %v4820_v50, %v4710_v11 }
 0x632   : > { %2447 = vst [vmem:[%s7132_s29] sm:$0xff] %v2431_v29  ;;  %v4645_v29 = vor.u32 %v4805_v25, %v4644_v15  ;;  %v5336_v15 = vld [vmem:[%s5845_s23 + $0x18] sm:$0xff] }
 0x633   : > { %v2309_v1 = vpop.f32.mrf.mxu2  ;;  %v2338_v3 = vpop.f32.mrf.mxu3 }
 0x634   : > { %v2339_v16 = vadd.f32 %v2338_v3, %v2309_v1  ;;  %2363 = vmatpush.bf16.xpose.msra.mxu2 %v2282_v51  ;;  %2392 = vmatpush.bf16.xpose.msra.mxu3 %v2283_v30  ;;  %v4802_v1 = vld [vmem:[#allocation9 + $0x54] sm:$0xf]  ;;  %v4638_v3 = vld [vmem:[#allocation9 + $0x58] sm:$0xf0] }
 0x635   : > { %2950 = vmatpush.bf16.msrb.mxu0 %v4645_v29 }
 0x636   : > { %v2417_v47 = vmul.f32 %v7123_v58, %v2339_v16  ;;  %v4641_v16 = vor.u32 %v4802_v1, %v4638_v3 }
 0x638   : > { %v2433_v62 = vadd.f32 %v5328_v40, %v2417_v47  ;;  %v4702_v47 = vld [vmem:[#allocation9 + $0xd8] sm:$0xf0]  ;;  %v4636_v40 = vld [vmem:[#allocation9 + $0x50] sm:$0xf] }
 0x63a   : > { %2449 = vst [vmem:[%s7132_s29 + $0x10] sm:$0xff] %v2433_v62 }
 0x63b   : > { %2364 = vmatmul.bf16.vlgmr.msra.gmra.mxu2 %v7058_v43  ;;  %2393 = vmatmul.bf16.vlgmr.msra.gmra.mxu3 %v7060_v13  ;;  %v2471_v43 = vpop.trf.xlu0  ;;  %v4806_v13 = vld [vmem:[#allocation9 + $0x74] sm:$0xf] }
 0x63c   : > { %2548 = vmatpush.bf16.msrb.mxu2 %v8691_v19  ;;  %2637 = vmatpush.bf16.msrb.mxu3 %v8692_v36  ;;  %v4657_v24 = vor.u32 %v4806_v13, %v4654_v4  ;;  %v4818_v36 = vld [vmem:[#allocation9 + $0xd4] sm:$0xf] }
 0x63d   : > { %v4705_v62 = vor.u32 %v4818_v36, %v4702_v47  ;;  %v4620_v47 = vld [vmem:[#allocation9 + $0x30] sm:$0xf] }
 0x63e   : > { %v2312_v60 = vpop.f32.mrf.mxu2  ;;  %v2341_v49 = vpop.f32.mrf.mxu3 }
 0x63f   : > { %v2342_v38 = vadd.f32 %v2341_v49, %v2312_v60  ;;  %v4803_v60 = vld [vmem:[#allocation9 + $0x54] sm:$0xf0]  ;;  %v4700_v49 = vld [vmem:[#allocation9 + $0xd0] sm:$0xf] }
 0x640   : > { %3127 = vmatpush.bf16.msra.mxu2 %v4657_v24  ;;  %3216 = vmatpush.bf16.msra.mxu3 %v4721_v7  ;;  %v5334_v24 = vld [vmem:[%s5845_s23 + $0x70] sm:$0xff]  ;;  %v4630_v7 = vld [vmem:[#allocation9 + $0x48] sm:$0xf0] }
 0x641   : > { %v2419_v8 = vmul.f32 %v7123_v58, %v2342_v38  ;;  %v4819_v38 = vld [vmem:[#allocation9 + $0xd4] sm:$0xf0] }
 0x643   : > { %v2435_v41 = vadd.f32 %v5329_v55, %v2419_v8  ;;  %v4637_v8 = vor.u32 %v4803_v60, %v4636_v40  ;;  %v4701_v55 = vor.u32 %v4819_v38, %v4700_v49  ;;  %v4799_v40 = vld [vmem:[#allocation9 + $0x34] sm:$0xf0] }
 0x644   : > { %3217 = vmatpush.bf16.msra.mxu3 %v4713_v61  ;;  %v5338_v60 = vld [vmem:[%s5845_s23 + $0x38] sm:$0xff]  ;;  %v4621_v38 = vor.u32 %v4799_v40, %v4620_v47  ;;  %v8698_v47 = vld [vmem:[#allocation35_spill] sm:$0xff] }
 0x645   : > { %2451 = vst [vmem:[%s7132_s29 + $0x20] sm:$0xff] %v2435_v41  ;;  %2951 = vmatpush.bf16.msrb.mxu0 %v4637_v8  ;;  %v4815_v8 = vld [vmem:[#allocation9 + $0xb4] sm:$0xf0] }
 0x646   : > { %v2314_v18 = vpop.f32.mrf.mxu2  ;;  %v2343_v9 = vpop.f32.mrf.mxu3 }
 0x647   : > { %v2344_v48 = vadd.f32 %v2343_v9, %v2314_v18 }
 0x648   : > { %3218 = vmatpush.bf16.msra.mxu3 %v4705_v62  ;;  %v4684_v62 = vld [vmem:[#allocation9 + $0xb0] sm:$0xf] }
 0x649   : > { %v2421_v39 = vmul.f32 %v7123_v58, %v2344_v48 }
 0x64b   : > { %v2437_v26 = vadd.f32 %v5330_v45, %v2421_v39  ;;  %2369 = vmatmul.bf16.gmra.mxu2 %v7068_v63  ;;  %2398 = vmatmul.bf16.gmra.mxu3 %v7070_v22  ;;  %v4823_v63 = vld [vmem:[#allocation9 + $0xf4] sm:$0xf0]  ;;  %v5333_v45 = vld [vmem:[%s5845_s23 + $0x60] sm:$0xff] }
 0x64c   : > { %v4717_v22 = vor.u32 %v4823_v63, %v4716_v23  ;;  %v4633_v63 = vor.u32 %v4800_v57, %v4630_v7  ;;  %v4686_v57 = vld [vmem:[#allocation9 + $0xb8] sm:$0xf0] }
 0x64d   : > { %2453 = vst [vmem:[%s7132_s29 + $0x30] sm:$0xff] %v2437_v26 }
 0x64e   : > { %3038 = vmatpush.bf16.msrb.mxu1 %v4717_v22 }
 0x652   : > { %3039 = vmatpush.bf16.msrb.mxu1 %v4709_v56  ;;  %v5337_v56 = vld [vmem:[%s5845_s23 + $0x28] sm:$0xff] }
 0x656   : > { %3040 = vmatpush.bf16.msrb.mxu1 %v4701_v55  ;;  %v4685_v55 = vor.u32 %v4815_v8, %v4684_v62 }
 0x65b   : > { %2374 = vmatmul.bf16.gmra.mxu2 %v7081_v5  ;;  %2403 = vmatmul.bf16.gmra.mxu3 %v7083_v53  ;;  %v7152_v5 = vpop.trf.xlu0 }
 0x663   : > { %v2473_v44 = vpop.trf.xlu0 }
 0x667   : > { %v2317_v53 = vpop.f32.mrf.mxu2  ;;  %v2346_v17 = vpop.f32.mrf.mxu3 }
 0x668   : > { %v2347_v27 = vadd.f32 %v2346_v17, %v2317_v53 }
 0x66a   : > { %v2423_v33 = vmul.f32 %v7123_v58, %v2347_v27  ;;  %v5335_v27 = vld [vmem:[%s5845_s23 + $0x8] sm:$0xff] }
 0x66b   : > { %2379 = vmatmul.bf16.gmra.mxu2 %v7113_v37  ;;  %2408 = vmatmul.bf16.gmra.mxu3 %v7115_v6  ;;  %v7162_v52 = vpop.trf.xlu0  ;;  %v4804_v37 = vld [vmem:[#allocation9 + $0x64] sm:$0xf]  ;;  %v4646_v6 = vld [vmem:[#allocation9 + $0x68] sm:$0xf0] }
 0x66c   : > { %v2439_v21 = vadd.f32 %v5331_v28, %v2423_v33  ;;  %v4649_v12 = vor.u32 %v4804_v37, %v4646_v6  ;;  %v4816_v28 = vld [vmem:[#allocation9 + $0xc4] sm:$0xf]  ;;  %v4817_v6 = vld [vmem:[#allocation9 + $0xc4] sm:$0xf0] }
 0x66e   : > { %2455 = vst [vmem:[%s7132_s29 + $0x40] sm:$0xff] %v2439_v21  ;;  %3128 = vmatpush.bf16.msra.mxu2 %v4649_v12  ;;  %v4694_v21 = vld [vmem:[#allocation9 + $0xc8] sm:$0xf0] }
 0x66f   : > { %v2319_v2 = vpop.f32.mrf.mxu2  ;;  %v2348_v59 = vpop.f32.mrf.mxu3 }
 0x670   : > { %v2349_v14 = vadd.f32 %v2348_v59, %v2319_v2  ;;  %v4697_v59 = vor.u32 %v4816_v28, %v4694_v21  ;;  %v5339_v28 = vld [vmem:[%s5845_s23 + $0x48] sm:$0xff] }
 0x672   : > { %v2425_v35 = vmul.f32 %v7123_v58, %v2349_v14  ;;  %3129 = vmatpush.bf16.msra.mxu2 %v4641_v16  ;;  %v4628_v14 = vld [vmem:[#allocation9 + $0x40] sm:$0xf]  ;;  %3219 = vmatpush.bf16.msra.mxu3 %v4697_v59 }
 0x673   : > { %v2475_v31 = vpop.trf.xlu0  ;;  %v4596_v59 = vld [vmem:[#allocation9] sm:$0xf] }
 0x674   : > { %v2441_v34 = vadd.f32 %v5332_v0, %v2425_v35  ;;  %v4801_v35 = vld [vmem:[#allocation9 + $0x44] sm:$0xf0]  ;;  %v4692_v0 = vld [vmem:[#allocation9 + $0xc0] sm:$0xf] }
 0x675   : > { %v4629_v37 = vor.u32 %v4801_v35, %v4628_v14  ;;  %v4693_v50 = vor.u32 %v4817_v6, %v4692_v0  ;;  %v4793_v14 = vld [vmem:[#allocation9 + $0x4] sm:$0xf0]  ;;  %v4660_v35 = vld [vmem:[#allocation9 + $0x80] sm:$0xf] }
 0x676   : > { %2457 = vst [vmem:[%s7132_s29 + $0x50] sm:$0xff] %v2441_v34  ;;  %3130 = vmatpush.bf16.msra.mxu2 %v4633_v63  ;;  %v4795_v63 = vld [vmem:[#allocation9 + $0x14] sm:$0xf0] }
 0x677   : > { %2952 = vmatpush.bf16.msrb.mxu0 %v4629_v37  ;;  %3041 = vmatpush.bf16.msrb.mxu1 %v4693_v50  ;;  %v4809_v37 = vld [vmem:[#allocation9 + $0x84] sm:$0xf0] }
 0x678   : > { %v4661_v50 = vor.u32 %v4809_v37, %v4660_v35 }
 0x67b   : > { %4562 = vmatmul.msk.bf16.vlgmr.msrb.gmra.mxu2 %vm812_vm2, %v2471_v43  ;;  %4578 = vmatmul.msk.bf16.vlgmr.msrb.gmra.mxu3 %vm812_vm2, %v2471_v43  ;;  %v7168_v51 = vpop.trf.xlu0 }
 0x67c   : > { %2953 = vmatpush.bf16.msrb.mxu0 %v4621_v38  ;;  %3042 = vmatpush.bf16.msrb.mxu1 %v4685_v55  ;;  %v8700_v38 = vld [vmem:[#allocation37_spill] sm:$0xff] }
 0x67d   : > { %v5342_v55 = vld [vmem:[%s5845_s23 + $0x78] sm:$0xff] }
 0x683   : > { %v2477_v30 = vpop.trf.xlu0 }
 0x68b   : > { %4563 = vmatmul.msk.bf16.gmra.mxu2 %vm812_vm2, %v2473_v44  ;;  %4579 = vmatmul.msk.bf16.gmra.mxu3 %vm812_vm2, %v2473_v44  ;;  %v7172_v19 = vpop.trf.xlu0 }
 0x693   : > { %v2479_v39 = vpop.trf.xlu0 }
 0x69b   : > { %4564 = vmatmul.msk.bf16.gmra.mxu2 %vm812_vm2, %v2475_v31  ;;  %4580 = vmatmul.msk.bf16.gmra.mxu3 %vm812_vm2, %v2475_v31  ;;  %v7181_v32 = vpop.trf.xlu0 }
 0x6a3   : > { %v2481_v53 = vpop.trf.xlu0 }
 0x6a8   : > { %v2322_v41 = vpop.f32.mrf.mxu2  ;;  %v2351_v18 = vpop.f32.mrf.mxu3 }
 0x6a9   : > { %v2352_v9 = vadd.f32 %v2351_v18, %v2322_v41  ;;  %v4798_v18 = vld [vmem:[#allocation9 + $0x34] sm:$0xf] }
 0x6ab   : > { %v2427_v48 = vmul.f32 %v7123_v58, %v2352_v9  ;;  %4565 = vmatmul.msk.bf16.gmra.mxu2 %vm812_vm2, %v2477_v30  ;;  %4581 = vmatmul.msk.bf16.gmra.mxu3 %vm812_vm2, %v2477_v30  ;;  %v7190_v11 = vpop.trf.xlu0  ;;  %v4622_v9 = vld [vmem:[#allocation9 + $0x38] sm:$0xf0] }
 0x6ad   : > { %v2443_v26 = vadd.f32 %v5333_v45, %v2427_v48  ;;  %v4625_v45 = vor.u32 %v4798_v18, %v4622_v9  ;;  %v4796_v9 = vld [vmem:[#allocation9 + $0x24] sm:$0xf] }
 0x6af   : > { %2459 = vst [vmem:[%s7132_s29 + $0x60] sm:$0xff] %v2443_v26  ;;  %v4612_v26 = vld [vmem:[#allocation9 + $0x20] sm:$0xf]  ;;  %3131 = vmatpush.bf16.msra.mxu2 %v4625_v45 }
 0x6b0   : > { %v2324_v43 = vpop.f32.mrf.mxu2  ;;  %v2353_v13 = vpop.f32.mrf.mxu3 }
 0x6b1   : > { %v2354_v4 = vadd.f32 %v2353_v13, %v2324_v43  ;;  %v4797_v43 = vld [vmem:[#allocation9 + $0x24] sm:$0xf0]  ;;  %v4676_v13 = vld [vmem:[#allocation9 + $0xa0] sm:$0xf] }
 0x6b3   : > { %v2429_v10 = vmul.f32 %v7123_v58, %v2354_v4  ;;  %v2483_v30 = vpop.trf.xlu0 }
 0x6b5   : > { %v2445_v54 = vadd.f32 %v5334_v24, %v2429_v10  ;;  %v4613_v10 = vor.u32 %v4797_v43, %v4612_v26  ;;  %v4813_v24 = vld [vmem:[#allocation9 + $0xa4] sm:$0xf0]  ;;  %v4812_v43 = vld [vmem:[#allocation9 + $0xa4] sm:$0xf] }
 0x6b6   : > { %v4677_v7 = vor.u32 %v4813_v24, %v4676_v13  ;;  %v4678_v13 = vld [vmem:[#allocation9 + $0xa8] sm:$0xf0] }
 0x6b7   : > { %2461 = vst [vmem:[%s7132_s29 + $0x70] sm:$0xff] %v2445_v54  ;;  %v4814_v54 = vld [vmem:[#allocation9 + $0xb4] sm:$0xf]  ;;  %2954 = vmatpush.bf16.msrb.mxu0 %v4613_v10 }
 0x6b8   : > { %3043 = vmatpush.bf16.msrb.mxu1 %v4677_v7 }
 0x6bb   : > { %4566 = vmatmul.msk.bf16.gmra.mxu2 %vm812_vm2, %v2479_v39  ;;  %4582 = vmatmul.msk.bf16.gmra.mxu3 %vm812_vm2, %v2479_v39  ;;  %v7204_v41 = vpop.trf.xlu0 }
 0x6be   : > { %v2365_v42 = vpop.f32.mrf.mxu2  ;;  %v2394_v23 = vpop.f32.mrf.mxu3 }
 0x6bf   : > { %v2395_v22 = vadd.f32 %v2394_v23, %v2365_v42  ;;  %v4689_v42 = vor.u32 %v4814_v54, %v4686_v57  ;;  %v4604_v23 = vld [vmem:[#allocation9 + $0x10] sm:$0xf] }
 0x6c1   : > { %v2416_v17 = vmul.f32 %v7123_v58, %v2395_v22  ;;  %v4668_v22 = vld [vmem:[#allocation9 + $0x90] sm:$0xf]  ;;  %3220 = vmatpush.bf16.msra.mxu3 %v4689_v42 }
 0x6c3   : > { %v2432_v33 = vadd.f32 %v5335_v27, %v2416_v17  ;;  %v4605_v17 = vor.u32 %v4795_v63, %v4604_v23  ;;  %v4811_v27 = vld [vmem:[#allocation9 + $0x94] sm:$0xf0]  ;;  %v2485_v6 = vpop.trf.xlu0 }
 0x6c5   : > { %2448 = vst [vmem:[%s7132_s29 + $0x8] sm:$0xff] %v2432_v33  ;;  %v4669_v33 = vor.u32 %v4811_v27, %v4668_v22  ;;  %2955 = vmatpush.bf16.msrb.mxu0 %v4605_v17  ;;  %v4794_v22 = vld [vmem:[#allocation9 + $0x14] sm:$0xf] }
 0x6c6   : > { %v2367_v44 = vpop.f32.mrf.mxu2  ;;  %v2396_v2 = vpop.f32.mrf.mxu3 }
 0x6c7   : > { %v2397_v34 = vadd.f32 %v2396_v2, %v2367_v44  ;;  %3044 = vmatpush.bf16.msrb.mxu1 %v4669_v33  ;;  %v4810_v33 = vld [vmem:[#allocation9 + $0x94] sm:$0xf] }
 0x6c9   : > { %v2418_v12 = vmul.f32 %v7123_v58, %v2397_v34  ;;  %v4597_v34 = vor.u32 %v4793_v14, %v4596_v59 }
 0x6cb   : > { %v2434_v25 = vadd.f32 %v5336_v15, %v2418_v12  ;;  %4567 = vmatmul.msk.bf16.gmra.mxu2 %vm812_vm2, %v2481_v53  ;;  %4583 = vmatmul.msk.bf16.gmra.mxu3 %vm812_vm2, %v2481_v53  ;;  %v8693_v15 = vld [vmem:[#allocation30_spill] sm:$0xff] }
 0x6cc   : > { %2956 = vmatpush.bf16.msrb.mxu0 %v4597_v34  ;;  %3045 = vmatpush.bf16.msrb.mxu1 %v4661_v50  ;;  %v4792_v50 = vld [vmem:[#allocation9 + $0x4] sm:$0xf] }
 0x6cd   : > { %2450 = vst [vmem:[%s7132_s29 + $0x18] sm:$0xff] %v2434_v25  ;;  %v5340_v25 = vld [vmem:[%s5845_s23 + $0x58] sm:$0xff] }
 0x6ce   : > { %v2370_v61 = vpop.f32.mrf.mxu2  ;;  %v2399_v29 = vpop.f32.mrf.mxu3 }
 0x6cf   : > { %v2400_v46 = vadd.f32 %v2399_v29, %v2370_v61  ;;  %v8694_v29 = vld [vmem:[#allocation31_spill] sm:$0xff] }
 0x6d0   : > { %3877 = vmatpush.bf16.msra.mxu0 %v8693_v15  ;;  %3906 = vmatpush.bf16.msra.mxu1 %v8694_v29  ;;  %v4662_v29 = vld [vmem:[#allocation9 + $0x88] sm:$0xf0] }
 0x6d1   : > { %v2420_v20 = vmul.f32 %v7123_v58, %v2400_v46 }
 0x6d3   : > { %v2436_v31 = vadd.f32 %v5337_v56, %v2420_v20  ;;  %v8695_v56 = vld [vmem:[#allocation32_spill] sm:$0xff] }
 0x6d4   : > { %3878 = vmatpush.bf16.msra.mxu0 %v8695_v56 }
 0x6d5   : > { %2452 = vst [vmem:[%s7132_s29 + $0x28] sm:$0xff] %v2436_v31 }
 0x6d6   : > { %v2372_v1 = vpop.f32.mrf.mxu2  ;;  %v2401_v3 = vpop.f32.mrf.mxu3 }
 0x6d7   : > { %v2402_v16 = vadd.f32 %v2401_v3, %v2372_v1  ;;  %v8697_v3 = vld [vmem:[#allocation34_spill] sm:$0xff] }
 0x6d8   : > { %3879 = vmatpush.bf16.msra.mxu0 %v8697_v3 }
 0x6d9   : > { %v2422_v36 = vmul.f32 %v7123_v58, %v2402_v16  ;;  %v5341_v16 = vld [vmem:[%s5845_s23 + $0x68] sm:$0xff] }
 0x6db   : > { %v2438_v49 = vadd.f32 %v5338_v60, %v2422_v36  ;;  %4568 = vmatmul.msk.bf16.gmra.mxu2 %vm812_vm2, %v2483_v30  ;;  %4584 = vmatmul.msk.bf16.gmra.mxu3 %vm812_vm2, %v2483_v30  ;;  %v8696_v30 = vld [vmem:[#allocation33_spill] sm:$0xff]  ;;  %v8699_v60 = vld [vmem:[#allocation36_spill] sm:$0xff] }
 0x6dc   : > { %3907 = vmatpush.bf16.msra.mxu1 %v8696_v30  ;;  %3880 = vmatpush.bf16.msra.mxu0 %v8699_v60 }
 0x6dd   : > { %2454 = vst [vmem:[%s7132_s29 + $0x38] sm:$0xff] %v2438_v49 }
 0x6de   : > { %v2375_v48 = vpop.f32.mrf.mxu2  ;;  %v2404_v39 = vpop.f32.mrf.mxu3 }
 0x6df   : > { %v2405_v4 = vadd.f32 %v2404_v39, %v2375_v48  ;;  %v4614_v48 = vld [vmem:[#allocation9 + $0x28] sm:$0xf0] }
 0x6e0   : > { %3908 = vmatpush.bf16.msra.mxu1 %v8698_v47  ;;  %v4617_v39 = vor.u32 %v4796_v9, %v4614_v48 }
 0x6e1   : > { %v2424_v53 = vmul.f32 %v7123_v58, %v2405_v4  ;;  %v4681_v4 = vor.u32 %v4812_v43, %v4678_v13  ;;  %v7311_v43 = vld [vmem:[%s8701_s10] sm:$0x3] }
 0x6e2   : > { %3132 = vmatpush.bf16.msra.mxu2 %v4617_v39  ;;  %v7314_v13 = vperm.slane %v7311_v43, 0 }
 0x6e3   : > { %v2440_v21 = vadd.f32 %v5339_v28, %v2424_v53  ;;  %3221 = vmatpush.bf16.msra.mxu3 %v4681_v4  ;;  %v4670_v28 = vld [vmem:[#allocation9 + $0x98] sm:$0xf0] }
 0x6e4   : > { %3909 = vmatpush.bf16.msra.mxu1 %v8700_v38 }
 0x6e5   : > { %2456 = vst [vmem:[%s7132_s29 + $0x48] sm:$0xff] %v2440_v21  ;;  %v4673_v21 = vor.u32 %v4810_v33, %v4670_v28 }
 0x6e6   : > { %v2377_v44 = vpop.f32.mrf.mxu2  ;;  %v2406_v2 = vpop.f32.mrf.mxu3 }
 0x6e7   : > { %v2407_v0 = vadd.f32 %v2406_v2, %v2377_v44  ;;  %3222 = vmatpush.bf16.msra.mxu3 %v4673_v21 }
 0x6e9   : > { %v2426_v12 = vmul.f32 %v7123_v58, %v2407_v0 }
 0x6eb   : > { %v2442_v61 = vadd.f32 %v5340_v25, %v2426_v12  ;;  %4569 = vmatmul.msk.bf16.gmra.mxu2 %vm812_vm2, %v2485_v6  ;;  %4585 = vmatmul.msk.bf16.gmra.mxu3 %vm812_vm2, %v2485_v6 }
 0x6ed   : > { %2458 = vst [vmem:[%s7132_s29 + $0x58] sm:$0xff] %v2442_v61  ;;  %v4808_v61 = vld [vmem:[#allocation9 + $0x84] sm:$0xf] }
 0x6ee   : > { %v2380_v46 = vpop.f32.mrf.mxu2  ;;  %v2409_v20 = vpop.f32.mrf.mxu3 }
 0x6ef   : > { %v2410_v31 = vadd.f32 %v2409_v20, %v2380_v46  ;;  %v4665_v46 = vor.u32 %v4808_v61, %v4662_v29 }
 0x6f1   : > { %v2428_v1 = vmul.f32 %v7123_v58, %v2410_v31  ;;  %3223 = vmatpush.bf16.msra.mxu3 %v4665_v46 }
 0x6f3   : > { %v2444_v36 = vadd.f32 %v5341_v16, %v2428_v1 }
 0x6f5   : > { %2460 = vst [vmem:[%s7132_s29 + $0x68] sm:$0xff] %v2444_v36 }
 0x6f6   : > { %v2382_v40 = vpop.f32.mrf.mxu2  ;;  %v2411_v62 = vpop.f32.mrf.mxu3 }
 0x6f7   : > { %v2412_v49 = vadd.f32 %v2411_v62, %v2382_v40 }
 0x6f9   : > { %v2430_v8 = vmul.f32 %v7123_v58, %v2412_v49 }
 0x6fb   : > { %v2446_v18 = vadd.f32 %v5342_v55, %v2430_v8  ;;  %4570 = vmatmul.msk.bf16.gmra.mxu2 %vm812_vm2, %v7152_v5  ;;  %4586 = vmatmul.msk.bf16.gmra.mxu3 %vm812_vm2, %v7152_v5  ;;  %v2486_v8 = vpop.trf.xlu0 }
 0x6fd   : > { %2462 = vst [vmem:[%s7132_s29 + $0x78] sm:$0xff] %v2446_v18 }
 0x6fe   : > { %v2550_v45 = vpop.f32.mrf.mxu2  ;;  %v2639_v26 = vpop.f32.mrf.mxu3 }
 0x706   : > { %v2552_v58 = vpop.f32.mrf.mxu2  ;;  %v2641_v10 = vpop.f32.mrf.mxu3 }
 0x707   : > { %v7232_v24 = vpack.c.bf16 %v2552_v58, %v2550_v45  ;;  %v7234_v54 = vpack.c.bf16 %v2641_v10, %v2639_v26 }
 0x709   : > { %2957 = vmatmul.bf16.vlgmr.msrb.gmra.mxu0 %v7232_v24  ;;  %3046 = vmatmul.bf16.vlgmr.msrb.gmra.mxu1 %v7234_v54 }
 0x70b   : > { %4571 = vmatmul.msk.bf16.gmra.mxu2 %vm812_vm2, %v7162_v52  ;;  %4587 = vmatmul.msk.bf16.gmra.mxu3 %vm812_vm2, %v7162_v52  ;;  %v4606_v52 = vld [vmem:[#allocation9 + $0x18] sm:$0xf0] }
 0x70c   : > { %v4609_v53 = vor.u32 %v4794_v22, %v4606_v52 }
 0x70e   : > { %v2555_v5 = vpop.f32.mrf.mxu2  ;;  %v2644_v57 = vpop.f32.mrf.mxu3  ;;  %3133 = vmatpush.bf16.msra.mxu2 %v4609_v53 }
 0x716   : > { %v2557_v7 = vpop.f32.mrf.mxu2  ;;  %v2646_v42 = vpop.f32.mrf.mxu3 }
 0x717   : > { %v7242_v23 = vpack.c.bf16 %v2557_v7, %v2555_v5  ;;  %v7244_v63 = vpack.c.bf16 %v2646_v42, %v2644_v57 }
 0x719   : > { %2962 = vmatmul.bf16.gmra.mxu0 %v7242_v23  ;;  %3051 = vmatmul.bf16.gmra.mxu1 %v7244_v63 }
 0x71b   : > { %4572 = vmatmul.msk.bf16.gmra.mxu2 %vm812_vm2, %v7168_v51  ;;  %4588 = vmatmul.msk.bf16.gmra.mxu3 %vm812_vm2, %v7168_v51 }
 0x71e   : > { %v2560_v17 = vpop.f32.mrf.mxu2  ;;  %v2649_v27 = vpop.f32.mrf.mxu3 }
 0x726   : > { %v2562_v44 = vpop.f32.mrf.mxu2  ;;  %v2651_v2 = vpop.f32.mrf.mxu3 }
 0x727   : > { %v7252_v59 = vpack.c.bf16 %v2562_v44, %v2560_v17  ;;  %v7254_v14 = vpack.c.bf16 %v2651_v2, %v2649_v27 }
 0x729   : > { %2967 = vmatmul.bf16.gmra.mxu0 %v7252_v59  ;;  %3056 = vmatmul.bf16.gmra.mxu1 %v7254_v14 }
 0x72b   : > { %4573 = vmatmul.msk.bf16.gmra.mxu2 %vm812_vm2, %v7172_v19  ;;  %4589 = vmatmul.msk.bf16.gmra.mxu3 %vm812_vm2, %v7172_v19  ;;  %v4598_v19 = vld [vmem:[#allocation9 + $0x8] sm:$0xf0] }
 0x72c   : > { %v4601_v12 = vor.u32 %v4792_v50, %v4598_v19 }
 0x72e   : > { %v2565_v51 = vpop.f32.mrf.mxu2  ;;  %v2654_v35 = vpop.f32.mrf.mxu3  ;;  %3134 = vmatpush.bf16.msra.mxu2 %v4601_v12 }
 0x736   : > { %v2567_v0 = vpop.f32.mrf.mxu2  ;;  %v2656_v34 = vpop.f32.mrf.mxu3 }
 0x737   : > { %v7262_v37 = vpack.c.bf16 %v2567_v0, %v2565_v51  ;;  %v7264_v6 = vpack.c.bf16 %v2656_v34, %v2654_v35 }
 0x739   : > { %2972 = vmatmul.bf16.gmra.mxu0 %v7262_v37  ;;  %3061 = vmatmul.bf16.gmra.mxu1 %v7264_v6 }
 0x73b   : > { %4574 = vmatmul.msk.bf16.gmra.mxu2 %vm812_vm2, %v7181_v32  ;;  %4590 = vmatmul.msk.bf16.gmra.mxu3 %vm812_vm2, %v7181_v32 }
 0x73e   : > { %v2570_v15 = vpop.f32.mrf.mxu2  ;;  %v2659_v25 = vpop.f32.mrf.mxu3 }
 0x746   : > { %v2572_v20 = vpop.f32.mrf.mxu2  ;;  %v2661_v56 = vpop.f32.mrf.mxu3 }
 0x747   : > { %v7272_v31 = vpack.c.bf16 %v2572_v20, %v2570_v15  ;;  %v7274_v30 = vpack.c.bf16 %v2661_v56, %v2659_v25 }
 0x749   : > { %2977 = vmatmul.bf16.gmra.mxu0 %v7272_v31  ;;  %3066 = vmatmul.bf16.gmra.mxu1 %v7274_v30 }
 0x74b   : > { %4575 = vmatmul.msk.bf16.gmra.mxu2 %vm812_vm2, %v7190_v11  ;;  %4591 = vmatmul.msk.bf16.gmra.mxu3 %vm812_vm2, %v7190_v11 }
 0x74e   : > { %v2575_v32 = vpop.f32.mrf.mxu2  ;;  %v2664_v1 = vpop.f32.mrf.mxu3 }
 0x756   : > { %v2577_v3 = vpop.f32.mrf.mxu2  ;;  %v2666_v16 = vpop.f32.mrf.mxu3 }
 0x757   : > { %v7282_v36 = vpack.c.bf16 %v2577_v3, %v2575_v32  ;;  %v7284_v47 = vpack.c.bf16 %v2666_v16, %v2664_v1 }
 0x759   : > { %2982 = vmatmul.bf16.gmra.mxu0 %v7282_v36  ;;  %3071 = vmatmul.bf16.gmra.mxu1 %v7284_v47 }
 0x75b   : > { %4576 = vmatmul.msk.bf16.gmra.mxu2 %vm812_vm2, %v7204_v41  ;;  %4592 = vmatmul.msk.bf16.gmra.mxu3 %vm812_vm2, %v7204_v41 }
 0x75e   : > { %v2580_v40 = vpop.f32.mrf.mxu2  ;;  %v2669_v11 = vpop.f32.mrf.mxu3 }
 0x766   : > { %v2582_v62 = vpop.f32.mrf.mxu2  ;;  %v2671_v60 = vpop.f32.mrf.mxu3 }
 0x767   : > { %v7292_v49 = vpack.c.bf16 %v2582_v62, %v2580_v40  ;;  %v7294_v38 = vpack.c.bf16 %v2671_v60, %v2669_v11 }
 0x769   : > { %2987 = vmatmul.bf16.gmra.mxu0 %v7292_v49  ;;  %3076 = vmatmul.bf16.gmra.mxu1 %v7294_v38 }
 0x76b   : > { %4577 = vmatmul.msk.bf16.gmra.mxu2 %vm812_vm2, %v2486_v8  ;;  %4593 = vmatmul.msk.bf16.gmra.mxu3 %vm812_vm2, %v2486_v8 }
 0x76e   : > { %v2585_v55 = vpop.f32.mrf.mxu2  ;;  %v2674_v18 = vpop.f32.mrf.mxu3 }
 0x776   : > { %v2587_v41 = vpop.f32.mrf.mxu2  ;;  %v2676_v9 = vpop.f32.mrf.mxu3 }
 0x777   : > { %v7300_v48 = vpack.c.bf16 %v2587_v41, %v2585_v55  ;;  %v7302_v39 = vpack.c.bf16 %v2676_v9, %v2674_v18 }
 0x779   : > { %2992 = vmatmul.bf16.gmra.mxu0 %v7300_v48  ;;  %3081 = vmatmul.bf16.gmra.mxu1 %v7302_v39 }
 0x77b   : > { %3135 = vmatmul.bf16.vlgmr.msra.gmra.mxu2 %v7232_v24  ;;  %3224 = vmatmul.bf16.vlgmr.msra.gmra.mxu3 %v7234_v54 }
 0x77e   : > { %v2590_v45 = vpop.f32.mrf.mxu2  ;;  %v2679_v26 = vpop.f32.mrf.mxu3 }
 0x786   : > { %v2592_v4 = vpop.f32.mrf.mxu2  ;;  %v2681_v58 = vpop.f32.mrf.mxu3 }
 0x787   : > { %v7316_v10 = vpack.c.bf16 %v2592_v4, %v2590_v45  ;;  %v7318_v5 = vpack.c.bf16 %v2681_v58, %v2679_v26  ;;  %v2958_v57 = vpop.f32.mrf.mxu0  ;;  %v3047_v24 = vpop.f32.mrf.mxu1 }
 0x788   : > { %v2959_v54 = vadd.f32 %v2958_v57, %v7314_v13 }
 0x789   : > { %2997 = vmatmul.bf16.gmra.mxu0 %v7316_v10  ;;  %3086 = vmatmul.bf16.gmra.mxu1 %v7318_v5 }
 0x78a   : > { %v7323_v7 = vadd.f32 %v3047_v24, %v2959_v54 }
 0x78b   : > { %3140 = vmatmul.bf16.gmra.mxu2 %v7242_v23  ;;  %3229 = vmatmul.bf16.gmra.mxu3 %v7244_v63 }
 0x78e   : > { %v2595_v42 = vpop.f32.mrf.mxu2  ;;  %v2684_v22 = vpop.f32.mrf.mxu3 }
 0x78f   : > { %v2960_v52 = vpop.f32.mrf.mxu0  ;;  %v3049_v53 = vpop.f32.mrf.mxu1 }
 0x790   : > { %v2961_v17 = vadd.f32 %v2960_v52, %v7314_v13 }
 0x792   : > { %v7328_v27 = vadd.f32 %v3049_v53, %v2961_v17 }
 0x796   : > { %v2597_v33 = vpop.f32.mrf.mxu2  ;;  %v2686_v28 = vpop.f32.mrf.mxu3 }
 0x797   : > { %v7330_v21 = vpack.c.bf16 %v2597_v33, %v2595_v42  ;;  %v7332_v44 = vpack.c.bf16 %v2686_v28, %v2684_v22  ;;  %v2963_v2 = vpop.f32.mrf.mxu0  ;;  %v3052_v51 = vpop.f32.mrf.mxu1 }
 0x798   : > { %v2964_v23 = vadd.f32 %v2963_v2, %v7314_v13 }
 0x799   : > { %3002 = vmatmul.bf16.gmra.mxu0 %v7330_v21  ;;  %3091 = vmatmul.bf16.gmra.mxu1 %v7332_v44 }
 0x79a   : > { %v7337_v63 = vadd.f32 %v3052_v51, %v2964_v23 }
 0x79b   : > { %3145 = vmatmul.bf16.gmra.mxu2 %v7252_v59  ;;  %3234 = vmatmul.bf16.gmra.mxu3 %v7254_v14 }
 0x79e   : > { %v2600_v35 = vpop.f32.mrf.mxu2  ;;  %v2689_v0 = vpop.f32.mrf.mxu3 }
 0x79f   : > { %v2965_v34 = vpop.f32.mrf.mxu0  ;;  %v3054_v50 = vpop.f32.mrf.mxu1 }
 0x7a0   : > { %v2966_v19 = vadd.f32 %v2965_v34, %v7314_v13 }
 0x7a2   : > { %v7342_v12 = vadd.f32 %v3054_v50, %v2966_v19 }
 0x7a6   : > { %v2602_v15 = vpop.f32.mrf.mxu2  ;;  %v2691_v25 = vpop.f32.mrf.mxu3 }
 0x7a7   : > { %v7344_v61 = vpack.c.bf16 %v2602_v15, %v2600_v35  ;;  %v7346_v29 = vpack.c.bf16 %v2691_v25, %v2689_v0  ;;  %v2968_v46 = vpop.f32.mrf.mxu0  ;;  %v3057_v20 = vpop.f32.mrf.mxu1 }
 0x7a8   : > { %v2969_v59 = vadd.f32 %v2968_v46, %v7314_v13 }
 0x7a9   : > { %3007 = vmatmul.bf16.gmra.mxu0 %v7344_v61  ;;  %3096 = vmatmul.bf16.gmra.mxu1 %v7346_v29 }
 0x7aa   : > { %v7351_v14 = vadd.f32 %v3057_v20, %v2969_v59 }
 0x7ab   : > { %3150 = vmatmul.bf16.gmra.mxu2 %v7262_v37  ;;  %3239 = vmatmul.bf16.gmra.mxu3 %v7264_v6 }
 0x7ae   : > { %v2605_v56 = vpop.f32.mrf.mxu2  ;;  %v2694_v32 = vpop.f32.mrf.mxu3 }
 0x7af   : > { %v2970_v1 = vpop.f32.mrf.mxu0  ;;  %v3059_v3 = vpop.f32.mrf.mxu1 }
 0x7b0   : > { %v2971_v16 = vadd.f32 %v2970_v1, %v7314_v13 }
 0x7b2   : > { %v7356_v40 = vadd.f32 %v3059_v3, %v2971_v16 }
 0x7b6   : > { %v2607_v11 = vpop.f32.mrf.mxu2  ;;  %v2696_v62 = vpop.f32.mrf.mxu3 }
 0x7b7   : > { %v7358_v60 = vpack.c.bf16 %v2607_v11, %v2605_v56  ;;  %v7360_v8 = vpack.c.bf16 %v2696_v62, %v2694_v32  ;;  %v2973_v55 = vpop.f32.mrf.mxu0  ;;  %v3062_v18 = vpop.f32.mrf.mxu1 }
 0x7b8   : > { %v2974_v37 = vadd.f32 %v2973_v55, %v7314_v13 }
 0x7b9   : > { %3012 = vmatmul.bf16.gmra.mxu0 %v7358_v60  ;;  %3101 = vmatmul.bf16.gmra.mxu1 %v7360_v8 }
 0x7ba   : > { %v7365_v6 = vadd.f32 %v3062_v18, %v2974_v37 }
 0x7bb   : > { %3155 = vmatmul.bf16.gmra.mxu2 %v7272_v31  ;;  %3244 = vmatmul.bf16.gmra.mxu3 %v7274_v30 }
 0x7be   : > { %v2610_v41 = vpop.f32.mrf.mxu2  ;;  %v2699_v9 = vpop.f32.mrf.mxu3 }
 0x7bf   : > { %v2975_v45 = vpop.f32.mrf.mxu0  ;;  %v3064_v26 = vpop.f32.mrf.mxu1 }
 0x7c0   : > { %v2976_v4 = vadd.f32 %v2975_v45, %v7314_v13 }
 0x7c2   : > { %v7370_v58 = vadd.f32 %v3064_v26, %v2976_v4 }
 0x7c6   : > { %v2612_v57 = vpop.f32.mrf.mxu2  ;;  %v2701_v24 = vpop.f32.mrf.mxu3 }
 0x7c7   : > { %v7372_v54 = vpack.c.bf16 %v2612_v57, %v2610_v41  ;;  %v7374_v42 = vpack.c.bf16 %v2701_v24, %v2699_v9  ;;  %v7376_v22 = vpop.f32.mrf.mxu0  ;;  %v7378_v52 = vpop.f32.mrf.mxu1 }
 0x7c9   : > { %3017 = vmatmul.bf16.gmra.mxu0 %v7372_v54  ;;  %3106 = vmatmul.bf16.gmra.mxu1 %v7374_v42 }
 0x7cb   : > { %3160 = vmatmul.bf16.gmra.mxu2 %v7282_v36  ;;  %3249 = vmatmul.bf16.gmra.mxu3 %v7284_v47 }
 0x7ce   : > { %v2615_v31 = vpop.f32.mrf.mxu2  ;;  %v2704_v30 = vpop.f32.mrf.mxu3 }
 0x7cf   : > { %v7384_v53 = vpop.f32.mrf.mxu0  ;;  %v7386_v17 = vpop.f32.mrf.mxu1 }
 0x7d6   : > { %v2617_v33 = vpop.f32.mrf.mxu2  ;;  %v2706_v28 = vpop.f32.mrf.mxu3 }
 0x7d7   : > { %v7388_v2 = vpack.c.bf16 %v2617_v33, %v2615_v31  ;;  %v7390_v51 = vpack.c.bf16 %v2706_v28, %v2704_v30  ;;  %v7392_v23 = vpop.f32.mrf.mxu0  ;;  %v7394_v35 = vpop.f32.mrf.mxu1 }
 0x7d9   : > { %3022 = vmatmul.bf16.gmra.mxu0 %v7388_v2  ;;  %3111 = vmatmul.bf16.gmra.mxu1 %v7390_v51 }
 0x7db   : > { %3165 = vmatmul.bf16.gmra.mxu2 %v7292_v49  ;;  %3254 = vmatmul.bf16.gmra.mxu3 %v7294_v38 }
 0x7de   : > { %v2620_v36 = vpop.f32.mrf.mxu2  ;;  %v2709_v47 = vpop.f32.mrf.mxu3 }
 0x7df   : > { %v7400_v0 = vpop.f32.mrf.mxu0  ;;  %v7402_v34 = vpop.f32.mrf.mxu1 }
 0x7e6   : > { %v2622_v50 = vpop.f32.mrf.mxu2  ;;  %v2711_v19 = vpop.f32.mrf.mxu3 }
 0x7e7   : > { %v7404_v15 = vpack.c.bf16 %v2622_v50, %v2620_v36  ;;  %v7406_v25 = vpack.c.bf16 %v2711_v19, %v2709_v47  ;;  %v7408_v46 = vpop.f32.mrf.mxu0  ;;  %v7410_v20 = vpop.f32.mrf.mxu1 }
 0x7e9   : > { %3027 = vmatmul.bf16.gmra.mxu0 %v7404_v15  ;;  %3116 = vmatmul.bf16.gmra.mxu1 %v7406_v25 }
 0x7eb   : > { %3170 = vmatmul.bf16.gmra.mxu2 %v7300_v48  ;;  %3259 = vmatmul.bf16.gmra.mxu3 %v7302_v39  ;;  %v7433_v48 = vperm.slane %v7311_v43, 1 }
 0x7ee   : > { %v2625_v49 = vpop.f32.mrf.mxu2  ;;  %v2714_v38 = vpop.f32.mrf.mxu3 }
 0x7ef   : > { %v7416_v59 = vpop.f32.mrf.mxu0  ;;  %v7418_v56 = vpop.f32.mrf.mxu1 }
 0x7f6   : > { %v2627_v32 = vpop.f32.mrf.mxu2  ;;  %v2716_v1 = vpop.f32.mrf.mxu3 }
 0x7f7   : > { %v7420_v3 = vpack.c.bf16 %v2627_v32, %v2625_v49  ;;  %v7422_v16 = vpack.c.bf16 %v2716_v1, %v2714_v38  ;;  %v7424_v11 = vpop.f32.mrf.mxu0  ;;  %v7426_v62 = vpop.f32.mrf.mxu1 }
 0x7f9   : > { %3032 = vmatmul.bf16.gmra.mxu0 %v7420_v3  ;;  %3121 = vmatmul.bf16.gmra.mxu1 %v7422_v16 }
 0x7fb   : > { %3175 = vmatmul.bf16.gmra.mxu2 %v7316_v10  ;;  %3264 = vmatmul.bf16.gmra.mxu3 %v7318_v5 }
 0x7fe   : > { %v3136_v39 = vpop.f32.mrf.mxu2  ;;  %v3225_v55 = vpop.f32.mrf.mxu3 }
 0x7ff   : > { %v7435_v18 = vpop.f32.mrf.mxu0  ;;  %v7437_v37 = vpop.f32.mrf.mxu1  ;;  %v3137_v41 = vadd.f32 %v3136_v39, %v7433_v48 }
 0x801   : > { %v7440_v9 = vadd.f32 %v3225_v55, %v3137_v41 }
 0x806   : > { %v3138_v45 = vpop.f32.mrf.mxu2  ;;  %v3227_v26 = vpop.f32.mrf.mxu3 }
 0x807   : > { %v2998_v4 = vpop.f32.mrf.mxu0  ;;  %v3139_v10 = vadd.f32 %v3138_v45, %v7433_v48  ;;  %v3087_v57 = vpop.f32.mrf.mxu1 }
 0x808   : > { %v2999_v5 = vadd.f32 %v2998_v4, %v7314_v13 }
 0x809   : > { %v7444_v43 = vadd.f32 %v3227_v26, %v3139_v10 }
 0x80a   : > { %v7446_v24 = vadd.f32 %v3087_v57, %v2999_v5 }
 0x80b   : > { %3180 = vmatmul.bf16.gmra.mxu2 %v7330_v21  ;;  %3269 = vmatmul.bf16.gmra.mxu3 %v7332_v44 }
 0x80c   : > { %8702 = vst [vmem:[#allocation53_spill] sm:$0xff] %v7446_v24 }
 0x80e   : > { %v3141_v31 = vpop.f32.mrf.mxu2  ;;  %v3230_v30 = vpop.f32.mrf.mxu3 }
 0x80f   : > { %v3142_v33 = vadd.f32 %v3141_v31, %v7433_v48 }
 0x811   : > { %v7451_v28 = vadd.f32 %v3230_v30, %v3142_v33  ;;  %v2986_v30 = vadd.f32 %v7400_v0, %v7314_v13  ;;  %v2989_v0 = vadd.f32 %v7408_v46, %v7314_v13 }
 0x816   : > { %v3143_v36 = vpop.f32.mrf.mxu2  ;;  %v3232_v47 = vpop.f32.mrf.mxu3 }
 0x817   : > { %v3144_v50 = vadd.f32 %v3143_v36, %v7433_v48 }
 0x819   : > { %v7454_v19 = vadd.f32 %v3232_v47, %v3144_v50 }
 0x81b   : > { %3185 = vmatmul.bf16.gmra.mxu2 %v7344_v61  ;;  %3274 = vmatmul.bf16.gmra.mxu3 %v7346_v29 }
 0x81e   : > { %v3146_v49 = vpop.f32.mrf.mxu2  ;;  %v3235_v21 = vpop.f32.mrf.mxu3 }
 0x81f   : > { %v3147_v44 = vadd.f32 %v3146_v49, %v7433_v48 }
 0x821   : > { %v7459_v38 = vadd.f32 %v3235_v21, %v3147_v44 }
 0x826   : > { %v3148_v32 = vpop.f32.mrf.mxu2  ;;  %v3237_v1 = vpop.f32.mrf.mxu3 }
 0x827   : > { %v3149_v39 = vadd.f32 %v3148_v32, %v7433_v48 }
 0x829   : > { %v7462_v55 = vadd.f32 %v3237_v1, %v3149_v39 }
 0x82b   : > { %3190 = vmatmul.bf16.gmra.mxu2 %v7358_v60  ;;  %3279 = vmatmul.bf16.gmra.mxu3 %v7360_v8 }
 0x82e   : > { %v3151_v41 = vpop.f32.mrf.mxu2  ;;  %v3240_v61 = vpop.f32.mrf.mxu3 }
 0x82f   : > { %v3152_v29 = vadd.f32 %v3151_v41, %v7433_v48  ;;  %v2984_v41 = vadd.f32 %v7392_v23, %v7314_v13 }
 0x831   : > { %v7467_v45 = vadd.f32 %v3240_v61, %v3152_v29 }
 0x836   : > { %v3153_v26 = vpop.f32.mrf.mxu2  ;;  %v3242_v4 = vpop.f32.mrf.mxu3 }
 0x837   : > { %v3154_v39 = vadd.f32 %v3153_v26, %v7433_v48 }
 0x83b   : > { %3195 = vmatmul.bf16.gmra.mxu2 %v7372_v54  ;;  %3284 = vmatmul.bf16.gmra.mxu3 %v7374_v42  ;;  %v7477_v54 = vadd.f32 %v7402_v34, %v2986_v30 }
 0x83e   : > { %v3156_v10 = vpop.f32.mrf.mxu2  ;;  %v3245_v5 = vpop.f32.mrf.mxu3 }
 0x846   : > { %v3158_v57 = vpop.f32.mrf.mxu2  ;;  %v3247_v31 = vpop.f32.mrf.mxu3 }
 0x847   : > { %v3159_v50 = vadd.f32 %v3158_v57, %v7433_v48 }
 0x849   : > { %v7490_v21 = vadd.f32 %v3247_v31, %v3159_v50  ;;  %v7514_v31 = vadd.f32 %v3242_v4, %v3154_v39  ;;  %v2994_v39 = vadd.f32 %v7424_v11, %v7314_v13 }
 0x84b   : > { %3200 = vmatmul.bf16.gmra.mxu2 %v7388_v2  ;;  %3289 = vmatmul.bf16.gmra.mxu3 %v7390_v51  ;;  %v2981_v51 = vadd.f32 %v7384_v53, %v7314_v13 }
 0x84e   : > { %v3161_v60 = vpop.f32.mrf.mxu2  ;;  %v3250_v8 = vpop.f32.mrf.mxu3 }
 0x84f   : > { %v3162_v53 = vadd.f32 %v3161_v60, %v7433_v48  ;;  %v7517_v60 = vadd.f32 %v7394_v35, %v2984_v41  ;;  %v3326_v35 = vmax.f32 %v7370_v58, %v7514_v31 }
 0x851   : > { %v7511_v29 = vadd.f32 %v3250_v8, %v3162_v53  ;;  %v3317_v53 = vmax.f32 %v7351_v14, %v7459_v38 }
 0x853   : > { %v3335_v4 = vmax.f32 %v7517_v60, %v7511_v29 }
 0x856   : > { %v3163_v33 = vpop.f32.mrf.mxu2  ;;  %v3252_v36 = vpop.f32.mrf.mxu3 }
 0x857   : > { %v3164_v47 = vadd.f32 %v3163_v33, %v7433_v48 }
 0x859   : > { %v7479_v42 = vadd.f32 %v3252_v36, %v3164_v47  ;;  %v3320_v36 = vmax.f32 %v7356_v40, %v7462_v55 }
 0x85b   : > { %3205 = vmatmul.bf16.gmra.mxu2 %v7404_v15  ;;  %3294 = vmatmul.bf16.gmra.mxu3 %v7406_v25  ;;  %v3338_v2 = vmax.f32 %v7477_v54, %v7479_v42  ;;  %v7494_v15 = vadd.f32 %v7386_v17, %v2981_v51  ;;  %v7497_v25 = vadd.f32 %v7410_v20, %v2989_v0 }
 0x85c   : > { %v2991_v17 = vadd.f32 %v7416_v59, %v7314_v13  ;;  %v3157_v59 = vadd.f32 %v3156_v10, %v7433_v48 }
 0x85d   : > { %3339 = vmax.xlane.f32.xlu2 %v3338_v2  ;;  %8703 = vst [vmem:[#allocation52_spill] sm:$0xff] %v7497_v25  ;;  %v3332_v1 = vmax.f32 %v7494_v15, %v7490_v21 }
 0x85e   : > { %v3166_v34 = vpop.f32.mrf.mxu2  ;;  %v3255_v49 = vpop.f32.mrf.mxu3  ;;  %v7520_v26 = vadd.f32 %v7418_v56, %v2991_v17  ;;  %v2979_v56 = vadd.f32 %v7376_v22, %v7314_v13 }
 0x85f   : > { %v3167_v44 = vadd.f32 %v3166_v34, %v7433_v48 }
 0x861   : > { %v7499_v32 = vadd.f32 %v3255_v49, %v3167_v44  ;;  %v4824_v44 = vld [vmem:[%s8707_s24] sm:$0xff]  ;;  %s4155_s24 = scalar_lea.hbm %s8781_s21, %s4828_s11 }
 0x862   : > { %4738 = vmatmul.msk.bf16.vlgmr.msra.gmra.mxu0 %vm716_vm0, %v4824_v44  ;;  %4742 = vmatmul.msk.bf16.vlgmr.msra.gmra.mxu1 %vm716_vm0, %v4824_v44  ;;  %s4158_s18 = sshll.u32 %s4155_s24, 4  ;;  %s4159_s18 = int_to_ptr.hbm [resolvable:$true] %s4158_s18 }
 0x863   : > { %8704 = vst [vmem:[#allocation45_spill] sm:$0xff] %v7499_v32  ;;  %v3341_v46 = vmax.f32 %v7497_v25, %v7499_v32  ;;  %s5508_s20 = sshra.s32 %s4159_s18, 4  ;;  %s5509_s20 = int_to_ptr.hbm [resolvable:$true] %s5508_s20 }
 0x864   : > { %s5510_s14 = scalar_lea.hbm %s5509_s20, 128  ;;  %p5515_p10 = scmp.lt.s32.totalorder %s5509_s20, %s8782_s15 }
 0x865   : > { %3342 = vmax.xlane.f32.xlu1 %v3341_v46  ;;  %3333 = vmax.xlane.f32.xlu2 %v3332_v1  ;;  %v3308_v1 = vmax.f32 %v7328_v27, %v7444_v43  ;;  %p5511_p1 = scmp.ne.s32.totalorder %s5509_s20, %s5510_s14 }
 0x866   : > { %v3168_v20 = vpop.f32.mrf.mxu2  ;;  %v3257_v61 = vpop.f32.mrf.mxu3 }
 0x867   : > { %v3169_v57 = vadd.f32 %v3168_v20, %v7433_v48  ;;  %v7569_v20 = vadd.f32 %v7426_v62, %v2994_v39  ;;  %v3305_v62 = vmax.f32 %v7323_v7, %v7440_v9  ;;  %p5512_p4 = pnand %p5511_p1, %p5806_p3 }
 0x869   : > { %v7522_v23 = vadd.f32 %v3257_v61, %v3169_v57  ;;  %8710 = vst [vmem:[#allocation64_spill] sm:$0xff] %v7569_v20  ;;  %v3000_v61 = vpop.f32.mrf.mxu0  ;;  %v3311_v57 = vmax.f32 %v7337_v63, %v7451_v28  ;;  %p5513_p8 = pneg %p5512_p4 }
 0x86b   : > { %3210 = vmatmul.bf16.gmra.mxu2 %v7420_v3  ;;  %3299 = vmatmul.bf16.gmra.mxu3 %v7422_v16  ;;  %v3344_v8 = vmax.f32 %v7520_v26, %v7522_v23  ;;  %v7535_v3 = vadd.f32 %v3245_v5, %v3157_v59  ;;  %v7538_v16 = vadd.f32 %v7378_v52, %v2979_v56  ;;  %v3089_v56 = vpop.f32.mrf.mxu1 }
 0x86c   : > { %v3323_v5 = vmax.f32 %v7365_v6, %v7467_v45  ;;  %v3314_v52 = vmax.f32 %v7342_v12, %v7454_v19 }
 0x86d   : > { %3345 = vmax.xlane.f32.xlu0 %v3344_v8  ;;  %3336 = vmax.xlane.f32.xlu1 %v3335_v4  ;;  %v3329_v33 = vmax.f32 %v7538_v16, %v7535_v3  ;;  %v3001_v4 = vadd.f32 %v3000_v61, %v7314_v13 }
 0x86e   : > { %3327 = vmax.xlane.f32.xlu2 %v3326_v35  ;;  %v3171_v10 = vpop.f32.mrf.mxu2  ;;  %v3260_v30 = vpop.f32.mrf.mxu3 }
 0x86f   : > { %v3172_v46 = vadd.f32 %v3171_v10, %v7433_v48  ;;  %v7579_v10 = vadd.f32 %v3089_v56, %v3001_v4 }
 0x871   : > { %v7566_v41 = vadd.f32 %v3260_v30, %v3172_v46  ;;  %8712 = vst [vmem:[#allocation43_spill] sm:$0xff] %v7579_v10 }
 0x873   : > { %8709 = vst [vmem:[#allocation44_spill] sm:$0xff] %v7566_v41  ;;  %v3347_v8 = vmax.f32 %v7569_v20, %v7566_v41 }
 0x875   : > { %3330 = vmax.xlane.f32.xlu1 %v3329_v33  ;;  %v3793_v33 = vld [vmem:[%s8713_s30] sm:$0xff] }
 0x876   : > { %3321 = vmax.xlane.f32.xlu2 %v3320_v36  ;;  %v3173_v47 = vpop.f32.mrf.mxu2  ;;  %v3262_v22 = vpop.f32.mrf.mxu3  ;;  %v2996_v36 = vadd.f32 %v7435_v18, %v7314_v13 }
 0x877   : > { %v3174_v50 = vadd.f32 %v3173_v47, %v7433_v48 }
 0x879   : > { %v7545_v2 = vadd.f32 %v3262_v22, %v3174_v50  ;;  %v7593_v22 = vadd.f32 %v7437_v37, %v2996_v36  ;;  %v7609_v37 = vpop.f32.mrf.mxu0 }
 0x87b   : > { %8705 = vst [vmem:[#allocation46_spill] sm:$0xff] %v7545_v2  ;;  %v3350_v50 = vmax.f32 %v7593_v22, %v7545_v2 }
 0x87c   : > { %8714 = vst [vmem:[#allocation66_spill] sm:$0xff] %v7593_v22 }
 0x87d   : > { %3324 = vmax.xlane.f32.xlu1 %v3323_v5 }
 0x87e   : > { %3315 = vmax.xlane.f32.xlu2 %v3314_v52  ;;  %v3176_v51 = vpop.f32.mrf.mxu2  ;;  %v3265_v34 = vpop.f32.mrf.mxu3 }
 0x87f   : > { %v3177_v0 = vadd.f32 %v3176_v51, %v7433_v48 }
 0x881   : > { %v7552_v49 = vadd.f32 %v3265_v34, %v3177_v0 }
 0x883   : > { %8706 = vst [vmem:[#allocation47_spill] sm:$0xff] %v7552_v49  ;;  %v3353_v51 = vmax.f32 %v7446_v24, %v7552_v49 }
 0x885   : > { %3318 = vmax.xlane.f32.xlu1 %v3317_v53 }
 0x886   : > { %3309 = vmax.xlane.f32.xlu2 %v3308_v1  ;;  %v3178_v17 = vpop.f32.mrf.mxu2  ;;  %v3267_v11 = vpop.f32.mrf.mxu3 }
 0x887   : > { %v3179_v59 = vadd.f32 %v3178_v17, %v7433_v48  ;;  %v7617_v1 = vpop.f32.mrf.mxu1  ;;  %v3005_v17 = vpop.f32.mrf.mxu0 }
 0x889   : > { %v7577_v35 = vadd.f32 %v3267_v11, %v3179_v59 }
 0x88b   : > { %8711 = vst [vmem:[#allocation65_spill] sm:$0xff] %v7577_v35  ;;  %v3356_v30 = vmax.f32 %v7579_v10, %v7577_v35 }
 0x88d   : > { %3312 = vmax.xlane.f32.xlu1 %v3311_v57 }
 0x88e   : > { %3348 = vmax.xlane.f32.xlu2 %v3347_v8  ;;  %v7607_v34 = vpop.f32.mrf.mxu2  ;;  %v7611_v44 = vpop.f32.mrf.mxu3 }
 0x88f   : > { %v3094_v8 = vpop.f32.mrf.mxu1  ;;  %v7623_v11 = vpop.f32.mrf.mxu0 }
 0x895   : > { %3306 = vmax.xlane.f32.xlu1 %v3305_v62 }
 0x896   : > { %3357 = vmax.xlane.f32.xlu2 %v3356_v30  ;;  %v3183_v39 = vpop.f32.mrf.mxu2  ;;  %v3272_v59 = vpop.f32.mrf.mxu3 }
 0x897   : > { %v7631_v49 = vpop.f32.mrf.mxu1  ;;  %v3010_v10 = vpop.f32.mrf.mxu0 }
 0x89e   : > { %v7621_v4 = vpop.f32.mrf.mxu2  ;;  %v7629_v36 = vpop.f32.mrf.mxu3 }
 0x8a6   : > { %v3188_v24 = vpop.f32.mrf.mxu2 }
 0x8ae   : > { %3803 = vperm.xlu1 %4942, %v3793_v33  }
 0x8d0   : > { %v7590_v47 = vpop.xlane.xlu2 %3339 }
 0x8d8   : > { %v7597_v5 = vpop.xlane.xlu1 %3342  ;;  %v7599_v52 = vpop.xlane.xlu2 %3333  ;;  %3351 = vmax.xlane.f32.xlu1 %v3350_v50 }
 0x8d9   : > { %8715 = vst [vmem:[#allocation62_spill] sm:$0xff] %v7597_v5 }
 0x8e0   : > { %v7603_v0 = vpop.xlane.xlu1 %3336  ;;  %3354 = vmax.xlane.f32.xlu1 %v3353_v51 }
 0x8e1   : > { %v7605_v18 = vpop.xlane.xlu2 %3327 }
 0x8e8   : > { %v7613_v53 = vpop.xlane.xlu1 %3330 }
 0x8e9   : > { %v7615_v46 = vpop.xlane.xlu2 %3321 }
 0x8f0   : > { %v7619_v61 = vpop.xlane.xlu1 %3324 }
 0x8f1   : > { %v3316_v57 = vpop.xlane.xlu2 %3315 }
 0x8f2   : > { %v3407_v41 = vsub.f32 %v7342_v12, %v3316_v57  ;;  %v3408_v2 = vsub.f32 %v7454_v19, %v3316_v57  ;;  %v7645_v19 = vpop.f32.mrf.mxu2 }
 0x8f4   : > { %v3479_v32 = vmul.f32 1.442695, %v3408_v2 }
 0x8f8   : > { %v7625_v56 = vpop.xlane.xlu1 %3318 }
 0x8f9   : > { %v3310_v62 = vpop.xlane.xlu2 %3309 }
 0x8fa   : > { %v3403_v30 = vsub.f32 %v7328_v27, %v3310_v62  ;;  %v3404_v33 = vsub.f32 %v7444_v43, %v3310_v62  ;;  %v3277_v43 = vpop.f32.mrf.mxu3  ;;  %v3184_v62 = vadd.f32 %v3183_v39, %v7433_v48  ;;  %v7649_v39 = vpop.f32.mrf.mxu0 }
 0x8fc   : > { %v3469_v50 = vmul.f32 1.442695, %v3403_v30  ;;  %v3471_v51 = vmul.f32 1.442695, %v3404_v33  ;;  %v3099_v33 = vpop.f32.mrf.mxu1  ;;  %v7647_v57 = vadd.f32 %v3272_v59, %v3184_v62  ;;  %v3182_v62 = vadd.f32 %v7607_v34, %v7433_v48 }
 0x8fe   : > { %5135 = vpow2.f32 %v3469_v50  ;;  %v3477_v50 = vmul.f32 1.442695, %v3407_v41  ;;  %8718 = vst [vmem:[#allocation41_spill] sm:$0xff] %v7647_v57 }
 0x8ff   : > { %5137 = vpow2.f32 %v3471_v51  ;;  %v3006_v51 = vadd.f32 %v3005_v17, %v7314_v13 }
 0x900   : > { %v3313_v35 = vpop.xlane.xlu1 %3312  ;;  %5139 = vpow2.f32 %v3477_v50  ;;  %v3189_v50 = vadd.f32 %v3188_v24, %v7433_v48  ;;  %v7684_v24 = vadd.f32 %v7611_v44, %v3182_v62  ;;  %v3415_v62 = vsub.f32 %v7370_v58, %v7605_v18 }
 0x901   : > { %5141 = vpow2.f32 %v3479_v32  ;;  %v3193_v32 = vpop.f32.mrf.mxu2  ;;  %v3405_v59 = vsub.f32 %v7337_v63, %v3313_v35  ;;  %v3004_v63 = vadd.f32 %v7609_v37, %v7314_v13 }
 0x902   : > { %v7655_v41 = vpop.f32.mrf.mxu3  ;;  %8720 = vst [vmem:[#allocation67_spill] sm:$0xff] %v7684_v24  ;;  %v3194_v58 = vadd.f32 %v3193_v32, %v7433_v48 }
 0x904   : > { %v7634_v20 = vpop.eup %5135 }
 0x905   : > { %8716 = vst [vmem:[#allocation63_spill] sm:$0xff] %v7634_v20  ;;  %v7637_v27 = vpop.eup %5137 }
 0x906   : > { %8717 = vst [vmem:[#allocation40_spill] sm:$0xff] %v7637_v27  ;;  %v3596_v30 = vadd.f32 %v7637_v27, %v7634_v20  ;;  %v7651_v20 = vadd.f32 %v3094_v8, %v3006_v51 }
 0x908   : > { %v3307_v22 = vpop.xlane.xlu1 %3306  ;;  %3597 = vadd.xlane.f32.xlu2 %v3596_v30  ;;  %8719 = vst [vmem:[#allocation73_spill] sm:$0xff] %v7651_v20  ;;  %v3362_v2 = vmax.f32 %v7651_v20, %v7647_v57  ;;  %v3406_v30 = vsub.f32 %v7451_v28, %v3313_v35  ;;  %v7686_v35 = vadd.f32 %v3277_v43, %v3189_v50 }
 0x909   : > { %v3401_v12 = vsub.f32 %v7323_v7, %v3307_v22  ;;  %v3402_v25 = vsub.f32 %v7440_v9, %v3307_v22  ;;  %v7657_v7 = vpop.eup %5139  ;;  %v7659_v9 = vpop.f32.mrf.mxu1 }
 0x90a   : > { %v7661_v22 = vpop.eup %5141  ;;  %v3282_v34 = vpop.f32.mrf.mxu3  ;;  %v3475_v28 = vmul.f32 1.442695, %v3406_v30  ;;  %8721 = vst [vmem:[#allocation69_spill] sm:$0xff] %v7686_v35 }
 0x90b   : > { %v3465_v5 = vmul.f32 1.442695, %v3401_v12  ;;  %v3467_v27 = vmul.f32 1.442695, %v3402_v25  ;;  %v3411_v25 = vsub.f32 %v7356_v40, %v7615_v46  ;;  %v3602_v40 = vadd.f32 %v7661_v22, %v7657_v7 }
 0x90d   : > { %5143 = vpow2.f32 %v3465_v5  ;;  %v3412_v5 = vsub.f32 %v7462_v55, %v7615_v46  ;;  %v3485_v51 = vmul.f32 1.442695, %v3411_v25  ;;  %v3011_v46 = vadd.f32 %v3010_v10, %v7314_v13  ;;  %v7693_v10 = vpop.f32.mrf.mxu2 }
 0x90e   : > { %5145 = vpow2.f32 %v3467_v27  ;;  %v3015_v27 = vpop.f32.mrf.mxu0 }
 0x90f   : > { %v3487_v55 = vmul.f32 1.442695, %v3412_v5  ;;  %5147 = vpow2.f32 %v3485_v51  ;;  %v7689_v5 = vadd.f32 %v7617_v1, %v3004_v63  ;;  %v7691_v57 = vadd.f32 %v3099_v33, %v3011_v46 }
 0x910   : > { %3363 = vmax.xlane.f32.xlu2 %v3362_v2  ;;  %v3473_v2 = vmul.f32 1.442695, %v3405_v59  ;;  %v3416_v51 = vsub.f32 %v7514_v31, %v7605_v18  ;;  %v3410_v63 = vsub.f32 %v7459_v38, %v7625_v56  ;;  %v3493_v46 = vmul.f32 1.442695, %v3415_v62 }
 0x911   : > { %v3104_v25 = vpop.f32.mrf.mxu1  ;;  %5149 = vpow2.f32 %v3487_v55  ;;  %8722 = vst [vmem:[#allocation57_spill] sm:$0xff] %v7689_v5  ;;  %v3368_v37 = vmax.f32 %v7691_v57, %v7686_v35  ;;  %v3359_v44 = vmax.f32 %v7689_v5, %v7684_v24  ;;  %v3187_v55 = vadd.f32 %v7621_v4, %v7433_v48 }
 0x912   : > { %5151 = vpow2.f32 %v3473_v2  ;;  %v7711_v50 = vpop.f32.mrf.mxu3 }
 0x913   : > { %v7665_v17 = vpop.eup %5143  ;;  %5153 = vpow2.f32 %v3475_v28  ;;  %v3495_v28 = vmul.f32 1.442695, %v3416_v51  ;;  %v7732_v32 = vadd.f32 %v7629_v36, %v3187_v55 }
 0x914   : > { %v7670_v8 = vpop.eup %5145  ;;  %5155 = vpow2.f32 %v3493_v46 }
 0x915   : > { %v3593_v12 = vadd.f32 %v7670_v8, %v7665_v17  ;;  %v7701_v59 = vpop.eup %5147  ;;  %v3198_v18 = vpop.f32.mrf.mxu2  ;;  %8723 = vst [vmem:[#allocation56_spill] sm:$0xff] %v7732_v32  ;;  %5157 = vpow2.f32 %v3495_v28  ;;  %v3192_v28 = vadd.f32 %v7645_v19, %v7433_v48 }
 0x916   : > { %v7699_v43 = vpop.f32.mrf.mxu0 }
 0x917   : > { %3594 = vadd.xlane.f32.xlu1 %v3593_v12  ;;  %v7703_v1 = vpop.eup %5149 }
 0x918   : > { %3603 = vadd.xlane.f32.xlu2 %v3602_v40  ;;  %v7705_v33 = vpop.eup %5151  ;;  %v3409_v40 = vsub.f32 %v7351_v14, %v7625_v56  ;;  %v3608_v2 = vadd.f32 %v7703_v1, %v7701_v59  ;;  %v3009_v14 = vadd.f32 %v7623_v11, %v7314_v13  ;;  %v3483_v56 = vmul.f32 1.442695, %v3410_v63 }
 0x919   : > { %v7709_v30 = vpop.eup %5153  ;;  %v7717_v12 = vpop.f32.mrf.mxu1  ;;  %v3419_v63 = vsub.f32 %v7494_v15, %v7599_v52 }
 0x91a   : > { %v3599_v31 = vadd.f32 %v7709_v30, %v7705_v33  ;;  %v3481_v4 = vmul.f32 1.442695, %v3409_v40  ;;  %v7737_v62 = vadd.f32 %v7631_v49, %v3009_v14  ;;  %v3287_v11 = vpop.f32.mrf.mxu3  ;;  %v7745_v55 = vpop.eup %5155  ;;  %v3414_v14 = vsub.f32 %v7467_v45, %v7619_v61 }
 0x91c   : > { %8724 = vst [vmem:[#allocation70_spill] sm:$0xff] %v7737_v62  ;;  %5159 = vpow2.f32 %v3481_v4  ;;  %v3365_v40 = vmax.f32 %v7737_v62, %v7732_v32  ;;  %v3501_v4 = vmul.f32 1.442695, %v3419_v63 }
 0x91d   : > { %5161 = vpow2.f32 %v3483_v56  ;;  %v7749_v49 = vpop.f32.mrf.mxu2 }
 0x91e   : > { %v3020_v38 = vpop.f32.mrf.mxu0  ;;  %5163 = vpow2.f32 %v3501_v4 }
 0x91f   : > { %3360 = vmax.xlane.f32.xlu1 %v3359_v44  ;;  %v7734_v44 = vadd.f32 %v3282_v34, %v3194_v58  ;;  %v7747_v34 = vpop.eup %5157 }
 0x920   : > { %3369 = vmax.xlane.f32.xlu2 %v3368_v37  ;;  %v3016_v37 = vadd.f32 %v3015_v27, %v7314_v13  ;;  %v3614_v15 = vadd.f32 %v7747_v34, %v7745_v55 }
 0x921   : > { %v3109_v36 = vpop.f32.mrf.mxu1 }
 0x922   : > { %v7739_v51 = vadd.f32 %v3104_v25, %v3016_v37  ;;  %v7751_v25 = vpop.eup %5159  ;;  %v3199_v37 = vadd.f32 %v3198_v18, %v7433_v48  ;;  %v7780_v18 = vadd.f32 %v7655_v41, %v3192_v28 }
 0x923   : > { %v7755_v58 = vpop.eup %5161 }
 0x924   : > { %v3374_v27 = vmax.f32 %v7739_v51, %v7734_v44  ;;  %v3605_v56 = vadd.f32 %v7755_v58, %v7751_v25  ;;  %v7793_v28 = vpop.eup %5163 }
 0x925   : > { %v3203_v63 = vpop.f32.mrf.mxu2 }
 0x926   : > { %v7757_v46 = vpop.f32.mrf.mxu0 }
 0x927   : > { %3600 = vadd.xlane.f32.xlu1 %v3599_v31  ;;  %v3413_v31 = vsub.f32 %v7365_v6, %v7619_v61  ;;  %v3014_v6 = vadd.f32 %v7649_v39, %v7314_v13  ;;  %v3491_v61 = vmul.f32 1.442695, %v3414_v14 }
 0x928   : > { %3609 = vadd.xlane.f32.xlu2 %v3608_v2  ;;  %v3420_v2 = vsub.f32 %v7490_v21, %v7599_v52  ;;  %v3021_v52 = vadd.f32 %v3020_v38, %v7314_v13 }
 0x929   : > { %v3489_v19 = vmul.f32 1.442695, %v3413_v31  ;;  %v7777_v45 = vpop.f32.mrf.mxu1 }
 0x92a   : > { %v3503_v21 = vmul.f32 1.442695, %v3420_v2  ;;  %v7785_v2 = vadd.f32 %v7659_v9, %v3014_v6  ;;  %v7787_v39 = vadd.f32 %v3109_v36, %v3021_v52  ;;  %v3423_v36 = vsub.f32 %v7477_v54, %v7590_v47 }
 0x92b   : > { %v3418_v52 = vsub.f32 %v7535_v3, %v7613_v53  ;;  %v3204_v54 = vadd.f32 %v3203_v63, %v7433_v48 }
 0x92c   : > { %5165 = vpow2.f32 %v3503_v21  ;;  %v3371_v41 = vmax.f32 %v7785_v2, %v7780_v18  ;;  %v3197_v21 = vadd.f32 %v7693_v10, %v7433_v48  ;;  %v3019_v10 = vadd.f32 %v7699_v43, %v7314_v13 }
 0x92d   : > { %5167 = vpow2.f32 %v3489_v19  ;;  %v7809_v6 = vpop.f32.mrf.mxu2  ;;  %v3509_v19 = vmul.f32 1.442695, %v3423_v36  ;;  %v3499_v3 = vmul.f32 1.442695, %v3418_v52 }
 0x92e   : > { %v3025_v38 = vpop.f32.mrf.mxu0  ;;  %5169 = vpow2.f32 %v3491_v61 }
 0x92f   : > { %3366 = vmax.xlane.f32.xlu1 %v3365_v40  ;;  %v7782_v40 = vadd.f32 %v3287_v11, %v3199_v37  ;;  %5171 = vpow2.f32 %v3509_v19 }
 0x930   : > { %3375 = vmax.xlane.f32.xlu2 %v3374_v27  ;;  %v7772_v27 = vpop.f32.mrf.mxu3 }
 0x931   : > { %v3380_v31 = vmax.f32 %v7787_v39, %v7782_v40  ;;  %v3114_v4 = vpop.f32.mrf.mxu1 }
 0x932   : > { %v7795_v11 = vpop.eup %5165 }
 0x933   : > { %v7797_v9 = vpop.eup %5167  ;;  %v3620_v61 = vadd.f32 %v7795_v11, %v7793_v28 }
 0x934   : > { %v7801_v37 = vpop.eup %5169 }
 0x937   : > { %3606 = vadd.xlane.f32.xlu1 %v3605_v56  ;;  %v3417_v56 = vsub.f32 %v7538_v16, %v7613_v53  ;;  %v7824_v53 = vadd.f32 %v7711_v50, %v3197_v21  ;;  %v7841_v21 = vpop.eup %5171 }
 0x938   : > { %3615 = vadd.xlane.f32.xlu2 %v3614_v15  ;;  %v3292_v14 = vpop.f32.mrf.mxu3  ;;  %v3424_v15 = vsub.f32 %v7479_v42, %v7590_v47  ;;  %v3611_v42 = vadd.f32 %v7801_v37, %v7797_v9  ;;  %v7818_v47 = vpop.f32.mrf.mxu0  ;;  %8725 = vst [vmem:[#allocation60_spill] sm:$0xff] %v7841_v21 }
 0x939   : > { %v7826_v63 = vadd.f32 %v3292_v14, %v3204_v54  ;;  %v7835_v43 = vpop.f32.mrf.mxu1  ;;  %v3346_v14 = vpop.xlane.xlu0 %3345 }
 0x93a   : > { %v3511_v16 = vmul.f32 1.442695, %v3424_v15  ;;  %v7831_v15 = vadd.f32 %v7717_v12, %v3019_v10  ;;  %v3427_v19 = vsub.f32 %v7520_v26, %v3346_v14  ;;  %v3422_v10 = vsub.f32 %v7511_v29, %v7603_v0 }
 0x93c   : > { %5173 = vpow2.f32 %v3511_v16  ;;  %v3377_v50 = vmax.f32 %v7831_v15, %v7824_v53  ;;  %v3202_v16 = vadd.f32 %v7749_v49, %v7433_v48  ;;  %v3507_v29 = vmul.f32 1.442695, %v3422_v10 }
 0x93f   : > { %3372 = vmax.xlane.f32.xlu1 %v3371_v41  ;;  %v3497_v41 = vmul.f32 1.442695, %v3417_v56  ;;  %v3208_v56 = vpop.f32.mrf.mxu2 }
 0x940   : > { %3381 = vmax.xlane.f32.xlu2 %v3380_v31  ;;  %v3026_v31 = vadd.f32 %v3025_v38, %v7314_v13  ;;  %v7828_v36 = vpop.f32.mrf.mxu3 }
 0x941   : > { %5175 = vpow2.f32 %v3497_v41  ;;  %v3517_v41 = vmul.f32 1.442695, %v3427_v19  ;;  %v7870_v19 = vadd.f32 %v7772_v27, %v3202_v16 }
 0x942   : > { %v7833_v32 = vadd.f32 %v3114_v4, %v3026_v31  ;;  %5177 = vpow2.f32 %v3499_v3  ;;  %v7843_v12 = vpop.eup %5173  ;;  %v3030_v4 = vpop.f32.mrf.mxu0  ;;  %v3209_v3 = vadd.f32 %v3208_v56, %v7433_v48 }
 0x943   : > { %8726 = vst [vmem:[#allocation61_spill] sm:$0xff] %v7843_v12  ;;  %v3626_v26 = vadd.f32 %v7843_v12, %v7841_v21  ;;  %v3031_v49 = vadd.f32 %v3030_v4, %v7314_v13  ;;  %v7867_v56 = vpop.permute.xlu1 %3803  ;;  %5179 = vpow2.f32 %v3517_v41  ;;  %v3207_v12 = vadd.f32 %v7809_v6, %v7433_v48 }
 0x944   : > { %v3386_v38 = vmax.f32 %v7833_v32, %v7826_v63  ;;  %8727 = vst [vmem:[#allocation42_spill] sm:$0xff] %v7867_v56 }
 0x947   : > { %3612 = vadd.xlane.f32.xlu1 %v3611_v42  ;;  %v7845_v52 = vpop.eup %5175  ;;  %v3421_v42 = vsub.f32 %v7517_v60, %v7603_v0  ;;  %v3024_v60 = vadd.f32 %v7757_v46, %v7314_v13  ;;  %v7865_v0 = vpop.f32.mrf.mxu2 }
 0x948   : > { %3621 = vadd.xlane.f32.xlu2 %v3620_v61  ;;  %v7848_v54 = vpop.eup %5177  ;;  %v3428_v61 = vsub.f32 %v7522_v23, %v3346_v14  ;;  %v3297_v31 = vpop.f32.mrf.mxu3 }
 0x949   : > { %v3119_v23 = vpop.f32.mrf.mxu1  ;;  %v3505_v14 = vmul.f32 1.442695, %v3421_v42  ;;  %v7872_v62 = vadd.f32 %v3297_v31, %v3209_v3  ;;  %v7877_v46 = vadd.f32 %v7777_v45, %v3024_v60  ;;  %v7885_v10 = vpop.eup %5179  ;;  %v8729_v45 = vld [vmem:[#allocation62_spill] sm:$0xff]  ;;  %v8730_v3 = vld [vmem:[#allocation52_spill] sm:$0xff]  ;;  %v8731_v60 = vld [vmem:[#allocation45_spill] sm:$0xff] }
 0x94a   : > { %v7879_v4 = vadd.f32 %v3119_v23, %v3031_v49  ;;  %v3426_v49 = vsub.f32 %v8731_v60, %v8729_v45 }
 0x94b   : > { %v3383_v27 = vmax.f32 %v7877_v46, %v7870_v19 }
 0x94c   : > { %v3392_v42 = vmax.f32 %v7879_v4, %v7872_v62  ;;  %v3515_v35 = vmul.f32 1.442695, %v3426_v49 }
 0x94f   : > { %3378 = vmax.xlane.f32.xlu1 %v3377_v50  ;;  %v3519_v50 = vmul.f32 1.442695, %v3428_v61  ;;  %v7874_v61 = vpop.f32.mrf.mxu0 }
 0x950   : > { %3387 = vmax.xlane.f32.xlu2 %v3386_v38  ;;  %v3617_v38 = vadd.f32 %v7848_v54, %v7845_v52  ;;  %v3300_v16 = vpop.f32.mrf.mxu3 }
 0x951   : > { %5181 = vpow2.f32 %v3519_v50  ;;  %v3122_v41 = vpop.f32.mrf.mxu1 }
 0x952   : > { %5183 = vpow2.f32 %v3505_v14  ;;  %v3213_v14 = vpop.f32.mrf.mxu2 }
 0x953   : > { %5185 = vpow2.f32 %v3507_v29  ;;  %v8732_v29 = vld [vmem:[#allocation66_spill] sm:$0xff] }
 0x957   : > { %3618 = vadd.xlane.f32.xlu1 %v3617_v38  ;;  %v7887_v31 = vpop.eup %5181  ;;  %v3352_v38 = vpop.xlane.xlu1 %3351 }
 0x958   : > { %3627 = vadd.xlane.f32.xlu2 %v3626_v26  ;;  %8728 = vst [vmem:[#allocation54_spill] sm:$0xff] %v7887_v31  ;;  %v3425_v26 = vsub.f32 %v8730_v3, %v8729_v45  ;;  %v7891_v23 = vpop.eup %5183  ;;  %v3431_v56 = vsub.f32 %v8732_v29, %v3352_v38  ;;  %v3035_v24 = vpop.f32.mrf.mxu0  ;;  %v3214_v3 = vadd.f32 %v3213_v14, %v7433_v48 }
 0x959   : > { %v7893_v50 = vpop.eup %5185  ;;  %v3632_v21 = vadd.f32 %v7887_v31, %v7885_v10  ;;  %v3029_v45 = vadd.f32 %v7818_v47, %v7314_v13  ;;  %v3036_v60 = vadd.f32 %v3035_v24, %v7314_v13  ;;  %v3349_v29 = vpop.xlane.xlu2 %3348  ;;  %v7910_v14 = vadd.f32 %v7828_v36, %v3207_v12 }
 0x95a   : > { %v3623_v20 = vadd.f32 %v7893_v50, %v7891_v23  ;;  %v3124_v31 = vpop.f32.mrf.mxu1 }
 0x95b   : > { %v7915_v49 = vadd.f32 %v7835_v43, %v3029_v45  ;;  %v7917_v47 = vadd.f32 %v3124_v31, %v3036_v60  ;;  %v3212_v45 = vadd.f32 %v7865_v0, %v7433_v48 }
 0x95f   : > { %3384 = vmax.xlane.f32.xlu1 %v3383_v27  ;;  %v8733_v27 = vld [vmem:[#allocation46_spill] sm:$0xff] }
 0x960   : > { %3393 = vmax.xlane.f32.xlu2 %v3392_v42  ;;  %v3513_v42 = vmul.f32 1.442695, %v3425_v26  ;;  %v3432_v5 = vsub.f32 %v8733_v27, %v3352_v38  ;;  %v3525_v26 = vmul.f32 1.442695, %v3431_v56  ;;  %v3302_v38 = vpop.f32.mrf.mxu3  ;;  %v8735_v56 = vld [vmem:[#allocation64_spill] sm:$0xff] }
 0x961   : > { %v7912_v27 = vadd.f32 %v3302_v38, %v3214_v3  ;;  %v7936_v12 = vpop.xlane.xlu2 %3357  ;;  %v3429_v31 = vsub.f32 %v8735_v56, %v3349_v29  ;;  %v3034_v38 = vadd.f32 %v7874_v61, %v7314_v13  ;;  %v7958_v13 = vpop.xlane.xlu1 %3354 }
 0x962   : > { %v3527_v6 = vmul.f32 1.442695, %v3432_v5  ;;  %5187 = vpow2.f32 %v3513_v42  ;;  %v3389_v5 = vmax.f32 %v7915_v49, %v7910_v14  ;;  %8734 = vst [vmem:[#allocation55_spill] sm:$0xff] %v7936_v12  ;;  %v8736_v42 = vld [vmem:[#allocation44_spill] sm:$0xff] }
 0x963   : > { %5189 = vpow2.f32 %v3515_v35  ;;  %v3398_v24 = vmax.f32 %v7917_v47, %v7912_v27  ;;  %v3430_v3 = vsub.f32 %v8736_v42, %v3349_v29  ;;  %v7950_v29 = vadd.f32 %v3122_v41, %v3034_v38  ;;  %8737 = vst [vmem:[#allocation58_spill] sm:$0xff] %v7958_v13  ;;  %v3794_v42 = vld [vmem:[%s8713_s30 + $0x8] sm:$0xff] }
 0x964   : > { %5191 = vpow2.f32 %v3525_v26 }
 0x965   : > { %5193 = vpow2.f32 %v3527_v6  ;;  %v3521_v6 = vmul.f32 1.442695, %v3429_v31 }
 0x967   : > { %3624 = vadd.xlane.f32.xlu1 %v3623_v20  ;;  %v4825_v20 = vld [vmem:[%s8708_s0 + $0x8] sm:$0xff]  ;;  %5195 = vpow2.f32 %v3521_v6 }
 0x968   : > { %3633 = vadd.xlane.f32.xlu2 %v3632_v21  ;;  %4739 = vmatmul.msk.bf16.gmra.mxu0 %vm716_vm0, %v4825_v20  ;;  %v7928_v35 = vpop.eup %5187  ;;  %v8739_v6 = vld [vmem:[#allocation63_spill] sm:$0xff] }
 0x969   : > { %4743 = vmatmul.msk.bf16.gmra.mxu1 %vm716_vm0, %v4825_v20  ;;  %v7930_v36 = vpop.eup %5189  ;;  %v3523_v20 = vmul.f32 1.442695, %v3430_v3 }
 0x96a   : > { %v7932_v43 = vpop.eup %5191  ;;  %v3629_v60 = vadd.f32 %v7930_v36, %v7928_v35 }
 0x96b   : > { %v7934_v21 = vpop.eup %5193  ;;  %5197 = vpow2.f32 %v3523_v20 }
 0x96c   : > { %v3638_v26 = vadd.f32 %v7934_v21, %v7932_v43 }
 0x96d   : > { %v7954_v0 = vpop.eup %5195 }
 0x96f   : > { %3390 = vmax.xlane.f32.xlu1 %v3389_v5 }
 0x970   : > { %3399 = vmax.xlane.f32.xlu2 %v3398_v24  ;;  %v7948_v24 = vadd.f32 %v3300_v16, %v3212_v45 }
 0x971   : > { %v7956_v56 = vpop.eup %5197 }
 0x972   : > { %v3395_v48 = vmax.f32 %v7950_v29, %v7948_v24  ;;  %v3635_v16 = vadd.f32 %v7956_v56, %v7954_v0 }
 0x977   : > { %3630 = vadd.xlane.f32.xlu1 %v3629_v60 }
 0x978   : > { %3639 = vadd.xlane.f32.xlu2 %v3638_v26 }
 0x97b   : > { %v3598_v5 = vpop.xlane.xlu2 %3597 }
 0x97c   : > { %5199 = vrcp.f32 %v3598_v5 }
 0x97f   : > { %3396 = vmax.xlane.f32.xlu1 %v3395_v48  ;;  %v8742_v48 = vld [vmem:[#allocation40_spill] sm:$0xff] }
 0x982   : > { %v5200_v3 = vpop.eup %5199 }
 0x983   : > { %v7960_v61 = vpop.xlane.xlu2 %3363  ;;  %v7975_v20 = vmul.f32 %v5200_v3, %v8739_v6 }
 0x985   : > { %8740 = vst [vmem:[#allocation50_spill] sm:$0xff] %v7975_v20 }
 0x987   : > { %3636 = vadd.xlane.f32.xlu1 %v3635_v16  ;;  %v7981_v16 = vmul.f32 %v5200_v3, %v8742_v48 }
 0x989   : > { %8743 = vst [vmem:[#allocation68_spill] sm:$0xff] %v7981_v16 }
 0x98a   : > { %v3595_v31 = vpop.xlane.xlu1 %3594 }
 0x98b   : > { %v3604_v41 = vpop.xlane.xlu2 %3603  ;;  %5201 = vrcp.f32 %v3595_v31 }
 0x98c   : > { %5203 = vrcp.f32 %v3604_v41 }
 0x990   : > { %3808 = vperm.xlu2 %4941, %v3794_v42  }
 0x991   : > { %v5202_v45 = vpop.eup %5201 }
 0x992   : > { %v7969_v26 = vpop.xlane.xlu1 %3360  ;;  %v7972_v38 = vmul.f32 %v5202_v45, %v7665_v17  ;;  %v7978_v5 = vmul.f32 %v5202_v45, %v7670_v8  ;;  %v3796_v17 = vld [vmem:[%s8713_s30 + $0x18] sm:$0xff]  ;;  %v5204_v8 = vpop.eup %5203 }
 0x993   : > { %v7967_v60 = vpop.xlane.xlu2 %3369  ;;  %v7996_v31 = vmul.f32 %v5204_v8, %v7657_v7 }
 0x994   : > { %8738 = vst [vmem:[#allocation59_spill] sm:$0xff] %v7972_v38 }
 0x995   : > { %8741 = vst [vmem:[#allocation51_spill] sm:$0xff] %v7978_v5 }
 0x99a   : > { %v3601_v12 = vpop.xlane.xlu1 %3600 }
 0x99b   : > { %v3610_v13 = vpop.xlane.xlu2 %3609  ;;  %5205 = vrcp.f32 %v3601_v12  ;;  %v8002_v12 = vmul.f32 %v5204_v8, %v7661_v22 }
 0x99c   : > { %5207 = vrcp.f32 %v3610_v13 }
 0x9a0   : > { %3818 = vperm.xlu1 %4942, %v3796_v17  }
 0x9a1   : > { %v5206_v45 = vpop.eup %5205 }
 0x9a2   : > { %v7990_v3 = vpop.xlane.xlu1 %3366  ;;  %v7993_v48 = vmul.f32 %v5206_v45, %v7705_v33  ;;  %v7999_v42 = vmul.f32 %v5206_v45, %v7709_v30  ;;  %v5208_v33 = vpop.eup %5207 }
 0x9a3   : > { %v3376_v6 = vpop.xlane.xlu2 %3375  ;;  %v8014_v8 = vmul.f32 %v5208_v33, %v7701_v59  ;;  %v8020_v13 = vmul.f32 %v5208_v33, %v7703_v1 }
 0x9a4   : > { %8744 = vst [vmem:[#allocation71_spill] sm:$0xff] %v7999_v42 }
 0x9aa   : > { %v3607_v16 = vpop.xlane.xlu1 %3606 }
 0x9ab   : > { %v3616_v5 = vpop.xlane.xlu2 %3615  ;;  %5209 = vrcp.f32 %v3607_v16 }
 0x9b1   : > { %v5210_v38 = vpop.eup %5209 }
 0x9b2   : > { %v3373_v20 = vpop.xlane.xlu1 %3372  ;;  %v8011_v22 = vmul.f32 %v5210_v38, %v7751_v25  ;;  %v8017_v17 = vmul.f32 %v5210_v38, %v7755_v58  ;;  %v3447_v25 = vsub.f32 %v7739_v51, %v3376_v6 }
 0x9b3   : > { %v3382_v7 = vpop.xlane.xlu2 %3381  ;;  %v3445_v30 = vsub.f32 %v7785_v2, %v3373_v20  ;;  %v3446_v45 = vsub.f32 %v7780_v18, %v3373_v20  ;;  %v3448_v2 = vsub.f32 %v7734_v44, %v3376_v6 }
 0x9b4   : > { %v3557_v38 = vmul.f32 1.442695, %v3447_v25  ;;  %v3451_v20 = vsub.f32 %v7787_v39, %v3382_v7 }
 0x9b5   : > { %v3553_v16 = vmul.f32 1.442695, %v3445_v30  ;;  %v3555_v41 = vmul.f32 1.442695, %v3446_v45  ;;  %v3559_v1 = vmul.f32 1.442695, %v3448_v2  ;;  %v3452_v30 = vsub.f32 %v7782_v40, %v3382_v7 }
 0x9b7   : > { %5211 = vpow2.f32 %v3553_v16  ;;  %v3567_v25 = vmul.f32 1.442695, %v3452_v30 }
 0x9b8   : > { %5213 = vpow2.f32 %v3555_v41  ;;  %v3565_v41 = vmul.f32 1.442695, %v3451_v20 }
 0x9b9   : > { %5215 = vrcp.f32 %v3616_v5 }
 0x9ba   : > { %v3613_v58 = vpop.xlane.xlu1 %3612 }
 0x9bb   : > { %v3622_v59 = vpop.xlane.xlu2 %3621  ;;  %5217 = vrcp.f32 %v3613_v58 }
 0x9bc   : > { %5219 = vpow2.f32 %v3557_v38 }
 0x9bd   : > { %v8029_v33 = vpop.eup %5211  ;;  %5221 = vpow2.f32 %v3559_v1 }
 0x9be   : > { %8745 = vst [vmem:[#allocation72_spill] sm:$0xff] %v8029_v33  ;;  %v8032_v45 = vpop.eup %5213  ;;  %5223 = vpow2.f32 %v3565_v41 }
 0x9bf   : > { %8746 = vst [vmem:[#allocation49_spill] sm:$0xff] %v8032_v45  ;;  %v5216_v51 = vpop.eup %5215  ;;  %v3659_v44 = vadd.f32 %v8032_v45, %v8029_v33  ;;  %5225 = vpow2.f32 %v3567_v25 }
 0x9c0   : > { %v8044_v7 = vmul.f32 %v5216_v51, %v7745_v55  ;;  %v8050_v38 = vmul.f32 %v5216_v51, %v7747_v34  ;;  %5227 = vrcp.f32 %v3622_v59 }
 0x9c1   : > { %v5218_v6 = vpop.eup %5217  ;;  %3660 = vadd.xlane.f32.xlu2 %v3659_v44 }
 0x9c2   : > { %v3379_v5 = vpop.xlane.xlu1 %3378  ;;  %v8041_v40 = vmul.f32 %v5218_v6, %v7797_v9  ;;  %v8047_v58 = vmul.f32 %v5218_v6, %v7801_v37  ;;  %v8052_v1 = vpop.eup %5219  ;;  %v4826_v37 = vld [vmem:[%s8708_s0 + $0x10] sm:$0xff] }
 0x9c3   : > { %v8036_v16 = vpop.xlane.xlu2 %3387  ;;  %v3449_v39 = vsub.f32 %v7831_v15, %v3379_v5  ;;  %v3450_v2 = vsub.f32 %v7824_v53, %v3379_v5  ;;  %v8054_v30 = vpop.eup %5221  ;;  %4740 = vmatmul.msk.bf16.gmra.mxu0 %vm716_vm0, %v4826_v37  ;;  %4744 = vmatmul.msk.bf16.gmra.mxu1 %vm716_vm0, %v4826_v37 }
 0x9c4   : > { %v3662_v34 = vadd.f32 %v8054_v30, %v8052_v1  ;;  %v8069_v44 = vpop.eup %5223 }
 0x9c5   : > { %v3561_v20 = vmul.f32 1.442695, %v3449_v39  ;;  %v3563_v15 = vmul.f32 1.442695, %v3450_v2  ;;  %v8071_v6 = vpop.eup %5225 }
 0x9c6   : > { %v5228_v41 = vpop.eup %5227  ;;  %v3668_v39 = vadd.f32 %v8071_v6, %v8069_v44 }
 0x9c7   : > { %5229 = vpow2.f32 %v3561_v20  ;;  %v8082_v37 = vmul.f32 %v5228_v41, %v7793_v28  ;;  %v8095_v45 = vmul.f32 %v5228_v41, %v7795_v11  ;;  %v3443_v41 = vsub.f32 %v7691_v57, %v7967_v60 }
 0x9c8   : > { %5231 = vpow2.f32 %v3563_v15 }
 0x9c9   : > { %3663 = vadd.xlane.f32.xlu2 %v3662_v34 }
 0x9ca   : > { %v3619_v51 = vpop.xlane.xlu1 %3618 }
 0x9cb   : > { %v8067_v53 = vpop.xlane.xlu2 %3627  ;;  %5233 = vrcp.f32 %v3619_v51 }
 0x9cd   : > { %v8073_v59 = vpop.eup %5229 }
 0x9ce   : > { %v8075_v5 = vpop.eup %5231 }
 0x9cf   : > { %v3665_v25 = vadd.f32 %v8075_v5, %v8073_v59 }
 0x9d1   : > { %v5234_v2 = vpop.eup %5233  ;;  %3666 = vadd.xlane.f32.xlu0 %v3665_v25  ;;  %3669 = vadd.xlane.f32.xlu2 %v3668_v39 }
 0x9d2   : > { %v3385_v15 = vpop.xlane.xlu1 %3384  ;;  %v8089_v55 = vmul.f32 %v5234_v2, %v7845_v52  ;;  %v8092_v9 = vmul.f32 %v5234_v2, %v7848_v54  ;;  %v3455_v52 = vsub.f32 %v7833_v32, %v8036_v16  ;;  %v3456_v54 = vsub.f32 %v7826_v63, %v8036_v16  ;;  %v8747_v32 = vld [vmem:[#allocation69_spill] sm:$0xff] }
 0x9d3   : > { %v3394_v20 = vpop.xlane.xlu2 %3393  ;;  %v3453_v18 = vsub.f32 %v7877_v46, %v3385_v15  ;;  %v3454_v42 = vsub.f32 %v7870_v19, %v3385_v15  ;;  %v3549_v15 = vmul.f32 1.442695, %v3443_v41 }
 0x9d4   : > { %v3459_v34 = vsub.f32 %v7879_v4, %v3394_v20  ;;  %v3460_v51 = vsub.f32 %v7872_v62, %v3394_v20  ;;  %v3947_v62 = vpack.c.bf16 %v8082_v37, %v8089_v55  ;;  %v3948_v46 = vpack.c.bf16 %v8095_v45, %v8092_v9  ;;  %v8757_v37 = vld [vmem:[#allocation55_spill] sm:$0xff]  ;;  %v8759_v9 = vld [vmem:[#allocation65_spill] sm:$0xff] }
 0x9d5   : > { %v3569_v39 = vmul.f32 1.442695, %v3453_v18  ;;  %v3571_v33 = vmul.f32 1.442695, %v3454_v42  ;;  %v3573_v4 = vmul.f32 1.442695, %v3455_v52  ;;  %v3444_v20 = vsub.f32 %v8747_v32, %v7967_v60 }
 0x9d6   : > { %v3581_v28 = vmul.f32 1.442695, %v3459_v34  ;;  %v3583_v25 = vmul.f32 1.442695, %v3460_v51  ;;  %v3575_v42 = vmul.f32 1.442695, %v3456_v54  ;;  %v8756_v55 = vpack.c.bf16 %v8050_v38, %v8047_v58 }
 0x9d7   : > { %v3551_v57 = vmul.f32 1.442695, %v3444_v20  ;;  %v8763_v58 = vpack.c.bf16 %v8014_v8, %v8011_v22  ;;  %v8764_v38 = vpack.c.bf16 %v8020_v13, %v8017_v17  ;;  %v3882_v8 = vpop.f32.mrf.mxu0 }
 0x9d8   : > { %5235 = vpow2.f32 %v3581_v28 }
 0x9d9   : > { %5237 = vpow2.f32 %v3583_v25 }
 0x9da   : > { %5239 = vpow2.f32 %v3569_v39  ;;  %v8107_v19 = vpop.xlane.xlu1 %3624 }
 0x9db   : > { %5241 = vpow2.f32 %v3571_v33  ;;  %v8105_v11 = vpop.xlane.xlu2 %3633 }
 0x9dc   : > { %5243 = vpow2.f32 %v3573_v4 }
 0x9dd   : > { %5245 = vpow2.f32 %v3575_v42 }
 0x9de   : > { %v8109_v18 = vpop.eup %5235  ;;  %5247 = vpow2.f32 %v3549_v15  ;;  %v4827_v15 = vld [vmem:[%s8708_s0 + $0x18] sm:$0xff]  ;;  %s5514_s0 = scalar_lea.hbm %s8782_s15, 256 }
 0x9df   : > { %v8113_v2 = vpop.eup %5237  ;;  %5249 = vpow2.f32 %v3551_v57  ;;  %4741 = vmatmul.msk.bf16.gmra.mxu0 %vm716_vm0, %v4827_v15  ;;  %4745 = vmatmul.msk.bf16.gmra.mxu1 %vm716_vm0, %v4827_v15  ;;  %p5516_p12 = scmp.lt.s32.totalorder %s5514_s0, %s5510_s14 }
 0x9e0   : > { %v8117_v63 = vpop.eup %5239  ;;  %v3680_v33 = vadd.f32 %v8113_v2, %v8109_v18 }
 0x9e1   : > { %v8121_v16 = vpop.eup %5241  ;;  %p5517_p13 = por %p5516_p12, %p5515_p10 }
 0x9e2   : > { %v3671_v34 = vadd.f32 %v8121_v16, %v8117_v63  ;;  %3681 = vadd.xlane.f32.xlu2 %v3680_v33  ;;  %v3391_v51 = vpop.xlane.xlu1 %3390  ;;  %v8129_v54 = vpop.eup %5243  ;;  %v8748_v33 = vld [vmem:[#allocation73_spill] sm:$0xff] }
 0x9e3   : > { %v3400_v28 = vpop.xlane.xlu2 %3399  ;;  %v3457_v60 = vsub.f32 %v7915_v49, %v3391_v51  ;;  %v3458_v25 = vsub.f32 %v7910_v14, %v3391_v51  ;;  %v8131_v32 = vpop.eup %5245  ;;  %v8749_v14 = vld [vmem:[#allocation41_spill] sm:$0xff]  ;;  %p5518_p0 = pnand %p5517_p13, %p5513_p8 }
 0x9e4   : > { %3672 = vadd.xlane.f32.xlu0 %v3671_v34  ;;  %v3463_v39 = vsub.f32 %v7917_v47, %v3400_v28  ;;  %v3464_v52 = vsub.f32 %v7912_v27, %v3400_v28  ;;  %v3439_v34 = vsub.f32 %v8748_v33, %v7960_v61  ;;  %v3440_v49 = vsub.f32 %v8749_v14, %v7960_v61  ;;  %v8142_v57 = vpop.eup %5247 }
 0x9e5   : > { %v3577_v4 = vmul.f32 1.442695, %v3457_v60  ;;  %v3579_v42 = vmul.f32 1.442695, %v3458_v25  ;;  %v3674_v27 = vadd.f32 %v8131_v32, %v8129_v54  ;;  %v8144_v28 = vpop.eup %5249 }
 0x9e6   : > { %v3589_v41 = vmul.f32 1.442695, %v3463_v39  ;;  %v3591_v20 = vmul.f32 1.442695, %v3464_v52  ;;  %v3541_v51 = vmul.f32 1.442695, %v3439_v34 }
 0x9e7   : > { %5251 = vpow2.f32 %v3577_v4  ;;  %v3543_v60 = vmul.f32 1.442695, %v3440_v49 }
 0x9e8   : > { %5253 = vpow2.f32 %v3579_v42  ;;  %v3656_v42 = vadd.f32 %v8144_v28, %v8142_v57 }
 0x9e9   : > { %5255 = vpow2.f32 %v3589_v41 }
 0x9ea   : > { %5257 = vpow2.f32 %v3591_v20  ;;  %v3631_v47 = vpop.xlane.xlu1 %3630 }
 0x9eb   : > { %5259 = vpow2.f32 %v3541_v51  ;;  %v3640_v33 = vpop.xlane.xlu2 %3639 }
 0x9ec   : > { %3675 = vadd.xlane.f32.xlu0 %v3674_v27  ;;  %5261 = vpow2.f32 %v3543_v60 }
 0x9ed   : > { %v8148_v61 = vpop.eup %5251  ;;  %5263 = vrcp.f32 %v3640_v33 }
 0x9ee   : > { %v8150_v25 = vpop.eup %5253 }
 0x9ef   : > { %v8152_v39 = vpop.eup %5255  ;;  %v3677_v52 = vadd.f32 %v8150_v25, %v8148_v61 }
 0x9f0   : > { %v8156_v4 = vpop.eup %5257 }
 0x9f1   : > { %v3686_v41 = vadd.f32 %v8156_v4, %v8152_v39  ;;  %3678 = vadd.xlane.f32.xlu1 %v3677_v52  ;;  %v8164_v49 = vpop.eup %5259 }
 0x9f2   : > { %v3397_v20 = vpop.xlane.xlu1 %3396  ;;  %v8166_v27 = vpop.eup %5261 }
 0x9f3   : > { %3687 = vadd.xlane.f32.xlu2 %v3686_v41  ;;  %v3461_v34 = vsub.f32 %v7950_v29, %v3397_v20  ;;  %v3462_v14 = vsub.f32 %v7948_v24, %v3397_v20  ;;  %v3650_v60 = vadd.f32 %v8166_v27, %v8164_v49 }
 0x9f4   : > { %3657 = vadd.xlane.f32.xlu0 %v3656_v42  ;;  %v5264_v42 = vpop.eup %5263 }
 0x9f5   : > { %v3585_v15 = vmul.f32 1.442695, %v3461_v34  ;;  %v3587_v51 = vmul.f32 1.442695, %v3462_v14  ;;  %v3751_v33 = vmul.f32 %v5264_v42, %v7932_v43  ;;  %v3752_v34 = vmul.f32 %v5264_v42, %v7934_v21 }
 0x9f7   : > { %5265 = vpow2.f32 %v3585_v15 }
 0x9f8   : > { %5267 = vpow2.f32 %v3587_v51 }
 0x9fa   : > { %v3637_v52 = vpop.xlane.xlu1 %3636 }
 0x9fb   : > { %5269 = vrcp.f32 %v3637_v52 }
 0x9fc   : > { %3651 = vadd.xlane.f32.xlu0 %v3650_v60  ;;  %5271 = vrcp.f32 %v3631_v47 }
 0x9fd   : > { %v8170_v41 = vpop.eup %5265  ;;  %5273 = vrcp.f32 %v8105_v11  ;;  %v3798_v11 = vld [vmem:[%s8713_s30 + $0x28] sm:$0xff] }
 0x9fe   : > { %v8172_v29 = vpop.eup %5267  ;;  %5275 = vrcp.f32 %v8107_v19 }
 0x9ff   : > { %v3683_v24 = vadd.f32 %v8172_v29, %v8170_v41  ;;  %5277 = vrcp.f32 %v8067_v53  ;;  %v8751_v53 = vld [vmem:[#allocation60_spill] sm:$0xff] }
 0xa01   : > { %v5270_v20 = vpop.eup %5269  ;;  %3684 = vadd.xlane.f32.xlu1 %v3683_v24  ;;  %v3795_v24 = vld [vmem:[%s8713_s30 + $0x10] sm:$0xff] }
 0xa02   : > { %v3749_v14 = vmul.f32 %v5270_v20, %v7954_v0  ;;  %v3750_v15 = vmul.f32 %v5270_v20, %v7956_v56  ;;  %v5272_v52 = vpop.eup %5271  ;;  %v8750_v56 = vld [vmem:[#allocation54_spill] sm:$0xff] }
 0xa03   : > { %v5274_v47 = vpop.eup %5273  ;;  %v3745_v43 = vmul.f32 %v5272_v52, %v7928_v35  ;;  %v3746_v21 = vmul.f32 %v5272_v52, %v7930_v36 }
 0xa04   : > { %v3953_v51 = vpack.c.bf16 %v3751_v33, %v3749_v14  ;;  %v3954_v60 = vpack.c.bf16 %v3752_v34, %v3750_v15  ;;  %v3747_v0 = vmul.f32 %v5274_v47, %v7885_v10  ;;  %v3748_v42 = vmul.f32 %v5274_v47, %v8750_v56  ;;  %v5276_v33 = vpop.eup %5275  ;;  %v8752_v14 = vld [vmem:[#allocation61_spill] sm:$0xff]  ;;  %v3797_v47 = vld [vmem:[%s8713_s30 + $0x20] sm:$0xff] }
 0xa05   : > { %v5278_v34 = vpop.eup %5277  ;;  %v3741_v35 = vmul.f32 %v5276_v33, %v7891_v23  ;;  %v3742_v36 = vmul.f32 %v5276_v33, %v7893_v50  ;;  %v8753_v23 = vld [vmem:[#allocation57_spill] sm:$0xff]  ;;  %v8755_v56 = vpack.c.bf16 %v8044_v7, %v8041_v40  ;;  %v8762_v40 = vld [vmem:[#allocation47_spill] sm:$0xff] }
 0xa06   : > { %3971 = vmatpush.bf16.xpose.msrb.mxu0 %v3953_v51  ;;  %4000 = vmatpush.bf16.xpose.msrb.mxu1 %v3954_v60  ;;  %v3951_v19 = vpack.c.bf16 %v3747_v0, %v3745_v43  ;;  %v3952_v20 = vpack.c.bf16 %v3748_v42, %v3746_v21  ;;  %v3743_v10 = vmul.f32 %v5278_v34, %v8751_v53  ;;  %v3799_v51 = vld [vmem:[%s8713_s30 + $0x30] sm:$0xff] }
 0xa07   : > { %v3744_v15 = vmul.f32 %v5278_v34, %v8752_v14  ;;  %v3437_v50 = vsub.f32 %v8753_v23, %v7969_v26  ;;  %v8766_v14 = vld [vmem:[#allocation56_spill] sm:$0xff] }
 0xa08   : > { %v3949_v60 = vpack.c.bf16 %v3743_v10, %v3741_v35 }
 0xa09   : > { %v3950_v52 = vpack.c.bf16 %v3744_v15, %v3742_v36  ;;  %v3537_v21 = vmul.f32 1.442695, %v3437_v50  ;;  %v8765_v36 = vld [vmem:[#allocation70_spill] sm:$0xff]  ;;  %v3442_v15 = vsub.f32 %v8766_v14, %v7990_v3 }
 0xa0a   : > { %v3441_v53 = vsub.f32 %v8765_v36, %v7990_v3 }
 0xa0b   : > { %3828 = vperm.xlu2 %4941, %v3798_v11   ;;  %v8754_v11 = vld [vmem:[#allocation67_spill] sm:$0xff]  ;;  %5279 = vpow2.f32 %v3537_v21  ;;  %v3884_v21 = vpop.f32.mrf.mxu0 }
 0xa0c   : > { %v3438_v43 = vsub.f32 %v8754_v11, %v7969_v26  ;;  %v3545_v17 = vmul.f32 1.442695, %v3441_v53 }
 0xa0e   : > { %3972 = vmatpush.bf16.xpose.msrb.mxu0 %v3951_v19  ;;  %4001 = vmatpush.bf16.xpose.msrb.mxu1 %v3952_v20  ;;  %v3539_v0 = vmul.f32 1.442695, %v3438_v43  ;;  %v8761_v19 = vld [vmem:[#allocation53_spill] sm:$0xff] }
 0xa10   : > { %3813 = vperm.xlu0 %4940, %v3795_v24   ;;  %5281 = vpow2.f32 %v3539_v0  ;;  %v8760_v24 = vld [vmem:[#allocation58_spill] sm:$0xff]  ;;  %v3809_v0 = vpop.permute.xlu2 %3808 }
 0xa11   : > { %v3433_v20 = vsub.f32 %v8761_v19, %v8760_v24  ;;  %v8225_v33 = vpop.eup %5279  ;;  %v3434_v7 = vsub.f32 %v8762_v40, %v8760_v24  ;;  %v8776_v24 = vld [vmem:[#allocation42_spill] sm:$0xff] }
 0xa12   : > { %v3883_v19 = vadd.f32 %v3882_v8, %v8776_v24 }
 0xa13   : > { %v3529_v35 = vmul.f32 1.442695, %v3433_v20  ;;  %v3531_v10 = vmul.f32 1.442695, %v3434_v7 }
 0xa16   : > { %3973 = vmatpush.bf16.xpose.msrb.mxu0 %v3949_v60  ;;  %4002 = vmatpush.bf16.xpose.msrb.mxu1 %v3950_v52  ;;  %v8235_v34 = vpop.eup %5281  ;;  %v3547_v60 = vmul.f32 1.442695, %v3442_v15  ;;  %v8767_v52 = vpack.c.bf16 %v7996_v31, %v7993_v48  ;;  %v8770_v48 = vld [vmem:[#allocation50_spill] sm:$0xff]  ;;  %v3819_v15 = vpop.permute.xlu1 %3818 }
 0xa17   : > { %v3647_v22 = vadd.f32 %v8235_v34, %v8225_v33 }
 0xa18   : > { %3833 = vperm.xlu0 %4940, %v3799_v51   ;;  %v3911_v51 = vpop.f32.mrf.mxu1 }
 0xa19   : > { %v3912_v20 = vadd.f32 %v3911_v51, %v8776_v24 }
 0xa1a   : > { %3823 = vperm.xlu1 %4942, %v3797_v47   ;;  %v8768_v47 = vld [vmem:[#allocation71_spill] sm:$0xff] }
 0xa1b   : > { %v8769_v23 = vpack.c.bf16 %v8002_v12, %v8768_v47  ;;  %v8773_v12 = vld [vmem:[#allocation68_spill] sm:$0xff]  ;;  %v3887_v47 = vpop.f32.mrf.mxu0 }
 0xa1e   : > { %3974 = vmatpush.bf16.xpose.msrb.mxu0 %v3947_v62  ;;  %4003 = vmatpush.bf16.xpose.msrb.mxu1 %v3948_v46  ;;  %v8758_v62 = vld [vmem:[#allocation43_spill] sm:$0xff]  ;;  %v3436_v46 = vsub.f32 %v8759_v9, %v8757_v37  ;;  %v3885_v9 = vadd.f32 %v3884_v21, %v3809_v0 }
 0xa1f   : > { %v3435_v45 = vsub.f32 %v8758_v62, %v8757_v37  ;;  %v8774_v37 = vld [vmem:[#allocation51_spill] sm:$0xff] }
 0xa20   : > { %v3535_v26 = vmul.f32 1.442695, %v3436_v46  ;;  %v3913_v31 = vpop.f32.mrf.mxu1  ;;  %v8775_v62 = vpack.c.bf16 %v8773_v12, %v8774_v37  ;;  %v8273_v40 = vpack.c.bf16 %v3885_v9, %v3883_v19 }
 0xa21   : > { %v3533_v42 = vmul.f32 1.442695, %v3435_v45 }
 0xa23   : > { %5283 = vpow2.f32 %v3533_v42 }
 0xa24   : > { %5285 = vpow2.f32 %v3535_v26  ;;  %v3914_v26 = vadd.f32 %v3913_v31, %v3809_v0 }
 0xa25   : > { %5287 = vpow2.f32 %v3529_v35 }
 0xa26   : > { %3975 = vmatpush.bf16.xpose.msrb.mxu0 %v8755_v56  ;;  %4004 = vmatpush.bf16.xpose.msrb.mxu1 %v8756_v55  ;;  %5289 = vpow2.f32 %v3531_v10  ;;  %v8771_v56 = vld [vmem:[#allocation59_spill] sm:$0xff]  ;;  %v3800_v10 = vld [vmem:[%s8713_s30 + $0x38] sm:$0xff] }
 0xa27   : > { %5291 = vpow2.f32 %v3545_v17  ;;  %v8772_v55 = vpack.c.bf16 %v8770_v48, %v8771_v56  ;;  %v3889_v48 = vpop.f32.mrf.mxu0 }
 0xa28   : > { %5293 = vpow2.f32 %v3547_v60 }
 0xa29   : > { %v8243_v13 = vpop.eup %5283 }
 0xa2a   : > { %v8251_v3 = vpop.eup %5285 }
 0xa2b   : > { %v3644_v50 = vadd.f32 %v8251_v3, %v8243_v13  ;;  %v8255_v11 = vpop.eup %5287 }
 0xa2c   : > { %v8257_v43 = vpop.eup %5289 }
 0xa2d   : > { %v8265_v45 = vpop.eup %5291  ;;  %v3641_v46 = vadd.f32 %v8257_v43, %v8255_v11 }
 0xa2e   : > { %3976 = vmatpush.bf16.xpose.msrb.mxu0 %v8763_v58  ;;  %4005 = vmatpush.bf16.xpose.msrb.mxu1 %v8764_v38  ;;  %v8269_v42 = vpop.eup %5293  ;;  %v8277_v58 = vpack.c.bf16 %v3914_v26, %v3912_v20  ;;  %v3890_v26 = vadd.f32 %v3889_v48, %v3819_v15 }
 0xa2f   : > { %v3653_v7 = vadd.f32 %v8269_v42, %v8265_v45 }
 0xa34   : > { %3648 = vadd.xlane.f32.xlu2 %v3647_v22  ;;  %v8281_v38 = vpop.xlane.xlu2 %3660 }
 0xa36   : > { %3977 = vmatpush.bf16.xpose.msrb.mxu0 %v8767_v52  ;;  %4006 = vmatpush.bf16.xpose.msrb.mxu1 %v8769_v23  ;;  %v3916_v52 = vpop.f32.mrf.mxu1 }
 0xa3c   : > { %3645 = vadd.xlane.f32.xlu2 %v3644_v50  ;;  %v8283_v36 = vpop.xlane.xlu2 %3663 }
 0xa3e   : > { %3978 = vmatpush.bf16.xpose.msrb.mxu0 %v8772_v55  ;;  %4007 = vmatpush.bf16.xpose.msrb.mxu1 %v8775_v62  ;;  %v3918_v31 = vpop.f32.mrf.mxu1 }
 0xa3f   : > { %v3919_v20 = vadd.f32 %v3918_v31, %v3819_v15 }
 0xa42   : > { %3642 = vadd.xlane.f32.xlu0 %v3641_v46 }
 0xa44   : > { %3654 = vadd.xlane.f32.xlu1 %v3653_v7  ;;  %v3667_v35 = vpop.xlane.xlu0 %3666  ;;  %v3670_v14 = vpop.xlane.xlu2 %3669 }
 0xa45   : > { %3979 = vmatmul.bf16.vlgmr.msrb.gmra.mxu0 %v8273_v40  ;;  %4008 = vmatmul.bf16.vlgmr.msrb.gmra.mxu1 %v8277_v58 }
 0xa55   : > { %v3682_v8 = vpop.xlane.xlu2 %3681 }
 0xa57   : > { %v3673_v53 = vpop.xlane.xlu0 %3672 }
 0xa5d   : > { %3838 = vperm.xlu1 %4942, %v3800_v10  }
 0xa5f   : > { %v3676_v22 = vpop.xlane.xlu0 %3675 }
 0xa64   : > { %v3679_v51 = vpop.xlane.xlu1 %3678 }
 0xa66   : > { %v3688_v60 = vpop.xlane.xlu2 %3687 }
 0xa67   : > { %v8288_v17 = vpop.xlane.xlu0 %3657  ;;  %5295 = vrcp.f32 %v3688_v60 }
 0xa6d   : > { %v5296_v21 = vpop.eup %5295 }
 0xa6e   : > { %v3783_v56 = vmul.f32 %v5296_v21, %v8152_v39  ;;  %v3784_v55 = vmul.f32 %v5296_v21, %v8156_v4  ;;  %v3829_v48 = vpop.permute.xlu2 %3828 }
 0xa6f   : > { %v8290_v50 = vpop.xlane.xlu0 %3651 }
 0xa74   : > { %v3685_v23 = vpop.xlane.xlu1 %3684 }
 0xa75   : > { %5297 = vrcp.f32 %v3685_v23 }
 0xa76   : > { %5299 = vrcp.f32 %v3679_v51  ;;  %v3892_v51 = vpop.f32.mrf.mxu0 }
 0xa77   : > { %5301 = vrcp.f32 %v3682_v8 }
 0xa78   : > { %5303 = vrcp.f32 %v3676_v22 }
 0xa79   : > { %5305 = vrcp.f32 %v3673_v53 }
 0xa7a   : > { %5307 = vrcp.f32 %v3667_v35 }
 0xa7b   : > { %v5298_v0 = vpop.eup %5297  ;;  %5309 = vrcp.f32 %v3670_v14 }
 0xa7c   : > { %v3781_v12 = vmul.f32 %v5298_v0, %v8170_v41  ;;  %v3782_v37 = vmul.f32 %v5298_v0, %v8172_v29  ;;  %v5300_v46 = vpop.eup %5299  ;;  %v3921_v41 = vpop.f32.mrf.mxu1  ;;  %5311 = vrcp.f32 %v8283_v36 }
 0xa7d   : > { %v5302_v19 = vpop.eup %5301  ;;  %v3777_v39 = vmul.f32 %v5300_v46, %v8148_v61  ;;  %v3778_v4 = vmul.f32 %v5300_v46, %v8150_v25  ;;  %5313 = vrcp.f32 %v8281_v38 }
 0xa7e   : > { %v3969_v62 = vpack.c.bf16 %v3783_v56, %v3781_v12  ;;  %v3970_v9 = vpack.c.bf16 %v3784_v55, %v3782_v37  ;;  %v3779_v60 = vmul.f32 %v5302_v19, %v8109_v18  ;;  %v3780_v23 = vmul.f32 %v5302_v19, %v8113_v2  ;;  %v5304_v61 = vpop.eup %5303  ;;  %v3894_v31 = vpop.f32.mrf.mxu0  ;;  %v8778_v19 = vld [vmem:[#allocation49_spill] sm:$0xff] }
 0xa7f   : > { %v5306_v25 = vpop.eup %5305  ;;  %v3775_v53 = vmul.f32 %v5304_v61, %v8129_v54  ;;  %v3895_v54 = vadd.f32 %v3894_v31, %v3829_v48  ;;  %5315 = vrcp.f32 %v8288_v17 }
 0xa80   : > { %4029 = vmatpush.bf16.xpose.msra.mxu0 %v3969_v62  ;;  %4058 = vmatpush.bf16.xpose.msra.mxu1 %v3970_v9  ;;  %v3967_v15 = vpack.c.bf16 %v3779_v60, %v3777_v39  ;;  %v3968_v22 = vpack.c.bf16 %v3780_v23, %v3778_v4  ;;  %v3773_v18 = vmul.f32 %v5306_v25, %v8117_v63  ;;  %v5308_v0 = vpop.eup %5307 }
 0xa81   : > { %v3774_v2 = vmul.f32 %v5306_v25, %v8121_v16  ;;  %v5310_v35 = vpop.eup %5309  ;;  %v3769_v14 = vmul.f32 %v5308_v0, %v8073_v59  ;;  %v3770_v16 = vmul.f32 %v5308_v0, %v8075_v5  ;;  %v8777_v5 = vld [vmem:[#allocation72_spill] sm:$0xff]  ;;  %v8332_v0 = vstv %s4377_s25 }
 0xa82   : > { %v3814_v24 = vpop.permute.xlu0 %3813  ;;  %v3965_v56 = vpack.c.bf16 %v3775_v53, %v3773_v18  ;;  %v3771_v63 = vmul.f32 %v5310_v35, %v8069_v44  ;;  %v3772_v62 = vmul.f32 %v5310_v35, %v8071_v6 }
 0xa83   : > { %v3888_v7 = vadd.f32 %v3887_v47, %v3814_v24  ;;  %v3917_v10 = vadd.f32 %v3916_v52, %v3814_v24  ;;  %v3776_v52 = vmul.f32 %v5304_v61, %v8131_v32  ;;  %v5312_v24 = vpop.eup %5311 }
 0xa84   : > { %v3923_v21 = vpop.f32.mrf.mxu1  ;;  %v3963_v36 = vpack.c.bf16 %v3771_v63, %v3769_v14  ;;  %v5314_v44 = vpop.eup %5313  ;;  %v3767_v59 = vmul.f32 %v5312_v24, %v8052_v1  ;;  %v3768_v6 = vmul.f32 %v5312_v24, %v8054_v30 }
 0xa85   : > { %v8298_v8 = vpack.c.bf16 %v3890_v26, %v3888_v7  ;;  %v8300_v29 = vpack.c.bf16 %v3919_v20, %v3917_v10  ;;  %v3966_v55 = vpack.c.bf16 %v3776_v52, %v3774_v2  ;;  %v3924_v32 = vadd.f32 %v3923_v21, %v3829_v48  ;;  %v5316_v30 = vpop.eup %5315  ;;  %v5343_v48 = vld [vmem:[%s5853_s19] sm:$0xff] }
 0xa86   : > { %v3964_v26 = vpack.c.bf16 %v3772_v62, %v3770_v16  ;;  %v3765_v38 = vmul.f32 %v5314_v44, %v8777_v5  ;;  %v3766_v20 = vmul.f32 %v5314_v44, %v8778_v19  ;;  %v3897_v39 = vpop.f32.mrf.mxu0  ;;  %v3763_v61 = vmul.f32 %v5316_v30, %v8142_v57  ;;  %v5344_v16 = vld [vmem:[%s5853_s19 + $0x10] sm:$0xff] }
 0xa87   : > { %3984 = vmatmul.bf16.gmra.mxu0 %v8298_v8  ;;  %4013 = vmatmul.bf16.gmra.mxu1 %v8300_v29  ;;  %v3764_v17 = vmul.f32 %v5316_v30, %v8144_v28 }
 0xa88   : > { %4030 = vmatpush.bf16.xpose.msra.mxu0 %v3967_v15  ;;  %4059 = vmatpush.bf16.xpose.msra.mxu1 %v3968_v22  ;;  %v3961_v7 = vpack.c.bf16 %v3767_v59, %v3765_v38  ;;  %v3962_v10 = vpack.c.bf16 %v3768_v6, %v3766_v20 }
 0xa8a   : > { %v3834_v23 = vpop.permute.xlu0 %3833 }
 0xa8b   : > { %v3898_v59 = vadd.f32 %v3897_v39, %v3834_v23 }
 0xa8c   : > { %v3824_v47 = vpop.permute.xlu1 %3823  ;;  %v3926_v4 = vpop.f32.mrf.mxu1 }
 0xa8d   : > { %v3893_v12 = vadd.f32 %v3892_v51, %v3824_v47  ;;  %v3922_v37 = vadd.f32 %v3921_v41, %v3824_v47  ;;  %v3927_v44 = vadd.f32 %v3926_v4, %v3834_v23  ;;  %v5346_v4 = vld [vmem:[%s5853_s19 + $0x30] sm:$0xff]  ;;  %v5347_v23 = vld [vmem:[%s5853_s19 + $0x40] sm:$0xff] }
 0xa8e   : > { %v3899_v51 = vpop.f32.mrf.mxu0 }
 0xa8f   : > { %v8316_v9 = vpack.c.bf16 %v3895_v54, %v3893_v12  ;;  %v8318_v46 = vpack.c.bf16 %v3924_v32, %v3922_v37 }
 0xa90   : > { %4031 = vmatpush.bf16.xpose.msra.mxu0 %v3965_v56  ;;  %4060 = vmatpush.bf16.xpose.msra.mxu1 %v3966_v55 }
 0xa94   : > { %v3928_v60 = vpop.f32.mrf.mxu1 }
 0xa97   : > { %3989 = vmatmul.bf16.gmra.mxu0 %v8316_v9  ;;  %4018 = vmatmul.bf16.gmra.mxu1 %v8318_v46 }
 0xa98   : > { %4032 = vmatpush.bf16.xpose.msra.mxu0 %v3963_v36  ;;  %4061 = vmatpush.bf16.xpose.msra.mxu1 %v3964_v26 }
 0xaa0   : > { %4033 = vmatpush.bf16.xpose.msra.mxu0 %v3961_v7  ;;  %4062 = vmatpush.bf16.xpose.msra.mxu1 %v3962_v10  ;;  %v5345_v10 = vld [vmem:[%s5853_s19 + $0x20] sm:$0xff] }
 0xaa7   : > { %v3649_v1 = vpop.xlane.xlu2 %3648 }
 0xaaf   : > { %v3646_v31 = vpop.xlane.xlu2 %3645 }
 0xab5   : > { %v3643_v53 = vpop.xlane.xlu0 %3642 }
 0xab7   : > { %v3655_v41 = vpop.xlane.xlu1 %3654 }
 0xab8   : > { %5317 = vrcp.f32 %v3655_v41 }
 0xab9   : > { %5319 = vrcp.f32 %v3649_v1 }
 0xaba   : > { %5321 = vrcp.f32 %v8290_v50 }
 0xabb   : > { %5323 = vrcp.f32 %v3643_v53 }
 0xabc   : > { %5325 = vrcp.f32 %v3646_v31 }
 0xabe   : > { %v5318_v15 = vpop.eup %5317 }
 0xabf   : > { %v3761_v22 = vmul.f32 %v5318_v15, %v8265_v45  ;;  %v3762_v25 = vmul.f32 %v5318_v15, %v8269_v42  ;;  %v5320_v2 = vpop.eup %5319 }
 0xac0   : > { %v5322_v45 = vpop.eup %5321  ;;  %v3757_v28 = vmul.f32 %v5320_v2, %v8225_v33  ;;  %v3758_v42 = vmul.f32 %v5320_v2, %v8235_v34 }
 0xac1   : > { %v3959_v47 = vpack.c.bf16 %v3763_v61, %v3761_v22  ;;  %v3960_v18 = vpack.c.bf16 %v3764_v17, %v3762_v25  ;;  %v3759_v55 = vmul.f32 %v5322_v45, %v8164_v49  ;;  %v3760_v35 = vmul.f32 %v5322_v45, %v8166_v27  ;;  %v5324_v32 = vpop.eup %5323  ;;  %v5348_v25 = vld [vmem:[%s5853_s19 + $0x50] sm:$0xff] }
 0xac2   : > { %v3980_v52 = vpop.f32.mrf.mxu0  ;;  %v4009_v21 = vpop.f32.mrf.mxu1  ;;  %v3753_v49 = vmul.f32 %v5324_v32, %v8255_v11  ;;  %v3754_v27 = vmul.f32 %v5324_v32, %v8257_v43 }
 0xac3   : > { %v4010_v50 = vadd.f32 %v4009_v21, %v3980_v52  ;;  %4034 = vmatpush.bf16.xpose.msra.mxu0 %v3959_v47  ;;  %4063 = vmatpush.bf16.xpose.msra.mxu1 %v3960_v18  ;;  %v3957_v37 = vpack.c.bf16 %v3759_v55, %v3757_v28  ;;  %v3958_v54 = vpack.c.bf16 %v3760_v35, %v3758_v42  ;;  %v5326_v34 = vpop.eup %5325 }
 0xac4   : > { %v3755_v26 = vmul.f32 %v5326_v34, %v8243_v13  ;;  %v3756_v24 = vmul.f32 %v5326_v34, %v8251_v3 }
 0xac5   : > { %v4088_v57 = vmul.f32 %v8332_v0, %v4010_v50 }
 0xac6   : > { %v3955_v38 = vpack.c.bf16 %v3755_v26, %v3753_v49  ;;  %v3956_v19 = vpack.c.bf16 %v3756_v24, %v3754_v27 }
 0xac7   : > { %v4104_v56 = vadd.f32 %v5343_v48, %v4088_v57 }
 0xac9   : > { %4120 = vst [vmem:[%s8341_s27] sm:$0xff] %v4104_v56 }
 0xaca   : > { %v3982_v12 = vpop.f32.mrf.mxu0  ;;  %v4011_v14 = vpop.f32.mrf.mxu1 }
 0xacb   : > { %v4012_v33 = vadd.f32 %v4011_v14, %v3982_v12  ;;  %4035 = vmatpush.bf16.xpose.msra.mxu0 %v3957_v37  ;;  %4064 = vmatpush.bf16.xpose.msra.mxu1 %v3958_v54 }
 0xacd   : > { %v4090_v63 = vmul.f32 %v8332_v0, %v4012_v33 }
 0xacf   : > { %v4106_v62 = vadd.f32 %v5344_v16, %v4090_v63  ;;  %v3839_v36 = vpop.permute.xlu1 %3838 }
 0xad0   : > { %v3900_v6 = vadd.f32 %v3899_v51, %v3839_v36  ;;  %v3929_v5 = vadd.f32 %v3928_v60, %v3839_v36 }
 0xad1   : > { %4122 = vst [vmem:[%s8341_s27 + $0x10] sm:$0xff] %v4106_v62 }
 0xad2   : > { %v3937_v20 = vpack.c.bf16 %v3900_v6, %v3898_v59  ;;  %v3938_v7 = vpack.c.bf16 %v3929_v5, %v3927_v44 }
 0xad3   : > { %4036 = vmatpush.bf16.xpose.msra.mxu0 %v3955_v38  ;;  %4065 = vmatpush.bf16.xpose.msra.mxu1 %v3956_v19 }
 0xad4   : > { %3994 = vmatmul.bf16.gmra.mxu0 %v3937_v20  ;;  %4023 = vmatmul.bf16.gmra.mxu1 %v3938_v7 }
 0xae4   : > { %4037 = vmatmul.bf16.vlgmr.msra.gmra.mxu0 %v8273_v40  ;;  %4066 = vmatmul.bf16.vlgmr.msra.gmra.mxu1 %v8277_v58 }
 0xaf4   : > { %4042 = vmatmul.bf16.gmra.mxu0 %v8298_v8  ;;  %4071 = vmatmul.bf16.gmra.mxu1 %v8300_v29 }
 0xb04   : > { %v3985_v13 = vpop.f32.mrf.mxu0  ;;  %v4014_v3 = vpop.f32.mrf.mxu1  ;;  %4047 = vmatmul.bf16.gmra.mxu0 %v8316_v9  ;;  %4076 = vmatmul.bf16.gmra.mxu1 %v8318_v46 }
 0xb05   : > { %v4015_v11 = vadd.f32 %v4014_v3, %v3985_v13 }
 0xb07   : > { %v4092_v43 = vmul.f32 %v8332_v0, %v4015_v11 }
 0xb09   : > { %v4108_v40 = vadd.f32 %v5345_v10, %v4092_v43 }
 0xb0b   : > { %4124 = vst [vmem:[%s8341_s27 + $0x20] sm:$0xff] %v4108_v40 }
 0xb0c   : > { %v3987_v58 = vpop.f32.mrf.mxu0  ;;  %v4016_v39 = vpop.f32.mrf.mxu1 }
 0xb0d   : > { %v4017_v8 = vadd.f32 %v4016_v39, %v3987_v58 }
 0xb0f   : > { %v4094_v29 = vmul.f32 %v8332_v0, %v4017_v8 }
 0xb11   : > { %v4110_v41 = vadd.f32 %v5346_v4, %v4094_v29 }
 0xb13   : > { %4126 = vst [vmem:[%s8341_s27 + $0x30] sm:$0xff] %v4110_v41 }
 0xb14   : > { %v3990_v9 = vpop.f32.mrf.mxu0  ;;  %v4019_v46 = vpop.f32.mrf.mxu1  ;;  %4052 = vmatmul.bf16.gmra.mxu0 %v3937_v20  ;;  %4081 = vmatmul.bf16.gmra.mxu1 %v3938_v7 }
 0xb15   : > { %v4020_v51 = vadd.f32 %v4019_v46, %v3990_v9 }
 0xb17   : > { %v4096_v60 = vmul.f32 %v8332_v0, %v4020_v51 }
 0xb19   : > { %v4112_v1 = vadd.f32 %v5347_v23, %v4096_v60 }
 0xb1b   : > { %4128 = vst [vmem:[%s8341_s27 + $0x40] sm:$0xff] %v4112_v1 }
 0xb1c   : > { %v3992_v30 = vpop.f32.mrf.mxu0  ;;  %v4021_v15 = vpop.f32.mrf.mxu1 }
 0xb1d   : > { %v4022_v22 = vadd.f32 %v4021_v15, %v3992_v30 }
 0xb1f   : > { %v4098_v61 = vmul.f32 %v8332_v0, %v4022_v22 }
 0xb21   : > { %v4114_v17 = vadd.f32 %v5348_v25, %v4098_v61 }
 0xb23   : > { %4130 = vst [vmem:[%s8341_s27 + $0x50] sm:$0xff] %v4114_v17 }
 0xb24   : > { %5521 = shalt.err (!%p5518_p0)
}
 0xb25   : > { %s5634_s29 = smov 256   ;;  %s5635_s16 = smov 16   ;;  %v5349_v2 = vld [vmem:[%s5853_s19 + $0x60] sm:$0xff]  ;;  %v5350_v28 = vld [vmem:[%s5853_s19 + $0x70] sm:$0xff]  ;;  %v5351_v12 = vld [vmem:[%s5853_s19 + $0x8] sm:$0xff] }
 0xb26   : > { %4846 = dma.vmem_to_hbm [thread:$0]  (%p5806_p3), %s4157_s17, 2048, %s4159_s18, %s4137_s28, %s5634_s29, %s5634_s29, %s5635_s16  }
 0xb27   : > { %v5352_v34 = vld [vmem:[%s5853_s19 + $0x18] sm:$0xff]  ;;  %v5353_v36 = vld [vmem:[%s5853_s19 + $0x28] sm:$0xff]  ;;  %s8783_s21 = sld [smem:[#allocation83_spill]]  ;;  %s4175_s18 = sshll.u32 %s8341_s27, 4  ;;  %s4176_s18 = int_to_ptr.vmem [resolvable:$true] %s4175_s18 }
 0xb28   : > { %v5354_v5 = vld [vmem:[%s5853_s19 + $0x38] sm:$0xff]  ;;  %v5355_v3 = vld [vmem:[%s5853_s19 + $0x48] sm:$0xff]  ;;  %s4142_s20 = scalar_lea.sflag [#allocation14], %s5838_s6 }
 0xb29   : > { %v5356_v39 = vld [vmem:[%s5853_s19 + $0x58] sm:$0xff]  ;;  %v5357_v46 = vld [vmem:[%s5853_s19 + $0x68] sm:$0xff] }
 0xb2a   : > { %v5358_v15 = vld [vmem:[%s5853_s19 + $0x78] sm:$0xff] }
 0xb2d   : > { %s8784_s17 = smov %s8783_s21  ;;  %s4174_s24 = scalar_lea.hbm %s8783_s21, %s4828_s11 }
 0xb2e   : > { %s4177_s28 = sshll.u32 %s4174_s24, 4  ;;  %s5542_s25 = scalar_lea.hbm %s8784_s17, 256  ;;  %s4178_s28 = int_to_ptr.hbm [resolvable:$true] %s4177_s28 }
 0xb2f   : > { %s5536_s14 = sshra.s32 %s4178_s28, 4  ;;  %s5537_s14 = int_to_ptr.hbm [resolvable:$true] %s5536_s14 }
 0xb30   : > { %s5538_s9 = scalar_lea.hbm %s5537_s14, 128  ;;  %p5543_p2 = scmp.lt.s32.totalorder %s5537_s14, %s8784_s17 }
 0xb31   : > { %p5539_p5 = scmp.ne.s32.totalorder %s5537_s14, %s5538_s9  ;;  %p5544_p1 = scmp.lt.s32.totalorder %s5542_s25, %s5538_s9 }
 0xb33   : > { %p5540_p7 = pnand %p5539_p5, %p5806_p3  ;;  %p5545_p4 = por %p5544_p1, %p5543_p2 }
 0xb35   : > { %p5541_p9 = pneg %p5540_p7 }
 0xb37   : > { %p5546_p8 = pnand %p5545_p4, %p5541_p9 }
 0xb51   : > { %v3995_v53 = vpop.f32.mrf.mxu0  ;;  %v4024_v52 = vpop.f32.mrf.mxu1 }
 0xb52   : > { %v4025_v47 = vadd.f32 %v4024_v52, %v3995_v53 }
 0xb54   : > { %v4100_v18 = vmul.f32 %v8332_v0, %v4025_v47 }
 0xb56   : > { %v4116_v21 = vadd.f32 %v5349_v2, %v4100_v18 }
 0xb58   : > { %4132 = vst [vmem:[%s8341_s27 + $0x60] sm:$0xff] %v4116_v21 }
 0xb59   : > { %v3997_v31 = vpop.f32.mrf.mxu0  ;;  %v4026_v50 = vpop.f32.mrf.mxu1 }
 0xb5a   : > { %v4027_v45 = vadd.f32 %v4026_v50, %v3997_v31 }
 0xb5c   : > { %v4102_v57 = vmul.f32 %v8332_v0, %v4027_v45 }
 0xb5e   : > { %v4118_v42 = vadd.f32 %v5350_v28, %v4102_v57 }
 0xb60   : > { %4134 = vst [vmem:[%s8341_s27 + $0x70] sm:$0xff] %v4118_v42 }
 0xb61   : > { %v4038_v48 = vpop.f32.mrf.mxu0  ;;  %v4067_v56 = vpop.f32.mrf.mxu1 }
 0xb62   : > { %v4068_v55 = vadd.f32 %v4067_v56, %v4038_v48 }
 0xb64   : > { %v4089_v35 = vmul.f32 %v8332_v0, %v4068_v55 }
 0xb66   : > { %v4105_v37 = vadd.f32 %v5351_v12, %v4089_v35 }
 0xb68   : > { %4121 = vst [vmem:[%s8341_s27 + $0x8] sm:$0xff] %v4105_v37 }
 0xb69   : > { %v4040_v54 = vpop.f32.mrf.mxu0  ;;  %v4069_v32 = vpop.f32.mrf.mxu1 }
 0xb6a   : > { %v4070_v14 = vadd.f32 %v4069_v32, %v4040_v54 }
 0xb6c   : > { %v4091_v33 = vmul.f32 %v8332_v0, %v4070_v14 }
 0xb6e   : > { %v4107_v63 = vadd.f32 %v5352_v34, %v4091_v33 }
 0xb70   : > { %4123 = vst [vmem:[%s8341_s27 + $0x18] sm:$0xff] %v4107_v63 }
 0xb71   : > { %v4043_v49 = vpop.f32.mrf.mxu0  ;;  %v4072_v27 = vpop.f32.mrf.mxu1 }
 0xb72   : > { %v4073_v16 = vadd.f32 %v4072_v27, %v4043_v49 }
 0xb74   : > { %v4093_v62 = vmul.f32 %v8332_v0, %v4073_v16 }
 0xb76   : > { %v4109_v26 = vadd.f32 %v5353_v36, %v4093_v62 }
 0xb78   : > { %4125 = vst [vmem:[%s8341_s27 + $0x28] sm:$0xff] %v4109_v26 }
 0xb79   : > { %v4045_v24 = vpop.f32.mrf.mxu0  ;;  %v4074_v44 = vpop.f32.mrf.mxu1 }
 0xb7a   : > { %v4075_v59 = vadd.f32 %v4074_v44, %v4045_v24 }
 0xb7c   : > { %v4095_v6 = vmul.f32 %v8332_v0, %v4075_v59 }
 0xb7e   : > { %v4111_v38 = vadd.f32 %v5354_v5, %v4095_v6 }
 0xb80   : > { %4127 = vst [vmem:[%s8341_s27 + $0x38] sm:$0xff] %v4111_v38 }
 0xb81   : > { %v4048_v19 = vpop.f32.mrf.mxu0  ;;  %v4077_v20 = vpop.f32.mrf.mxu1 }
 0xb82   : > { %v4078_v7 = vadd.f32 %v4077_v20, %v4048_v19 }
 0xb84   : > { %v4097_v13 = vmul.f32 %v8332_v0, %v4078_v7 }
 0xb86   : > { %v4113_v11 = vadd.f32 %v5355_v3, %v4097_v13 }
 0xb88   : > { %4129 = vst [vmem:[%s8341_s27 + $0x48] sm:$0xff] %v4113_v11 }
 0xb89   : > { %v4050_v43 = vpop.f32.mrf.mxu0  ;;  %v4079_v10 = vpop.f32.mrf.mxu1 }
 0xb8a   : > { %v4080_v40 = vadd.f32 %v4079_v10, %v4050_v43 }
 0xb8c   : > { %v4099_v58 = vmul.f32 %v8332_v0, %v4080_v40 }
 0xb8e   : > { %v4115_v8 = vadd.f32 %v5356_v39, %v4099_v58 }
 0xb90   : > { %4131 = vst [vmem:[%s8341_s27 + $0x58] sm:$0xff] %v4115_v8 }
 0xb91   : > { %v4053_v29 = vpop.f32.mrf.mxu0  ;;  %v4082_v4 = vpop.f32.mrf.mxu1 }
 0xb92   : > { %v4083_v41 = vadd.f32 %v4082_v4, %v4053_v29 }
 0xb94   : > { %v4101_v9 = vmul.f32 %v8332_v0, %v4083_v41 }
 0xb96   : > { %v4117_v51 = vadd.f32 %v5357_v46, %v4101_v9 }
 0xb98   : > { %4133 = vst [vmem:[%s8341_s27 + $0x68] sm:$0xff] %v4117_v51 }
 0xb99   : > { %v4055_v60 = vpop.f32.mrf.mxu0  ;;  %v4084_v23 = vpop.f32.mrf.mxu1 }
 0xb9a   : > { %v4085_v1 = vadd.f32 %v4084_v23, %v4055_v60 }
 0xb9c   : > { %v4103_v30 = vmul.f32 %v8332_v0, %v4085_v1 }
 0xb9e   : > { %v4119_v22 = vadd.f32 %v5358_v15, %v4103_v30 }
 0xba0   : > { %4135 = vst [vmem:[%s8341_s27 + $0x78] sm:$0xff] %v4119_v22 }
 0xba1   : > { %5549 = shalt.err (!%p5546_p8)
}
 0xba2   : > { %4847 = dma.vmem_to_hbm [thread:$0]  (%p5806_p3), %s4176_s18, 2048, %s4178_s28, %s4142_s20, %s5634_s29, %s5634_s29, %s5635_s16  }
 0xba3 PF: > { %s8785_s6 = sld [smem:[#allocation22_spill]]  ;;  %p4868_p10 = pnand %p4358_p11, %p5766_p6 }
 0xba5   : > { %p4869_p12 = pneg %p4868_p10 }
 0xba9   : > { %s4192_s27 = sand.u32 1, %s8785_s6  }
 0xbaa   : > { %s4193_s0 = scalar_lea.sflag [#allocation4], %s4192_s27 }
 0xbab   : > { %5595 = dma.done.wait (%p4869_p12), %s4193_s0, 2048  }
 0xbac   : > { %5597 = vsyncadd (%p4869_p12), %s4193_s0, 4294965248  ;;  %s4203_s21 = scalar_lea.sflag [#allocation14], %s4192_s27 }
 0xbad   : > { %5599 = dma.done.wait (%p4869_p12), %s4203_s21, 2048  }
 0xbae   : > { %5601 = vsyncadd (%p4869_p12), %s4203_s21, 4294965248  ;;  %s41_s26 = sadd.s32 1, %s5624_s26   ;;  %s8787_s23 = sld [smem:[#allocation23_spill]] }
 0xbaf   : > { %p38_p13 = scmp.ge.s32.totalorder %s41_s26, 4   ;;  %s8788_s29 = sld [smem:[#allocation29_spill]] }
 0xbb0   : > { %s8789_s24 = sld [smem:[#allocation25_spill]]  ;;  %s8791_s21 = smov %s5608_s22 }
 0xbb1   : > { %s8790_s25 = sld [smem:[#allocation28_spill]]  ;;  %40 = sbr.rel (!%p38_p13) target bundleno = 23 (0x17), region = 168 }
 0xbb4   : > { %s8792_s22 = smov %s8787_s23 }
 0xbb5   : > { %s8793_s23 = smov %s8788_s29 }
 0xbb6   :  { %4209 = vsyncpa [#allocation3], 1 }
 0xbb7   :  { %4211 = vsyncpa [#allocation3 + $0x1], 1 }
 0xbb8   :  { %4212 = vsyncpa [#allocation7], 1 }
 0xbb9   :  { %4214 = vsyncpa [#allocation7 + $0x1], 1 }
 0xbba   :  { %4215 = vsyncpa [#allocation10], 1 }
 0xbbb   :  { %4216 = vsyncpa [#allocation4], 1 }
 0xbbc   :  { %4218 = vsyncpa [#allocation4 + $0x1], 1 }
 0xbbd   :  { %4219 = vsyncpa [#allocation14], 1 }
 0xbbe   :  { %4221 = vsyncpa [#allocation14 + $0x1], 1 }
 0xbbf   :  { %4222 = vsyncpa [#allocation5], 1 }
 0xbc0   :  { %4224 = vsyncpa [#allocation5 + $0x1], 1 }

// kernel: tpu_custom_call.1
= control target key start
LH: loop header
LB: loop body
LE: loop exit
PB: predicated region body
PF: predicated region fallthrough
CT: control target
= control target key end

     0   :  { %s8463_s0 = inlined_call_operand.hbm [shape: f32[2,64,256], index: 0, kind: input, shape index: {}]   ;;  %s8464_s1 = inlined_call_operand.hbm [shape: f32[2,64,256], index: 1, kind: input, shape index: {}]   ;;  %s8465_s2 = inlined_call_operand.vmem [shape: bf16[8,64], index: 2, kind: input, shape index: {}]   ;;  %s8466_s3 = inlined_call_operand.vmem [shape: f32[8,1], index: 3, kind: input, shape index: {}]   ;;  %s8467_s4 = inlined_call_operand.vmem [shape: bf16[8,64], index: 4, kind: input, shape index: {}]   ;;  %s8468_s5 = inlined_call_operand.vmem [shape: f32[8,1], index: 5, kind: input, shape index: {}]   ;;  %s8469_s6 = inlined_call_operand.hbm [shape: bf16[256,256], index: 6, kind: input, shape index: {}]   ;;  %s8470_s7 = inlined_call_operand.vmem [shape: f32[1,256], index: 7, kind: input, shape index: {}]   ;;  %s8471_s8 = inlined_call_operand.hbm [shape: bf16[256,256], index: 8, kind: input, shape index: {}]   ;;  %s8472_s9 = inlined_call_operand.vmem [shape: f32[1,256], index: 9, kind: input, shape index: {}]   ;;  %s8473_s10 = inlined_call_operand.vmem [shape: bf16[64,64], index: 10, kind: input, shape index: {}]   ;;  %s8474_s11 = inlined_call_operand.vmem [shape: f32[64,1], index: 11, kind: input, shape index: {}]   ;;  %s8475_s12 = inlined_call_operand.vmem [shape: bf16[64,64], index: 12, kind: input, shape index: {}]   ;;  %s8476_s13 = inlined_call_operand.vmem [shape: f32[64,1], index: 13, kind: input, shape index: {}]   ;;  %s8477_s14 = inlined_call_operand.vmem [shape: f32[2], index: 14, kind: input, shape index: {}]   ;;  %s8478_s15 = inlined_call_operand.hbm [shape: f32[2,64,256], index: 15, kind: output, shape index: {0}]   ;;  %s8479_s16 = inlined_call_operand.hbm [shape: f32[2,64,256], index: 16, kind: output, shape index: {1}]  }
   0x1   :  { %8568 = sst [smem:[#allocation74_spill]] %s8463_s0 }
   0x2   :  { %8569 = sst [smem:[#allocation75_spill]] %s8464_s1 }
   0x3   :  { %8570 = sst [smem:[#allocation76_spill]] %s8469_s6 }
   0x4   :  { %8571 = sst [smem:[#allocation77_spill]] %s8471_s8 }
   0x5   :  { %8572 = sst [smem:[#allocation78_spill]] %s8472_s9 }
   0x6   :  { %8573 = sst [smem:[#allocation79_spill]] %s8473_s10 }
   0x7   :  { %8574 = sst [smem:[#allocation80_spill]] %s8474_s11 }
   0x8   :  { %8575 = sst [smem:[#allocation81_spill]] %s8477_s14 }
   0x9   :  { %8576 = sst [smem:[#allocation82_spill]] %s8478_s15 }
   0xa   :  { %8577 = sst [smem:[#allocation83_spill]] %s8479_s16 }
   0xb   :  { %22 = vsyncpa [#allocation3], 0 }
   0xc   :  { %24 = vsyncpa [#allocation3 + $0x1], 0 }
   0xd   :  { %25 = vsyncpa [#allocation7], 0 }
   0xe   :  { %27 = vsyncpa [#allocation7 + $0x1], 0 }
   0xf   :  { %28 = vsyncpa [#allocation10], 0 }
  0x10   :  { %29 = vsyncpa [#allocation5], 0 }
  0x11   :  { %30 = vsyncpa [#allocation4], 0 }
  0x12   :  { %32 = vsyncpa [#allocation4 + $0x1], 0 }
  0x13   :  { %33 = vsyncpa [#allocation14], 0 }
  0x14   :  { %35 = vsyncpa [#allocation14 + $0x1], 0  ;;  %s5721_s21 = smov 0   ;;  %s5723_s22 = smov 0  }
  0x15   :  { %s5725_s23 = smov 0   ;;  %s5727_s24 = smov 0  }
  0x16   :  { %s5729_s25 = smov 0   ;;  %s5731_s26 = smov 0  }
  0x17 LB: > { %8578 = sst [smem:[#allocation22_spill]] %s5604_s21  ;;  %s5752_s27 = sadd.s32 4294967295, %s5624_s26   ;;  %s5624_s26 = sphi %s5731_s26, %s41_s26   ;;  %s5620_s25 = sphi %s5729_s25, %s8790_s25   ;;  %s5616_s24 = sphi %s5727_s24, %s8789_s24   ;;  %s5612_s23 = sphi %s5725_s23, %s8793_s23   ;;  %s5608_s22 = sphi %s5723_s22, %s8792_s22   ;;  %s5604_s21 = sphi %s5721_s21, %s8791_s21  }
  0x18   : > { %8579 = sst [smem:[#allocation23_spill]] %s5612_s23  ;;  %s4353_s28 = sadd.s32 4294967294, %s5624_s26  }
  0x19   : > { %8580 = sst [smem:[#allocation24_spill]] %s5616_s24  ;;  %p73_p0 = scmp.ne.s32.totalorder %s5608_s22, %s5604_s21 }
  0x1a   : > { %8581 = sst [smem:[#allocation25_spill]] %s5620_s25  ;;  %p74_p1 = scmp.eq.s32.totalorder %s5752_s27, 0 }
  0x1b   : > { %p398_p2 = scmp.eq.s32.totalorder %s5752_s27, 1  ;;  %p404_p3 = scmp.eq.s32.totalorder %s4353_s28, 1 }
  0x1c   : > { %p5761_p4 = por %p74_p1, %p73_p0  ;;  %p4354_p5 = scmp.ge.s32.totalorder %s5624_s26, 1 }
  0x1d   : > { %p5766_p6 = por %p404_p3, %p73_p0  ;;  %p439_p7 = scmp.lt.s32.totalorder %s5624_s26, 3 }
  0x1e   : > { %s8585_s6 = sld [smem:[#allocation76_spill]]  ;;  %s5626_s20 = smov [#allocation8]  }
  0x1f   : > { %s8583_s30 = scalar_select %p5766_p6, 1, 0 }
  0x20   : > { %p5774_p8 = pnand %p4354_p5, %p439_p7  ;;  %s464_s28 = sshll.u32 %s5626_s20, 4  ;;  %s465_s28 = int_to_ptr.vmem [resolvable:$true] %s464_s28 }
  0x21   : > { %8584 = sst [smem:[#allocation26_spill]] %s8583_s30  ;;  %p4358_p11 = scmp.ge.s32.totalorder %s5624_s26, 2 }
  0x22   : > { %p4850_p9 = pneg %p5774_p8  ;;  %s8588_s8 = sld [smem:[#allocation77_spill]] }
  0x23   : > { %s5627_s20 = smov 128   ;;  %s5628_s21 = smov 8  }
  0x24   : > { %s462_s18 = sshll.u32 %s8585_s6, 4  ;;  %p5782_p10 = pnand %p4850_p9, %p74_p1  ;;  %s463_s18 = int_to_ptr.hbm [resolvable:$true] %s462_s18 }
  0x25   : > { %s5629_s16 = smov [#allocation9]   ;;  %s8589_s14 = sld [smem:[#allocation81_spill]] }
  0x26   : > { %4853 = dma.hbm_to_vmem [thread:$0]  (!%p5782_p10), %s463_s18, 4096, %s465_s28, [#allocation7], %s5627_s20, %s5627_s20, %s5628_s21  }
  0x27   : > { %s481_s15 = sshll.u32 %s5629_s16, 4  ;;  %s5630_s0 = smov [#allocation11]   ;;  %s482_s15 = int_to_ptr.vmem [resolvable:$true] %s481_s15 }
  0x28   : > { %s479_s6 = sshll.u32 %s8588_s8, 4  ;;  %s60_s17 = sadd.s32 1, %s5612_s23  ;;  %s480_s6 = int_to_ptr.hbm [resolvable:$true] %s479_s6 }
  0x29   : > { %4856 = dma.hbm_to_vmem [thread:$0]  (!%p5782_p10), %s480_s6, 4096, %s482_s15, [#allocation10], %s5627_s20, %s5627_s20, %s5628_s21  }
  0x2a   : > { %s53_s8 = sadd.s32 1, %s5620_s25  ;;  %p67_p12 = scmp.ne.s32.totalorder %s5612_s23, %s5608_s22 }
  0x2b   : > { %s509_s10 = sshll.u32 %s8589_s14, 4  ;;  %p55_p13 = scmp.ge.s32.totalorder %s53_s8, 2  ;;  %s510_s10 = int_to_ptr.vmem [resolvable:$true] %s509_s10 }
  0x2c   : > { %4859 = dma.vmem_to_smem (!%p5782_p10), %s510_s10, 16, %s5630_s0, [#allocation5]  }
  0x2d   : > { %p68_p0 = scmp.eq.s32.totalorder %s5624_s26, 0  ;;  %p5806_p3 = por %p398_p2, %p67_p12 }
  0x2e   : > { %p4877_p5 = scmp.lt.s32.totalorder %s5624_s26, 2  ;;  %s8795_s8 = smov (%p55_p13, %s53_s8), 0 }
  0x2f   : > { %s8590_s11 = scalar_select %p5806_p3, 1, 0 }
  0x30   : > { %8592 = sst [smem:[#allocation28_spill]] %s8795_s8  ;;  %p5813_p7 = por %p68_p0, %p67_p12 }
  0x31   : > { %8591 = sst [smem:[#allocation27_spill]] %s8590_s11  ;;  %s520_s10 = sand.u32 1, %s5612_s23  }
  0x32   : > { %s57_s15 = ssub.s32 %s5620_s25, %s8795_s8  ;;  %s4359_s16 = sshll.u32 %s520_s10, 7 }
  0x33   : > { %p58_p9 = scmp.eq.s32.totalorder %s57_s15, 0  ;;  %s4754_s21 = sshll.u32 %s5620_s25, 7 }
  0x34   : > { %s8595_s28 = sld [smem:[#allocation74_spill]]  ;;  %s524_s0 = scalar_lea.vmem [#allocation2], %s4359_s16 }
  0x35   : > { %s5822_s24 = scalar_select %p58_p9, %s5612_s23, %s60_s17  }
  0x36   : > { %s532_s14 = sshll.u32 %s524_s0, 4  ;;  %p4861_p2 = pnand %p4877_p5, %p5813_p7  ;;  %s533_s14 = int_to_ptr.vmem [resolvable:$true] %s532_s14 }
  0x37   : > { %8594 = sst [smem:[#allocation29_spill]] %s5822_s24  ;;  %s521_s9 = scalar_lea.sflag [#allocation3], %s520_s10 }
  0x38   : > { %s5631_s8 = smov 256   ;;  %s5632_s15 = smov 16  }
  0x39   : > { %s8596_s1 = sld [smem:[#allocation75_spill]]  ;;  %s546_s23 = scalar_lea.vmem [#allocation6], %s4359_s16 }
  0x3a   : > { %s529_s20 = scalar_lea.hbm %s8595_s28, %s4754_s21  ;;  %s554_s30 = sshll.u32 %s546_s23, 4  ;;  %s555_s30 = int_to_ptr.vmem [resolvable:$true] %s554_s30 }
  0x3b   : > { %s530_s11 = sshll.u32 %s529_s20, 4  ;;  %s542_s28 = sand.u32 1, %s5624_s26   ;;  %s531_s11 = int_to_ptr.hbm [resolvable:$true] %s530_s11 }
  0x3c   : > { %4863 = dma.hbm_to_vmem [thread:$0]  (!%p4861_p2), %s531_s11, 2048, %s533_s14, %s521_s9, %s5631_s8, %s5631_s8, %s5632_s15  }
  0x3d   : > { %s543_s20 = scalar_lea.sflag [#allocation7], %s542_s28  ;;  %566 = sbr.rel (%p5774_p8) target bundleno = 2979 (0xba3), region = 80 }
  0x3f   : > { %s551_s24 = scalar_lea.hbm %s8596_s1, %s4754_s21 }
  0x40   : > { %s552_s18 = sshll.u32 %s551_s24, 4  ;;  %s553_s18 = int_to_ptr.hbm [resolvable:$true] %s552_s18 }
  0x41   : > { %4866 = dma.hbm_to_vmem [thread:$0]  (!%p4861_p2), %s553_s18, 2048, %s555_s30, %s543_s20, %s5631_s8, %s5631_s8, %s5632_s15  }
  0x42   : > { %s5838_s6 = sand.u32 1, %s5608_s22  }
  0x43   : > { %s5841_s9 = sshll.u32 %s5838_s6, 7  ;;  %s569_s14 = scalar_lea.sflag [#allocation3], %s5838_s6 }
  0x44   : > { %s5845_s23 = scalar_lea.vmem [#allocation2], %s5841_s9 }
  0x45   : > { %5575 = dma.done.wait (%p5761_p4), %s569_s14, 2048  }
  0x46   : > { %5577 = vsyncadd (%p5761_p4), %s569_s14, 4294965248  ;;  %s578_s8 = sand.u32 1, %s5752_s27   ;;  %s5853_s19 = scalar_lea.vmem [#allocation6], %s5841_s9 }
  0x47   : > { %s579_s25 = scalar_lea.sflag [#allocation7], %s578_s8 }
  0x48   : > { %5579 = dma.done.wait (%p5761_p4), %s579_s25, 2048  }
  0x49   : > { %5581 = vsyncadd (%p5761_p4), %s579_s25, 4294965248 }
  0x4a   : > { %5583 = dma.done.wait (%p74_p1), [#allocation7], 4096  }
  0x4b   : > { %5585 = vsyncadd (%p74_p1), [#allocation7], 4294963200 }
  0x4c   : > { %5587 = dma.done.wait (%p74_p1), [#allocation10], 4096  }
  0x4d   : > { %5589 = vsyncadd (%p74_p1), [#allocation10], 4294963200 }
  0x4e   : > { %5591 = dma.done.wait (%p74_p1), [#allocation5], 16  }
  0x4f   : > { %5593 = vsyncadd (%p74_p1), [#allocation5], 4294967280 }
  0x50   : > { %603 = sfence }
  0x51   : > { %v673_v0 = vld [vmem:[%s5845_s23 + $0x60] sm:$0xff]  ;;  %v675_v1 = vld [vmem:[%s5845_s23 + $0x70] sm:$0xff]  ;;  %v674_v2 = vld [vmem:[%s5845_s23 + $0x68] sm:$0xff]  ;;  %v5633_v7 = vmov 0   ;;  %vm716_vm0 = vcmask 523264   ;;  %vm861_vm1 = vcmask 1043456  }
  0x52   : > { %v5874_v3 = vpack.c.bf16 %v675_v1, %v673_v0  ;;  %v676_v4 = vld [vmem:[%s5845_s23 + $0x78] sm:$0xff]  ;;  %v689_v5 = vld [vmem:[%s5853_s19 + $0x60] sm:$0xff]  ;;  %v691_v6 = vld [vmem:[%s5853_s19 + $0x70] sm:$0xff]  ;;  %4940 = vset.pattern.permute.xlu0 %v5633_v7  ;;  %4941 = vset.pattern.permute.xlu2 %v5633_v7  ;;  %vm812_vm2 = vcmask 64512   ;;  %s786_s27 = sld [smem:[#allocation11]]  ;;  %s7132_s29 = scalar_lea.vmem [#allocation12], %s5841_s9 }
  0x53   : > { %v5881_v8 = vpack.c.bf16 %v676_v4, %v674_v2  ;;  %v5883_v9 = vpack.c.bf16 %v691_v6, %v689_v5  ;;  %v690_v10 = vld [vmem:[%s5853_s19 + $0x68] sm:$0xff]  ;;  %v692_v11 = vld [vmem:[%s5853_s19 + $0x78] sm:$0xff]  ;;  %v669_v12 = vld [vmem:[%s5845_s23 + $0x40] sm:$0xff]  ;;  %s8701_s10 = sld [smem:[#allocation78_spill]]  ;;  %s4156_s17 = sshll.u32 %s7132_s29, 4  ;;  %s4157_s17 = int_to_ptr.vmem [resolvable:$true] %s4156_s17 }
  0x54   : > { %8597 = vst [vmem:[#allocation30_spill] sm:$0xff] %v5874_v3  ;;  %724 = vmatpush.bf16.msra.mxu0 %v5874_v3  ;;  %v5889_v13 = vpack.c.bf16 %v692_v11, %v690_v10  ;;  %v671_v14 = vld [vmem:[%s5845_s23 + $0x50] sm:$0xff]  ;;  %v670_v15 = vld [vmem:[%s5845_s23 + $0x48] sm:$0xff]  ;;  %v672_v16 = vld [vmem:[%s5845_s23 + $0x58] sm:$0xff]  ;;  %s8707_s24 = sld [smem:[#allocation79_spill]]  ;;  %s4137_s28 = scalar_lea.sflag [#allocation4], %s5838_s6 }
  0x55   : > { %8598 = vst [vmem:[#allocation31_spill] sm:$0xff] %v5881_v8  ;;  %737 = vmatpush.bf16.msra.mxu1 %v5881_v8  ;;  %762 = vmatpush.bf16.msra.mxu2 %v5883_v9  ;;  %v5896_v17 = vpack.c.bf16 %v671_v14, %v669_v12  ;;  %v5898_v18 = vpack.c.bf16 %v672_v16, %v670_v15  ;;  %v685_v19 = vld [vmem:[%s5853_s19 + $0x40] sm:$0xff]  ;;  %v687_v20 = vld [vmem:[%s5853_s19 + $0x50] sm:$0xff]  ;;  %v686_v21 = vld [vmem:[%s5853_s19 + $0x48] sm:$0xff]  ;;  %s8713_s30 = sld [smem:[#allocation80_spill]] }
  0x56   : > { %775 = vmatpush.bf16.msra.mxu3 %v5889_v13  ;;  %v5904_v22 = vpack.c.bf16 %v687_v20, %v685_v19  ;;  %v688_v23 = vld [vmem:[%s5853_s19 + $0x58] sm:$0xff]  ;;  %v665_v24 = vld [vmem:[%s5845_s23 + $0x20] sm:$0xff]  ;;  %v667_v25 = vld [vmem:[%s5845_s23 + $0x30] sm:$0xff]  ;;  %s4377_s25 = sld [smem:[#allocation11 + $0x1]] }
  0x57   : > { %8599 = vst [vmem:[#allocation32_spill] sm:$0xff] %v5896_v17  ;;  %v5909_v26 = vpack.c.bf16 %v688_v23, %v686_v21  ;;  %v666_v27 = vld [vmem:[%s5845_s23 + $0x28] sm:$0xff]  ;;  %v668_v28 = vld [vmem:[%s5845_s23 + $0x38] sm:$0xff]  ;;  %v681_v29 = vld [vmem:[%s5853_s19 + $0x20] sm:$0xff]  ;;  %v5915_v30 = vpack.c.bf16 %v667_v25, %v665_v24  ;;  %s8781_s21 = sld [smem:[#allocation82_spill]] }
  0x58   : > { %8600 = vst [vmem:[#allocation33_spill] sm:$0xff] %v5898_v18  ;;  %725 = vmatpush.bf16.msra.mxu0 %v5896_v17  ;;  %v683_v31 = vld [vmem:[%s5853_s19 + $0x30] sm:$0xff]  ;;  %v682_v32 = vld [vmem:[%s5853_s19 + $0x28] sm:$0xff]  ;;  %v684_v33 = vld [vmem:[%s5853_s19 + $0x38] sm:$0xff]  ;;  %v5922_v34 = vpack.c.bf16 %v668_v28, %v666_v27 }
  0x59   : > { %8601 = vst [vmem:[#allocation34_spill] sm:$0xff] %v5915_v30  ;;  %738 = vmatpush.bf16.msra.mxu1 %v5898_v18  ;;  %763 = vmatpush.bf16.msra.mxu2 %v5904_v22  ;;  %v5924_v35 = vpack.c.bf16 %v683_v31, %v681_v29  ;;  %v661_v36 = vld [vmem:[%s5845_s23] sm:$0xff]  ;;  %v663_v37 = vld [vmem:[%s5845_s23 + $0x10] sm:$0xff]  ;;  %v662_v38 = vld [vmem:[%s5845_s23 + $0x8] sm:$0xff]  ;;  %v5930_v39 = vpack.c.bf16 %v684_v33, %v682_v32 }
  0x5a   : > { %8602 = vst [vmem:[#allocation35_spill] sm:$0xff] %v5922_v34  ;;  %776 = vmatpush.bf16.msra.mxu3 %v5909_v26  ;;  %v664_v40 = vld [vmem:[%s5845_s23 + $0x18] sm:$0xff]  ;;  %v677_v41 = vld [vmem:[%s5853_s19] sm:$0xff]  ;;  %v679_v42 = vld [vmem:[%s5853_s19 + $0x10] sm:$0xff]  ;;  %v5938_v45 = vpack.c.bf16 %v663_v37, %v661_v36  ;;  %s8708_s0 = smov %s8707_s24 }
  0x5b   : > { %v678_v43 = vld [vmem:[%s5853_s19 + $0x8] sm:$0xff]  ;;  %v680_v44 = vld [vmem:[%s5853_s19 + $0x18] sm:$0xff]  ;;  %v710_v46 = vld [vmem:[%s8466_s3] sm:$0xff]  ;;  %v5945_v47 = vpack.c.bf16 %v664_v40, %v662_v38  ;;  %v5947_v48 = vpack.c.bf16 %v679_v42, %v677_v41 }
  0x5c   : > { %726 = vmatpush.bf16.msra.mxu0 %v5915_v30  ;;  %8603 = vst [vmem:[#allocation36_spill] sm:$0xff] %v5938_v45  ;;  %v5950_v49 = vpack.c.bf16 %v680_v44, %v678_v43  ;;  %713 = vperm.xlu0 %4940, %v710_v46   ;;  %v709_v50 = vld [vmem:[%s8465_s2] sm:$0xf]  ;;  %v4770_v16 = vld [vmem:[#allocation8 + $0x74] sm:$0xf] }
  0x5d   : > { %739 = vmatpush.bf16.msra.mxu1 %v5922_v34  ;;  %764 = vmatpush.bf16.msra.mxu2 %v5924_v35  ;;  %8604 = vst [vmem:[#allocation37_spill] sm:$0xff] %v5945_v47  ;;  %v748_v51 = vld [vmem:[%s8467_s4] sm:$0xf]  ;;  %v4470_v19 = vld [vmem:[#allocation8 + $0x78] sm:$0xf0]  ;;  %s8782_s15 = smov %s8781_s21 }
  0x5e   : > { %777 = vmatpush.bf16.msra.mxu3 %v5930_v39  ;;  %v749_v52 = vld [vmem:[%s8468_s5] sm:$0xff]  ;;  %v4786_v20 = vld [vmem:[#allocation8 + $0xf4] sm:$0xf]  ;;  %v4473_v21 = vor.u32 %v4770_v16, %v4470_v19  ;;  %v4534_v23 = vld [vmem:[#allocation8 + $0xf8] sm:$0xf0] }
  0x5f   : > { %v4537_v24 = vor.u32 %v4786_v20, %v4534_v23  ;;  %v4768_v27 = vld [vmem:[#allocation8 + $0x64] sm:$0xf]  ;;  %v4462_v28 = vld [vmem:[#allocation8 + $0x68] sm:$0xf0]  ;;  %v4766_v40 = vld [vmem:[#allocation8 + $0x54] sm:$0xf] }
  0x60   : > { %727 = vmatpush.bf16.msra.mxu0 %v5938_v45  ;;  %v4784_v29 = vld [vmem:[#allocation8 + $0xe4] sm:$0xf]  ;;  %v4465_v31 = vor.u32 %v4768_v27, %v4462_v28  ;;  %v4526_v32 = vld [vmem:[#allocation8 + $0xe8] sm:$0xf0]  ;;  %v4454_v41 = vld [vmem:[#allocation8 + $0x58] sm:$0xf0] }
  0x61   : > { %740 = vmatpush.bf16.msra.mxu1 %v5945_v47  ;;  %765 = vmatpush.bf16.msra.mxu2 %v5947_v48  ;;  %v4782_v42 = vld [vmem:[#allocation8 + $0xd4] sm:$0xf]  ;;  %v4457_v43 = vor.u32 %v4766_v40, %v4454_v41  ;;  %v4518_v44 = vld [vmem:[#allocation8 + $0xd8] sm:$0xf0]  ;;  %v4767_v23 = vld [vmem:[#allocation8 + $0x54] sm:$0xf0] }
  0x62   : > { %778 = vmatpush.bf16.msra.mxu3 %v5950_v49  ;;  %v4521_v46 = vor.u32 %v4782_v42, %v4518_v44  ;;  %v4783_v27 = vld [vmem:[#allocation8 + $0xd4] sm:$0xf0]  ;;  %v4444_v28 = vld [vmem:[#allocation8 + $0x40] sm:$0xf]  ;;  %v4436_v40 = vld [vmem:[#allocation8 + $0x30] sm:$0xf] }
  0x63   : > { %4373 = vmatmul.msk.bf16.vlgmr.msra.gmra.mxu0 %vm716_vm0, %v709_v50  ;;  %v4763_v41 = vld [vmem:[#allocation8 + $0x34] sm:$0xf0]  ;;  %v4500_v42 = vld [vmem:[#allocation8 + $0xb0] sm:$0xf] }
  0x64   : > { %4374 = vmatmul.msk.bf16.vlgmr.msra.gmra.mxu1 %vm716_vm0, %v709_v50  ;;  %4375 = vmatmul.msk.bf16.vlgmr.msra.gmra.mxu2 %vm716_vm0, %v748_v51  ;;  %v4437_v44 = vor.u32 %v4763_v41, %v4436_v40 }
  0x65   : > { %4376 = vmatmul.msk.bf16.vlgmr.msra.gmra.mxu3 %vm716_vm0, %v748_v51  ;;  %752 = vperm.xlu0 %4940, %v749_v52  }
  0xce   : > { %v714_v53 = vpop.permute.xlu0 %713 }
  0xd7   : > { %v753_v62 = vpop.permute.xlu0 %752 }
  0xe0   : > { %v729_v54 = vpop.f32.mrf.mxu0 }
  0xe1   : > { %v730_v55 = vadd.f32 %v729_v54, %v714_v53  ;;  %v742_v56 = vpop.f32.mrf.mxu1  ;;  %v4764_v54 = vld [vmem:[#allocation8 + $0x44] sm:$0xf] }
  0xe2   : > { %v743_v57 = vadd.f32 %v742_v56, %v714_v53  ;;  %v4780_v56 = vld [vmem:[#allocation8 + $0xc4] sm:$0xf] }
  0xe3   : > { %v746_v58 = vpack.c.bf16 %v730_v55, %v730_v55  ;;  %v4446_v55 = vld [vmem:[#allocation8 + $0x48] sm:$0xf0] }
  0xe4   : > { %v747_v59 = vpack.c.bf16 %v743_v57, %v743_v57  ;;  %v4449_v57 = vor.u32 %v4764_v54, %v4446_v55  ;;  %v4761_v54 = vld [vmem:[#allocation8 + $0x24] sm:$0xf0]  ;;  %v4492_v55 = vld [vmem:[#allocation8 + $0xa0] sm:$0xf] }
  0xe5   : > { %v5970_v60 = vsel %vm861_vm1, %v746_v58, 0 }
  0xe6   : > { %8605 = vst [vmem:[#allocation38_spill] sm:$0xff] %v5970_v60  ;;  %v5973_v61 = vsel %vm861_vm1, %v747_v59, 0  ;;  %788 = vxpose.binary.xlu1.c.b16.start.end [1/2] (short) %v747_v59, %v746_v58, 128  ;;  %v4510_v58 = vld [vmem:[#allocation8 + $0xc8] sm:$0xf0] }
  0xe7   : > { %8606 = vst [vmem:[#allocation39_spill] sm:$0xff] %v5973_v61  ;;  %v767_v63 = vpop.f32.mrf.mxu2  ;;  %v4513_v59 = vor.u32 %v4780_v56, %v4510_v58 }
  0xe8   : > { %v768_v0 = vadd.f32 %v767_v63, %v753_v62  ;;  %v780_v1 = vpop.f32.mrf.mxu3  ;;  %v731_v2 = vpop.f32.mrf.mxu0  ;;  %v4468_v63 = vld [vmem:[#allocation8 + $0x70] sm:$0xf] }
  0xe9   : > { %v781_v4 = vadd.f32 %v780_v1, %v753_v62  ;;  %v744_v5 = vpop.f32.mrf.mxu1  ;;  %v4532_v1 = vld [vmem:[#allocation8 + $0xf0] sm:$0xf] }
  0xea   : > { %v5975_v6 = vpack.c.bf16 %v768_v0, %v768_v0  ;;  %v4771_v0 = vld [vmem:[#allocation8 + $0x74] sm:$0xf0]  ;;  %v4460_v5 = vld [vmem:[#allocation8 + $0x60] sm:$0xf] }
  0xeb   : > { %v5977_v10 = vpack.c.bf16 %v781_v4, %v781_v4  ;;  %v4469_v2 = vor.u32 %v4771_v0, %v4468_v63  ;;  %v4787_v4 = vld [vmem:[#allocation8 + $0xf4] sm:$0xf0]  ;;  %v4420_v63 = vld [vmem:[#allocation8 + $0x10] sm:$0xf] }
  0xec   : > { %8607 = vst [vmem:[#allocation40_spill] sm:$0xff] %v5975_v6  ;;  %v863_v11 = vsel %vm861_vm1, %v5975_v6, 0  ;;  %v4759_v0 = vld [vmem:[#allocation8 + $0x14] sm:$0xf0] }
  0xed   : > { %8608 = vst [vmem:[#allocation41_spill] sm:$0xff] %v5977_v10  ;;  %875 = vmatpush.bf16.msrb.mxu0 %v863_v11  ;;  %v866_v12 = vsel %vm861_vm1, %v5977_v10, 0  ;;  %v4769_v11 = vld [vmem:[#allocation8 + $0x64] sm:$0xf0]  ;;  %1276 = vmatpush.bf16.msrb.mxu2 %v4469_v2  ;;  %v4421_v2 = vor.u32 %v4759_v0, %v4420_v63 }
  0xee   : > { %964 = vmatpush.bf16.msrb.mxu1 %v866_v12  ;;  %v4533_v12 = vor.u32 %v4787_v4, %v4532_v1  ;;  %v4461_v16 = vor.u32 %v4769_v11, %v4460_v5  ;;  %v4484_v1 = vld [vmem:[#allocation8 + $0x90] sm:$0xf]  ;;  %v4775_v4 = vld [vmem:[#allocation8 + $0x94] sm:$0xf0]  ;;  %v4762_v5 = vld [vmem:[#allocation8 + $0x34] sm:$0xf] }
  0xef   : > { %v769_v14 = vpop.f32.mrf.mxu2  ;;  %v4438_v11 = vld [vmem:[#allocation8 + $0x38] sm:$0xf0] }
  0xf0   : > { %v782_v15 = vpop.f32.mrf.mxu3  ;;  %v4524_v14 = vld [vmem:[#allocation8 + $0xe0] sm:$0xf]  ;;  %1365 = vmatpush.bf16.msrb.mxu3 %v4533_v12  ;;  %v4485_v12 = vor.u32 %v4775_v4, %v4484_v1 }
  0xf1   : > { %1454 = vmatpush.bf16.msra.mxu0 %v4473_v21  ;;  %v4785_v15 = vld [vmem:[#allocation8 + $0xe4] sm:$0xf0]  ;;  %1277 = vmatpush.bf16.msrb.mxu2 %v4461_v16  ;;  %v4452_v21 = vld [vmem:[#allocation8 + $0x50] sm:$0xf]  ;;  %v4502_v16 = vld [vmem:[#allocation8 + $0xb8] sm:$0xf0] }
  0xf2   : > { %1543 = vmatpush.bf16.msra.mxu1 %v4537_v24  ;;  %v4525_v19 = vor.u32 %v4785_v15, %v4524_v14  ;;  %v4516_v24 = vld [vmem:[#allocation8 + $0xd0] sm:$0xf]  ;;  %v4441_v14 = vor.u32 %v4762_v5, %v4438_v11  ;;  %v4778_v15 = vld [vmem:[#allocation8 + $0xb4] sm:$0xf] }
  0xf4   : > { %1366 = vmatpush.bf16.msrb.mxu3 %v4525_v19  ;;  %v4505_v19 = vor.u32 %v4778_v15, %v4502_v16  ;;  %v4756_v15 = vld [vmem:[#allocation8 + $0x4] sm:$0xf] }
  0xf5   : > { %1455 = vmatpush.bf16.msra.mxu0 %v4465_v31  ;;  %v4517_v31 = vor.u32 %v4783_v27, %v4516_v24  ;;  %v4772_v16 = vld [vmem:[#allocation8 + $0x84] sm:$0xf] }
  0xf8   : > { %1367 = vmatpush.bf16.msrb.mxu3 %v4517_v31 }
  0xf9   : > { %1456 = vmatpush.bf16.msra.mxu0 %v4457_v43  ;;  %v4779_v43 = vld [vmem:[#allocation8 + $0xb4] sm:$0xf0] }
  0xfd   : > { %1457 = vmatpush.bf16.msra.mxu0 %v4449_v57  ;;  %v4777_v57 = vld [vmem:[#allocation8 + $0xa4] sm:$0xf0] }
  0xfe   : > { %v4493_v58 = vor.u32 %v4777_v57, %v4492_v55 }
 0x101   : > { %1458 = vmatpush.bf16.msra.mxu0 %v4441_v14 }
 0x139   : > { %4942 = vset.pattern.permute.xlu1 %v5633_v7  ;;  %v4529_v7 = vor.u32 %v4784_v29, %v4526_v32  ;;  %v4765_v29 = vld [vmem:[#allocation8 + $0x44] sm:$0xf0]  ;;  %v4508_v32 = vld [vmem:[#allocation8 + $0xc0] sm:$0xf] }
 0x13b   : > { %1544 = vmatpush.bf16.msra.mxu1 %v4529_v7  ;;  %v4781_v7 = vld [vmem:[#allocation8 + $0xc4] sm:$0xf0] }
 0x13f   : > { %1545 = vmatpush.bf16.msra.mxu1 %v4521_v46 }
 0x143   : > { %1546 = vmatpush.bf16.msra.mxu1 %v4513_v59 }
 0x147   : > { %1547 = vmatpush.bf16.msra.mxu1 %v4505_v19 }
 0x192   : > { %v796_v25 = vpop.trf.xlu1 }
 0x193   : > { %4378 = vmatmul.msk.bf16.vlgmr.msrb.gmra.mxu0 %vm812_vm2, %v796_v25  ;;  %4394 = vmatmul.msk.bf16.vlgmr.msrb.gmra.mxu1 %vm812_vm2, %v796_v25  ;;  %v4453_v25 = vor.u32 %v4767_v23, %v4452_v21  ;;  %v4757_v21 = vld [vmem:[#allocation8 + $0x4] sm:$0xf0]  ;;  %v4476_v23 = vld [vmem:[#allocation8 + $0x80] sm:$0xf] }
 0x195   : > { %1278 = vmatpush.bf16.msrb.mxu2 %v4453_v25  ;;  %v4773_v25 = vld [vmem:[#allocation8 + $0x84] sm:$0xf0] }
 0x196   : > { %v4477_v27 = vor.u32 %v4773_v25, %v4476_v23 }
 0x19a   : > { %v5986_v33 = vpop.trf.xlu1 }
 0x1a2   : > { %v798_v36 = vpop.trf.xlu1 }
 0x1a3   : > { %4379 = vmatmul.msk.bf16.gmra.mxu0 %vm812_vm2, %v798_v36  ;;  %4395 = vmatmul.msk.bf16.gmra.mxu1 %vm812_vm2, %v798_v36  ;;  %v4445_v36 = vor.u32 %v4765_v29, %v4444_v28 }
 0x1a5   : > { %1279 = vmatpush.bf16.msrb.mxu2 %v4445_v36 }
 0x1a9   : > { %1280 = vmatpush.bf16.msrb.mxu2 %v4437_v44 }
 0x1aa   : > { %v5990_v37 = vpop.trf.xlu1 }
 0x1b2   : > { %v800_v38 = vpop.trf.xlu1 }
 0x1b3   : > { %4380 = vmatmul.msk.bf16.gmra.mxu0 %vm812_vm2, %v800_v38  ;;  %4396 = vmatmul.msk.bf16.gmra.mxu1 %vm812_vm2, %v800_v38  ;;  %v4509_v38 = vor.u32 %v4781_v7, %v4508_v32  ;;  %v4494_v32 = vld [vmem:[#allocation8 + $0xa8] sm:$0xf0] }
 0x1b5   : > { %1368 = vmatpush.bf16.msrb.mxu3 %v4509_v38 }
 0x1ba   : > { %v5994_v50 = vpop.trf.xlu1 }
 0x1c2   : > { %v802_v51 = vpop.trf.xlu1 }
 0x1c3   : > { %4381 = vmatmul.msk.bf16.gmra.mxu0 %vm812_vm2, %v802_v51  ;;  %4397 = vmatmul.msk.bf16.gmra.mxu1 %vm812_vm2, %v802_v51  ;;  %v4501_v51 = vor.u32 %v4779_v43, %v4500_v42 }
 0x1c5   : > { %1369 = vmatpush.bf16.msrb.mxu3 %v4501_v51 }
 0x1c9   : > { %1370 = vmatpush.bf16.msrb.mxu3 %v4493_v58 }
 0x1ca   : > { %v5998_v52 = vpop.trf.xlu1 }
 0x1cd   : > { %1371 = vmatpush.bf16.msrb.mxu3 %v4485_v12 }
 0x1d1   : > { %1372 = vmatpush.bf16.msrb.mxu3 %v4477_v27 }
 0x1d2   : > { %v804_v53 = vpop.trf.xlu1 }
 0x1d3   : > { %4382 = vmatmul.msk.bf16.gmra.mxu0 %vm812_vm2, %v804_v53  ;;  %4398 = vmatmul.msk.bf16.gmra.mxu1 %vm812_vm2, %v804_v53  ;;  %v4428_v53 = vld [vmem:[#allocation8 + $0x20] sm:$0xf] }
 0x1d4   : > { %v4429_v56 = vor.u32 %v4761_v54, %v4428_v53  ;;  %v4758_v53 = vld [vmem:[#allocation8 + $0x14] sm:$0xf] }
 0x1d5   : > { %2233 = vmatpush.bf16.msra.mxu3 %v5889_v13  ;;  %v4760_v13 = vld [vmem:[#allocation8 + $0x24] sm:$0xf]  ;;  %v4774_v54 = vld [vmem:[#allocation8 + $0x94] sm:$0xf] }
 0x1d6   : > { %1281 = vmatpush.bf16.msrb.mxu2 %v4429_v56  ;;  %v4486_v56 = vld [vmem:[#allocation8 + $0x98] sm:$0xf0] }
 0x1d7   : > { %v4489_v57 = vor.u32 %v4774_v54, %v4486_v56 }
 0x1d9   : > { %2234 = vmatpush.bf16.msra.mxu3 %v5909_v26  ;;  %v4776_v26 = vld [vmem:[#allocation8 + $0xa4] sm:$0xf] }
 0x1da   : > { %v6002_v62 = vpop.trf.xlu1  ;;  %1282 = vmatpush.bf16.msrb.mxu2 %v4421_v2  ;;  %v4497_v7 = vor.u32 %v4776_v26, %v4494_v32 }
 0x1dc   : > { %1548 = vmatpush.bf16.msra.mxu1 %v4497_v7 }
 0x1dd   : > { %2235 = vmatpush.bf16.msra.mxu3 %v5930_v39 }
 0x1e0   : > { %1549 = vmatpush.bf16.msra.mxu1 %v4489_v57 }
 0x1e1   : > { %2236 = vmatpush.bf16.msra.mxu3 %v5950_v49 }
 0x1e2   : > { %v806_v20 = vpop.trf.xlu1 }
 0x1e3   : > { %4383 = vmatmul.msk.bf16.gmra.mxu0 %vm812_vm2, %v806_v20  ;;  %4399 = vmatmul.msk.bf16.gmra.mxu1 %vm812_vm2, %v806_v20  ;;  %v4412_v20 = vld [vmem:[#allocation8] sm:$0xf] }
 0x1e4   : > { %v4413_v24 = vor.u32 %v4757_v21, %v4412_v20  ;;  %v4478_v20 = vld [vmem:[#allocation8 + $0x88] sm:$0xf0] }
 0x1e5   : > { %v4481_v21 = vor.u32 %v4772_v16, %v4478_v20 }
 0x1e6   : > { %1283 = vmatpush.bf16.msrb.mxu2 %v4413_v24 }
 0x1e7   : > { %1550 = vmatpush.bf16.msra.mxu1 %v4481_v21 }
 0x1ea   : > { %v6006_v46 = vpop.trf.xlu1  ;;  %2204 = vmatpush.bf16.msra.mxu2 %v5883_v9 }
 0x1ee   : > { %2205 = vmatpush.bf16.msra.mxu2 %v5904_v22  ;;  %v4430_v22 = vld [vmem:[#allocation8 + $0x28] sm:$0xf0] }
 0x1f2   : > { %v808_v59 = vpop.trf.xlu1  ;;  %2206 = vmatpush.bf16.msra.mxu2 %v5924_v35  ;;  %v4433_v35 = vor.u32 %v4760_v13, %v4430_v22 }
 0x1f3   : > { %4384 = vmatmul.msk.bf16.gmra.mxu0 %vm812_vm2, %v808_v59  ;;  %4400 = vmatmul.msk.bf16.gmra.mxu1 %vm812_vm2, %v808_v59 }
 0x1f4   : > { %1459 = vmatpush.bf16.msra.mxu0 %v4433_v35 }
 0x1f6   : > { %2207 = vmatpush.bf16.msra.mxu2 %v5947_v48 }
 0x1fa   : > { %v6010_v28 = vpop.trf.xlu1 }
 0x202   : > { %v810_v29 = vpop.trf.xlu1 }
 0x203   : > { %4385 = vmatmul.msk.bf16.gmra.mxu0 %vm812_vm2, %v810_v29  ;;  %4401 = vmatmul.msk.bf16.gmra.mxu1 %vm812_vm2, %v810_v29 }
 0x210   : > { %v877_v9 = vpop.f32.mrf.mxu0  ;;  %v966_v31 = vpop.f32.mrf.mxu1 }
 0x213   : > { %4386 = vmatmul.msk.bf16.gmra.mxu0 %vm812_vm2, %v5986_v33  ;;  %4402 = vmatmul.msk.bf16.gmra.mxu1 %vm812_vm2, %v5986_v33 }
 0x218   : > { %v879_v39 = vpop.f32.mrf.mxu0  ;;  %v968_v48 = vpop.f32.mrf.mxu1 }
 0x219   : > { %v6026_v36 = vpack.c.bf16 %v879_v39, %v877_v9  ;;  %v6028_v49 = vpack.c.bf16 %v968_v48, %v966_v31  ;;  %v811_v48 = vpop.trf.xlu1 }
 0x21b   : > { %1284 = vmatmul.bf16.vlgmr.msrb.gmra.mxu2 %v6026_v36  ;;  %1373 = vmatmul.bf16.vlgmr.msrb.gmra.mxu3 %v6028_v49 }
 0x220   : > { %v882_v38 = vpop.f32.mrf.mxu0  ;;  %v971_v33 = vpop.f32.mrf.mxu1 }
 0x223   : > { %4387 = vmatmul.msk.bf16.gmra.mxu0 %vm812_vm2, %v5990_v37  ;;  %4403 = vmatmul.msk.bf16.gmra.mxu1 %vm812_vm2, %v5990_v37  ;;  %v4422_v37 = vld [vmem:[#allocation8 + $0x18] sm:$0xf0] }
 0x224   : > { %v4425_v55 = vor.u32 %v4758_v53, %v4422_v37 }
 0x226   : > { %1460 = vmatpush.bf16.msra.mxu0 %v4425_v55  ;;  %v6105_v55 = vld [vmem:[%s8470_s7] sm:$0x3] }
 0x228   : > { %v884_v40 = vpop.f32.mrf.mxu0  ;;  %v973_v41 = vpop.f32.mrf.mxu1 }
 0x229   : > { %v6036_v42 = vpack.c.bf16 %v884_v40, %v882_v38  ;;  %v6038_v43 = vpack.c.bf16 %v973_v41, %v971_v33 }
 0x22b   : > { %1289 = vmatmul.bf16.gmra.mxu2 %v6036_v42  ;;  %1378 = vmatmul.bf16.gmra.mxu3 %v6038_v43 }
 0x230   : > { %v887_v44 = vpop.f32.mrf.mxu0  ;;  %v976_v51 = vpop.f32.mrf.mxu1 }
 0x233   : > { %4388 = vmatmul.msk.bf16.gmra.mxu0 %vm812_vm2, %v5994_v50  ;;  %4404 = vmatmul.msk.bf16.gmra.mxu1 %vm812_vm2, %v5994_v50 }
 0x238   : > { %v889_v58 = vpop.f32.mrf.mxu0  ;;  %v978_v59 = vpop.f32.mrf.mxu1 }
 0x239   : > { %v6046_v63 = vpack.c.bf16 %v889_v58, %v887_v44  ;;  %v6048_v0 = vpack.c.bf16 %v978_v59, %v976_v51  ;;  %v6114_v58 = vperm.slane %v6105_v55, 0 }
 0x23b   : > { %1294 = vmatmul.bf16.gmra.mxu2 %v6046_v63  ;;  %1383 = vmatmul.bf16.gmra.mxu3 %v6048_v0 }
 0x240   : > { %v892_v1 = vpop.f32.mrf.mxu0  ;;  %v981_v50 = vpop.f32.mrf.mxu1 }
 0x243   : > { %4389 = vmatmul.msk.bf16.gmra.mxu0 %vm812_vm2, %v5998_v52  ;;  %4405 = vmatmul.msk.bf16.gmra.mxu1 %vm812_vm2, %v5998_v52  ;;  %v4414_v52 = vld [vmem:[#allocation8 + $0x8] sm:$0xf0] }
 0x244   : > { %v4417_v19 = vor.u32 %v4756_v15, %v4414_v52 }
 0x246   : > { %1461 = vmatpush.bf16.msra.mxu0 %v4417_v19 }
 0x248   : > { %v894_v2 = vpop.f32.mrf.mxu0  ;;  %v983_v4 = vpop.f32.mrf.mxu1 }
 0x249   : > { %v6056_v5 = vpack.c.bf16 %v894_v2, %v892_v1  ;;  %v6058_v11 = vpack.c.bf16 %v983_v4, %v981_v50 }
 0x24b   : > { %1299 = vmatmul.bf16.gmra.mxu2 %v6056_v5  ;;  %1388 = vmatmul.bf16.gmra.mxu3 %v6058_v11 }
 0x250   : > { %v897_v12 = vpop.f32.mrf.mxu0  ;;  %v986_v14 = vpop.f32.mrf.mxu1 }
 0x253   : > { %4390 = vmatmul.msk.bf16.gmra.mxu0 %vm812_vm2, %v6002_v62  ;;  %4406 = vmatmul.msk.bf16.gmra.mxu1 %vm812_vm2, %v6002_v62 }
 0x258   : > { %v899_v23 = vpop.f32.mrf.mxu0  ;;  %v988_v24 = vpop.f32.mrf.mxu1 }
 0x259   : > { %v6066_v25 = vpack.c.bf16 %v899_v23, %v897_v12  ;;  %v6068_v27 = vpack.c.bf16 %v988_v24, %v986_v14 }
 0x25b   : > { %1304 = vmatmul.bf16.gmra.mxu2 %v6066_v25  ;;  %1393 = vmatmul.bf16.gmra.mxu3 %v6068_v27 }
 0x260   : > { %v902_v29 = vpop.f32.mrf.mxu0  ;;  %v991_v62 = vpop.f32.mrf.mxu1 }
 0x263   : > { %4391 = vmatmul.msk.bf16.gmra.mxu0 %vm812_vm2, %v6006_v46  ;;  %4407 = vmatmul.msk.bf16.gmra.mxu1 %vm812_vm2, %v6006_v46 }
 0x268   : > { %v904_v9 = vpop.f32.mrf.mxu0  ;;  %v993_v31 = vpop.f32.mrf.mxu1 }
 0x269   : > { %v6076_v13 = vpack.c.bf16 %v904_v9, %v902_v29  ;;  %v6078_v22 = vpack.c.bf16 %v993_v31, %v991_v62 }
 0x26b   : > { %1309 = vmatmul.bf16.gmra.mxu2 %v6076_v13  ;;  %1398 = vmatmul.bf16.gmra.mxu3 %v6078_v22 }
 0x270   : > { %v907_v26 = vpop.f32.mrf.mxu0  ;;  %v996_v35 = vpop.f32.mrf.mxu1 }
 0x273   : > { %4392 = vmatmul.msk.bf16.gmra.mxu0 %vm812_vm2, %v6010_v28  ;;  %4408 = vmatmul.msk.bf16.gmra.mxu1 %vm812_vm2, %v6010_v28 }
 0x278   : > { %v909_v32 = vpop.f32.mrf.mxu0  ;;  %v998_v46 = vpop.f32.mrf.mxu1 }
 0x279   : > { %v6086_v7 = vpack.c.bf16 %v909_v32, %v907_v26  ;;  %v6088_v39 = vpack.c.bf16 %v998_v46, %v996_v35 }
 0x27b   : > { %1314 = vmatmul.bf16.gmra.mxu2 %v6086_v7  ;;  %1403 = vmatmul.bf16.gmra.mxu3 %v6088_v39 }
 0x280   : > { %v912_v38 = vpop.f32.mrf.mxu0  ;;  %v1001_v33 = vpop.f32.mrf.mxu1 }
 0x283   : > { %4393 = vmatmul.msk.bf16.gmra.mxu0 %vm812_vm2, %v811_v48  ;;  %4409 = vmatmul.msk.bf16.gmra.mxu1 %vm812_vm2, %v811_v48 }
 0x288   : > { %v914_v40 = vpop.f32.mrf.mxu0  ;;  %v1003_v41 = vpop.f32.mrf.mxu1 }
 0x289   : > { %v6094_v28 = vpack.c.bf16 %v914_v40, %v912_v38  ;;  %v6096_v44 = vpack.c.bf16 %v1003_v41, %v1001_v33 }
 0x28b   : > { %1319 = vmatmul.bf16.gmra.mxu2 %v6094_v28  ;;  %1408 = vmatmul.bf16.gmra.mxu3 %v6096_v44 }
 0x290   : > { %v917_v51 = vpop.f32.mrf.mxu0  ;;  %v1006_v53 = vpop.f32.mrf.mxu1 }
 0x293   : > { %1462 = vmatmul.bf16.vlgmr.msra.gmra.mxu0 %v6026_v36  ;;  %1551 = vmatmul.bf16.vlgmr.msra.gmra.mxu1 %v6028_v49 }
 0x298   : > { %v919_v37 = vpop.f32.mrf.mxu0  ;;  %v1008_v54 = vpop.f32.mrf.mxu1 }
 0x299   : > { %v6107_v56 = vpack.c.bf16 %v919_v37, %v917_v51  ;;  %v6109_v57 = vpack.c.bf16 %v1008_v54, %v1006_v53 }
 0x29b   : > { %1324 = vmatmul.bf16.gmra.mxu2 %v6107_v56  ;;  %1413 = vmatmul.bf16.gmra.mxu3 %v6109_v57 }
 0x29e   : > { %v1285_v36 = vpop.f32.mrf.mxu2  ;;  %v1374_v49 = vpop.f32.mrf.mxu3 }
 0x29f   : > { %v1286_v59 = vadd.f32 %v1285_v36, %v6114_v58 }
 0x2a0   : > { %v922_v1 = vpop.f32.mrf.mxu0  ;;  %v1011_v50 = vpop.f32.mrf.mxu1 }
 0x2a1   : > { %v6117_v2 = vadd.f32 %v1374_v49, %v1286_v59 }
 0x2a3   : > { %1467 = vmatmul.bf16.gmra.mxu0 %v6036_v42  ;;  %1556 = vmatmul.bf16.gmra.mxu1 %v6038_v43 }
 0x2a6   : > { %v1287_v4 = vpop.f32.mrf.mxu2  ;;  %v1376_v12 = vpop.f32.mrf.mxu3 }
 0x2a7   : > { %v1288_v14 = vadd.f32 %v1287_v4, %v6114_v58 }
 0x2a8   : > { %v924_v15 = vpop.f32.mrf.mxu0  ;;  %v1013_v52 = vpop.f32.mrf.mxu1 }
 0x2a9   : > { %v6122_v16 = vadd.f32 %v1376_v12, %v1288_v14  ;;  %v6124_v19 = vpack.c.bf16 %v924_v15, %v922_v1  ;;  %v6126_v20 = vpack.c.bf16 %v1013_v52, %v1011_v50 }
 0x2ab   : > { %1329 = vmatmul.bf16.gmra.mxu2 %v6124_v19  ;;  %1418 = vmatmul.bf16.gmra.mxu3 %v6126_v20 }
 0x2ae   : > { %v1290_v21 = vpop.f32.mrf.mxu2  ;;  %v1379_v42 = vpop.f32.mrf.mxu3 }
 0x2af   : > { %v1291_v43 = vadd.f32 %v1290_v21, %v6114_v58 }
 0x2b0   : > { %v927_v23 = vpop.f32.mrf.mxu0  ;;  %v1016_v24 = vpop.f32.mrf.mxu1 }
 0x2b1   : > { %v6131_v29 = vadd.f32 %v1379_v42, %v1291_v43 }
 0x2b3   : > { %1472 = vmatmul.bf16.gmra.mxu0 %v6046_v63  ;;  %1561 = vmatmul.bf16.gmra.mxu1 %v6048_v0 }
 0x2b6   : > { %v1292_v62 = vpop.f32.mrf.mxu2  ;;  %v1381_v9 = vpop.f32.mrf.mxu3 }
 0x2b7   : > { %v1293_v31 = vadd.f32 %v1292_v62, %v6114_v58 }
 0x2b8   : > { %v929_v26 = vpop.f32.mrf.mxu0  ;;  %v1018_v35 = vpop.f32.mrf.mxu1 }
 0x2b9   : > { %v6136_v32 = vadd.f32 %v1381_v9, %v1293_v31  ;;  %v6138_v46 = vpack.c.bf16 %v929_v26, %v927_v23  ;;  %v6140_v48 = vpack.c.bf16 %v1018_v35, %v1016_v24 }
 0x2bb   : > { %1334 = vmatmul.bf16.gmra.mxu2 %v6138_v46  ;;  %1423 = vmatmul.bf16.gmra.mxu3 %v6140_v48 }
 0x2be   : > { %v1295_v38 = vpop.f32.mrf.mxu2  ;;  %v1384_v63 = vpop.f32.mrf.mxu3 }
 0x2bf   : > { %v1296_v0 = vadd.f32 %v1295_v38, %v6114_v58 }
 0x2c0   : > { %v932_v33 = vpop.f32.mrf.mxu0  ;;  %v1021_v40 = vpop.f32.mrf.mxu1 }
 0x2c1   : > { %v6145_v41 = vadd.f32 %v1384_v63, %v1296_v0 }
 0x2c3   : > { %1477 = vmatmul.bf16.gmra.mxu0 %v6056_v5  ;;  %1566 = vmatmul.bf16.gmra.mxu1 %v6058_v11 }
 0x2c6   : > { %v1297_v51 = vpop.f32.mrf.mxu2  ;;  %v1386_v53 = vpop.f32.mrf.mxu3 }
 0x2c7   : > { %v1298_v37 = vadd.f32 %v1297_v51, %v6114_v58 }
 0x2c8   : > { %v934_v54 = vpop.f32.mrf.mxu0  ;;  %v1023_v36 = vpop.f32.mrf.mxu1 }
 0x2c9   : > { %v6150_v49 = vadd.f32 %v1386_v53, %v1298_v37  ;;  %v6152_v59 = vpack.c.bf16 %v934_v54, %v932_v33  ;;  %v6154_v1 = vpack.c.bf16 %v1023_v36, %v1021_v40  ;;  %v6197_v54 = vperm.slane %v6105_v55, 1 }
 0x2cb   : > { %1339 = vmatmul.bf16.gmra.mxu2 %v6152_v59  ;;  %1428 = vmatmul.bf16.gmra.mxu3 %v6154_v1 }
 0x2ce   : > { %v1300_v50 = vpop.f32.mrf.mxu2  ;;  %v1389_v5 = vpop.f32.mrf.mxu3 }
 0x2cf   : > { %v1301_v11 = vadd.f32 %v1300_v50, %v6114_v58 }
 0x2d0   : > { %v937_v4 = vpop.f32.mrf.mxu0  ;;  %v1026_v12 = vpop.f32.mrf.mxu1 }
 0x2d1   : > { %v6159_v14 = vadd.f32 %v1389_v5, %v1301_v11 }
 0x2d3   : > { %1482 = vmatmul.bf16.gmra.mxu0 %v6066_v25  ;;  %1571 = vmatmul.bf16.gmra.mxu1 %v6068_v27 }
 0x2d6   : > { %v1302_v15 = vpop.f32.mrf.mxu2  ;;  %v1391_v21 = vpop.f32.mrf.mxu3 }
 0x2d7   : > { %v1303_v52 = vadd.f32 %v1302_v15, %v6114_v58 }
 0x2d8   : > { %v939_v42 = vpop.f32.mrf.mxu0  ;;  %v1028_v43 = vpop.f32.mrf.mxu1 }
 0x2d9   : > { %v6164_v23 = vadd.f32 %v1391_v21, %v1303_v52  ;;  %v6166_v24 = vpack.c.bf16 %v939_v42, %v937_v4  ;;  %v6168_v62 = vpack.c.bf16 %v1028_v43, %v1026_v12 }
 0x2db   : > { %1344 = vmatmul.bf16.gmra.mxu2 %v6166_v24  ;;  %1433 = vmatmul.bf16.gmra.mxu3 %v6168_v62 }
 0x2e0   : > { %v942_v9 = vpop.f32.mrf.mxu0  ;;  %v1031_v25 = vpop.f32.mrf.mxu1 }
 0x2e3   : > { %1487 = vmatmul.bf16.gmra.mxu0 %v6076_v13  ;;  %1576 = vmatmul.bf16.gmra.mxu1 %v6078_v22 }
 0x2e8   : > { %v944_v27 = vpop.f32.mrf.mxu0  ;;  %v1033_v31 = vpop.f32.mrf.mxu1 }
 0x2e9   : > { %v6174_v26 = vpack.c.bf16 %v944_v27, %v942_v9  ;;  %v6176_v35 = vpack.c.bf16 %v1033_v31, %v1031_v25 }
 0x2eb   : > { %1349 = vmatmul.bf16.gmra.mxu2 %v6174_v26  ;;  %1438 = vmatmul.bf16.gmra.mxu3 %v6176_v35 }
 0x2f0   : > { %v947_v38 = vpop.f32.mrf.mxu0  ;;  %v1036_v63 = vpop.f32.mrf.mxu1 }
 0x2f3   : > { %1492 = vmatmul.bf16.gmra.mxu0 %v6086_v7  ;;  %1581 = vmatmul.bf16.gmra.mxu1 %v6088_v39 }
 0x2f8   : > { %v949_v0 = vpop.f32.mrf.mxu0  ;;  %v1038_v13 = vpop.f32.mrf.mxu1 }
 0x2f9   : > { %v6182_v33 = vpack.c.bf16 %v949_v0, %v947_v38  ;;  %v6184_v22 = vpack.c.bf16 %v1038_v13, %v1036_v63  ;;  %v6220_v63 = vpop.f32.mrf.mxu2  ;;  %v6225_v13 = vpop.f32.mrf.mxu3 }
 0x2fb   : > { %1354 = vmatmul.bf16.gmra.mxu2 %v6182_v33  ;;  %1443 = vmatmul.bf16.gmra.mxu3 %v6184_v22 }
 0x300   : > { %v952_v40 = vpop.f32.mrf.mxu0  ;;  %v1041_v51 = vpop.f32.mrf.mxu1 }
 0x303   : > { %1497 = vmatmul.bf16.gmra.mxu0 %v6094_v28  ;;  %1586 = vmatmul.bf16.gmra.mxu1 %v6096_v44 }
 0x308   : > { %v954_v53 = vpop.f32.mrf.mxu0  ;;  %v1043_v7 = vpop.f32.mrf.mxu1 }
 0x309   : > { %v6190_v37 = vpack.c.bf16 %v954_v53, %v952_v40  ;;  %v6192_v39 = vpack.c.bf16 %v1043_v7, %v1041_v51  ;;  %v6228_v7 = vpop.f32.mrf.mxu2 }
 0x30b   : > { %1359 = vmatmul.bf16.gmra.mxu2 %v6190_v37  ;;  %1448 = vmatmul.bf16.gmra.mxu3 %v6192_v39 }
 0x310   : > { %v1463_v36 = vpop.f32.mrf.mxu0  ;;  %v1552_v50 = vpop.f32.mrf.mxu1 }
 0x311   : > { %v1464_v5 = vadd.f32 %v1463_v36, %v6197_v54 }
 0x313   : > { %v6200_v28 = vadd.f32 %v1552_v50, %v1464_v5  ;;  %1502 = vmatmul.bf16.gmra.mxu0 %v6107_v56  ;;  %1591 = vmatmul.bf16.gmra.mxu1 %v6109_v57  ;;  %v6234_v50 = vpop.f32.mrf.mxu3 }
 0x318   : > { %v1465_v44 = vpop.f32.mrf.mxu0  ;;  %v1554_v11 = vpop.f32.mrf.mxu1 }
 0x319   : > { %v1466_v4 = vadd.f32 %v1465_v44, %v6197_v54 }
 0x31b   : > { %v6205_v12 = vadd.f32 %v1554_v11, %v1466_v4  ;;  %v1310_v11 = vpop.f32.mrf.mxu2 }
 0x320   : > { %v1468_v15 = vpop.f32.mrf.mxu0  ;;  %v1557_v52 = vpop.f32.mrf.mxu1 }
 0x321   : > { %v1469_v55 = vadd.f32 %v1468_v15, %v6197_v54 }
 0x323   : > { %v6208_v21 = vadd.f32 %v1557_v52, %v1469_v55  ;;  %1507 = vmatmul.bf16.gmra.mxu0 %v6124_v19  ;;  %1596 = vmatmul.bf16.gmra.mxu1 %v6126_v20  ;;  %v1399_v52 = vpop.f32.mrf.mxu3 }
 0x328   : > { %v1470_v42 = vpop.f32.mrf.mxu0  ;;  %v1559_v56 = vpop.f32.mrf.mxu1 }
 0x329   : > { %v1471_v57 = vadd.f32 %v1470_v42, %v6197_v54 }
 0x32b   : > { %v6213_v43 = vadd.f32 %v1559_v56, %v1471_v57  ;;  %v1401_v42 = vpop.f32.mrf.mxu3 }
 0x330   : > { %v1473_v9 = vpop.f32.mrf.mxu0  ;;  %v1562_v25 = vpop.f32.mrf.mxu1 }
 0x331   : > { %v1474_v27 = vadd.f32 %v1473_v9, %v6197_v54 }
 0x333   : > { %v6216_v31 = vadd.f32 %v1562_v25, %v1474_v27  ;;  %1512 = vmatmul.bf16.gmra.mxu0 %v6138_v46  ;;  %1601 = vmatmul.bf16.gmra.mxu1 %v6140_v48  ;;  %v1404_v25 = vpop.f32.mrf.mxu3 }
 0x338   : > { %v1475_v38 = vpop.f32.mrf.mxu0  ;;  %v1564_v19 = vpop.f32.mrf.mxu1 }
 0x339   : > { %v1476_v20 = vadd.f32 %v1475_v38, %v6197_v54 }
 0x33b   : > { %v6223_v0 = vadd.f32 %v1564_v19, %v1476_v20 }
 0x340   : > { %v1478_v40 = vpop.f32.mrf.mxu0  ;;  %v1567_v51 = vpop.f32.mrf.mxu1 }
 0x341   : > { %v1479_v53 = vadd.f32 %v1478_v40, %v6197_v54  ;;  %v1406_v40 = vpop.f32.mrf.mxu3 }
 0x343   : > { %v6230_v36 = vadd.f32 %v1567_v51, %v1479_v53  ;;  %1517 = vmatmul.bf16.gmra.mxu0 %v6152_v59  ;;  %1606 = vmatmul.bf16.gmra.mxu1 %v6154_v1  ;;  %v1312_v59 = vpop.f32.mrf.mxu2 }
 0x348   : > { %v1480_v46 = vpop.f32.mrf.mxu0  ;;  %v1569_v48 = vpop.f32.mrf.mxu1 }
 0x349   : > { %v1481_v5 = vadd.f32 %v1480_v46, %v6197_v54 }
 0x34b   : > { %v6237_v44 = vadd.f32 %v1569_v48, %v1481_v5  ;;  %v1315_v9 = vpop.f32.mrf.mxu2  ;;  %v1311_v5 = vadd.f32 %v1310_v11, %v6114_v58 }
 0x350   : > { %v1483_v4 = vpop.f32.mrf.mxu0  ;;  %v6239_v15 = vpop.f32.mrf.mxu1 }
 0x353   : > { %1522 = vmatmul.bf16.gmra.mxu0 %v6166_v24  ;;  %1611 = vmatmul.bf16.gmra.mxu1 %v6168_v62  ;;  %v1317_v19 = vpop.f32.mrf.mxu2  ;;  %v1316_v24 = vadd.f32 %v1315_v9, %v6114_v58 }
 0x354   : > { %v1318_v9 = vadd.f32 %v1317_v19, %v6114_v58 }
 0x355   : > { %v6251_v53 = vadd.f32 %v1404_v25, %v1316_v24 }
 0x358   : > { %v6243_v55 = vpop.f32.mrf.mxu0  ;;  %v6245_v1 = vpop.f32.mrf.mxu1 }
 0x360   : > { %v1488_v56 = vpop.f32.mrf.mxu0  ;;  %v1577_v57 = vpop.f32.mrf.mxu1 }
 0x363   : > { %1527 = vmatmul.bf16.gmra.mxu0 %v6174_v26  ;;  %1616 = vmatmul.bf16.gmra.mxu1 %v6176_v35  ;;  %v1320_v26 = vpop.f32.mrf.mxu2  ;;  %v1489_v35 = vadd.f32 %v1488_v56, %v6197_v54 }
 0x365   : > { %v6262_v24 = vadd.f32 %v1577_v57, %v1489_v35  ;;  %v1313_v57 = vadd.f32 %v1312_v59, %v6114_v58  ;;  %v1321_v35 = vadd.f32 %v1320_v26, %v6114_v58  ;;  %v1484_v26 = vadd.f32 %v1483_v4, %v6197_v54 }
 0x368   : > { %v1490_v27 = vpop.f32.mrf.mxu0  ;;  %v1579_v38 = vpop.f32.mrf.mxu1 }
 0x369   : > { %v1491_v47 = vadd.f32 %v1490_v27, %v6197_v54 }
 0x370   : > { %v1493_v62 = vpop.f32.mrf.mxu0  ;;  %v1582_v20 = vpop.f32.mrf.mxu1 }
 0x371   : > { %v1494_v51 = vadd.f32 %v1493_v62, %v6197_v54 }
 0x373   : > { %v6253_v46 = vadd.f32 %v1582_v20, %v1494_v51  ;;  %1532 = vmatmul.bf16.gmra.mxu0 %v6182_v33  ;;  %1621 = vmatmul.bf16.gmra.mxu1 %v6184_v22  ;;  %v6265_v33 = vadd.f32 %v1399_v52, %v1311_v5  ;;  %v6267_v22 = vadd.f32 %v1406_v40, %v1318_v9  ;;  %v1409_v51 = vpop.f32.mrf.mxu3 }
 0x374   : > { %v6280_v5 = vadd.f32 %v1579_v38, %v1491_v47  ;;  %v6283_v9 = vadd.f32 %v1401_v42, %v1313_v57  ;;  %v1644_v42 = vmax.f32 %v6145_v41, %v6216_v31 }
 0x375   : > { %v1668_v48 = vmax.f32 %v6251_v53, %v6253_v46  ;;  %8609 = vst [vmem:[#allocation42_spill] sm:$0xff] %v6267_v22  ;;  %v1662_v19 = vmax.f32 %v6265_v33, %v6262_v24 }
 0x376   : > { %v1665_v38 = vmax.f32 %v6283_v9, %v6280_v5 }
 0x377   : > { %1669 = vmax.xlane.f32.xlu2 %v1668_v48  ;;  %v6278_v48 = vpop.f32.mrf.mxu2 }
 0x378   : > { %v1495_v62 = vpop.f32.mrf.mxu0  ;;  %v1584_v25 = vpop.f32.mrf.mxu1 }
 0x379   : > { %v1496_v20 = vadd.f32 %v1495_v62, %v6197_v54  ;;  %v6285_v62 = vadd.f32 %v1409_v51, %v1321_v35  ;;  %v6303_v51 = vadd.f32 %v6239_v15, %v1484_v26  ;;  %v1308_v35 = vadd.f32 %v6228_v7, %v6114_v58 }
 0x37a   : > { %v1632_v7 = vmax.f32 %v6117_v2, %v6200_v28 }
 0x37b   : > { %v6269_v56 = vadd.f32 %v1584_v25, %v1496_v20  ;;  %v6291_v59 = vpop.f32.mrf.mxu3  ;;  %v1306_v20 = vadd.f32 %v6220_v63, %v6114_v58  ;;  %v1638_v63 = vmax.f32 %v6131_v29, %v6208_v21 }
 0x37d   : > { %8610 = vst [vmem:[#allocation43_spill] sm:$0xff] %v6269_v56  ;;  %v1671_v11 = vmax.f32 %v6267_v22, %v6269_v56 }
 0x37f   : > { %1672 = vmax.xlane.f32.xlu0 %v1671_v11  ;;  %1663 = vmax.xlane.f32.xlu2 %v1662_v19  ;;  %v1325_v4 = vpop.f32.mrf.mxu2  ;;  %v6306_v11 = vadd.f32 %v6225_v13, %v1306_v20  ;;  %v1486_v19 = vadd.f32 %v6243_v55, %v6197_v54 }
 0x380   : > { %v1498_v52 = vpop.f32.mrf.mxu0  ;;  %v1587_v40 = vpop.f32.mrf.mxu1 }
 0x381   : > { %v1499_v27 = vadd.f32 %v1498_v52, %v6197_v54  ;;  %v1656_v57 = vmax.f32 %v6306_v11, %v6303_v51  ;;  %v6317_v13 = vadd.f32 %v6245_v1, %v1486_v19 }
 0x383   : > { %v6287_v25 = vadd.f32 %v1587_v40, %v1499_v27  ;;  %1537 = vmatmul.bf16.gmra.mxu0 %v6190_v37  ;;  %1626 = vmatmul.bf16.gmra.mxu1 %v6192_v39  ;;  %v1414_v52 = vpop.f32.mrf.mxu3  ;;  %v6320_v27 = vadd.f32 %v6234_v50, %v1308_v35 }
 0x385   : > { %v1674_v47 = vmax.f32 %v6285_v62, %v6287_v25  ;;  %v1659_v26 = vmax.f32 %v6320_v27, %v6317_v13 }
 0x387   : > { %1675 = vmax.xlane.f32.xlu1 %v1674_v47  ;;  %1666 = vmax.xlane.f32.xlu2 %v1665_v38  ;;  %v1327_v55 = vpop.f32.mrf.mxu2 }
 0x388   : > { %1645 = vmax.xlane.f32.xlu0 %v1644_v42  ;;  %v1500_v37 = vpop.f32.mrf.mxu0  ;;  %v1589_v39 = vpop.f32.mrf.mxu1  ;;  %v1328_v38 = vadd.f32 %v1327_v55, %v6114_v58  ;;  %v1326_v42 = vadd.f32 %v1325_v4, %v6114_v58  ;;  %v1650_v4 = vmax.f32 %v6159_v14, %v6230_v36 }
 0x38b   : > { %v1416_v50 = vpop.f32.mrf.mxu3 }
 0x38f   : > { %1657 = vmax.xlane.f32.xlu2 %v1656_v57 }
 0x390   : > { %1639 = vmax.xlane.f32.xlu0 %v1638_v63  ;;  %v1503_v15 = vpop.f32.mrf.mxu0  ;;  %v1592_v40 = vpop.f32.mrf.mxu1  ;;  %v6332_v63 = vadd.f32 %v1416_v50, %v1328_v38  ;;  %v4788_v38 = vld [vmem:[%s8475_s12] sm:$0xff] }
 0x391   : > { %v1504_v47 = vadd.f32 %v1503_v15, %v6197_v54  ;;  %v6336_v15 = vadd.f32 %v1414_v52, %v1326_v42  ;;  %v1647_v52 = vmax.f32 %v6150_v49, %v6223_v0  ;;  %4554 = vmatmul.msk.bf16.vlgmr.msra.gmra.mxu2 %vm716_vm0, %v4788_v38  ;;  %4558 = vmatmul.msk.bf16.vlgmr.msra.gmra.mxu3 %vm716_vm0, %v4788_v38  ;;  %v2120_v42 = vld [vmem:[%s8476_s13] sm:$0xff]  ;;  %v1330_v38 = vpop.f32.mrf.mxu2 }
 0x392   : > { %8612 = vst [vmem:[#allocation45_spill] sm:$0xff] %v6332_v63 }
 0x393   : > { %v6330_v19 = vadd.f32 %v1592_v40, %v1504_v47  ;;  %8614 = vst [vmem:[#allocation47_spill] sm:$0xff] %v6336_v15  ;;  %v1653_v40 = vmax.f32 %v6164_v23, %v6237_v44  ;;  %v1641_v47 = vmax.f32 %v6136_v32, %v6213_v43  ;;  %v1419_v34 = vpop.f32.mrf.mxu3 }
 0x395   : > { %8611 = vst [vmem:[#allocation44_spill] sm:$0xff] %v6330_v19 }
 0x397   : > { %1660 = vmax.xlane.f32.xlu2 %v1659_v26  ;;  %v1680_v26 = vmax.f32 %v6336_v15, %v6330_v19 }
 0x398   : > { %1633 = vmax.xlane.f32.xlu0 %v1632_v7  ;;  %v1505_v1 = vpop.f32.mrf.mxu0  ;;  %v1594_v57 = vpop.f32.mrf.mxu1  ;;  %v1635_v7 = vmax.f32 %v6122_v16, %v6205_v12 }
 0x399   : > { %v1506_v20 = vadd.f32 %v1505_v1, %v6197_v54 }
 0x39b   : > { %v6334_v35 = vadd.f32 %v1594_v57, %v1506_v20  ;;  %v1501_v57 = vadd.f32 %v1500_v37, %v6197_v54  ;;  %v6390_v8 = vpop.f32.mrf.mxu3 }
 0x39d   : > { %8613 = vst [vmem:[#allocation46_spill] sm:$0xff] %v6334_v35  ;;  %v1683_v55 = vmax.f32 %v6332_v63, %v6334_v35 }
 0x39f   : > { %1684 = vmax.xlane.f32.xlu1 %v1683_v55  ;;  %1651 = vmax.xlane.f32.xlu2 %v1650_v4  ;;  %v1323_v55 = vadd.f32 %v6278_v48, %v6114_v58  ;;  %v6369_v4 = vadd.f32 %v1589_v39, %v1501_v57  ;;  %v6382_v39 = vpop.f32.mrf.mxu2 }
 0x3a0   : > { %1681 = vmax.xlane.f32.xlu0 %v1680_v26  ;;  %v1597_v45 = vpop.f32.mrf.mxu1 }
 0x3a1   : > { %8615 = vst [vmem:[#allocation48_spill] sm:$0xff] %v6369_v4 }
 0x3a7   : > { %1654 = vmax.xlane.f32.xlu2 %v1653_v40  ;;  %v1335_v60 = vpop.f32.mrf.mxu2 }
 0x3a8   : > { %v6388_v18 = vpop.f32.mrf.mxu1 }
 0x3af   : > { %1648 = vmax.xlane.f32.xlu2 %v1647_v52  ;;  %v6374_v52 = vadd.f32 %v6291_v59, %v1323_v55 }
 0x3b1   : > { %8616 = vst [vmem:[#allocation49_spill] sm:$0xff] %v6374_v52 }
 0x3b7   : > { %1642 = vmax.xlane.f32.xlu2 %v1641_v47  ;;  %v1508_v47 = vpop.f32.mrf.mxu0 }
 0x3bf   : > { %1636 = vmax.xlane.f32.xlu2 %v1635_v7  ;;  %v1677_v7 = vmax.f32 %v6374_v52, %v6369_v4  ;;  %v6380_v48 = vpop.f32.mrf.mxu0  ;;  %v6410_v4 = vpop.f32.mrf.mxu2 }
 0x3c7   : > { %v1513_v3 = vpop.f32.mrf.mxu0 }
 0x3cf   : > { %v6406_v35 = vpop.f32.mrf.mxu0 }
 0x3d7   : > { %2130 = vperm.xlu2 %4941, %v2120_v42  }
 0x3ea   : > { %v6360_v1 = vpop.xlane.xlu2 %1669 }
 0x3f2   : > { %v6362_v20 = vpop.xlane.xlu0 %1672  ;;  %v6364_v50 = vpop.xlane.xlu2 %1663 }
 0x3fa   : > { %v6371_v26 = vpop.xlane.xlu2 %1666 }
 0x3fb   : > { %v1646_v40 = vpop.xlane.xlu0 %1645 }
 0x400   : > { %1678 = vmax.xlane.f32.xlu2 %v1677_v7 }
 0x402   : > { %v6378_v42 = vpop.xlane.xlu2 %1657 }
 0x403   : > { %v1640_v37 = vpop.xlane.xlu0 %1639 }
 0x404   : > { %v1732_v6 = vsub.f32 %v6131_v29, %v1640_v37 }
 0x406   : > { %v1800_v15 = vmul.f32 1.442695, %v1732_v6 }
 0x40a   : > { %v6384_v57 = vpop.xlane.xlu2 %1660 }
 0x40b   : > { %v1634_v30 = vpop.xlane.xlu0 %1633 }
 0x40c   : > { %v1728_v59 = vsub.f32 %v6117_v2, %v1634_v30  ;;  %v1729_v55 = vsub.f32 %v6200_v28, %v1634_v30  ;;  %v1602_v2 = vpop.f32.mrf.mxu1  ;;  %v1733_v30 = vsub.f32 %v6208_v21, %v1640_v37  ;;  %v1509_v28 = vadd.f32 %v1508_v47, %v6197_v54 }
 0x40e   : > { %v1792_v17 = vmul.f32 1.442695, %v1728_v59  ;;  %v1794_v7 = vmul.f32 1.442695, %v1729_v55  ;;  %v1802_v29 = vmul.f32 1.442695, %v1733_v30  ;;  %v6408_v63 = vadd.f32 %v1597_v45, %v1509_v28  ;;  %v1518_v30 = vpop.f32.mrf.mxu0  ;;  %v1340_v28 = vpop.f32.mrf.mxu2 }
 0x410   : > { %4943 = vpow2.f32 %v1792_v17  ;;  %v1424_v17 = vpop.f32.mrf.mxu3  ;;  %8619 = vst [vmem:[#allocation52_spill] sm:$0xff] %v6408_v63 }
 0x411   : > { %4945 = vpow2.f32 %v1794_v7  ;;  %v1331_v7 = vadd.f32 %v1330_v38, %v6114_v58 }
 0x412   : > { %v6392_v61 = vpop.xlane.xlu2 %1651  ;;  %4947 = vpow2.f32 %v1800_v15  ;;  %v1737_v15 = vsub.f32 %v6216_v31, %v1646_v40 }
 0x413   : > { %v6412_v21 = vadd.f32 %v1419_v34, %v1331_v7  ;;  %4949 = vpow2.f32 %v1802_v29  ;;  %v1736_v34 = vsub.f32 %v6145_v41, %v1646_v40 }
 0x414   : > { %v6416_v37 = vpop.f32.mrf.mxu1 }
 0x415   : > { %8620 = vst [vmem:[#allocation53_spill] sm:$0xff] %v6412_v21  ;;  %v1686_v47 = vmax.f32 %v6412_v21, %v6408_v63  ;;  %v1810_v21 = vmul.f32 1.442695, %v1737_v15 }
 0x416   : > { %v6394_v10 = vpop.eup %4943  ;;  %v6436_v41 = vpop.f32.mrf.mxu0 }
 0x417   : > { %8617 = vst [vmem:[#allocation50_spill] sm:$0xff] %v6394_v10  ;;  %v6397_v19 = vpop.eup %4945  ;;  %v6440_v31 = vpop.f32.mrf.mxu2 }
 0x418   : > { %8618 = vst [vmem:[#allocation51_spill] sm:$0xff] %v6397_v19  ;;  %v1920_v59 = vadd.f32 %v6397_v19, %v6394_v10  ;;  %v6420_v6 = vpop.f32.mrf.mxu3  ;;  %v6422_v38 = vpop.eup %4947  ;;  %v1808_v10 = vmul.f32 1.442695, %v1736_v34 }
 0x419   : > { %8621 = vst [vmem:[#allocation54_spill] sm:$0xff] %v6422_v38  ;;  %v6424_v45 = vpop.eup %4949 }
 0x41a   : > { %v6403_v55 = vpop.xlane.xlu2 %1654  ;;  %1921 = vadd.xlane.f32.xlu0 %v1920_v59  ;;  %8622 = vst [vmem:[#allocation55_spill] sm:$0xff] %v6424_v45  ;;  %v1514_v59 = vadd.f32 %v1513_v3, %v6197_v54  ;;  %v1926_v7 = vadd.f32 %v6424_v45, %v6422_v38  ;;  %4951 = vpow2.f32 %v1808_v10 }
 0x41b   : > { %4953 = vpow2.f32 %v1810_v21  ;;  %v1740_v21 = vsub.f32 %v6159_v14, %v6392_v61 }
 0x41c   : > { %v1607_v63 = vpop.f32.mrf.mxu1  ;;  %v6432_v52 = vadd.f32 %v1602_v2, %v1514_v59 }
 0x41e   : > { %8623 = vst [vmem:[#allocation56_spill] sm:$0xff] %v6432_v52 }
 0x420   : > { %v1429_v56 = vpop.f32.mrf.mxu3  ;;  %v6444_v2 = vpop.eup %4951 }
 0x421   : > { %v6446_v59 = vpop.eup %4953 }
 0x422   : > { %v6418_v19 = vpop.xlane.xlu2 %1648  ;;  %1687 = vmax.xlane.f32.xlu0 %v1686_v47  ;;  %v1336_v47 = vadd.f32 %v1335_v60, %v6114_v58 }
 0x424   : > { %v6434_v22 = vadd.f32 %v1424_v17, %v1336_v47  ;;  %v6448_v10 = vpop.f32.mrf.mxu1  ;;  %v1741_v47 = vsub.f32 %v6230_v36, %v6392_v61 }
 0x426   : > { %8624 = vst [vmem:[#allocation57_spill] sm:$0xff] %v6434_v22  ;;  %v1692_v3 = vmax.f32 %v6434_v22, %v6432_v52  ;;  %v1818_v45 = vmul.f32 1.442695, %v1741_v47 }
 0x42a   : > { %v1643_v29 = vpop.xlane.xlu2 %1642  ;;  %1927 = vadd.xlane.f32.xlu0 %v1926_v7  ;;  %v6452_v7 = vpop.f32.mrf.mxu3 }
 0x42b   : > { %v1734_v38 = vsub.f32 %v6136_v32, %v1643_v29  ;;  %v1735_v36 = vsub.f32 %v6213_v43, %v1643_v29 }
 0x42d   : > { %v1804_v47 = vmul.f32 1.442695, %v1734_v38 }
 0x432   : > { %v1637_v40 = vpop.xlane.xlu2 %1636  ;;  %1693 = vmax.xlane.f32.xlu0 %v1692_v3  ;;  %v1523_v3 = vpop.f32.mrf.mxu0 }
 0x433   : > { %v1730_v60 = vsub.f32 %v6122_v16, %v1637_v40  ;;  %v1731_v34 = vsub.f32 %v6205_v12, %v1637_v40  ;;  %v1519_v16 = vadd.f32 %v1518_v30, %v6197_v54  ;;  %v1932_v12 = vadd.f32 %v6446_v59, %v6444_v2  ;;  %v1434_v43 = vpop.f32.mrf.mxu3 }
 0x434   : > { %v1341_v40 = vadd.f32 %v1340_v28, %v6114_v58 }
 0x435   : > { %v1796_v15 = vmul.f32 1.442695, %v1730_v60  ;;  %v1798_v17 = vmul.f32 1.442695, %v1731_v34  ;;  %v1816_v60 = vmul.f32 1.442695, %v1740_v21  ;;  %v1345_v34 = vpop.f32.mrf.mxu2  ;;  %v1612_v21 = vpop.f32.mrf.mxu1 }
 0x436   : > { %v6468_v30 = vadd.f32 %v1429_v56, %v1341_v40  ;;  %v1806_v56 = vmul.f32 1.442695, %v1735_v36  ;;  %v1745_v40 = vsub.f32 %v6303_v51, %v6378_v42 }
 0x437   : > { %4955 = vpow2.f32 %v1796_v15  ;;  %v6462_v15 = vadd.f32 %v1607_v63, %v1519_v16  ;;  %v1333_v63 = vadd.f32 %v6382_v39, %v6114_v58 }
 0x438   : > { %4957 = vpow2.f32 %v1798_v17  ;;  %v1511_v17 = vadd.f32 %v6380_v48, %v6197_v54 }
 0x439   : > { %4959 = vpow2.f32 %v1816_v60  ;;  %v1698_v32 = vmax.f32 %v6468_v30, %v6462_v15  ;;  %v1524_v60 = vadd.f32 %v1523_v3, %v6197_v54 }
 0x43a   : > { %1933 = vadd.xlane.f32.xlu0 %v1932_v12  ;;  %4961 = vpow2.f32 %v1818_v45  ;;  %v6479_v29 = vadd.f32 %v6388_v18, %v1511_v17  ;;  %v6481_v48 = vpop.f32.mrf.mxu0  ;;  %v6486_v45 = vadd.f32 %v6390_v8, %v1333_v63  ;;  %v1744_v12 = vsub.f32 %v6306_v11, %v6378_v42 }
 0x43b   : > { %4963 = vpow2.f32 %v1804_v47  ;;  %v6508_v47 = vpop.f32.mrf.mxu3  ;;  %v6510_v51 = vadd.f32 %v1612_v21, %v1524_v60  ;;  %v1738_v42 = vsub.f32 %v6150_v49, %v6418_v19  ;;  %v1338_v21 = vadd.f32 %v6410_v4, %v6114_v58 }
 0x43c   : > { %4965 = vpow2.f32 %v1806_v56  ;;  %v1689_v18 = vmax.f32 %v6486_v45, %v6479_v29  ;;  %v1824_v63 = vmul.f32 1.442695, %v1744_v12  ;;  %v1739_v56 = vsub.f32 %v6223_v0, %v6418_v19 }
 0x43d   : > { %v6460_v14 = vpop.eup %4955  ;;  %v6490_v38 = vpop.f32.mrf.mxu2  ;;  %v6532_v60 = vadd.f32 %v6420_v6, %v1338_v21 }
 0x43e   : > { %8625 = vst [vmem:[#allocation58_spill] sm:$0xff] %v6460_v14  ;;  %v6465_v61 = vpop.eup %4957  ;;  %v6501_v36 = vpop.f32.mrf.mxu1  ;;  %4967 = vpow2.f32 %v1824_v63  ;;  %v1814_v0 = vmul.f32 1.442695, %v1739_v56  ;;  %v1748_v63 = vsub.f32 %v6265_v33, %v6364_v50 }
 0x43f   : > { %8626 = vst [vmem:[#allocation59_spill] sm:$0xff] %v6465_v61  ;;  %v1923_v28 = vadd.f32 %v6465_v61, %v6460_v14  ;;  %v6483_v16 = vpop.eup %4959 }
 0x440   : > { %v6488_v39 = vpop.eup %4961  ;;  %v1832_v21 = vmul.f32 1.442695, %v1748_v63 }
 0x441   : > { %1924 = vadd.xlane.f32.xlu2 %v1923_v28  ;;  %v1938_v8 = vadd.f32 %v6488_v39, %v6483_v16  ;;  %v6503_v17 = vpop.eup %4963  ;;  %v1346_v28 = vadd.f32 %v1345_v34, %v6114_v58  ;;  %v1516_v34 = vadd.f32 %v6406_v35, %v6197_v54 }
 0x442   : > { %1699 = vmax.xlane.f32.xlu0 %v1698_v32  ;;  %8627 = vst [vmem:[#allocation60_spill] sm:$0xff] %v6503_v17  ;;  %v6506_v11 = vpop.eup %4965  ;;  %v1826_v32 = vmul.f32 1.442695, %v1745_v40  ;;  %v1528_v3 = vpop.f32.mrf.mxu0  ;;  %v1812_v40 = vmul.f32 1.442695, %v1738_v42  ;;  %v1749_v42 = vsub.f32 %v6262_v24, %v6364_v50  ;;  %v1742_v24 = vsub.f32 %v6164_v23, %v6403_v55 }
 0x443   : > { %8628 = vst [vmem:[#allocation61_spill] sm:$0xff] %v6506_v11  ;;  %v1929_v12 = vadd.f32 %v6506_v11, %v6503_v17  ;;  %v6527_v19 = vadd.f32 %v6416_v37, %v1516_v34  ;;  %v1439_v4 = vpop.f32.mrf.mxu3  ;;  %v1529_v56 = vadd.f32 %v1528_v3, %v6197_v54  ;;  %v1743_v3 = vsub.f32 %v6237_v44, %v6403_v55 }
 0x444   : > { %4969 = vpow2.f32 %v1826_v32  ;;  %v1343_v23 = vadd.f32 %v6440_v31, %v6114_v58  ;;  %v1752_v31 = vsub.f32 %v6251_v53, %v6360_v1 }
 0x445   : > { %4971 = vpow2.f32 %v1812_v40  ;;  %v1695_v32 = vmax.f32 %v6532_v60, %v6527_v19 }
 0x446   : > { %v1617_v35 = vpop.f32.mrf.mxu1  ;;  %4973 = vpow2.f32 %v1814_v0 }
 0x447   : > { %v6554_v0 = vadd.f32 %v1617_v35, %v1529_v56  ;;  %4975 = vpow2.f32 %v1832_v21  ;;  %v1820_v35 = vmul.f32 1.442695, %v1742_v24 }
 0x449   : > { %1690 = vmax.xlane.f32.xlu2 %v1689_v18  ;;  %v6516_v18 = vadd.f32 %v1434_v43, %v1346_v28  ;;  %v6529_v43 = vpop.eup %4967 }
 0x44a   : > { %1939 = vadd.xlane.f32.xlu0 %v1938_v8  ;;  %v1350_v8 = vpop.f32.mrf.mxu2  ;;  %v6534_v28 = vpop.eup %4969 }
 0x44b   : > { %v1704_v49 = vmax.f32 %v6516_v18, %v6510_v51  ;;  %v6540_v37 = vpop.f32.mrf.mxu0  ;;  %v1944_v6 = vadd.f32 %v6534_v28, %v6529_v43  ;;  %v1351_v33 = vadd.f32 %v1350_v8, %v6114_v58  ;;  %v1521_v8 = vadd.f32 %v6436_v41, %v6197_v54 }
 0x44d   : > { %v6575_v56 = vadd.f32 %v6448_v10, %v1521_v8  ;;  %v1753_v10 = vsub.f32 %v6253_v46, %v6360_v1  ;;  %v1746_v1 = vsub.f32 %v6320_v27, %v6384_v57 }
 0x44e   : > { %v6558_v50 = vpop.f32.mrf.mxu1 }
 0x451   : > { %1930 = vadd.xlane.f32.xlu2 %v1929_v12  ;;  %v6549_v12 = vpop.eup %4971 }
 0x452   : > { %1705 = vmax.xlane.f32.xlu0 %v1704_v49  ;;  %v6547_v34 = vpop.f32.mrf.mxu2  ;;  %v6552_v40 = vpop.eup %4973  ;;  %v1834_v49 = vmul.f32 1.442695, %v1749_v42 }
 0x453   : > { %v1935_v63 = vadd.f32 %v6552_v40, %v6549_v12  ;;  %v6568_v42 = vpop.f32.mrf.mxu3  ;;  %v1533_v55 = vpop.f32.mrf.mxu0 }
 0x454   : > { %4977 = vpow2.f32 %v1834_v49 }
 0x455   : > { %4979 = vpow2.f32 %v1820_v35  ;;  %v1840_v35 = vmul.f32 1.442695, %v1752_v31 }
 0x456   : > { %v1622_v24 = vpop.f32.mrf.mxu1 }
 0x459   : > { %1696 = vmax.xlane.f32.xlu2 %v1695_v32  ;;  %v6562_v32 = vadd.f32 %v1439_v4, %v1351_v33  ;;  %v1822_v4 = vmul.f32 1.442695, %v1743_v3  ;;  %v6580_v33 = vadd.f32 %v6452_v7, %v1343_v23  ;;  %v1534_v3 = vadd.f32 %v1533_v55, %v6197_v54 }
 0x45a   : > { %1945 = vadd.xlane.f32.xlu0 %v1944_v6  ;;  %v1355_v41 = vpop.f32.mrf.mxu2  ;;  %v6577_v6 = vpop.eup %4975 }
 0x45b   : > { %v1710_v44 = vmax.f32 %v6562_v32, %v6554_v0  ;;  %v6582_v21 = vpop.eup %4977  ;;  %4981 = vpow2.f32 %v1822_v4  ;;  %v1701_v49 = vmax.f32 %v6580_v33, %v6575_v56  ;;  %v1444_v8 = vpop.f32.mrf.mxu3  ;;  %v1356_v23 = vadd.f32 %v1355_v41, %v6114_v58 }
 0x45c   : > { %v1950_v7 = vadd.f32 %v6582_v21, %v6577_v6  ;;  %v6598_v4 = vpop.f32.mrf.mxu0  ;;  %v6600_v46 = vadd.f32 %v1622_v24, %v1534_v3  ;;  %v1526_v41 = vadd.f32 %v6481_v48, %v6197_v54  ;;  %4983 = vpow2.f32 %v1840_v35 }
 0x45d   : > { %v6608_v61 = vadd.f32 %v1444_v8, %v1356_v23  ;;  %v1828_v24 = vmul.f32 1.442695, %v1746_v1 }
 0x45e   : > { %v6618_v3 = vpop.f32.mrf.mxu1 }
 0x45f   : > { %v1716_v27 = vmax.f32 %v6608_v61, %v6600_v46 }
 0x461   : > { %1936 = vadd.xlane.f32.xlu2 %v1935_v63  ;;  %v6593_v63 = vpop.eup %4979 }
 0x462   : > { %1711 = vmax.xlane.f32.xlu0 %v1710_v44  ;;  %v6596_v53 = vpop.eup %4981  ;;  %v1842_v44 = vmul.f32 1.442695, %v1753_v10  ;;  %v6604_v55 = vpop.f32.mrf.mxu2  ;;  %v1348_v10 = vadd.f32 %v6490_v38, %v6114_v58 }
 0x463   : > { %v1941_v31 = vadd.f32 %v6596_v53, %v6593_v63  ;;  %v6623_v48 = vpop.f32.mrf.mxu3  ;;  %v6625_v8 = vpop.eup %4983 }
 0x464   : > { %4985 = vpow2.f32 %v1842_v44  ;;  %8629 = vst [vmem:[#allocation62_spill] sm:$0xff] %v6625_v8  ;;  %v6628_v23 = vadd.f32 %v6508_v47, %v1348_v10  ;;  %v1538_v35 = vpop.f32.mrf.mxu0 }
 0x465   : > { %4987 = vpow2.f32 %v1828_v24 }
 0x469   : > { %1702 = vmax.xlane.f32.xlu2 %v1701_v49  ;;  %v1747_v49 = vsub.f32 %v6317_v13, %v6384_v57  ;;  %v6621_v57 = vadd.f32 %v6501_v36, %v1526_v41  ;;  %v1539_v41 = vadd.f32 %v1538_v35, %v6197_v54 }
 0x46a   : > { %1951 = vadd.xlane.f32.xlu0 %v1950_v7  ;;  %v1676_v7 = vpop.xlane.xlu1 %1675  ;;  %v6630_v38 = vpop.eup %4985 }
 0x46b   : > { %v1830_v13 = vmul.f32 1.442695, %v1747_v49  ;;  %8630 = vst [vmem:[#allocation63_spill] sm:$0xff] %v6630_v38  ;;  %v1756_v44 = vsub.f32 %v6285_v62, %v1676_v7  ;;  %v1707_v36 = vmax.f32 %v6628_v23, %v6621_v57  ;;  %v1360_v1 = vpop.f32.mrf.mxu2  ;;  %v1757_v49 = vsub.f32 %v6287_v25, %v1676_v7  ;;  %v4789_v62 = vld [vmem:[%s8475_s12 + $0x8] sm:$0xff]  ;;  %v1627_v25 = vpop.f32.mrf.mxu1 }
 0x46c   : > { %v1956_v47 = vadd.f32 %v6630_v38, %v6625_v8  ;;  %v1361_v10 = vadd.f32 %v1360_v1, %v6114_v58  ;;  %v1750_v7 = vsub.f32 %v6283_v9, %v6371_v26  ;;  %v6649_v35 = vadd.f32 %v1627_v25, %v1539_v41  ;;  %4559 = vmatmul.msk.bf16.gmra.mxu3 %vm716_vm0, %v4789_v62 }
 0x46d   : > { %4989 = vpow2.f32 %v1830_v13  ;;  %v1848_v24 = vmul.f32 1.442695, %v1756_v44  ;;  %v1850_v13 = vmul.f32 1.442695, %v1757_v49  ;;  %4555 = vmatmul.msk.bf16.gmra.mxu2 %vm716_vm0, %v4789_v62  ;;  %v1751_v44 = vsub.f32 %v6280_v5, %v6371_v26 }
 0x46e   : > { %v1353_v9 = vadd.f32 %v6547_v34, %v6114_v58  ;;  %v1836_v41 = vmul.f32 1.442695, %v1750_v7  ;;  %v6675_v34 = vpop.xlane.xlu0 %1681 }
 0x46f   : > { %4991 = vpow2.f32 %v1848_v24  ;;  %v1838_v25 = vmul.f32 1.442695, %v1751_v44  ;;  %v8634_v44 = vld [vmem:[#allocation43_spill] sm:$0xff] }
 0x470   : > { %4993 = vpow2.f32 %v1850_v13 }
 0x471   : > { %1942 = vadd.xlane.f32.xlu2 %v1941_v31  ;;  %v6639_v31 = vpop.eup %4987  ;;  %4995 = vpow2.f32 %v1836_v41 }
 0x472   : > { %1717 = vmax.xlane.f32.xlu0 %v1716_v27  ;;  %4997 = vpow2.f32 %v1838_v25 }
 0x473   : > { %v6645_v27 = vpop.eup %4989 }
 0x474   : > { %v1947_v49 = vadd.f32 %v6645_v27, %v6639_v31 }
 0x475   : > { %v6668_v26 = vpop.eup %4991 }
 0x476   : > { %8631 = vst [vmem:[#allocation64_spill] sm:$0xff] %v6668_v26 }
 0x479   : > { %1708 = vmax.xlane.f32.xlu2 %v1707_v36  ;;  %v1449_v36 = vpop.f32.mrf.mxu3 }
 0x47a   : > { %1957 = vadd.xlane.f32.xlu0 %v1956_v47  ;;  %v6655_v1 = vadd.f32 %v1449_v36, %v1361_v10  ;;  %v1531_v47 = vadd.f32 %v6540_v37, %v6197_v54  ;;  %v6671_v37 = vadd.f32 %v6568_v42, %v1353_v9  ;;  %v6673_v10 = vpop.eup %4993  ;;  %v8633_v42 = vld [vmem:[#allocation42_spill] sm:$0xff]  ;;  %v1536_v9 = vadd.f32 %v6598_v4, %v6197_v54 }
 0x47b   : > { %8632 = vst [vmem:[#allocation65_spill] sm:$0xff] %v6673_v10  ;;  %v6681_v13 = vpop.eup %4995  ;;  %v1754_v36 = vsub.f32 %v8633_v42, %v6362_v20 }
 0x47c   : > { %v1722_v62 = vmax.f32 %v6655_v1, %v6649_v35  ;;  %v6666_v5 = vadd.f32 %v6558_v50, %v1531_v47  ;;  %v1962_v50 = vadd.f32 %v6673_v10, %v6668_v26  ;;  %v6683_v7 = vpop.eup %4997  ;;  %v1755_v47 = vsub.f32 %v8634_v44, %v6362_v20 }
 0x47d   : > { %v1953_v41 = vadd.f32 %v6683_v7, %v6681_v13  ;;  %v1844_v25 = vmul.f32 1.442695, %v1754_v36 }
 0x47e   : > { %v1713_v24 = vmax.f32 %v6671_v37, %v6666_v5 }
 0x47f   : > { %4999 = vpow2.f32 %v1844_v25 }
 0x481   : > { %1948 = vadd.xlane.f32.xlu2 %v1947_v49 }
 0x482   : > { %1723 = vmax.xlane.f32.xlu0 %v1722_v62  ;;  %v1358_v62 = vadd.f32 %v6604_v55, %v6114_v58 }
 0x484   : > { %v6701_v42 = vadd.f32 %v6623_v48, %v1358_v62 }
 0x485   : > { %v6707_v44 = vpop.eup %4999 }
 0x486   : > { %8636 = vst [vmem:[#allocation43_spill] sm:$0xff] %v6707_v44 }
 0x489   : > { %1714 = vmax.xlane.f32.xlu2 %v1713_v24  ;;  %v1846_v24 = vmul.f32 1.442695, %v1755_v47  ;;  %v6718_v47 = vpop.permute.xlu2 %2130 }
 0x48a   : > { %1963 = vadd.xlane.f32.xlu0 %v1962_v50  ;;  %v6698_v50 = vadd.f32 %v6618_v3, %v1536_v9  ;;  %v2121_v3 = vld [vmem:[%s8476_s13 + $0x8] sm:$0xff]  ;;  %8639 = vst [vmem:[#allocation68_spill] sm:$0xff] %v6718_v47 }
 0x48b   : > { %5001 = vpow2.f32 %v1846_v24 }
 0x48c   : > { %v1719_v4 = vmax.f32 %v6701_v42, %v6698_v50 }
 0x48d   : > { %v6689_v49 = vpop.xlane.xlu0 %1921 }
 0x48e   : > { %8635 = vst [vmem:[#allocation42_spill] sm:$0xff] %v6689_v49 }
 0x491   : > { %1954 = vadd.xlane.f32.xlu2 %v1953_v41  ;;  %v6709_v55 = vpop.eup %5001  ;;  %v1679_v41 = vpop.xlane.xlu2 %1678 }
 0x492   : > { %8637 = vst [vmem:[#allocation66_spill] sm:$0xff] %v6709_v55  ;;  %v1959_v48 = vadd.f32 %v6709_v55, %v6707_v44 }
 0x495   : > { %v6703_v20 = vpop.xlane.xlu0 %1687 }
 0x499   : > { %1720 = vmax.xlane.f32.xlu2 %v1719_v4  ;;  %v2122_v4 = vld [vmem:[%s8476_s13 + $0x10] sm:$0xff] }
 0x49d   : > { %v6714_v36 = vpop.xlane.xlu0 %1927 }
 0x49e   : > { %8638 = vst [vmem:[#allocation67_spill] sm:$0xff] %v6714_v36  ;;  %2135 = vperm.xlu0 %4940, %v2121_v3  }
 0x4a1   : > { %1960 = vadd.xlane.f32.xlu2 %v1959_v48 }
 0x4a5   : > { %v6720_v9 = vpop.xlane.xlu0 %1693 }
 0x4a6   : > { %8640 = vst [vmem:[#allocation69_spill] sm:$0xff] %v6720_v9 }
 0x4ad   : > { %v1934_v62 = vpop.xlane.xlu0 %1933 }
 0x4b4   : > { %v6722_v25 = vpop.xlane.xlu2 %1924 }
 0x4b5   : > { %8641 = vst [vmem:[#allocation70_spill] sm:$0xff] %v6722_v25  ;;  %v1700_v24 = vpop.xlane.xlu0 %1699 }
 0x4b6   : > { %v1772_v14 = vsub.f32 %v6468_v30, %v1700_v24  ;;  %v1773_v3 = vsub.f32 %v6462_v15, %v1700_v24  ;;  %v1540_v24 = vpop.f32.mrf.mxu0 }
 0x4b7   : > { %v1541_v36 = vadd.f32 %v1540_v24, %v6197_v54 }
 0x4b8   : > { %v1880_v49 = vmul.f32 1.442695, %v1772_v14  ;;  %v1882_v48 = vmul.f32 1.442695, %v1773_v3  ;;  %v8645_v3 = vld [vmem:[#allocation49_spill] sm:$0xff] }
 0x4b9   : > { %2140 = vperm.xlu2 %4941, %v2122_v4   ;;  %v1362_v4 = vpop.f32.mrf.mxu2 }
 0x4ba   : > { %5003 = vpow2.f32 %v1880_v49 }
 0x4bb   : > { %5005 = vpow2.f32 %v1882_v48  ;;  %v1758_v48 = vsub.f32 %v8645_v3, %v1679_v41 }
 0x4bc   : > { %v6729_v11 = vpop.xlane.xlu2 %1690  ;;  %5007 = vrcp.f32 %v1934_v62 }
 0x4bd   : > { %v1940_v47 = vpop.xlane.xlu0 %1939 }
 0x4c0   : > { %v6731_v17 = vpop.eup %5003 }
 0x4c1   : > { %8642 = vst [vmem:[#allocation71_spill] sm:$0xff] %v6731_v17  ;;  %v6733_v25 = vpop.eup %5005 }
 0x4c2   : > { %8643 = vst [vmem:[#allocation72_spill] sm:$0xff] %v6733_v25  ;;  %v1986_v30 = vadd.f32 %v6733_v25, %v6731_v17  ;;  %v5008_v8 = vpop.eup %5007  ;;  %v1363_v25 = vadd.f32 %v1362_v4, %v6114_v58  ;;  %v1852_v17 = vmul.f32 1.442695, %v1758_v48 }
 0x4c3   : > { %v6750_v10 = vmul.f32 %v5008_v8, %v6444_v2 }
 0x4c4   : > { %v6735_v52 = vpop.xlane.xlu2 %1930 }
 0x4c5   : > { %8644 = vst [vmem:[#allocation73_spill] sm:$0xff] %v6735_v52  ;;  %v1706_v22 = vpop.xlane.xlu0 %1705  ;;  %v8646_v52 = vld [vmem:[#allocation48_spill] sm:$0xff] }
 0x4c6   : > { %v1759_v38 = vsub.f32 %v8646_v52, %v1679_v41  ;;  %v1776_v3 = vsub.f32 %v6516_v18, %v1706_v22  ;;  %v6757_v52 = vmul.f32 %v5008_v8, %v6446_v59 }
 0x4c8   : > { %1987 = vadd.xlane.f32.xlu0 %v1986_v30  ;;  %v1629_v30 = vpop.f32.mrf.mxu1  ;;  %v1854_v62 = vmul.f32 1.442695, %v1759_v38 }
 0x4c9   : > { %v6747_v44 = vadd.f32 %v1629_v30, %v1541_v36  ;;  %v1777_v36 = vsub.f32 %v6510_v51, %v1706_v22 }
 0x4cc   : > { %v6739_v15 = vpop.xlane.xlu2 %1696 }
 0x4cd   : > { %v6741_v14 = vpop.xlane.xlu0 %1945 }
 0x4d4   : > { %v1937_v49 = vpop.xlane.xlu2 %1936 }
 0x4d5   : > { %5009 = vrcp.f32 %v1937_v49  ;;  %v1712_v9 = vpop.xlane.xlu0 %1711  ;;  %v1451_v49 = vpop.f32.mrf.mxu3 }
 0x4d6   : > { %v6762_v41 = vadd.f32 %v1451_v49, %v1363_v25  ;;  %5011 = vpow2.f32 %v1852_v17  ;;  %v1888_v17 = vmul.f32 1.442695, %v1776_v3  ;;  %v1781_v22 = vsub.f32 %v6554_v0, %v1712_v9 }
 0x4d7   : > { %5013 = vpow2.f32 %v1854_v62 }
 0x4d8   : > { %v1725_v51 = vmax.f32 %v6762_v41, %v6747_v44  ;;  %v1898_v25 = vmul.f32 1.442695, %v1781_v22 }
 0x4db   : > { %v5010_v55 = vpop.eup %5009 }
 0x4dc   : > { %v1703_v26 = vpop.xlane.xlu2 %1702  ;;  %v6754_v54 = vmul.f32 %v5010_v55, %v6549_v12  ;;  %v6760_v58 = vmul.f32 %v5010_v55, %v6552_v40  ;;  %v1780_v40 = vsub.f32 %v6562_v32, %v1712_v9 }
 0x4dd   : > { %v1774_v38 = vsub.f32 %v6580_v33, %v1703_v26  ;;  %v1775_v2 = vsub.f32 %v6575_v56, %v1703_v26  ;;  %v6767_v18 = vpop.xlane.xlu0 %1951  ;;  %v4790_v56 = vld [vmem:[%s8475_s12 + $0x10] sm:$0xff]  ;;  %v1890_v33 = vmul.f32 1.442695, %v1777_v36  ;;  %v6782_v26 = vpop.eup %5011 }
 0x4de   : > { %4556 = vmatmul.msk.bf16.gmra.mxu2 %vm716_vm0, %v4790_v56  ;;  %4560 = vmatmul.msk.bf16.gmra.mxu3 %vm716_vm0, %v4790_v56  ;;  %v1896_v32 = vmul.f32 1.442695, %v1780_v40  ;;  %v6784_v4 = vpop.eup %5013 }
 0x4df   : > { %v1884_v8 = vmul.f32 1.442695, %v1774_v38  ;;  %v1886_v55 = vmul.f32 1.442695, %v1775_v2 }
 0x4e1   : > { %5015 = vpow2.f32 %v1884_v8 }
 0x4e2   : > { %5017 = vpow2.f32 %v1886_v55  ;;  %1726 = vmax.xlane.f32.xlu2 %v1725_v51 }
 0x4e3   : > { %5019 = vrcp.f32 %v1940_v47  ;;  %v1965_v47 = vadd.f32 %v6784_v4, %v6782_v26 }
 0x4e4   : > { %5021 = vpow2.f32 %v1888_v17  ;;  %v1943_v24 = vpop.xlane.xlu2 %1942 }
 0x4e5   : > { %5023 = vrcp.f32 %v1943_v24  ;;  %v6786_v0 = vpop.xlane.xlu0 %1717 }
 0x4e6   : > { %5025 = vpow2.f32 %v1890_v33 }
 0x4e7   : > { %v6788_v9 = vpop.eup %5015  ;;  %5027 = vpow2.f32 %v1896_v32 }
 0x4e8   : > { %v6790_v48 = vpop.eup %5017  ;;  %5029 = vpow2.f32 %v1898_v25 }
 0x4e9   : > { %v5020_v30 = vpop.eup %5019  ;;  %v1989_v62 = vadd.f32 %v6790_v48, %v6788_v9  ;;  %5031 = vrcp.f32 %v6741_v14 }
 0x4ea   : > { %v6796_v49 = vpop.eup %5021  ;;  %1966 = vadd.xlane.f32.xlu2 %v1965_v47  ;;  %v6801_v36 = vmul.f32 %v5020_v30, %v6483_v16  ;;  %v6807_v8 = vmul.f32 %v5020_v30, %v6488_v39 }
 0x4eb   : > { %v5024_v3 = vpop.eup %5023  ;;  %1990 = vadd.xlane.f32.xlu0 %v1989_v62 }
 0x4ec   : > { %v6798_v38 = vpop.eup %5025  ;;  %v1709_v2 = vpop.xlane.xlu2 %1708  ;;  %v6804_v40 = vmul.f32 %v5024_v3, %v6593_v63  ;;  %v6810_v55 = vmul.f32 %v5024_v3, %v6596_v53 }
 0x4ed   : > { %v6812_v56 = vpop.eup %5027  ;;  %v1778_v17 = vsub.f32 %v6628_v23, %v1709_v2  ;;  %v1779_v22 = vsub.f32 %v6621_v57, %v1709_v2  ;;  %v6818_v33 = vpop.xlane.xlu0 %1957  ;;  %v1992_v53 = vadd.f32 %v6798_v38, %v6796_v49 }
 0x4ee   : > { %v6816_v51 = vpop.eup %5029 }
 0x4ef   : > { %v1892_v63 = vmul.f32 1.442695, %v1778_v17  ;;  %v1894_v32 = vmul.f32 1.442695, %v1779_v22  ;;  %v1998_v57 = vadd.f32 %v6816_v51, %v6812_v56  ;;  %v5032_v25 = vpop.eup %5031 }
 0x4f1   : > { %5033 = vpow2.f32 %v1892_v63  ;;  %v6838_v63 = vmul.f32 %v5032_v25, %v6529_v43 }
 0x4f2   : > { %5035 = vpow2.f32 %v1894_v32  ;;  %1993 = vadd.xlane.f32.xlu2 %v1992_v53 }
 0x4f3   : > { %1999 = vadd.xlane.f32.xlu0 %v1998_v57 }
 0x4f4   : > { %v1949_v23 = vpop.xlane.xlu2 %1948 }
 0x4f5   : > { %5037 = vrcp.f32 %v1949_v23  ;;  %v1724_v24 = vpop.xlane.xlu0 %1723 }
 0x4f6   : > { %v1788_v30 = vsub.f32 %v6655_v1, %v1724_v24  ;;  %v1789_v14 = vsub.f32 %v6649_v35, %v1724_v24  ;;  %v6844_v35 = vmul.f32 %v5032_v25, %v6534_v28  ;;  %v1785_v28 = vsub.f32 %v6600_v46, %v6786_v0 }
 0x4f7   : > { %v6829_v47 = vpop.eup %5033 }
 0x4f8   : > { %v6833_v62 = vpop.eup %5035  ;;  %v1912_v3 = vmul.f32 1.442695, %v1788_v30  ;;  %v1914_v2 = vmul.f32 1.442695, %v1789_v14 }
 0x4f9   : > { %v1995_v17 = vadd.f32 %v6833_v62, %v6829_v47 }
 0x4fa   : > { %5039 = vpow2.f32 %v1912_v3  ;;  %v1906_v3 = vmul.f32 1.442695, %v1785_v28 }
 0x4fb   : > { %v5038_v22 = vpop.eup %5037  ;;  %1996 = vadd.xlane.f32.xlu1 %v1995_v17  ;;  %5041 = vpow2.f32 %v1914_v2 }
 0x4fc   : > { %v1715_v32 = vpop.xlane.xlu2 %1714  ;;  %v6841_v53 = vmul.f32 %v5038_v22, %v6639_v31  ;;  %v6847_v1 = vmul.f32 %v5038_v22, %v6645_v27  ;;  %v1784_v31 = vsub.f32 %v6608_v61, %v6786_v0 }
 0x4fd   : > { %v1782_v57 = vsub.f32 %v6671_v37, %v1715_v32  ;;  %v1783_v23 = vsub.f32 %v6666_v5, %v1715_v32 }
 0x4fe   : > { %v1904_v5 = vmul.f32 1.442695, %v1784_v31 }
 0x4ff   : > { %v1900_v30 = vmul.f32 1.442695, %v1782_v57  ;;  %v1902_v14 = vmul.f32 1.442695, %v1783_v23 }
 0x500   : > { %v6859_v27 = vpop.eup %5039 }
 0x501   : > { %5043 = vpow2.f32 %v1900_v30  ;;  %v6861_v37 = vpop.eup %5041 }
 0x502   : > { %5045 = vpow2.f32 %v1902_v14  ;;  %v2010_v25 = vadd.f32 %v6861_v37, %v6859_v27 }
 0x503   : > { %5047 = vrcp.f32 %v6767_v18 }
 0x504   : > { %v1955_v2 = vpop.xlane.xlu2 %1954  ;;  %2011 = vadd.xlane.f32.xlu0 %v2010_v25 }
 0x505   : > { %5049 = vrcp.f32 %v1955_v2 }
 0x506   : > { %5051 = vpow2.f32 %v1904_v5 }
 0x507   : > { %v6866_v61 = vpop.eup %5043  ;;  %5053 = vpow2.f32 %v1906_v3  ;;  %v1771_v3 = vsub.f32 %v6527_v19, %v6739_v15  ;;  %v1767_v19 = vsub.f32 %v6479_v29, %v6729_v11 }
 0x508   : > { %v6868_v46 = vpop.eup %5045 }
 0x509   : > { %v5048_v0 = vpop.eup %5047  ;;  %v2001_v17 = vadd.f32 %v6868_v46, %v6866_v61  ;;  %v1878_v2 = vmul.f32 1.442695, %v1771_v3 }
 0x50a   : > { %v6873_v32 = vmul.f32 %v5048_v0, %v6577_v6  ;;  %v6879_v23 = vmul.f32 %v5048_v0, %v6582_v21  ;;  %v1770_v21 = vsub.f32 %v6532_v60, %v6739_v15  ;;  %v2125_v0 = vld [vmem:[%s8476_s13 + $0x28] sm:$0xff]  ;;  %v1766_v60 = vsub.f32 %v6486_v45, %v6729_v11 }
 0x50b   : > { %v5050_v22 = vpop.eup %5049  ;;  %2002 = vadd.xlane.f32.xlu1 %v2001_v17 }
 0x50c   : > { %v1721_v18 = vpop.xlane.xlu2 %1720  ;;  %v6876_v57 = vmul.f32 %v5050_v22, %v6681_v13  ;;  %v6882_v31 = vmul.f32 %v5050_v22, %v6683_v7  ;;  %v6884_v30 = vpop.eup %5051 }
 0x50d   : > { %v1786_v14 = vsub.f32 %v6701_v42, %v1721_v18  ;;  %v1787_v28 = vsub.f32 %v6698_v50, %v1721_v18  ;;  %v6888_v5 = vpop.eup %5053  ;;  %v1876_v42 = vmul.f32 1.442695, %v1770_v21  ;;  %v1868_v18 = vmul.f32 1.442695, %v1766_v60 }
 0x50e   : > { %v2004_v50 = vadd.f32 %v6888_v5, %v6884_v30 }
 0x50f   : > { %v1908_v25 = vmul.f32 1.442695, %v1786_v14  ;;  %v1910_v7 = vmul.f32 1.442695, %v1787_v28  ;;  %v1870_v14 = vmul.f32 1.442695, %v1767_v19 }
 0x510   : > { %v8649_v19 = vld [vmem:[#allocation45_spill] sm:$0xff] }
 0x511   : > { %5055 = vpow2.f32 %v1908_v25 }
 0x512   : > { %5057 = vpow2.f32 %v1910_v7  ;;  %v8647_v7 = vld [vmem:[#allocation53_spill] sm:$0xff] }
 0x513   : > { %2005 = vadd.xlane.f32.xlu1 %v2004_v50  ;;  %5059 = vpow2.f32 %v1876_v42  ;;  %v1764_v3 = vsub.f32 %v8647_v7, %v6703_v20  ;;  %v8648_v50 = vld [vmem:[#allocation52_spill] sm:$0xff]  ;;  %v2123_v7 = vld [vmem:[%s8476_s13 + $0x18] sm:$0xff] }
 0x514   : > { %5061 = vpow2.f32 %v1878_v2  ;;  %v1765_v42 = vsub.f32 %v8648_v50, %v6703_v20 }
 0x515   : > { %5063 = vpow2.f32 %v1868_v18  ;;  %v1864_v2 = vmul.f32 1.442695, %v1764_v3  ;;  %v8650_v18 = vld [vmem:[#allocation46_spill] sm:$0xff]  ;;  %v1961_v3 = vpop.xlane.xlu2 %1960 }
 0x516   : > { %5065 = vpow2.f32 %v1870_v14  ;;  %v1866_v60 = vmul.f32 1.442695, %v1765_v42 }
 0x517   : > { %v6903_v17 = vpop.eup %5055  ;;  %5067 = vpow2.f32 %v1864_v2 }
 0x518   : > { %v6907_v22 = vpop.eup %5057  ;;  %2155 = vperm.xlu0 %4940, %v2125_v0   ;;  %v1685_v0 = vpop.xlane.xlu1 %1684  ;;  %5069 = vpow2.f32 %v1866_v60  ;;  %v4791_v60 = vld [vmem:[%s8475_s12 + $0x18] sm:$0xff] }
 0x519   : > { %v2007_v15 = vadd.f32 %v6907_v22, %v6903_v17  ;;  %v6913_v28 = vpop.eup %5059  ;;  %v1763_v14 = vsub.f32 %v8650_v18, %v1685_v0  ;;  %4557 = vmatmul.msk.bf16.gmra.mxu2 %vm716_vm0, %v4791_v60  ;;  %4561 = vmatmul.msk.bf16.gmra.mxu3 %vm716_vm0, %v4791_v60  ;;  %v8653_v60 = vld [vmem:[#allocation47_spill] sm:$0xff] }
 0x51a   : > { %v6915_v21 = vpop.eup %5061  ;;  %v1760_v16 = vsub.f32 %v8653_v60, %v6675_v34 }
 0x51b   : > { %2008 = vadd.xlane.f32.xlu1 %v2007_v15  ;;  %v1983_v45 = vadd.f32 %v6915_v21, %v6913_v28  ;;  %v6919_v25 = vpop.eup %5063  ;;  %v1762_v15 = vsub.f32 %v8649_v19, %v1685_v0  ;;  %v1862_v59 = vmul.f32 1.442695, %v1763_v14 }
 0x51c   : > { %v6921_v29 = vpop.eup %5065  ;;  %v1856_v60 = vmul.f32 1.442695, %v1760_v16 }
 0x51d   : > { %v1977_v11 = vadd.f32 %v6921_v29, %v6919_v25  ;;  %v6931_v12 = vpop.eup %5067  ;;  %v6949_v0 = vpop.permute.xlu2 %2140 }
 0x523   : > { %1984 = vadd.xlane.f32.xlu1 %v1983_v45  ;;  %v1860_v45 = vmul.f32 1.442695, %v1762_v15 }
 0x525   : > { %5071 = vpow2.f32 %v1860_v45 }
 0x526   : > { %5073 = vpow2.f32 %v1862_v59  ;;  %v2126_v59 = vld [vmem:[%s8476_s13 + $0x30] sm:$0xff] }
 0x52b   : > { %1978 = vadd.xlane.f32.xlu1 %v1977_v11  ;;  %v6933_v11 = vpop.eup %5069 }
 0x52c   : > { %v1974_v20 = vadd.f32 %v6933_v11, %v6931_v12  ;;  %v6940_v50 = vpop.eup %5071 }
 0x52d   : > { %8651 = vst [vmem:[#allocation49_spill] sm:$0xff] %v6940_v50  ;;  %v6942_v42 = vpop.eup %5073 }
 0x52e   : > { %8652 = vst [vmem:[#allocation48_spill] sm:$0xff] %v6942_v42  ;;  %v1971_v2 = vadd.f32 %v6942_v42, %v6940_v50  ;;  %v8659_v42 = vld [vmem:[#allocation62_spill] sm:$0xff] }
 0x542   : > { %1975 = vadd.xlane.f32.xlu0 %v1974_v20  ;;  %v1964_v20 = vpop.xlane.xlu0 %1963 }
 0x544   : > { %2145 = vperm.xlu1 %4942, %v2123_v7  }
 0x54a   : > { %1972 = vadd.xlane.f32.xlu0 %v1971_v2 }
 0x54c   : > { %2160 = vperm.xlu1 %4942, %v2126_v59  }
 0x555   : > { %v1727_v19 = vpop.xlane.xlu2 %1726 }
 0x556   : > { %v1790_v15 = vsub.f32 %v6762_v41, %v1727_v19  ;;  %v1791_v18 = vsub.f32 %v6747_v44, %v1727_v19  ;;  %v8654_v41 = vld [vmem:[#allocation44_spill] sm:$0xff] }
 0x557   : > { %v1761_v19 = vsub.f32 %v8654_v41, %v6675_v34  ;;  %v8658_v41 = vld [vmem:[#allocation66_spill] sm:$0xff] }
 0x558   : > { %v1916_v14 = vmul.f32 1.442695, %v1790_v15  ;;  %v1918_v45 = vmul.f32 1.442695, %v1791_v18  ;;  %v8655_v18 = vld [vmem:[#allocation64_spill] sm:$0xff] }
 0x55a   : > { %5075 = vpow2.f32 %v1916_v14 }
 0x55b   : > { %5077 = vpow2.f32 %v1918_v45  ;;  %v8656_v45 = vld [vmem:[#allocation65_spill] sm:$0xff] }
 0x55c   : > { %5079 = vrcp.f32 %v1964_v20 }
 0x55d   : > { %v1967_v7 = vpop.xlane.xlu2 %1966 }
 0x55e   : > { %5081 = vrcp.f32 %v1967_v7 }
 0x55f   : > { %5083 = vrcp.f32 %v1961_v3  ;;  %v1858_v3 = vmul.f32 1.442695, %v1761_v19 }
 0x560   : > { %v6958_v2 = vpop.eup %5075  ;;  %5085 = vrcp.f32 %v6818_v33  ;;  %v8657_v33 = vld [vmem:[#allocation43_spill] sm:$0xff] }
 0x561   : > { %v6960_v59 = vpop.eup %5077  ;;  %5087 = vpow2.f32 %v1856_v60  ;;  %v8670_v60 = vld [vmem:[#allocation67_spill] sm:$0xff] }
 0x562   : > { %v5080_v39 = vpop.eup %5079  ;;  %v2013_v44 = vadd.f32 %v6960_v59, %v6958_v2  ;;  %5089 = vpow2.f32 %v1858_v3  ;;  %v8671_v3 = vld [vmem:[#allocation69_spill] sm:$0xff] }
 0x563   : > { %v2076_v14 = vmul.f32 %v5080_v39, %v8655_v18  ;;  %v2077_v20 = vmul.f32 %v5080_v39, %v8656_v45  ;;  %v8660_v45 = vld [vmem:[#allocation63_spill] sm:$0xff] }
 0x564   : > { %v5082_v15 = vpop.eup %5081  ;;  %2014 = vadd.xlane.f32.xlu2 %v2013_v44 }
 0x565   : > { %v2078_v7 = vmul.f32 %v5082_v15, %v6782_v26  ;;  %v2079_v43 = vmul.f32 %v5082_v15, %v6784_v4  ;;  %v5084_v6 = vpop.eup %5083 }
 0x566   : > { %v5086_v34 = vpop.eup %5085  ;;  %v2074_v44 = vmul.f32 %v5084_v6, %v8657_v33  ;;  %v2075_v18 = vmul.f32 %v5084_v6, %v8658_v41  ;;  %v8663_v6 = vpack.c.bf16 %v6876_v57, %v6873_v32  ;;  %v8667_v57 = vpack.c.bf16 %v6804_v40, %v6801_v36  ;;  %v8677_v41 = vld [vmem:[#allocation60_spill] sm:$0xff] }
 0x567   : > { %v2280_v24 = vpack.c.bf16 %v2078_v7, %v2076_v14  ;;  %v2281_v13 = vpack.c.bf16 %v2079_v43, %v2077_v20  ;;  %v2072_v39 = vmul.f32 %v5086_v34, %v8659_v42  ;;  %v2073_v26 = vmul.f32 %v5086_v34, %v8660_v45  ;;  %v6977_v16 = vpop.eup %5087  ;;  %v8662_v43 = vld [vmem:[#allocation41_spill] sm:$0xff]  ;;  %v8673_v34 = vld [vmem:[#allocation56_spill] sm:$0xff] }
 0x568   : > { %v6979_v19 = vpop.eup %5089  ;;  %v8664_v42 = vpack.c.bf16 %v6882_v31, %v6879_v23  ;;  %v8665_v20 = vpack.c.bf16 %v6841_v53, %v6838_v63  ;;  %v8666_v7 = vpack.c.bf16 %v6847_v1, %v6844_v35  ;;  %v8668_v23 = vpack.c.bf16 %v6810_v55, %v6807_v8  ;;  %v8669_v31 = vld [vmem:[#allocation73_spill] sm:$0xff]  ;;  %v8676_v55 = vld [vmem:[#allocation70_spill] sm:$0xff] }
 0x569   : > { %2298 = vmatpush.bf16.xpose.msrb.mxu2 %v2280_v24  ;;  %2327 = vmatpush.bf16.xpose.msrb.mxu3 %v2281_v13  ;;  %v2278_v50 = vpack.c.bf16 %v2074_v44, %v2072_v39  ;;  %v2279_v4 = vpack.c.bf16 %v2075_v18, %v2073_v26  ;;  %v8661_v24 = vld [vmem:[#allocation40_spill] sm:$0xff]  ;;  %v1968_v13 = vadd.f32 %v6979_v19, %v6977_v16  ;;  %5091 = vrcp.f32 %v8669_v31  ;;  %v8672_v35 = vld [vmem:[#allocation57_spill] sm:$0xff]  ;;  %v8679_v26 = vld [vmem:[#allocation42_spill] sm:$0xff] }
 0x56a   : > { %5093 = vrcp.f32 %v8670_v60  ;;  %v1768_v1 = vsub.f32 %v8672_v35, %v8671_v3  ;;  %v1769_v33 = vsub.f32 %v8673_v34, %v8671_v3  ;;  %v8674_v36 = vpack.c.bf16 %v6754_v54, %v6750_v10  ;;  %v8678_v39 = vld [vmem:[#allocation61_spill] sm:$0xff]  ;;  %v8681_v54 = vld [vmem:[#allocation55_spill] sm:$0xff] }
 0x56b   : > { %v8675_v40 = vpack.c.bf16 %v6760_v58, %v6757_v52  ;;  %v8685_v35 = vld [vmem:[#allocation51_spill] sm:$0xff] }
 0x56e   : > { %v6985_v15 = vpop.xlane.xlu1 %1996 }
 0x56f   : > { %v5092_v53 = vpop.eup %5091 }
 0x570   : > { %v5094_v8 = vpop.eup %5093  ;;  %v2054_v18 = vmul.f32 %v5092_v53, %v8677_v41  ;;  %v2055_v45 = vmul.f32 %v5092_v53, %v8678_v39  ;;  %v8684_v53 = vld [vmem:[#allocation50_spill] sm:$0xff] }
 0x571   : > { %2299 = vmatpush.bf16.xpose.msrb.mxu2 %v2278_v50  ;;  %2328 = vmatpush.bf16.xpose.msrb.mxu3 %v2279_v4  ;;  %v2124_v50 = vld [vmem:[%s8476_s13 + $0x20] sm:$0xff] }
 0x573   : > { %2463 = vxpose.binary.xlu0.c.b16.start.end [1/2] (short) %v8662_v43, %v8661_v24, 128  ;;  %v1872_v24 = vmul.f32 1.442695, %v1768_v1  ;;  %v1874_v43 = vmul.f32 1.442695, %v1769_v33 }
 0x576   : > { %1969 = vadd.xlane.f32.xlu1 %v1968_v13  ;;  %v8680_v13 = vld [vmem:[#allocation54_spill] sm:$0xff] }
 0x577   : > { %v2052_v10 = vmul.f32 %v5094_v8, %v8680_v13 }
 0x579   : > { %2300 = vmatpush.bf16.xpose.msrb.mxu2 %v8663_v6  ;;  %2329 = vmatpush.bf16.xpose.msrb.mxu3 %v8664_v42  ;;  %v2053_v6 = vmul.f32 %v5094_v8, %v8681_v54  ;;  %v2209_v42 = vpop.f32.mrf.mxu2 }
 0x57c   : > { %2150 = vperm.xlu2 %4941, %v2124_v50  }
 0x57e   : > { %v6996_v14 = vpop.xlane.xlu1 %2002 }
 0x581   : > { %2301 = vmatpush.bf16.xpose.msrb.mxu2 %v8665_v20  ;;  %2330 = vmatpush.bf16.xpose.msrb.mxu3 %v8666_v7  ;;  %v2238_v7 = vpop.f32.mrf.mxu3  ;;  %v2211_v34 = vpop.f32.mrf.mxu2 }
 0x586   : > { %v2006_v32 = vpop.xlane.xlu1 %2005 }
 0x587   : > { %5095 = vrcp.f32 %v2006_v32  ;;  %v2268_v32 = vpack.c.bf16 %v2054_v18, %v2052_v10 }
 0x589   : > { %2302 = vmatpush.bf16.xpose.msrb.mxu2 %v8667_v57  ;;  %2331 = vmatpush.bf16.xpose.msrb.mxu3 %v8668_v23  ;;  %v2269_v57 = vpack.c.bf16 %v2055_v45, %v2053_v6  ;;  %v8686_v45 = vld [vmem:[#allocation68_spill] sm:$0xff]  ;;  %v2214_v10 = vpop.f32.mrf.mxu2 }
 0x58d   : > { %v5096_v44 = vpop.eup %5095 }
 0x58e   : > { %v2009_v63 = vpop.xlane.xlu1 %2008  ;;  %v7029_v52 = vmul.f32 %v5096_v44, %v6884_v30  ;;  %v7035_v50 = vmul.f32 %v5096_v44, %v6888_v5  ;;  %v8682_v5 = vld [vmem:[#allocation58_spill] sm:$0xff] }
 0x58f   : > { %5097 = vrcp.f32 %v2009_v63  ;;  %v8683_v63 = vld [vmem:[#allocation59_spill] sm:$0xff] }
 0x590   : > { %5099 = vrcp.f32 %v8676_v55 }
 0x591   : > { %2303 = vmatpush.bf16.xpose.msrb.mxu2 %v8674_v36  ;;  %2332 = vmatpush.bf16.xpose.msrb.mxu3 %v8675_v40  ;;  %5101 = vrcp.f32 %v8679_v26  ;;  %v2240_v36 = vpop.f32.mrf.mxu3  ;;  %v2136_v40 = vpop.permute.xlu0 %2135  ;;  %v2239_v26 = vadd.f32 %v2238_v7, %v8686_v45 }
 0x592   : > { %5103 = vpow2.f32 %v1872_v24  ;;  %v2212_v41 = vadd.f32 %v2211_v34, %v2136_v40  ;;  %v2241_v18 = vadd.f32 %v2240_v36, %v2136_v40 }
 0x593   : > { %5105 = vpow2.f32 %v1874_v43 }
 0x594   : > { %v7060_v13 = vpack.c.bf16 %v2241_v18, %v2239_v26 }
 0x595   : > { %v5098_v4 = vpop.eup %5097 }
 0x596   : > { %v7032_v58 = vmul.f32 %v5098_v4, %v6903_v17  ;;  %v7038_v20 = vmul.f32 %v5098_v4, %v6907_v22  ;;  %v5100_v23 = vpop.eup %5099  ;;  %v2210_v4 = vadd.f32 %v2209_v42, %v8686_v45  ;;  %v7056_v24 = vpop.xlane.xlu1 %1984 }
 0x597   : > { %v5102_v17 = vpop.eup %5101  ;;  %v2050_v60 = vmul.f32 %v5100_v23, %v8682_v5  ;;  %v2051_v22 = vmul.f32 %v5100_v23, %v8683_v63  ;;  %v2215_v23 = vadd.f32 %v2214_v10, %v6949_v0 }
 0x598   : > { %v2294_v31 = vpack.c.bf16 %v7032_v58, %v7029_v52  ;;  %v2295_v30 = vpack.c.bf16 %v7038_v20, %v7035_v50  ;;  %v2048_v3 = vmul.f32 %v5102_v17, %v8684_v53  ;;  %v2049_v1 = vmul.f32 %v5102_v17, %v8685_v35  ;;  %v7048_v33 = vpop.eup %5103  ;;  %v2127_v53 = vld [vmem:[%s8476_s13 + $0x38] sm:$0xff] }
 0x599   : > { %2304 = vmatpush.bf16.xpose.msrb.mxu2 %v2268_v32  ;;  %2333 = vmatpush.bf16.xpose.msrb.mxu3 %v2269_v57  ;;  %v7050_v44 = vpop.eup %5105  ;;  %v7058_v43 = vpack.c.bf16 %v2212_v41, %v2210_v4  ;;  %v2243_v54 = vpop.f32.mrf.mxu3 }
 0x59a   : > { %v2266_v8 = vpack.c.bf16 %v2050_v60, %v2048_v3  ;;  %v2267_v55 = vpack.c.bf16 %v2051_v22, %v2049_v1  ;;  %v1980_v39 = vadd.f32 %v7050_v44, %v7048_v33  ;;  %v2216_v32 = vpop.f32.mrf.mxu2  ;;  %v2244_v42 = vadd.f32 %v2243_v54, %v6949_v0  ;;  %v1988_v60 = vpop.xlane.xlu0 %1987 }
 0x59b   : > { %v1994_v1 = vpop.xlane.xlu2 %1993 }
 0x59e   : > { %v7064_v6 = vpop.xlane.xlu1 %1978 }
 0x5a1   : > { %2305 = vmatpush.bf16.xpose.msrb.mxu2 %v2266_v8  ;;  %2334 = vmatpush.bf16.xpose.msrb.mxu3 %v2267_v55  ;;  %v2245_v57 = vpop.f32.mrf.mxu3 }
 0x5a2   : > { %v1991_v3 = vpop.xlane.xlu0 %1990  ;;  %v2219_v0 = vpop.f32.mrf.mxu2 }
 0x5a5   : > { %1981 = vadd.xlane.f32.xlu2 %v1980_v39 }
 0x5a8   : > { %2306 = vmatmul.bf16.vlgmr.msrb.gmra.mxu2 %v7058_v43  ;;  %2335 = vmatmul.bf16.vlgmr.msrb.gmra.mxu3 %v7060_v13 }
 0x5a9   : > { %v2248_v36 = vpop.f32.mrf.mxu3 }
 0x5aa   : > { %v2000_v35 = vpop.xlane.xlu0 %1999  ;;  %v2221_v55 = vpop.f32.mrf.mxu2 }
 0x5b1   : > { %v2250_v41 = vpop.f32.mrf.mxu3 }
 0x5b2   : > { %v2012_v34 = vpop.xlane.xlu0 %2011 }
 0x5b3   : > { %5107 = vrcp.f32 %v2012_v34 }
 0x5b6   : > { %v2146_v7 = vpop.permute.xlu1 %2145 }
 0x5b7   : > { %v2217_v17 = vadd.f32 %v2216_v32, %v2146_v7  ;;  %v2246_v5 = vadd.f32 %v2245_v57, %v2146_v7 }
 0x5b9   : > { %v7068_v63 = vpack.c.bf16 %v2217_v17, %v2215_v23  ;;  %v7070_v22 = vpack.c.bf16 %v2246_v5, %v2244_v42  ;;  %v5108_v8 = vpop.eup %5107 }
 0x5ba   : > { %v2156_v18 = vpop.permute.xlu0 %2155  ;;  %v2108_v45 = vmul.f32 %v5108_v8, %v6859_v27  ;;  %v2109_v26 = vmul.f32 %v5108_v8, %v6861_v37  ;;  %v2224_v8 = vpop.f32.mrf.mxu2 }
 0x5bb   : > { %2311 = vmatmul.bf16.gmra.mxu2 %v7068_v63  ;;  %2340 = vmatmul.bf16.gmra.mxu3 %v7070_v22  ;;  %v2222_v32 = vadd.f32 %v2221_v55, %v2156_v18  ;;  %v2251_v57 = vadd.f32 %v2250_v41, %v2156_v18 }
 0x5bd   : > { %2165 = vperm.xlu2 %4941, %v2127_v53  }
 0x5c2   : > { %v1976_v41 = vpop.xlane.xlu0 %1975 }
 0x5d7   : > { %v2015_v40 = vpop.xlane.xlu2 %2014 }
 0x5d8   : > { %5109 = vrcp.f32 %v2015_v40 }
 0x5d9   : > { %5111 = vrcp.f32 %v6996_v14 }
 0x5da   : > { %5113 = vrcp.f32 %v2000_v35 }
 0x5db   : > { %5115 = vrcp.f32 %v6985_v15 }
 0x5dc   : > { %5117 = vrcp.f32 %v1994_v1 }
 0x5dd   : > { %5119 = vrcp.f32 %v1991_v3  ;;  %v8687_v3 = vld [vmem:[#allocation71_spill] sm:$0xff] }
 0x5de   : > { %v5110_v39 = vpop.eup %5109  ;;  %5121 = vrcp.f32 %v1988_v60 }
 0x5df   : > { %v2110_v4 = vmul.f32 %v5110_v39, %v6958_v2  ;;  %v2111_v10 = vmul.f32 %v5110_v39, %v6960_v59  ;;  %v2151_v54 = vpop.permute.xlu2 %2150  ;;  %v5112_v27 = vpop.eup %5111  ;;  %5123 = vrcp.f32 %v7056_v24 }
 0x5e0   : > { %v2220_v7 = vadd.f32 %v2219_v0, %v2151_v54  ;;  %v2249_v42 = vadd.f32 %v2248_v36, %v2151_v54  ;;  %v5114_v37 = vpop.eup %5113  ;;  %v2102_v2 = vmul.f32 %v5112_v27, %v6866_v61  ;;  %v2103_v59 = vmul.f32 %v5112_v27, %v6868_v46  ;;  %v2226_v39 = vpop.f32.mrf.mxu2 }
 0x5e1   : > { %v2296_v23 = vpack.c.bf16 %v2110_v4, %v2108_v45  ;;  %v2297_v17 = vpack.c.bf16 %v2111_v10, %v2109_v26  ;;  %v2100_v14 = vmul.f32 %v5114_v37, %v6812_v56  ;;  %v2101_v35 = vmul.f32 %v5114_v37, %v6816_v51  ;;  %v5116_v52 = vpop.eup %5115 }
 0x5e2   : > { %v7081_v5 = vpack.c.bf16 %v2222_v32, %v2220_v7  ;;  %v7083_v53 = vpack.c.bf16 %v2251_v57, %v2249_v42  ;;  %v5118_v58 = vpop.eup %5117  ;;  %v2098_v50 = vmul.f32 %v5116_v52, %v6829_v47  ;;  %v2099_v15 = vmul.f32 %v5116_v52, %v6833_v62  ;;  %v8688_v47 = vld [vmem:[#allocation72_spill] sm:$0xff] }
 0x5e3   : > { %2356 = vmatpush.bf16.xpose.msra.mxu2 %v2296_v23  ;;  %2385 = vmatpush.bf16.xpose.msra.mxu3 %v2297_v17  ;;  %v2292_v0 = vpack.c.bf16 %v2102_v2, %v2100_v14  ;;  %v2293_v34 = vpack.c.bf16 %v2103_v59, %v2101_v35  ;;  %v2096_v61 = vmul.f32 %v5118_v58, %v6796_v49  ;;  %v2253_v49 = vpop.f32.mrf.mxu3 }
 0x5e4   : > { %2316 = vmatmul.bf16.gmra.mxu2 %v7081_v5  ;;  %2345 = vmatmul.bf16.gmra.mxu3 %v7083_v53  ;;  %v2097_v46 = vmul.f32 %v5118_v58, %v6798_v38  ;;  %v2161_v38 = vpop.permute.xlu1 %2160  ;;  %v7123_v58 = vstv %s786_s27  ;;  %s8341_s27 = scalar_lea.vmem [#allocation13], %s5841_s9  ;;  %s8779_s9 = sld [smem:[#allocation24_spill]] }
 0x5e5   : > { %v2290_v20 = vpack.c.bf16 %v2098_v50, %v2096_v61  ;;  %v2225_v54 = vadd.f32 %v2224_v8, %v2161_v38  ;;  %v2254_v32 = vadd.f32 %v2253_v49, %v2161_v38  ;;  %v5327_v61 = vld [vmem:[%s5845_s23] sm:$0xff] }
 0x5e6   : > { %v2291_v56 = vpack.c.bf16 %v2099_v15, %v2097_v46  ;;  %v8689_v46 = vld [vmem:[#allocation49_spill] sm:$0xff] }
 0x5ea   : > { %s4828_s11 = sshll.u32 %s8779_s9, 7 }
 0x5eb   : > { %2357 = vmatpush.bf16.xpose.msra.mxu2 %v2294_v31  ;;  %2386 = vmatpush.bf16.xpose.msra.mxu3 %v2295_v30  ;;  %v5120_v31 = vpop.eup %5119 }
 0x5ec   : > { %v5122_v51 = vpop.eup %5121  ;;  %v2094_v30 = vmul.f32 %v5120_v31, %v6788_v9  ;;  %v2095_v1 = vmul.f32 %v5120_v31, %v6790_v48  ;;  %v2255_v9 = vpop.f32.mrf.mxu3 }
 0x5ed   : > { %v2092_v36 = vmul.f32 %v5122_v51, %v8687_v3  ;;  %v2093_v40 = vmul.f32 %v5122_v51, %v8688_v47  ;;  %v5124_v18 = vpop.eup %5123  ;;  %v1970_v42 = vpop.xlane.xlu1 %1969 }
 0x5ee   : > { %v2090_v4 = vmul.f32 %v5124_v18, %v6913_v28  ;;  %v2091_v24 = vmul.f32 %v5124_v18, %v6915_v21 }
 0x5ef   : > { %v2288_v62 = vpack.c.bf16 %v2094_v30, %v2092_v36  ;;  %v2289_v60 = vpack.c.bf16 %v2095_v1, %v2093_v40  ;;  %v8692_v36 = vld [vmem:[#allocation39_spill] sm:$0xff]  ;;  %v5328_v40 = vld [vmem:[%s5845_s23 + $0x10] sm:$0xff] }
 0x5f3   : > { %2358 = vmatpush.bf16.xpose.msra.mxu2 %v2292_v0  ;;  %2387 = vmatpush.bf16.xpose.msra.mxu3 %v2293_v34 }
 0x5fb   : > { %2359 = vmatpush.bf16.xpose.msra.mxu2 %v2290_v20  ;;  %2388 = vmatpush.bf16.xpose.msra.mxu3 %v2291_v56  ;;  %v8690_v56 = vld [vmem:[#allocation48_spill] sm:$0xff] }
 0x603   : > { %2360 = vmatpush.bf16.xpose.msra.mxu2 %v2288_v62  ;;  %2389 = vmatpush.bf16.xpose.msra.mxu3 %v2289_v60 }
 0x618   : > { %v1982_v55 = vpop.xlane.xlu2 %1981 }
 0x619   : > { %5125 = vrcp.f32 %v1982_v55  ;;  %v5329_v55 = vld [vmem:[%s5845_s23 + $0x20] sm:$0xff] }
 0x61a   : > { %5127 = vrcp.f32 %v1976_v41 }
 0x61b   : > { %5129 = vrcp.f32 %v7064_v6 }
 0x61c   : > { %5131 = vrcp.f32 %v1970_v42 }
 0x61f   : > { %v5126_v48 = vpop.eup %5125 }
 0x620   : > { %v2166_v45 = vpop.permute.xlu2 %2165  ;;  %v2088_v26 = vmul.f32 %v5126_v48, %v7048_v33  ;;  %v2089_v10 = vmul.f32 %v5126_v48, %v7050_v44  ;;  %v5128_v27 = vpop.eup %5127 }
 0x621   : > { %v2227_v57 = vadd.f32 %v2226_v39, %v2166_v45  ;;  %v2256_v7 = vadd.f32 %v2255_v9, %v2166_v45  ;;  %v1973_v33 = vpop.xlane.xlu0 %1972  ;;  %v5130_v28 = vpop.eup %5129  ;;  %v2084_v21 = vmul.f32 %v5128_v27, %v6931_v12  ;;  %v2085_v44 = vmul.f32 %v5128_v27, %v6933_v11  ;;  %v5330_v45 = vld [vmem:[%s5845_s23 + $0x30] sm:$0xff] }
 0x622   : > { %v2286_v23 = vpack.c.bf16 %v2090_v4, %v2088_v26  ;;  %v2287_v17 = vpack.c.bf16 %v2091_v24, %v2089_v10  ;;  %5133 = vrcp.f32 %v1973_v33  ;;  %v2086_v2 = vmul.f32 %v5130_v28, %v6919_v25  ;;  %v5132_v0 = vpop.eup %5131  ;;  %v4654_v4 = vld [vmem:[#allocation9 + $0x78] sm:$0xf0]  ;;  %v4822_v10 = vld [vmem:[#allocation9 + $0xf4] sm:$0xf] }
 0x623   : > { %v7113_v37 = vpack.c.bf16 %v2227_v57, %v2225_v54  ;;  %v7115_v6 = vpack.c.bf16 %v2256_v7, %v2254_v32  ;;  %v2087_v59 = vmul.f32 %v5130_v28, %v6921_v29  ;;  %v2080_v15 = vmul.f32 %v5132_v0, %v6977_v16  ;;  %v4718_v54 = vld [vmem:[#allocation9 + $0xf8] sm:$0xf0]  ;;  %v4652_v32 = vld [vmem:[#allocation9 + $0x70] sm:$0xf]  ;;  %v4807_v57 = vld [vmem:[#allocation9 + $0x74] sm:$0xf0] }
 0x624   : > { %2361 = vmatpush.bf16.xpose.msra.mxu2 %v2286_v23  ;;  %2390 = vmatpush.bf16.xpose.msra.mxu3 %v2287_v17  ;;  %v2284_v14 = vpack.c.bf16 %v2086_v2, %v2084_v21  ;;  %v2081_v25 = vmul.f32 %v5132_v0, %v6979_v19  ;;  %v8691_v19 = vld [vmem:[#allocation38_spill] sm:$0xff]  ;;  %v4721_v7 = vor.u32 %v4822_v10, %v4718_v54  ;;  %v4716_v23 = vld [vmem:[#allocation9 + $0xf0] sm:$0xf] }
 0x625   : > { %2321 = vmatmul.bf16.gmra.mxu2 %v7113_v37  ;;  %2350 = vmatmul.bf16.gmra.mxu3 %v7115_v6  ;;  %v2285_v35 = vpack.c.bf16 %v2087_v59, %v2085_v44  ;;  %v4653_v42 = vor.u32 %v4807_v57, %v4652_v32  ;;  %v5331_v28 = vld [vmem:[%s5845_s23 + $0x40] sm:$0xff]  ;;  %v5332_v0 = vld [vmem:[%s5845_s23 + $0x50] sm:$0xff] }
 0x626   : > { %v4800_v57 = vld [vmem:[#allocation9 + $0x44] sm:$0xf] }
 0x627   : > { %2949 = vmatpush.bf16.msrb.mxu0 %v4653_v42 }
 0x628   : > { %v5134_v12 = vpop.eup %5133 }
 0x629   : > { %v2082_v20 = vmul.f32 %v5134_v12, %v8689_v46  ;;  %v2083_v31 = vmul.f32 %v5134_v12, %v8690_v56  ;;  %v4708_v46 = vld [vmem:[#allocation9 + $0xe0] sm:$0xf] }
 0x62b   : > { %v2307_v34 = vpop.f32.mrf.mxu2  ;;  %v2336_v52 = vpop.f32.mrf.mxu3  ;;  %v2282_v51 = vpack.c.bf16 %v2082_v20, %v2080_v15  ;;  %v2283_v30 = vpack.c.bf16 %v2083_v31, %v2081_v25  ;;  %v4644_v15 = vld [vmem:[#allocation9 + $0x60] sm:$0xf]  ;;  %v4805_v25 = vld [vmem:[#allocation9 + $0x64] sm:$0xf0] }
 0x62c   : > { %v2337_v50 = vadd.f32 %v2336_v52, %v2307_v34  ;;  %2362 = vmatpush.bf16.xpose.msra.mxu2 %v2284_v14  ;;  %2391 = vmatpush.bf16.xpose.msra.mxu3 %v2285_v35  ;;  %v4821_v20 = vld [vmem:[#allocation9 + $0xe4] sm:$0xf0] }
 0x62d   : > { %v4709_v56 = vor.u32 %v4821_v20, %v4708_v46 }
 0x62e   : > { %v2415_v11 = vmul.f32 %v7123_v58, %v2337_v50  ;;  %v4820_v50 = vld [vmem:[#allocation9 + $0xe4] sm:$0xf] }
 0x630   : > { %v2431_v29 = vadd.f32 %v5327_v61, %v2415_v11  ;;  %v4710_v11 = vld [vmem:[#allocation9 + $0xe8] sm:$0xf0] }
 0x631   : > { %v4713_v61 = vor.u32 %v4820_v50, %v4710_v11 }
 0x632   : > { %2447 = vst [vmem:[%s7132_s29] sm:$0xff] %v2431_v29  ;;  %v4645_v29 = vor.u32 %v4805_v25, %v4644_v15  ;;  %v5336_v15 = vld [vmem:[%s5845_s23 + $0x18] sm:$0xff] }
 0x633   : > { %v2309_v1 = vpop.f32.mrf.mxu2  ;;  %v2338_v3 = vpop.f32.mrf.mxu3 }
 0x634   : > { %v2339_v16 = vadd.f32 %v2338_v3, %v2309_v1  ;;  %2363 = vmatpush.bf16.xpose.msra.mxu2 %v2282_v51  ;;  %2392 = vmatpush.bf16.xpose.msra.mxu3 %v2283_v30  ;;  %v4802_v1 = vld [vmem:[#allocation9 + $0x54] sm:$0xf]  ;;  %v4638_v3 = vld [vmem:[#allocation9 + $0x58] sm:$0xf0] }
 0x635   : > { %2950 = vmatpush.bf16.msrb.mxu0 %v4645_v29 }
 0x636   : > { %v2417_v47 = vmul.f32 %v7123_v58, %v2339_v16  ;;  %v4641_v16 = vor.u32 %v4802_v1, %v4638_v3 }
 0x638   : > { %v2433_v62 = vadd.f32 %v5328_v40, %v2417_v47  ;;  %v4702_v47 = vld [vmem:[#allocation9 + $0xd8] sm:$0xf0]  ;;  %v4636_v40 = vld [vmem:[#allocation9 + $0x50] sm:$0xf] }
 0x63a   : > { %2449 = vst [vmem:[%s7132_s29 + $0x10] sm:$0xff] %v2433_v62 }
 0x63b   : > { %2364 = vmatmul.bf16.vlgmr.msra.gmra.mxu2 %v7058_v43  ;;  %2393 = vmatmul.bf16.vlgmr.msra.gmra.mxu3 %v7060_v13  ;;  %v2471_v43 = vpop.trf.xlu0  ;;  %v4806_v13 = vld [vmem:[#allocation9 + $0x74] sm:$0xf] }
 0x63c   : > { %2548 = vmatpush.bf16.msrb.mxu2 %v8691_v19  ;;  %2637 = vmatpush.bf16.msrb.mxu3 %v8692_v36  ;;  %v4657_v24 = vor.u32 %v4806_v13, %v4654_v4  ;;  %v4818_v36 = vld [vmem:[#allocation9 + $0xd4] sm:$0xf] }
 0x63d   : > { %v4705_v62 = vor.u32 %v4818_v36, %v4702_v47  ;;  %v4620_v47 = vld [vmem:[#allocation9 + $0x30] sm:$0xf] }
 0x63e   : > { %v2312_v60 = vpop.f32.mrf.mxu2  ;;  %v2341_v49 = vpop.f32.mrf.mxu3 }
 0x63f   : > { %v2342_v38 = vadd.f32 %v2341_v49, %v2312_v60  ;;  %v4803_v60 = vld [vmem:[#allocation9 + $0x54] sm:$0xf0]  ;;  %v4700_v49 = vld [vmem:[#allocation9 + $0xd0] sm:$0xf] }
 0x640   : > { %3127 = vmatpush.bf16.msra.mxu2 %v4657_v24  ;;  %3216 = vmatpush.bf16.msra.mxu3 %v4721_v7  ;;  %v5334_v24 = vld [vmem:[%s5845_s23 + $0x70] sm:$0xff]  ;;  %v4630_v7 = vld [vmem:[#allocation9 + $0x48] sm:$0xf0] }
 0x641   : > { %v2419_v8 = vmul.f32 %v7123_v58, %v2342_v38  ;;  %v4819_v38 = vld [vmem:[#allocation9 + $0xd4] sm:$0xf0] }
 0x643   : > { %v2435_v41 = vadd.f32 %v5329_v55, %v2419_v8  ;;  %v4637_v8 = vor.u32 %v4803_v60, %v4636_v40  ;;  %v4701_v55 = vor.u32 %v4819_v38, %v4700_v49  ;;  %v4799_v40 = vld [vmem:[#allocation9 + $0x34] sm:$0xf0] }
 0x644   : > { %3217 = vmatpush.bf16.msra.mxu3 %v4713_v61  ;;  %v5338_v60 = vld [vmem:[%s5845_s23 + $0x38] sm:$0xff]  ;;  %v4621_v38 = vor.u32 %v4799_v40, %v4620_v47  ;;  %v8698_v47 = vld [vmem:[#allocation35_spill] sm:$0xff] }
 0x645   : > { %2451 = vst [vmem:[%s7132_s29 + $0x20] sm:$0xff] %v2435_v41  ;;  %2951 = vmatpush.bf16.msrb.mxu0 %v4637_v8  ;;  %v4815_v8 = vld [vmem:[#allocation9 + $0xb4] sm:$0xf0] }
 0x646   : > { %v2314_v18 = vpop.f32.mrf.mxu2  ;;  %v2343_v9 = vpop.f32.mrf.mxu3 }
 0x647   : > { %v2344_v48 = vadd.f32 %v2343_v9, %v2314_v18 }
 0x648   : > { %3218 = vmatpush.bf16.msra.mxu3 %v4705_v62  ;;  %v4684_v62 = vld [vmem:[#allocation9 + $0xb0] sm:$0xf] }
 0x649   : > { %v2421_v39 = vmul.f32 %v7123_v58, %v2344_v48 }
 0x64b   : > { %v2437_v26 = vadd.f32 %v5330_v45, %v2421_v39  ;;  %2369 = vmatmul.bf16.gmra.mxu2 %v7068_v63  ;;  %2398 = vmatmul.bf16.gmra.mxu3 %v7070_v22  ;;  %v4823_v63 = vld [vmem:[#allocation9 + $0xf4] sm:$0xf0]  ;;  %v5333_v45 = vld [vmem:[%s5845_s23 + $0x60] sm:$0xff] }
 0x64c   : > { %v4717_v22 = vor.u32 %v4823_v63, %v4716_v23  ;;  %v4633_v63 = vor.u32 %v4800_v57, %v4630_v7  ;;  %v4686_v57 = vld [vmem:[#allocation9 + $0xb8] sm:$0xf0] }
 0x64d   : > { %2453 = vst [vmem:[%s7132_s29 + $0x30] sm:$0xff] %v2437_v26 }
 0x64e   : > { %3038 = vmatpush.bf16.msrb.mxu1 %v4717_v22 }
 0x652   : > { %3039 = vmatpush.bf16.msrb.mxu1 %v4709_v56  ;;  %v5337_v56 = vld [vmem:[%s5845_s23 + $0x28] sm:$0xff] }
 0x656   : > { %3040 = vmatpush.bf16.msrb.mxu1 %v4701_v55  ;;  %v4685_v55 = vor.u32 %v4815_v8, %v4684_v62 }
 0x65b   : > { %2374 = vmatmul.bf16.gmra.mxu2 %v7081_v5  ;;  %2403 = vmatmul.bf16.gmra.mxu3 %v7083_v53  ;;  %v7152_v5 = vpop.trf.xlu0 }
 0x663   : > { %v2473_v44 = vpop.trf.xlu0 }
 0x667   : > { %v2317_v53 = vpop.f32.mrf.mxu2  ;;  %v2346_v17 = vpop.f32.mrf.mxu3 }
 0x668   : > { %v2347_v27 = vadd.f32 %v2346_v17, %v2317_v53 }
 0x66a   : > { %v2423_v33 = vmul.f32 %v7123_v58, %v2347_v27  ;;  %v5335_v27 = vld [vmem:[%s5845_s23 + $0x8] sm:$0xff] }
 0x66b   : > { %2379 = vmatmul.bf16.gmra.mxu2 %v7113_v37  ;;  %2408 = vmatmul.bf16.gmra.mxu3 %v7115_v6  ;;  %v7162_v52 = vpop.trf.xlu0  ;;  %v4804_v37 = vld [vmem:[#allocation9 + $0x64] sm:$0xf]  ;;  %v4646_v6 = vld [vmem:[#allocation9 + $0x68] sm:$0xf0] }
 0x66c   : > { %v2439_v21 = vadd.f32 %v5331_v28, %v2423_v33  ;;  %v4649_v12 = vor.u32 %v4804_v37, %v4646_v6  ;;  %v4816_v28 = vld [vmem:[#allocation9 + $0xc4] sm:$0xf]  ;;  %v4817_v6 = vld [vmem:[#allocation9 + $0xc4] sm:$0xf0] }
 0x66e   : > { %2455 = vst [vmem:[%s7132_s29 + $0x40] sm:$0xff] %v2439_v21  ;;  %3128 = vmatpush.bf16.msra.mxu2 %v4649_v12  ;;  %v4694_v21 = vld [vmem:[#allocation9 + $0xc8] sm:$0xf0] }
 0x66f   : > { %v2319_v2 = vpop.f32.mrf.mxu2  ;;  %v2348_v59 = vpop.f32.mrf.mxu3 }
 0x670   : > { %v2349_v14 = vadd.f32 %v2348_v59, %v2319_v2  ;;  %v4697_v59 = vor.u32 %v4816_v28, %v4694_v21  ;;  %v5339_v28 = vld [vmem:[%s5845_s23 + $0x48] sm:$0xff] }
 0x672   : > { %v2425_v35 = vmul.f32 %v7123_v58, %v2349_v14  ;;  %3129 = vmatpush.bf16.msra.mxu2 %v4641_v16  ;;  %v4628_v14 = vld [vmem:[#allocation9 + $0x40] sm:$0xf]  ;;  %3219 = vmatpush.bf16.msra.mxu3 %v4697_v59 }
 0x673   : > { %v2475_v31 = vpop.trf.xlu0  ;;  %v4596_v59 = vld [vmem:[#allocation9] sm:$0xf] }
 0x674   : > { %v2441_v34 = vadd.f32 %v5332_v0, %v2425_v35  ;;  %v4801_v35 = vld [vmem:[#allocation9 + $0x44] sm:$0xf0]  ;;  %v4692_v0 = vld [vmem:[#allocation9 + $0xc0] sm:$0xf] }
 0x675   : > { %v4629_v37 = vor.u32 %v4801_v35, %v4628_v14  ;;  %v4693_v50 = vor.u32 %v4817_v6, %v4692_v0  ;;  %v4793_v14 = vld [vmem:[#allocation9 + $0x4] sm:$0xf0]  ;;  %v4660_v35 = vld [vmem:[#allocation9 + $0x80] sm:$0xf] }
 0x676   : > { %2457 = vst [vmem:[%s7132_s29 + $0x50] sm:$0xff] %v2441_v34  ;;  %3130 = vmatpush.bf16.msra.mxu2 %v4633_v63  ;;  %v4795_v63 = vld [vmem:[#allocation9 + $0x14] sm:$0xf0] }
 0x677   : > { %2952 = vmatpush.bf16.msrb.mxu0 %v4629_v37  ;;  %3041 = vmatpush.bf16.msrb.mxu1 %v4693_v50  ;;  %v4809_v37 = vld [vmem:[#allocation9 + $0x84] sm:$0xf0] }
 0x678   : > { %v4661_v50 = vor.u32 %v4809_v37, %v4660_v35 }
 0x67b   : > { %4562 = vmatmul.msk.bf16.vlgmr.msrb.gmra.mxu2 %vm812_vm2, %v2471_v43  ;;  %4578 = vmatmul.msk.bf16.vlgmr.msrb.gmra.mxu3 %vm812_vm2, %v2471_v43  ;;  %v7168_v51 = vpop.trf.xlu0 }
 0x67c   : > { %2953 = vmatpush.bf16.msrb.mxu0 %v4621_v38  ;;  %3042 = vmatpush.bf16.msrb.mxu1 %v4685_v55  ;;  %v8700_v38 = vld [vmem:[#allocation37_spill] sm:$0xff] }
 0x67d   : > { %v5342_v55 = vld [vmem:[%s5845_s23 + $0x78] sm:$0xff] }
 0x683   : > { %v2477_v30 = vpop.trf.xlu0 }
 0x68b   : > { %4563 = vmatmul.msk.bf16.gmra.mxu2 %vm812_vm2, %v2473_v44  ;;  %4579 = vmatmul.msk.bf16.gmra.mxu3 %vm812_vm2, %v2473_v44  ;;  %v7172_v19 = vpop.trf.xlu0 }
 0x693   : > { %v2479_v39 = vpop.trf.xlu0 }
 0x69b   : > { %4564 = vmatmul.msk.bf16.gmra.mxu2 %vm812_vm2, %v2475_v31  ;;  %4580 = vmatmul.msk.bf16.gmra.mxu3 %vm812_vm2, %v2475_v31  ;;  %v7181_v32 = vpop.trf.xlu0 }
 0x6a3   : > { %v2481_v53 = vpop.trf.xlu0 }
 0x6a8   : > { %v2322_v41 = vpop.f32.mrf.mxu2  ;;  %v2351_v18 = vpop.f32.mrf.mxu3 }
 0x6a9   : > { %v2352_v9 = vadd.f32 %v2351_v18, %v2322_v41  ;;  %v4798_v18 = vld [vmem:[#allocation9 + $0x34] sm:$0xf] }
 0x6ab   : > { %v2427_v48 = vmul.f32 %v7123_v58, %v2352_v9  ;;  %4565 = vmatmul.msk.bf16.gmra.mxu2 %vm812_vm2, %v2477_v30  ;;  %4581 = vmatmul.msk.bf16.gmra.mxu3 %vm812_vm2, %v2477_v30  ;;  %v7190_v11 = vpop.trf.xlu0  ;;  %v4622_v9 = vld [vmem:[#allocation9 + $0x38] sm:$0xf0] }
 0x6ad   : > { %v2443_v26 = vadd.f32 %v5333_v45, %v2427_v48  ;;  %v4625_v45 = vor.u32 %v4798_v18, %v4622_v9  ;;  %v4796_v9 = vld [vmem:[#allocation9 + $0x24] sm:$0xf] }
 0x6af   : > { %2459 = vst [vmem:[%s7132_s29 + $0x60] sm:$0xff] %v2443_v26  ;;  %v4612_v26 = vld [vmem:[#allocation9 + $0x20] sm:$0xf]  ;;  %3131 = vmatpush.bf16.msra.mxu2 %v4625_v45 }
 0x6b0   : > { %v2324_v43 = vpop.f32.mrf.mxu2  ;;  %v2353_v13 = vpop.f32.mrf.mxu3 }
 0x6b1   : > { %v2354_v4 = vadd.f32 %v2353_v13, %v2324_v43  ;;  %v4797_v43 = vld [vmem:[#allocation9 + $0x24] sm:$0xf0]  ;;  %v4676_v13 = vld [vmem:[#allocation9 + $0xa0] sm:$0xf] }
 0x6b3   : > { %v2429_v10 = vmul.f32 %v7123_v58, %v2354_v4  ;;  %v2483_v30 = vpop.trf.xlu0 }
 0x6b5   : > { %v2445_v54 = vadd.f32 %v5334_v24, %v2429_v10  ;;  %v4613_v10 = vor.u32 %v4797_v43, %v4612_v26  ;;  %v4813_v24 = vld [vmem:[#allocation9 + $0xa4] sm:$0xf0]  ;;  %v4812_v43 = vld [vmem:[#allocation9 + $0xa4] sm:$0xf] }
 0x6b6   : > { %v4677_v7 = vor.u32 %v4813_v24, %v4676_v13  ;;  %v4678_v13 = vld [vmem:[#allocation9 + $0xa8] sm:$0xf0] }
 0x6b7   : > { %2461 = vst [vmem:[%s7132_s29 + $0x70] sm:$0xff] %v2445_v54  ;;  %v4814_v54 = vld [vmem:[#allocation9 + $0xb4] sm:$0xf]  ;;  %2954 = vmatpush.bf16.msrb.mxu0 %v4613_v10 }
 0x6b8   : > { %3043 = vmatpush.bf16.msrb.mxu1 %v4677_v7 }
 0x6bb   : > { %4566 = vmatmul.msk.bf16.gmra.mxu2 %vm812_vm2, %v2479_v39  ;;  %4582 = vmatmul.msk.bf16.gmra.mxu3 %vm812_vm2, %v2479_v39  ;;  %v7204_v41 = vpop.trf.xlu0 }
 0x6be   : > { %v2365_v42 = vpop.f32.mrf.mxu2  ;;  %v2394_v23 = vpop.f32.mrf.mxu3 }
 0x6bf   : > { %v2395_v22 = vadd.f32 %v2394_v23, %v2365_v42  ;;  %v4689_v42 = vor.u32 %v4814_v54, %v4686_v57  ;;  %v4604_v23 = vld [vmem:[#allocation9 + $0x10] sm:$0xf] }
 0x6c1   : > { %v2416_v17 = vmul.f32 %v7123_v58, %v2395_v22  ;;  %v4668_v22 = vld [vmem:[#allocation9 + $0x90] sm:$0xf]  ;;  %3220 = vmatpush.bf16.msra.mxu3 %v4689_v42 }
 0x6c3   : > { %v2432_v33 = vadd.f32 %v5335_v27, %v2416_v17  ;;  %v4605_v17 = vor.u32 %v4795_v63, %v4604_v23  ;;  %v4811_v27 = vld [vmem:[#allocation9 + $0x94] sm:$0xf0]  ;;  %v2485_v6 = vpop.trf.xlu0 }
 0x6c5   : > { %2448 = vst [vmem:[%s7132_s29 + $0x8] sm:$0xff] %v2432_v33  ;;  %v4669_v33 = vor.u32 %v4811_v27, %v4668_v22  ;;  %2955 = vmatpush.bf16.msrb.mxu0 %v4605_v17  ;;  %v4794_v22 = vld [vmem:[#allocation9 + $0x14] sm:$0xf] }
 0x6c6   : > { %v2367_v44 = vpop.f32.mrf.mxu2  ;;  %v2396_v2 = vpop.f32.mrf.mxu3 }
 0x6c7   : > { %v2397_v34 = vadd.f32 %v2396_v2, %v2367_v44  ;;  %3044 = vmatpush.bf16.msrb.mxu1 %v4669_v33  ;;  %v4810_v33 = vld [vmem:[#allocation9 + $0x94] sm:$0xf] }
 0x6c9   : > { %v2418_v12 = vmul.f32 %v7123_v58, %v2397_v34  ;;  %v4597_v34 = vor.u32 %v4793_v14, %v4596_v59 }
 0x6cb   : > { %v2434_v25 = vadd.f32 %v5336_v15, %v2418_v12  ;;  %4567 = vmatmul.msk.bf16.gmra.mxu2 %vm812_vm2, %v2481_v53  ;;  %4583 = vmatmul.msk.bf16.gmra.mxu3 %vm812_vm2, %v2481_v53  ;;  %v8693_v15 = vld [vmem:[#allocation30_spill] sm:$0xff] }
 0x6cc   : > { %2956 = vmatpush.bf16.msrb.mxu0 %v4597_v34  ;;  %3045 = vmatpush.bf16.msrb.mxu1 %v4661_v50  ;;  %v4792_v50 = vld [vmem:[#allocation9 + $0x4] sm:$0xf] }
 0x6cd   : > { %2450 = vst [vmem:[%s7132_s29 + $0x18] sm:$0xff] %v2434_v25  ;;  %v5340_v25 = vld [vmem:[%s5845_s23 + $0x58] sm:$0xff] }
 0x6ce   : > { %v2370_v61 = vpop.f32.mrf.mxu2  ;;  %v2399_v29 = vpop.f32.mrf.mxu3 }
 0x6cf   : > { %v2400_v46 = vadd.f32 %v2399_v29, %v2370_v61  ;;  %v8694_v29 = vld [vmem:[#allocation31_spill] sm:$0xff] }
 0x6d0   : > { %3877 = vmatpush.bf16.msra.mxu0 %v8693_v15  ;;  %3906 = vmatpush.bf16.msra.mxu1 %v8694_v29  ;;  %v4662_v29 = vld [vmem:[#allocation9 + $0x88] sm:$0xf0] }
 0x6d1   : > { %v2420_v20 = vmul.f32 %v7123_v58, %v2400_v46 }
 0x6d3   : > { %v2436_v31 = vadd.f32 %v5337_v56, %v2420_v20  ;;  %v8695_v56 = vld [vmem:[#allocation32_spill] sm:$0xff] }
 0x6d4   : > { %3878 = vmatpush.bf16.msra.mxu0 %v8695_v56 }
 0x6d5   : > { %2452 = vst [vmem:[%s7132_s29 + $0x28] sm:$0xff] %v2436_v31 }
 0x6d6   : > { %v2372_v1 = vpop.f32.mrf.mxu2  ;;  %v2401_v3 = vpop.f32.mrf.mxu3 }
 0x6d7   : > { %v2402_v16 = vadd.f32 %v2401_v3, %v2372_v1  ;;  %v8697_v3 = vld [vmem:[#allocation34_spill] sm:$0xff] }
 0x6d8   : > { %3879 = vmatpush.bf16.msra.mxu0 %v8697_v3 }
 0x6d9   : > { %v2422_v36 = vmul.f32 %v7123_v58, %v2402_v16  ;;  %v5341_v16 = vld [vmem:[%s5845_s23 + $0x68] sm:$0xff] }
 0x6db   : > { %v2438_v49 = vadd.f32 %v5338_v60, %v2422_v36  ;;  %4568 = vmatmul.msk.bf16.gmra.mxu2 %vm812_vm2, %v2483_v30  ;;  %4584 = vmatmul.msk.bf16.gmra.mxu3 %vm812_vm2, %v2483_v30  ;;  %v8696_v30 = vld [vmem:[#allocation33_spill] sm:$0xff]  ;;  %v8699_v60 = vld [vmem:[#allocation36_spill] sm:$0xff] }
 0x6dc   : > { %3907 = vmatpush.bf16.msra.mxu1 %v8696_v30  ;;  %3880 = vmatpush.bf16.msra.mxu0 %v8699_v60 }
 0x6dd   : > { %2454 = vst [vmem:[%s7132_s29 + $0x38] sm:$0xff] %v2438_v49 }
 0x6de   : > { %v2375_v48 = vpop.f32.mrf.mxu2  ;;  %v2404_v39 = vpop.f32.mrf.mxu3 }
 0x6df   : > { %v2405_v4 = vadd.f32 %v2404_v39, %v2375_v48  ;;  %v4614_v48 = vld [vmem:[#allocation9 + $0x28] sm:$0xf0] }
 0x6e0   : > { %3908 = vmatpush.bf16.msra.mxu1 %v8698_v47  ;;  %v4617_v39 = vor.u32 %v4796_v9, %v4614_v48 }
 0x6e1   : > { %v2424_v53 = vmul.f32 %v7123_v58, %v2405_v4  ;;  %v4681_v4 = vor.u32 %v4812_v43, %v4678_v13  ;;  %v7311_v43 = vld [vmem:[%s8701_s10] sm:$0x3] }
 0x6e2   : > { %3132 = vmatpush.bf16.msra.mxu2 %v4617_v39  ;;  %v7314_v13 = vperm.slane %v7311_v43, 0 }
 0x6e3   : > { %v2440_v21 = vadd.f32 %v5339_v28, %v2424_v53  ;;  %3221 = vmatpush.bf16.msra.mxu3 %v4681_v4  ;;  %v4670_v28 = vld [vmem:[#allocation9 + $0x98] sm:$0xf0] }
 0x6e4   : > { %3909 = vmatpush.bf16.msra.mxu1 %v8700_v38 }
 0x6e5   : > { %2456 = vst [vmem:[%s7132_s29 + $0x48] sm:$0xff] %v2440_v21  ;;  %v4673_v21 = vor.u32 %v4810_v33, %v4670_v28 }
 0x6e6   : > { %v2377_v44 = vpop.f32.mrf.mxu2  ;;  %v2406_v2 = vpop.f32.mrf.mxu3 }
 0x6e7   : > { %v2407_v0 = vadd.f32 %v2406_v2, %v2377_v44  ;;  %3222 = vmatpush.bf16.msra.mxu3 %v4673_v21 }
 0x6e9   : > { %v2426_v12 = vmul.f32 %v7123_v58, %v2407_v0 }
 0x6eb   : > { %v2442_v61 = vadd.f32 %v5340_v25, %v2426_v12  ;;  %4569 = vmatmul.msk.bf16.gmra.mxu2 %vm812_vm2, %v2485_v6  ;;  %4585 = vmatmul.msk.bf16.gmra.mxu3 %vm812_vm2, %v2485_v6 }
 0x6ed   : > { %2458 = vst [vmem:[%s7132_s29 + $0x58] sm:$0xff] %v2442_v61  ;;  %v4808_v61 = vld [vmem:[#allocation9 + $0x84] sm:$0xf] }
 0x6ee   : > { %v2380_v46 = vpop.f32.mrf.mxu2  ;;  %v2409_v20 = vpop.f32.mrf.mxu3 }
 0x6ef   : > { %v2410_v31 = vadd.f32 %v2409_v20, %v2380_v46  ;;  %v4665_v46 = vor.u32 %v4808_v61, %v4662_v29 }
 0x6f1   : > { %v2428_v1 = vmul.f32 %v7123_v58, %v2410_v31  ;;  %3223 = vmatpush.bf16.msra.mxu3 %v4665_v46 }
 0x6f3   : > { %v2444_v36 = vadd.f32 %v5341_v16, %v2428_v1 }
 0x6f5   : > { %2460 = vst [vmem:[%s7132_s29 + $0x68] sm:$0xff] %v2444_v36 }
 0x6f6   : > { %v2382_v40 = vpop.f32.mrf.mxu2  ;;  %v2411_v62 = vpop.f32.mrf.mxu3 }
 0x6f7   : > { %v2412_v49 = vadd.f32 %v2411_v62, %v2382_v40 }
 0x6f9   : > { %v2430_v8 = vmul.f32 %v7123_v58, %v2412_v49 }
 0x6fb   : > { %v2446_v18 = vadd.f32 %v5342_v55, %v2430_v8  ;;  %4570 = vmatmul.msk.bf16.gmra.mxu2 %vm812_vm2, %v7152_v5  ;;  %4586 = vmatmul.msk.bf16.gmra.mxu3 %vm812_vm2, %v7152_v5  ;;  %v2486_v8 = vpop.trf.xlu0 }
 0x6fd   : > { %2462 = vst [vmem:[%s7132_s29 + $0x78] sm:$0xff] %v2446_v18 }
 0x6fe   : > { %v2550_v45 = vpop.f32.mrf.mxu2  ;;  %v2639_v26 = vpop.f32.mrf.mxu3 }
 0x706   : > { %v2552_v58 = vpop.f32.mrf.mxu2  ;;  %v2641_v10 = vpop.f32.mrf.mxu3 }
 0x707   : > { %v7232_v24 = vpack.c.bf16 %v2552_v58, %v2550_v45  ;;  %v7234_v54 = vpack.c.bf16 %v2641_v10, %v2639_v26 }
 0x709   : > { %2957 = vmatmul.bf16.vlgmr.msrb.gmra.mxu0 %v7232_v24  ;;  %3046 = vmatmul.bf16.vlgmr.msrb.gmra.mxu1 %v7234_v54 }
 0x70b   : > { %4571 = vmatmul.msk.bf16.gmra.mxu2 %vm812_vm2, %v7162_v52  ;;  %4587 = vmatmul.msk.bf16.gmra.mxu3 %vm812_vm2, %v7162_v52  ;;  %v4606_v52 = vld [vmem:[#allocation9 + $0x18] sm:$0xf0] }
 0x70c   : > { %v4609_v53 = vor.u32 %v4794_v22, %v4606_v52 }
 0x70e   : > { %v2555_v5 = vpop.f32.mrf.mxu2  ;;  %v2644_v57 = vpop.f32.mrf.mxu3  ;;  %3133 = vmatpush.bf16.msra.mxu2 %v4609_v53 }
 0x716   : > { %v2557_v7 = vpop.f32.mrf.mxu2  ;;  %v2646_v42 = vpop.f32.mrf.mxu3 }
 0x717   : > { %v7242_v23 = vpack.c.bf16 %v2557_v7, %v2555_v5  ;;  %v7244_v63 = vpack.c.bf16 %v2646_v42, %v2644_v57 }
 0x719   : > { %2962 = vmatmul.bf16.gmra.mxu0 %v7242_v23  ;;  %3051 = vmatmul.bf16.gmra.mxu1 %v7244_v63 }
 0x71b   : > { %4572 = vmatmul.msk.bf16.gmra.mxu2 %vm812_vm2, %v7168_v51  ;;  %4588 = vmatmul.msk.bf16.gmra.mxu3 %vm812_vm2, %v7168_v51 }
 0x71e   : > { %v2560_v17 = vpop.f32.mrf.mxu2  ;;  %v2649_v27 = vpop.f32.mrf.mxu3 }
 0x726   : > { %v2562_v44 = vpop.f32.mrf.mxu2  ;;  %v2651_v2 = vpop.f32.mrf.mxu3 }
 0x727   : > { %v7252_v59 = vpack.c.bf16 %v2562_v44, %v2560_v17  ;;  %v7254_v14 = vpack.c.bf16 %v2651_v2, %v2649_v27 }
 0x729   : > { %2967 = vmatmul.bf16.gmra.mxu0 %v7252_v59  ;;  %3056 = vmatmul.bf16.gmra.mxu1 %v7254_v14 }
 0x72b   : > { %4573 = vmatmul.msk.bf16.gmra.mxu2 %vm812_vm2, %v7172_v19  ;;  %4589 = vmatmul.msk.bf16.gmra.mxu3 %vm812_vm2, %v7172_v19  ;;  %v4598_v19 = vld [vmem:[#allocation9 + $0x8] sm:$0xf0] }
 0x72c   : > { %v4601_v12 = vor.u32 %v4792_v50, %v4598_v19 }
 0x72e   : > { %v2565_v51 = vpop.f32.mrf.mxu2  ;;  %v2654_v35 = vpop.f32.mrf.mxu3  ;;  %3134 = vmatpush.bf16.msra.mxu2 %v4601_v12 }
 0x736   : > { %v2567_v0 = vpop.f32.mrf.mxu2  ;;  %v2656_v34 = vpop.f32.mrf.mxu3 }
 0x737   : > { %v7262_v37 = vpack.c.bf16 %v2567_v0, %v2565_v51  ;;  %v7264_v6 = vpack.c.bf16 %v2656_v34, %v2654_v35 }
 0x739   : > { %2972 = vmatmul.bf16.gmra.mxu0 %v7262_v37  ;;  %3061 = vmatmul.bf16.gmra.mxu1 %v7264_v6 }
 0x73b   : > { %4574 = vmatmul.msk.bf16.gmra.mxu2 %vm812_vm2, %v7181_v32  ;;  %4590 = vmatmul.msk.bf16.gmra.mxu3 %vm812_vm2, %v7181_v32 }
 0x73e   : > { %v2570_v15 = vpop.f32.mrf.mxu2  ;;  %v2659_v25 = vpop.f32.mrf.mxu3 }
 0x746   : > { %v2572_v20 = vpop.f32.mrf.mxu2  ;;  %v2661_v56 = vpop.f32.mrf.mxu3 }
 0x747   : > { %v7272_v31 = vpack.c.bf16 %v2572_v20, %v2570_v15  ;;  %v7274_v30 = vpack.c.bf16 %v2661_v56, %v2659_v25 }
 0x749   : > { %2977 = vmatmul.bf16.gmra.mxu0 %v7272_v31  ;;  %3066 = vmatmul.bf16.gmra.mxu1 %v7274_v30 }
 0x74b   : > { %4575 = vmatmul.msk.bf16.gmra.mxu2 %vm812_vm2, %v7190_v11  ;;  %4591 = vmatmul.msk.bf16.gmra.mxu3 %vm812_vm2, %v7190_v11 }
 0x74e   : > { %v2575_v32 = vpop.f32.mrf.mxu2  ;;  %v2664_v1 = vpop.f32.mrf.mxu3 }
 0x756   : > { %v2577_v3 = vpop.f32.mrf.mxu2  ;;  %v2666_v16 = vpop.f32.mrf.mxu3 }
 0x757   : > { %v7282_v36 = vpack.c.bf16 %v2577_v3, %v2575_v32  ;;  %v7284_v47 = vpack.c.bf16 %v2666_v16, %v2664_v1 }
 0x759   : > { %2982 = vmatmul.bf16.gmra.mxu0 %v7282_v36  ;;  %3071 = vmatmul.bf16.gmra.mxu1 %v7284_v47 }
 0x75b   : > { %4576 = vmatmul.msk.bf16.gmra.mxu2 %vm812_vm2, %v7204_v41  ;;  %4592 = vmatmul.msk.bf16.gmra.mxu3 %vm812_vm2, %v7204_v41 }
 0x75e   : > { %v2580_v40 = vpop.f32.mrf.mxu2  ;;  %v2669_v11 = vpop.f32.mrf.mxu3 }
 0x766   : > { %v2582_v62 = vpop.f32.mrf.mxu2  ;;  %v2671_v60 = vpop.f32.mrf.mxu3 }
 0x767   : > { %v7292_v49 = vpack.c.bf16 %v2582_v62, %v2580_v40  ;;  %v7294_v38 = vpack.c.bf16 %v2671_v60, %v2669_v11 }
 0x769   : > { %2987 = vmatmul.bf16.gmra.mxu0 %v7292_v49  ;;  %3076 = vmatmul.bf16.gmra.mxu1 %v7294_v38 }
 0x76b   : > { %4577 = vmatmul.msk.bf16.gmra.mxu2 %vm812_vm2, %v2486_v8  ;;  %4593 = vmatmul.msk.bf16.gmra.mxu3 %vm812_vm2, %v2486_v8 }
 0x76e   : > { %v2585_v55 = vpop.f32.mrf.mxu2  ;;  %v2674_v18 = vpop.f32.mrf.mxu3 }
 0x776   : > { %v2587_v41 = vpop.f32.mrf.mxu2  ;;  %v2676_v9 = vpop.f32.mrf.mxu3 }
 0x777   : > { %v7300_v48 = vpack.c.bf16 %v2587_v41, %v2585_v55  ;;  %v7302_v39 = vpack.c.bf16 %v2676_v9, %v2674_v18 }
 0x779   : > { %2992 = vmatmul.bf16.gmra.mxu0 %v7300_v48  ;;  %3081 = vmatmul.bf16.gmra.mxu1 %v7302_v39 }
 0x77b   : > { %3135 = vmatmul.bf16.vlgmr.msra.gmra.mxu2 %v7232_v24  ;;  %3224 = vmatmul.bf16.vlgmr.msra.gmra.mxu3 %v7234_v54 }
 0x77e   : > { %v2590_v45 = vpop.f32.mrf.mxu2  ;;  %v2679_v26 = vpop.f32.mrf.mxu3 }
 0x786   : > { %v2592_v4 = vpop.f32.mrf.mxu2  ;;  %v2681_v58 = vpop.f32.mrf.mxu3 }
 0x787   : > { %v7316_v10 = vpack.c.bf16 %v2592_v4, %v2590_v45  ;;  %v7318_v5 = vpack.c.bf16 %v2681_v58, %v2679_v26  ;;  %v2958_v57 = vpop.f32.mrf.mxu0  ;;  %v3047_v24 = vpop.f32.mrf.mxu1 }
 0x788   : > { %v2959_v54 = vadd.f32 %v2958_v57, %v7314_v13 }
 0x789   : > { %2997 = vmatmul.bf16.gmra.mxu0 %v7316_v10  ;;  %3086 = vmatmul.bf16.gmra.mxu1 %v7318_v5 }
 0x78a   : > { %v7323_v7 = vadd.f32 %v3047_v24, %v2959_v54 }
 0x78b   : > { %3140 = vmatmul.bf16.gmra.mxu2 %v7242_v23  ;;  %3229 = vmatmul.bf16.gmra.mxu3 %v7244_v63 }
 0x78e   : > { %v2595_v42 = vpop.f32.mrf.mxu2  ;;  %v2684_v22 = vpop.f32.mrf.mxu3 }
 0x78f   : > { %v2960_v52 = vpop.f32.mrf.mxu0  ;;  %v3049_v53 = vpop.f32.mrf.mxu1 }
 0x790   : > { %v2961_v17 = vadd.f32 %v2960_v52, %v7314_v13 }
 0x792   : > { %v7328_v27 = vadd.f32 %v3049_v53, %v2961_v17 }
 0x796   : > { %v2597_v33 = vpop.f32.mrf.mxu2  ;;  %v2686_v28 = vpop.f32.mrf.mxu3 }
 0x797   : > { %v7330_v21 = vpack.c.bf16 %v2597_v33, %v2595_v42  ;;  %v7332_v44 = vpack.c.bf16 %v2686_v28, %v2684_v22  ;;  %v2963_v2 = vpop.f32.mrf.mxu0  ;;  %v3052_v51 = vpop.f32.mrf.mxu1 }
 0x798   : > { %v2964_v23 = vadd.f32 %v2963_v2, %v7314_v13 }
 0x799   : > { %3002 = vmatmul.bf16.gmra.mxu0 %v7330_v21  ;;  %3091 = vmatmul.bf16.gmra.mxu1 %v7332_v44 }
 0x79a   : > { %v7337_v63 = vadd.f32 %v3052_v51, %v2964_v23 }
 0x79b   : > { %3145 = vmatmul.bf16.gmra.mxu2 %v7252_v59  ;;  %3234 = vmatmul.bf16.gmra.mxu3 %v7254_v14 }
 0x79e   : > { %v2600_v35 = vpop.f32.mrf.mxu2  ;;  %v2689_v0 = vpop.f32.mrf.mxu3 }
 0x79f   : > { %v2965_v34 = vpop.f32.mrf.mxu0  ;;  %v3054_v50 = vpop.f32.mrf.mxu1 }
 0x7a0   : > { %v2966_v19 = vadd.f32 %v2965_v34, %v7314_v13 }
 0x7a2   : > { %v7342_v12 = vadd.f32 %v3054_v50, %v2966_v19 }
 0x7a6   : > { %v2602_v15 = vpop.f32.mrf.mxu2  ;;  %v2691_v25 = vpop.f32.mrf.mxu3 }
 0x7a7   : > { %v7344_v61 = vpack.c.bf16 %v2602_v15, %v2600_v35  ;;  %v7346_v29 = vpack.c.bf16 %v2691_v25, %v2689_v0  ;;  %v2968_v46 = vpop.f32.mrf.mxu0  ;;  %v3057_v20 = vpop.f32.mrf.mxu1 }
 0x7a8   : > { %v2969_v59 = vadd.f32 %v2968_v46, %v7314_v13 }
 0x7a9   : > { %3007 = vmatmul.bf16.gmra.mxu0 %v7344_v61  ;;  %3096 = vmatmul.bf16.gmra.mxu1 %v7346_v29 }
 0x7aa   : > { %v7351_v14 = vadd.f32 %v3057_v20, %v2969_v59 }
 0x7ab   : > { %3150 = vmatmul.bf16.gmra.mxu2 %v7262_v37  ;;  %3239 = vmatmul.bf16.gmra.mxu3 %v7264_v6 }
 0x7ae   : > { %v2605_v56 = vpop.f32.mrf.mxu2  ;;  %v2694_v32 = vpop.f32.mrf.mxu3 }
 0x7af   : > { %v2970_v1 = vpop.f32.mrf.mxu0  ;;  %v3059_v3 = vpop.f32.mrf.mxu1 }
 0x7b0   : > { %v2971_v16 = vadd.f32 %v2970_v1, %v7314_v13 }
 0x7b2   : > { %v7356_v40 = vadd.f32 %v3059_v3, %v2971_v16 }
 0x7b6   : > { %v2607_v11 = vpop.f32.mrf.mxu2  ;;  %v2696_v62 = vpop.f32.mrf.mxu3 }
 0x7b7   : > { %v7358_v60 = vpack.c.bf16 %v2607_v11, %v2605_v56  ;;  %v7360_v8 = vpack.c.bf16 %v2696_v62, %v2694_v32  ;;  %v2973_v55 = vpop.f32.mrf.mxu0  ;;  %v3062_v18 = vpop.f32.mrf.mxu1 }
 0x7b8   : > { %v2974_v37 = vadd.f32 %v2973_v55, %v7314_v13 }
 0x7b9   : > { %3012 = vmatmul.bf16.gmra.mxu0 %v7358_v60  ;;  %3101 = vmatmul.bf16.gmra.mxu1 %v7360_v8 }
 0x7ba   : > { %v7365_v6 = vadd.f32 %v3062_v18, %v2974_v37 }
 0x7bb   : > { %3155 = vmatmul.bf16.gmra.mxu2 %v7272_v31  ;;  %3244 = vmatmul.bf16.gmra.mxu3 %v7274_v30 }
 0x7be   : > { %v2610_v41 = vpop.f32.mrf.mxu2  ;;  %v2699_v9 = vpop.f32.mrf.mxu3 }
 0x7bf   : > { %v2975_v45 = vpop.f32.mrf.mxu0  ;;  %v3064_v26 = vpop.f32.mrf.mxu1 }
 0x7c0   : > { %v2976_v4 = vadd.f32 %v2975_v45, %v7314_v13 }
 0x7c2   : > { %v7370_v58 = vadd.f32 %v3064_v26, %v2976_v4 }
 0x7c6   : > { %v2612_v57 = vpop.f32.mrf.mxu2  ;;  %v2701_v24 = vpop.f32.mrf.mxu3 }
 0x7c7   : > { %v7372_v54 = vpack.c.bf16 %v2612_v57, %v2610_v41  ;;  %v7374_v42 = vpack.c.bf16 %v2701_v24, %v2699_v9  ;;  %v7376_v22 = vpop.f32.mrf.mxu0  ;;  %v7378_v52 = vpop.f32.mrf.mxu1 }
 0x7c9   : > { %3017 = vmatmul.bf16.gmra.mxu0 %v7372_v54  ;;  %3106 = vmatmul.bf16.gmra.mxu1 %v7374_v42 }
 0x7cb   : > { %3160 = vmatmul.bf16.gmra.mxu2 %v7282_v36  ;;  %3249 = vmatmul.bf16.gmra.mxu3 %v7284_v47 }
 0x7ce   : > { %v2615_v31 = vpop.f32.mrf.mxu2  ;;  %v2704_v30 = vpop.f32.mrf.mxu3 }
 0x7cf   : > { %v7384_v53 = vpop.f32.mrf.mxu0  ;;  %v7386_v17 = vpop.f32.mrf.mxu1 }
 0x7d6   : > { %v2617_v33 = vpop.f32.mrf.mxu2  ;;  %v2706_v28 = vpop.f32.mrf.mxu3 }
 0x7d7   : > { %v7388_v2 = vpack.c.bf16 %v2617_v33, %v2615_v31  ;;  %v7390_v51 = vpack.c.bf16 %v2706_v28, %v2704_v30  ;;  %v7392_v23 = vpop.f32.mrf.mxu0  ;;  %v7394_v35 = vpop.f32.mrf.mxu1 }
 0x7d9   : > { %3022 = vmatmul.bf16.gmra.mxu0 %v7388_v2  ;;  %3111 = vmatmul.bf16.gmra.mxu1 %v7390_v51 }
 0x7db   : > { %3165 = vmatmul.bf16.gmra.mxu2 %v7292_v49  ;;  %3254 = vmatmul.bf16.gmra.mxu3 %v7294_v38 }
 0x7de   : > { %v2620_v36 = vpop.f32.mrf.mxu2  ;;  %v2709_v47 = vpop.f32.mrf.mxu3 }
 0x7df   : > { %v7400_v0 = vpop.f32.mrf.mxu0  ;;  %v7402_v34 = vpop.f32.mrf.mxu1 }
 0x7e6   : > { %v2622_v50 = vpop.f32.mrf.mxu2  ;;  %v2711_v19 = vpop.f32.mrf.mxu3 }
 0x7e7   : > { %v7404_v15 = vpack.c.bf16 %v2622_v50, %v2620_v36  ;;  %v7406_v25 = vpack.c.bf16 %v2711_v19, %v2709_v47  ;;  %v7408_v46 = vpop.f32.mrf.mxu0  ;;  %v7410_v20 = vpop.f32.mrf.mxu1 }
 0x7e9   : > { %3027 = vmatmul.bf16.gmra.mxu0 %v7404_v15  ;;  %3116 = vmatmul.bf16.gmra.mxu1 %v7406_v25 }
 0x7eb   : > { %3170 = vmatmul.bf16.gmra.mxu2 %v7300_v48  ;;  %3259 = vmatmul.bf16.gmra.mxu3 %v7302_v39  ;;  %v7433_v48 = vperm.slane %v7311_v43, 1 }
 0x7ee   : > { %v2625_v49 = vpop.f32.mrf.mxu2  ;;  %v2714_v38 = vpop.f32.mrf.mxu3 }
 0x7ef   : > { %v7416_v59 = vpop.f32.mrf.mxu0  ;;  %v7418_v56 = vpop.f32.mrf.mxu1 }
 0x7f6   : > { %v2627_v32 = vpop.f32.mrf.mxu2  ;;  %v2716_v1 = vpop.f32.mrf.mxu3 }
 0x7f7   : > { %v7420_v3 = vpack.c.bf16 %v2627_v32, %v2625_v49  ;;  %v7422_v16 = vpack.c.bf16 %v2716_v1, %v2714_v38  ;;  %v7424_v11 = vpop.f32.mrf.mxu0  ;;  %v7426_v62 = vpop.f32.mrf.mxu1 }
 0x7f9   : > { %3032 = vmatmul.bf16.gmra.mxu0 %v7420_v3  ;;  %3121 = vmatmul.bf16.gmra.mxu1 %v7422_v16 }
 0x7fb   : > { %3175 = vmatmul.bf16.gmra.mxu2 %v7316_v10  ;;  %3264 = vmatmul.bf16.gmra.mxu3 %v7318_v5 }
 0x7fe   : > { %v3136_v39 = vpop.f32.mrf.mxu2  ;;  %v3225_v55 = vpop.f32.mrf.mxu3 }
 0x7ff   : > { %v7435_v18 = vpop.f32.mrf.mxu0  ;;  %v7437_v37 = vpop.f32.mrf.mxu1  ;;  %v3137_v41 = vadd.f32 %v3136_v39, %v7433_v48 }
 0x801   : > { %v7440_v9 = vadd.f32 %v3225_v55, %v3137_v41 }
 0x806   : > { %v3138_v45 = vpop.f32.mrf.mxu2  ;;  %v3227_v26 = vpop.f32.mrf.mxu3 }
 0x807   : > { %v2998_v4 = vpop.f32.mrf.mxu0  ;;  %v3139_v10 = vadd.f32 %v3138_v45, %v7433_v48  ;;  %v3087_v57 = vpop.f32.mrf.mxu1 }
 0x808   : > { %v2999_v5 = vadd.f32 %v2998_v4, %v7314_v13 }
 0x809   : > { %v7444_v43 = vadd.f32 %v3227_v26, %v3139_v10 }
 0x80a   : > { %v7446_v24 = vadd.f32 %v3087_v57, %v2999_v5 }
 0x80b   : > { %3180 = vmatmul.bf16.gmra.mxu2 %v7330_v21  ;;  %3269 = vmatmul.bf16.gmra.mxu3 %v7332_v44 }
 0x80c   : > { %8702 = vst [vmem:[#allocation53_spill] sm:$0xff] %v7446_v24 }
 0x80e   : > { %v3141_v31 = vpop.f32.mrf.mxu2  ;;  %v3230_v30 = vpop.f32.mrf.mxu3 }
 0x80f   : > { %v3142_v33 = vadd.f32 %v3141_v31, %v7433_v48 }
 0x811   : > { %v7451_v28 = vadd.f32 %v3230_v30, %v3142_v33  ;;  %v2986_v30 = vadd.f32 %v7400_v0, %v7314_v13  ;;  %v2989_v0 = vadd.f32 %v7408_v46, %v7314_v13 }
 0x816   : > { %v3143_v36 = vpop.f32.mrf.mxu2  ;;  %v3232_v47 = vpop.f32.mrf.mxu3 }
 0x817   : > { %v3144_v50 = vadd.f32 %v3143_v36, %v7433_v48 }
 0x819   : > { %v7454_v19 = vadd.f32 %v3232_v47, %v3144_v50 }
 0x81b   : > { %3185 = vmatmul.bf16.gmra.mxu2 %v7344_v61  ;;  %3274 = vmatmul.bf16.gmra.mxu3 %v7346_v29 }
 0x81e   : > { %v3146_v49 = vpop.f32.mrf.mxu2  ;;  %v3235_v21 = vpop.f32.mrf.mxu3 }
 0x81f   : > { %v3147_v44 = vadd.f32 %v3146_v49, %v7433_v48 }
 0x821   : > { %v7459_v38 = vadd.f32 %v3235_v21, %v3147_v44 }
 0x826   : > { %v3148_v32 = vpop.f32.mrf.mxu2  ;;  %v3237_v1 = vpop.f32.mrf.mxu3 }
 0x827   : > { %v3149_v39 = vadd.f32 %v3148_v32, %v7433_v48 }
 0x829   : > { %v7462_v55 = vadd.f32 %v3237_v1, %v3149_v39 }
 0x82b   : > { %3190 = vmatmul.bf16.gmra.mxu2 %v7358_v60  ;;  %3279 = vmatmul.bf16.gmra.mxu3 %v7360_v8 }
 0x82e   : > { %v3151_v41 = vpop.f32.mrf.mxu2  ;;  %v3240_v61 = vpop.f32.mrf.mxu3 }
 0x82f   : > { %v3152_v29 = vadd.f32 %v3151_v41, %v7433_v48  ;;  %v2984_v41 = vadd.f32 %v7392_v23, %v7314_v13 }
 0x831   : > { %v7467_v45 = vadd.f32 %v3240_v61, %v3152_v29 }
 0x836   : > { %v3153_v26 = vpop.f32.mrf.mxu2  ;;  %v3242_v4 = vpop.f32.mrf.mxu3 }
 0x837   : > { %v3154_v39 = vadd.f32 %v3153_v26, %v7433_v48 }
 0x83b   : > { %3195 = vmatmul.bf16.gmra.mxu2 %v7372_v54  ;;  %3284 = vmatmul.bf16.gmra.mxu3 %v7374_v42  ;;  %v7477_v54 = vadd.f32 %v7402_v34, %v2986_v30 }
 0x83e   : > { %v3156_v10 = vpop.f32.mrf.mxu2  ;;  %v3245_v5 = vpop.f32.mrf.mxu3 }
 0x846   : > { %v3158_v57 = vpop.f32.mrf.mxu2  ;;  %v3247_v31 = vpop.f32.mrf.mxu3 }
 0x847   : > { %v3159_v50 = vadd.f32 %v3158_v57, %v7433_v48 }
 0x849   : > { %v7490_v21 = vadd.f32 %v3247_v31, %v3159_v50  ;;  %v7514_v31 = vadd.f32 %v3242_v4, %v3154_v39  ;;  %v2994_v39 = vadd.f32 %v7424_v11, %v7314_v13 }
 0x84b   : > { %3200 = vmatmul.bf16.gmra.mxu2 %v7388_v2  ;;  %3289 = vmatmul.bf16.gmra.mxu3 %v7390_v51  ;;  %v2981_v51 = vadd.f32 %v7384_v53, %v7314_v13 }
 0x84e   : > { %v3161_v60 = vpop.f32.mrf.mxu2  ;;  %v3250_v8 = vpop.f32.mrf.mxu3 }
 0x84f   : > { %v3162_v53 = vadd.f32 %v3161_v60, %v7433_v48  ;;  %v7517_v60 = vadd.f32 %v7394_v35, %v2984_v41  ;;  %v3326_v35 = vmax.f32 %v7370_v58, %v7514_v31 }
 0x851   : > { %v7511_v29 = vadd.f32 %v3250_v8, %v3162_v53  ;;  %v3317_v53 = vmax.f32 %v7351_v14, %v7459_v38 }
 0x853   : > { %v3335_v4 = vmax.f32 %v7517_v60, %v7511_v29 }
 0x856   : > { %v3163_v33 = vpop.f32.mrf.mxu2  ;;  %v3252_v36 = vpop.f32.mrf.mxu3 }
 0x857   : > { %v3164_v47 = vadd.f32 %v3163_v33, %v7433_v48 }
 0x859   : > { %v7479_v42 = vadd.f32 %v3252_v36, %v3164_v47  ;;  %v3320_v36 = vmax.f32 %v7356_v40, %v7462_v55 }
 0x85b   : > { %3205 = vmatmul.bf16.gmra.mxu2 %v7404_v15  ;;  %3294 = vmatmul.bf16.gmra.mxu3 %v7406_v25  ;;  %v3338_v2 = vmax.f32 %v7477_v54, %v7479_v42  ;;  %v7494_v15 = vadd.f32 %v7386_v17, %v2981_v51  ;;  %v7497_v25 = vadd.f32 %v7410_v20, %v2989_v0 }
 0x85c   : > { %v2991_v17 = vadd.f32 %v7416_v59, %v7314_v13  ;;  %v3157_v59 = vadd.f32 %v3156_v10, %v7433_v48 }
 0x85d   : > { %3339 = vmax.xlane.f32.xlu2 %v3338_v2  ;;  %8703 = vst [vmem:[#allocation52_spill] sm:$0xff] %v7497_v25  ;;  %v3332_v1 = vmax.f32 %v7494_v15, %v7490_v21 }
 0x85e   : > { %v3166_v34 = vpop.f32.mrf.mxu2  ;;  %v3255_v49 = vpop.f32.mrf.mxu3  ;;  %v7520_v26 = vadd.f32 %v7418_v56, %v2991_v17  ;;  %v2979_v56 = vadd.f32 %v7376_v22, %v7314_v13 }
 0x85f   : > { %v3167_v44 = vadd.f32 %v3166_v34, %v7433_v48 }
 0x861   : > { %v7499_v32 = vadd.f32 %v3255_v49, %v3167_v44  ;;  %v4824_v44 = vld [vmem:[%s8707_s24] sm:$0xff]  ;;  %s4155_s24 = scalar_lea.hbm %s8781_s21, %s4828_s11 }
 0x862   : > { %4738 = vmatmul.msk.bf16.vlgmr.msra.gmra.mxu0 %vm716_vm0, %v4824_v44  ;;  %4742 = vmatmul.msk.bf16.vlgmr.msra.gmra.mxu1 %vm716_vm0, %v4824_v44  ;;  %s4158_s18 = sshll.u32 %s4155_s24, 4  ;;  %s4159_s18 = int_to_ptr.hbm [resolvable:$true] %s4158_s18 }
 0x863   : > { %8704 = vst [vmem:[#allocation45_spill] sm:$0xff] %v7499_v32  ;;  %v3341_v46 = vmax.f32 %v7497_v25, %v7499_v32  ;;  %s5508_s20 = sshra.s32 %s4159_s18, 4  ;;  %s5509_s20 = int_to_ptr.hbm [resolvable:$true] %s5508_s20 }
 0x864   : > { %s5510_s14 = scalar_lea.hbm %s5509_s20, 128  ;;  %p5515_p10 = scmp.lt.s32.totalorder %s5509_s20, %s8782_s15 }
 0x865   : > { %3342 = vmax.xlane.f32.xlu1 %v3341_v46  ;;  %3333 = vmax.xlane.f32.xlu2 %v3332_v1  ;;  %v3308_v1 = vmax.f32 %v7328_v27, %v7444_v43  ;;  %p5511_p1 = scmp.ne.s32.totalorder %s5509_s20, %s5510_s14 }
 0x866   : > { %v3168_v20 = vpop.f32.mrf.mxu2  ;;  %v3257_v61 = vpop.f32.mrf.mxu3 }
 0x867   : > { %v3169_v57 = vadd.f32 %v3168_v20, %v7433_v48  ;;  %v7569_v20 = vadd.f32 %v7426_v62, %v2994_v39  ;;  %v3305_v62 = vmax.f32 %v7323_v7, %v7440_v9  ;;  %p5512_p4 = pnand %p5511_p1, %p5806_p3 }
 0x869   : > { %v7522_v23 = vadd.f32 %v3257_v61, %v3169_v57  ;;  %8710 = vst [vmem:[#allocation64_spill] sm:$0xff] %v7569_v20  ;;  %v3000_v61 = vpop.f32.mrf.mxu0  ;;  %v3311_v57 = vmax.f32 %v7337_v63, %v7451_v28  ;;  %p5513_p8 = pneg %p5512_p4 }
 0x86b   : > { %3210 = vmatmul.bf16.gmra.mxu2 %v7420_v3  ;;  %3299 = vmatmul.bf16.gmra.mxu3 %v7422_v16  ;;  %v3344_v8 = vmax.f32 %v7520_v26, %v7522_v23  ;;  %v7535_v3 = vadd.f32 %v3245_v5, %v3157_v59  ;;  %v7538_v16 = vadd.f32 %v7378_v52, %v2979_v56  ;;  %v3089_v56 = vpop.f32.mrf.mxu1 }
 0x86c   : > { %v3323_v5 = vmax.f32 %v7365_v6, %v7467_v45  ;;  %v3314_v52 = vmax.f32 %v7342_v12, %v7454_v19 }
 0x86d   : > { %3345 = vmax.xlane.f32.xlu0 %v3344_v8  ;;  %3336 = vmax.xlane.f32.xlu1 %v3335_v4  ;;  %v3329_v33 = vmax.f32 %v7538_v16, %v7535_v3  ;;  %v3001_v4 = vadd.f32 %v3000_v61, %v7314_v13 }
 0x86e   : > { %3327 = vmax.xlane.f32.xlu2 %v3326_v35  ;;  %v3171_v10 = vpop.f32.mrf.mxu2  ;;  %v3260_v30 = vpop.f32.mrf.mxu3 }
 0x86f   : > { %v3172_v46 = vadd.f32 %v3171_v10, %v7433_v48  ;;  %v7579_v10 = vadd.f32 %v3089_v56, %v3001_v4 }
 0x871   : > { %v7566_v41 = vadd.f32 %v3260_v30, %v3172_v46  ;;  %8712 = vst [vmem:[#allocation43_spill] sm:$0xff] %v7579_v10 }
 0x873   : > { %8709 = vst [vmem:[#allocation44_spill] sm:$0xff] %v7566_v41  ;;  %v3347_v8 = vmax.f32 %v7569_v20, %v7566_v41 }
 0x875   : > { %3330 = vmax.xlane.f32.xlu1 %v3329_v33  ;;  %v3793_v33 = vld [vmem:[%s8713_s30] sm:$0xff] }
 0x876   : > { %3321 = vmax.xlane.f32.xlu2 %v3320_v36  ;;  %v3173_v47 = vpop.f32.mrf.mxu2  ;;  %v3262_v22 = vpop.f32.mrf.mxu3  ;;  %v2996_v36 = vadd.f32 %v7435_v18, %v7314_v13 }
 0x877   : > { %v3174_v50 = vadd.f32 %v3173_v47, %v7433_v48 }
 0x879   : > { %v7545_v2 = vadd.f32 %v3262_v22, %v3174_v50  ;;  %v7593_v22 = vadd.f32 %v7437_v37, %v2996_v36  ;;  %v7609_v37 = vpop.f32.mrf.mxu0 }
 0x87b   : > { %8705 = vst [vmem:[#allocation46_spill] sm:$0xff] %v7545_v2  ;;  %v3350_v50 = vmax.f32 %v7593_v22, %v7545_v2 }
 0x87c   : > { %8714 = vst [vmem:[#allocation66_spill] sm:$0xff] %v7593_v22 }
 0x87d   : > { %3324 = vmax.xlane.f32.xlu1 %v3323_v5 }
 0x87e   : > { %3315 = vmax.xlane.f32.xlu2 %v3314_v52  ;;  %v3176_v51 = vpop.f32.mrf.mxu2  ;;  %v3265_v34 = vpop.f32.mrf.mxu3 }
 0x87f   : > { %v3177_v0 = vadd.f32 %v3176_v51, %v7433_v48 }
 0x881   : > { %v7552_v49 = vadd.f32 %v3265_v34, %v3177_v0 }
 0x883   : > { %8706 = vst [vmem:[#allocation47_spill] sm:$0xff] %v7552_v49  ;;  %v3353_v51 = vmax.f32 %v7446_v24, %v7552_v49 }
 0x885   : > { %3318 = vmax.xlane.f32.xlu1 %v3317_v53 }
 0x886   : > { %3309 = vmax.xlane.f32.xlu2 %v3308_v1  ;;  %v3178_v17 = vpop.f32.mrf.mxu2  ;;  %v3267_v11 = vpop.f32.mrf.mxu3 }
 0x887   : > { %v3179_v59 = vadd.f32 %v3178_v17, %v7433_v48  ;;  %v7617_v1 = vpop.f32.mrf.mxu1  ;;  %v3005_v17 = vpop.f32.mrf.mxu0 }
 0x889   : > { %v7577_v35 = vadd.f32 %v3267_v11, %v3179_v59 }
 0x88b   : > { %8711 = vst [vmem:[#allocation65_spill] sm:$0xff] %v7577_v35  ;;  %v3356_v30 = vmax.f32 %v7579_v10, %v7577_v35 }
 0x88d   : > { %3312 = vmax.xlane.f32.xlu1 %v3311_v57 }
 0x88e   : > { %3348 = vmax.xlane.f32.xlu2 %v3347_v8  ;;  %v7607_v34 = vpop.f32.mrf.mxu2  ;;  %v7611_v44 = vpop.f32.mrf.mxu3 }
 0x88f   : > { %v3094_v8 = vpop.f32.mrf.mxu1  ;;  %v7623_v11 = vpop.f32.mrf.mxu0 }
 0x895   : > { %3306 = vmax.xlane.f32.xlu1 %v3305_v62 }
 0x896   : > { %3357 = vmax.xlane.f32.xlu2 %v3356_v30  ;;  %v3183_v39 = vpop.f32.mrf.mxu2  ;;  %v3272_v59 = vpop.f32.mrf.mxu3 }
 0x897   : > { %v7631_v49 = vpop.f32.mrf.mxu1  ;;  %v3010_v10 = vpop.f32.mrf.mxu0 }
 0x89e   : > { %v7621_v4 = vpop.f32.mrf.mxu2  ;;  %v7629_v36 = vpop.f32.mrf.mxu3 }
 0x8a6   : > { %v3188_v24 = vpop.f32.mrf.mxu2 }
 0x8ae   : > { %3803 = vperm.xlu1 %4942, %v3793_v33  }
 0x8d0   : > { %v7590_v47 = vpop.xlane.xlu2 %3339 }
 0x8d8   : > { %v7597_v5 = vpop.xlane.xlu1 %3342  ;;  %v7599_v52 = vpop.xlane.xlu2 %3333  ;;  %3351 = vmax.xlane.f32.xlu1 %v3350_v50 }
 0x8d9   : > { %8715 = vst [vmem:[#allocation62_spill] sm:$0xff] %v7597_v5 }
 0x8e0   : > { %v7603_v0 = vpop.xlane.xlu1 %3336  ;;  %3354 = vmax.xlane.f32.xlu1 %v3353_v51 }
 0x8e1   : > { %v7605_v18 = vpop.xlane.xlu2 %3327 }
 0x8e8   : > { %v7613_v53 = vpop.xlane.xlu1 %3330 }
 0x8e9   : > { %v7615_v46 = vpop.xlane.xlu2 %3321 }
 0x8f0   : > { %v7619_v61 = vpop.xlane.xlu1 %3324 }
 0x8f1   : > { %v3316_v57 = vpop.xlane.xlu2 %3315 }
 0x8f2   : > { %v3407_v41 = vsub.f32 %v7342_v12, %v3316_v57  ;;  %v3408_v2 = vsub.f32 %v7454_v19, %v3316_v57  ;;  %v7645_v19 = vpop.f32.mrf.mxu2 }
 0x8f4   : > { %v3479_v32 = vmul.f32 1.442695, %v3408_v2 }
 0x8f8   : > { %v7625_v56 = vpop.xlane.xlu1 %3318 }
 0x8f9   : > { %v3310_v62 = vpop.xlane.xlu2 %3309 }
 0x8fa   : > { %v3403_v30 = vsub.f32 %v7328_v27, %v3310_v62  ;;  %v3404_v33 = vsub.f32 %v7444_v43, %v3310_v62  ;;  %v3277_v43 = vpop.f32.mrf.mxu3  ;;  %v3184_v62 = vadd.f32 %v3183_v39, %v7433_v48  ;;  %v7649_v39 = vpop.f32.mrf.mxu0 }
 0x8fc   : > { %v3469_v50 = vmul.f32 1.442695, %v3403_v30  ;;  %v3471_v51 = vmul.f32 1.442695, %v3404_v33  ;;  %v3099_v33 = vpop.f32.mrf.mxu1  ;;  %v7647_v57 = vadd.f32 %v3272_v59, %v3184_v62  ;;  %v3182_v62 = vadd.f32 %v7607_v34, %v7433_v48 }
 0x8fe   : > { %5135 = vpow2.f32 %v3469_v50  ;;  %v3477_v50 = vmul.f32 1.442695, %v3407_v41  ;;  %8718 = vst [vmem:[#allocation41_spill] sm:$0xff] %v7647_v57 }
 0x8ff   : > { %5137 = vpow2.f32 %v3471_v51  ;;  %v3006_v51 = vadd.f32 %v3005_v17, %v7314_v13 }
 0x900   : > { %v3313_v35 = vpop.xlane.xlu1 %3312  ;;  %5139 = vpow2.f32 %v3477_v50  ;;  %v3189_v50 = vadd.f32 %v3188_v24, %v7433_v48  ;;  %v7684_v24 = vadd.f32 %v7611_v44, %v3182_v62  ;;  %v3415_v62 = vsub.f32 %v7370_v58, %v7605_v18 }
 0x901   : > { %5141 = vpow2.f32 %v3479_v32  ;;  %v3193_v32 = vpop.f32.mrf.mxu2  ;;  %v3405_v59 = vsub.f32 %v7337_v63, %v3313_v35  ;;  %v3004_v63 = vadd.f32 %v7609_v37, %v7314_v13 }
 0x902   : > { %v7655_v41 = vpop.f32.mrf.mxu3  ;;  %8720 = vst [vmem:[#allocation67_spill] sm:$0xff] %v7684_v24  ;;  %v3194_v58 = vadd.f32 %v3193_v32, %v7433_v48 }
 0x904   : > { %v7634_v20 = vpop.eup %5135 }
 0x905   : > { %8716 = vst [vmem:[#allocation63_spill] sm:$0xff] %v7634_v20  ;;  %v7637_v27 = vpop.eup %5137 }
 0x906   : > { %8717 = vst [vmem:[#allocation40_spill] sm:$0xff] %v7637_v27  ;;  %v3596_v30 = vadd.f32 %v7637_v27, %v7634_v20  ;;  %v7651_v20 = vadd.f32 %v3094_v8, %v3006_v51 }
 0x908   : > { %v3307_v22 = vpop.xlane.xlu1 %3306  ;;  %3597 = vadd.xlane.f32.xlu2 %v3596_v30  ;;  %8719 = vst [vmem:[#allocation73_spill] sm:$0xff] %v7651_v20  ;;  %v3362_v2 = vmax.f32 %v7651_v20, %v7647_v57  ;;  %v3406_v30 = vsub.f32 %v7451_v28, %v3313_v35  ;;  %v7686_v35 = vadd.f32 %v3277_v43, %v3189_v50 }
 0x909   : > { %v3401_v12 = vsub.f32 %v7323_v7, %v3307_v22  ;;  %v3402_v25 = vsub.f32 %v7440_v9, %v3307_v22  ;;  %v7657_v7 = vpop.eup %5139  ;;  %v7659_v9 = vpop.f32.mrf.mxu1 }
 0x90a   : > { %v7661_v22 = vpop.eup %5141  ;;  %v3282_v34 = vpop.f32.mrf.mxu3  ;;  %v3475_v28 = vmul.f32 1.442695, %v3406_v30  ;;  %8721 = vst [vmem:[#allocation69_spill] sm:$0xff] %v7686_v35 }
 0x90b   : > { %v3465_v5 = vmul.f32 1.442695, %v3401_v12  ;;  %v3467_v27 = vmul.f32 1.442695, %v3402_v25  ;;  %v3411_v25 = vsub.f32 %v7356_v40, %v7615_v46  ;;  %v3602_v40 = vadd.f32 %v7661_v22, %v7657_v7 }
 0x90d   : > { %5143 = vpow2.f32 %v3465_v5  ;;  %v3412_v5 = vsub.f32 %v7462_v55, %v7615_v46  ;;  %v3485_v51 = vmul.f32 1.442695, %v3411_v25  ;;  %v3011_v46 = vadd.f32 %v3010_v10, %v7314_v13  ;;  %v7693_v10 = vpop.f32.mrf.mxu2 }
 0x90e   : > { %5145 = vpow2.f32 %v3467_v27  ;;  %v3015_v27 = vpop.f32.mrf.mxu0 }
 0x90f   : > { %v3487_v55 = vmul.f32 1.442695, %v3412_v5  ;;  %5147 = vpow2.f32 %v3485_v51  ;;  %v7689_v5 = vadd.f32 %v7617_v1, %v3004_v63  ;;  %v7691_v57 = vadd.f32 %v3099_v33, %v3011_v46 }
 0x910   : > { %3363 = vmax.xlane.f32.xlu2 %v3362_v2  ;;  %v3473_v2 = vmul.f32 1.442695, %v3405_v59  ;;  %v3416_v51 = vsub.f32 %v7514_v31, %v7605_v18  ;;  %v3410_v63 = vsub.f32 %v7459_v38, %v7625_v56  ;;  %v3493_v46 = vmul.f32 1.442695, %v3415_v62 }
 0x911   : > { %v3104_v25 = vpop.f32.mrf.mxu1  ;;  %5149 = vpow2.f32 %v3487_v55  ;;  %8722 = vst [vmem:[#allocation57_spill] sm:$0xff] %v7689_v5  ;;  %v3368_v37 = vmax.f32 %v7691_v57, %v7686_v35  ;;  %v3359_v44 = vmax.f32 %v7689_v5, %v7684_v24  ;;  %v3187_v55 = vadd.f32 %v7621_v4, %v7433_v48 }
 0x912   : > { %5151 = vpow2.f32 %v3473_v2  ;;  %v7711_v50 = vpop.f32.mrf.mxu3 }
 0x913   : > { %v7665_v17 = vpop.eup %5143  ;;  %5153 = vpow2.f32 %v3475_v28  ;;  %v3495_v28 = vmul.f32 1.442695, %v3416_v51  ;;  %v7732_v32 = vadd.f32 %v7629_v36, %v3187_v55 }
 0x914   : > { %v7670_v8 = vpop.eup %5145  ;;  %5155 = vpow2.f32 %v3493_v46 }
 0x915   : > { %v3593_v12 = vadd.f32 %v7670_v8, %v7665_v17  ;;  %v7701_v59 = vpop.eup %5147  ;;  %v3198_v18 = vpop.f32.mrf.mxu2  ;;  %8723 = vst [vmem:[#allocation56_spill] sm:$0xff] %v7732_v32  ;;  %5157 = vpow2.f32 %v3495_v28  ;;  %v3192_v28 = vadd.f32 %v7645_v19, %v7433_v48 }
 0x916   : > { %v7699_v43 = vpop.f32.mrf.mxu0 }
 0x917   : > { %3594 = vadd.xlane.f32.xlu1 %v3593_v12  ;;  %v7703_v1 = vpop.eup %5149 }
 0x918   : > { %3603 = vadd.xlane.f32.xlu2 %v3602_v40  ;;  %v7705_v33 = vpop.eup %5151  ;;  %v3409_v40 = vsub.f32 %v7351_v14, %v7625_v56  ;;  %v3608_v2 = vadd.f32 %v7703_v1, %v7701_v59  ;;  %v3009_v14 = vadd.f32 %v7623_v11, %v7314_v13  ;;  %v3483_v56 = vmul.f32 1.442695, %v3410_v63 }
 0x919   : > { %v7709_v30 = vpop.eup %5153  ;;  %v7717_v12 = vpop.f32.mrf.mxu1  ;;  %v3419_v63 = vsub.f32 %v7494_v15, %v7599_v52 }
 0x91a   : > { %v3599_v31 = vadd.f32 %v7709_v30, %v7705_v33  ;;  %v3481_v4 = vmul.f32 1.442695, %v3409_v40  ;;  %v7737_v62 = vadd.f32 %v7631_v49, %v3009_v14  ;;  %v3287_v11 = vpop.f32.mrf.mxu3  ;;  %v7745_v55 = vpop.eup %5155  ;;  %v3414_v14 = vsub.f32 %v7467_v45, %v7619_v61 }
 0x91c   : > { %8724 = vst [vmem:[#allocation70_spill] sm:$0xff] %v7737_v62  ;;  %5159 = vpow2.f32 %v3481_v4  ;;  %v3365_v40 = vmax.f32 %v7737_v62, %v7732_v32  ;;  %v3501_v4 = vmul.f32 1.442695, %v3419_v63 }
 0x91d   : > { %5161 = vpow2.f32 %v3483_v56  ;;  %v7749_v49 = vpop.f32.mrf.mxu2 }
 0x91e   : > { %v3020_v38 = vpop.f32.mrf.mxu0  ;;  %5163 = vpow2.f32 %v3501_v4 }
 0x91f   : > { %3360 = vmax.xlane.f32.xlu1 %v3359_v44  ;;  %v7734_v44 = vadd.f32 %v3282_v34, %v3194_v58  ;;  %v7747_v34 = vpop.eup %5157 }
 0x920   : > { %3369 = vmax.xlane.f32.xlu2 %v3368_v37  ;;  %v3016_v37 = vadd.f32 %v3015_v27, %v7314_v13  ;;  %v3614_v15 = vadd.f32 %v7747_v34, %v7745_v55 }
 0x921   : > { %v3109_v36 = vpop.f32.mrf.mxu1 }
 0x922   : > { %v7739_v51 = vadd.f32 %v3104_v25, %v3016_v37  ;;  %v7751_v25 = vpop.eup %5159  ;;  %v3199_v37 = vadd.f32 %v3198_v18, %v7433_v48  ;;  %v7780_v18 = vadd.f32 %v7655_v41, %v3192_v28 }
 0x923   : > { %v7755_v58 = vpop.eup %5161 }
 0x924   : > { %v3374_v27 = vmax.f32 %v7739_v51, %v7734_v44  ;;  %v3605_v56 = vadd.f32 %v7755_v58, %v7751_v25  ;;  %v7793_v28 = vpop.eup %5163 }
 0x925   : > { %v3203_v63 = vpop.f32.mrf.mxu2 }
 0x926   : > { %v7757_v46 = vpop.f32.mrf.mxu0 }
 0x927   : > { %3600 = vadd.xlane.f32.xlu1 %v3599_v31  ;;  %v3413_v31 = vsub.f32 %v7365_v6, %v7619_v61  ;;  %v3014_v6 = vadd.f32 %v7649_v39, %v7314_v13  ;;  %v3491_v61 = vmul.f32 1.442695, %v3414_v14 }
 0x928   : > { %3609 = vadd.xlane.f32.xlu2 %v3608_v2  ;;  %v3420_v2 = vsub.f32 %v7490_v21, %v7599_v52  ;;  %v3021_v52 = vadd.f32 %v3020_v38, %v7314_v13 }
 0x929   : > { %v3489_v19 = vmul.f32 1.442695, %v3413_v31  ;;  %v7777_v45 = vpop.f32.mrf.mxu1 }
 0x92a   : > { %v3503_v21 = vmul.f32 1.442695, %v3420_v2  ;;  %v7785_v2 = vadd.f32 %v7659_v9, %v3014_v6  ;;  %v7787_v39 = vadd.f32 %v3109_v36, %v3021_v52  ;;  %v3423_v36 = vsub.f32 %v7477_v54, %v7590_v47 }
 0x92b   : > { %v3418_v52 = vsub.f32 %v7535_v3, %v7613_v53  ;;  %v3204_v54 = vadd.f32 %v3203_v63, %v7433_v48 }
 0x92c   : > { %5165 = vpow2.f32 %v3503_v21  ;;  %v3371_v41 = vmax.f32 %v7785_v2, %v7780_v18  ;;  %v3197_v21 = vadd.f32 %v7693_v10, %v7433_v48  ;;  %v3019_v10 = vadd.f32 %v7699_v43, %v7314_v13 }
 0x92d   : > { %5167 = vpow2.f32 %v3489_v19  ;;  %v7809_v6 = vpop.f32.mrf.mxu2  ;;  %v3509_v19 = vmul.f32 1.442695, %v3423_v36  ;;  %v3499_v3 = vmul.f32 1.442695, %v3418_v52 }
 0x92e   : > { %v3025_v38 = vpop.f32.mrf.mxu0  ;;  %5169 = vpow2.f32 %v3491_v61 }
 0x92f   : > { %3366 = vmax.xlane.f32.xlu1 %v3365_v40  ;;  %v7782_v40 = vadd.f32 %v3287_v11, %v3199_v37  ;;  %5171 = vpow2.f32 %v3509_v19 }
 0x930   : > { %3375 = vmax.xlane.f32.xlu2 %v3374_v27  ;;  %v7772_v27 = vpop.f32.mrf.mxu3 }
 0x931   : > { %v3380_v31 = vmax.f32 %v7787_v39, %v7782_v40  ;;  %v3114_v4 = vpop.f32.mrf.mxu1 }
 0x932   : > { %v7795_v11 = vpop.eup %5165 }
 0x933   : > { %v7797_v9 = vpop.eup %5167  ;;  %v3620_v61 = vadd.f32 %v7795_v11, %v7793_v28 }
 0x934   : > { %v7801_v37 = vpop.eup %5169 }
 0x937   : > { %3606 = vadd.xlane.f32.xlu1 %v3605_v56  ;;  %v3417_v56 = vsub.f32 %v7538_v16, %v7613_v53  ;;  %v7824_v53 = vadd.f32 %v7711_v50, %v3197_v21  ;;  %v7841_v21 = vpop.eup %5171 }
 0x938   : > { %3615 = vadd.xlane.f32.xlu2 %v3614_v15  ;;  %v3292_v14 = vpop.f32.mrf.mxu3  ;;  %v3424_v15 = vsub.f32 %v7479_v42, %v7590_v47  ;;  %v3611_v42 = vadd.f32 %v7801_v37, %v7797_v9  ;;  %v7818_v47 = vpop.f32.mrf.mxu0  ;;  %8725 = vst [vmem:[#allocation60_spill] sm:$0xff] %v7841_v21 }
 0x939   : > { %v7826_v63 = vadd.f32 %v3292_v14, %v3204_v54  ;;  %v7835_v43 = vpop.f32.mrf.mxu1  ;;  %v3346_v14 = vpop.xlane.xlu0 %3345 }
 0x93a   : > { %v3511_v16 = vmul.f32 1.442695, %v3424_v15  ;;  %v7831_v15 = vadd.f32 %v7717_v12, %v3019_v10  ;;  %v3427_v19 = vsub.f32 %v7520_v26, %v3346_v14  ;;  %v3422_v10 = vsub.f32 %v7511_v29, %v7603_v0 }
 0x93c   : > { %5173 = vpow2.f32 %v3511_v16  ;;  %v3377_v50 = vmax.f32 %v7831_v15, %v7824_v53  ;;  %v3202_v16 = vadd.f32 %v7749_v49, %v7433_v48  ;;  %v3507_v29 = vmul.f32 1.442695, %v3422_v10 }
 0x93f   : > { %3372 = vmax.xlane.f32.xlu1 %v3371_v41  ;;  %v3497_v41 = vmul.f32 1.442695, %v3417_v56  ;;  %v3208_v56 = vpop.f32.mrf.mxu2 }
 0x940   : > { %3381 = vmax.xlane.f32.xlu2 %v3380_v31  ;;  %v3026_v31 = vadd.f32 %v3025_v38, %v7314_v13  ;;  %v7828_v36 = vpop.f32.mrf.mxu3 }
 0x941   : > { %5175 = vpow2.f32 %v3497_v41  ;;  %v3517_v41 = vmul.f32 1.442695, %v3427_v19  ;;  %v7870_v19 = vadd.f32 %v7772_v27, %v3202_v16 }
 0x942   : > { %v7833_v32 = vadd.f32 %v3114_v4, %v3026_v31  ;;  %5177 = vpow2.f32 %v3499_v3  ;;  %v7843_v12 = vpop.eup %5173  ;;  %v3030_v4 = vpop.f32.mrf.mxu0  ;;  %v3209_v3 = vadd.f32 %v3208_v56, %v7433_v48 }
 0x943   : > { %8726 = vst [vmem:[#allocation61_spill] sm:$0xff] %v7843_v12  ;;  %v3626_v26 = vadd.f32 %v7843_v12, %v7841_v21  ;;  %v3031_v49 = vadd.f32 %v3030_v4, %v7314_v13  ;;  %v7867_v56 = vpop.permute.xlu1 %3803  ;;  %5179 = vpow2.f32 %v3517_v41  ;;  %v3207_v12 = vadd.f32 %v7809_v6, %v7433_v48 }
 0x944   : > { %v3386_v38 = vmax.f32 %v7833_v32, %v7826_v63  ;;  %8727 = vst [vmem:[#allocation42_spill] sm:$0xff] %v7867_v56 }
 0x947   : > { %3612 = vadd.xlane.f32.xlu1 %v3611_v42  ;;  %v7845_v52 = vpop.eup %5175  ;;  %v3421_v42 = vsub.f32 %v7517_v60, %v7603_v0  ;;  %v3024_v60 = vadd.f32 %v7757_v46, %v7314_v13  ;;  %v7865_v0 = vpop.f32.mrf.mxu2 }
 0x948   : > { %3621 = vadd.xlane.f32.xlu2 %v3620_v61  ;;  %v7848_v54 = vpop.eup %5177  ;;  %v3428_v61 = vsub.f32 %v7522_v23, %v3346_v14  ;;  %v3297_v31 = vpop.f32.mrf.mxu3 }
 0x949   : > { %v3119_v23 = vpop.f32.mrf.mxu1  ;;  %v3505_v14 = vmul.f32 1.442695, %v3421_v42  ;;  %v7872_v62 = vadd.f32 %v3297_v31, %v3209_v3  ;;  %v7877_v46 = vadd.f32 %v7777_v45, %v3024_v60  ;;  %v7885_v10 = vpop.eup %5179  ;;  %v8729_v45 = vld [vmem:[#allocation62_spill] sm:$0xff]  ;;  %v8730_v3 = vld [vmem:[#allocation52_spill] sm:$0xff]  ;;  %v8731_v60 = vld [vmem:[#allocation45_spill] sm:$0xff] }
 0x94a   : > { %v7879_v4 = vadd.f32 %v3119_v23, %v3031_v49  ;;  %v3426_v49 = vsub.f32 %v8731_v60, %v8729_v45 }
 0x94b   : > { %v3383_v27 = vmax.f32 %v7877_v46, %v7870_v19 }
 0x94c   : > { %v3392_v42 = vmax.f32 %v7879_v4, %v7872_v62  ;;  %v3515_v35 = vmul.f32 1.442695, %v3426_v49 }
 0x94f   : > { %3378 = vmax.xlane.f32.xlu1 %v3377_v50  ;;  %v3519_v50 = vmul.f32 1.442695, %v3428_v61  ;;  %v7874_v61 = vpop.f32.mrf.mxu0 }
 0x950   : > { %3387 = vmax.xlane.f32.xlu2 %v3386_v38  ;;  %v3617_v38 = vadd.f32 %v7848_v54, %v7845_v52  ;;  %v3300_v16 = vpop.f32.mrf.mxu3 }
 0x951   : > { %5181 = vpow2.f32 %v3519_v50  ;;  %v3122_v41 = vpop.f32.mrf.mxu1 }
 0x952   : > { %5183 = vpow2.f32 %v3505_v14  ;;  %v3213_v14 = vpop.f32.mrf.mxu2 }
 0x953   : > { %5185 = vpow2.f32 %v3507_v29  ;;  %v8732_v29 = vld [vmem:[#allocation66_spill] sm:$0xff] }
 0x957   : > { %3618 = vadd.xlane.f32.xlu1 %v3617_v38  ;;  %v7887_v31 = vpop.eup %5181  ;;  %v3352_v38 = vpop.xlane.xlu1 %3351 }
 0x958   : > { %3627 = vadd.xlane.f32.xlu2 %v3626_v26  ;;  %8728 = vst [vmem:[#allocation54_spill] sm:$0xff] %v7887_v31  ;;  %v3425_v26 = vsub.f32 %v8730_v3, %v8729_v45  ;;  %v7891_v23 = vpop.eup %5183  ;;  %v3431_v56 = vsub.f32 %v8732_v29, %v3352_v38  ;;  %v3035_v24 = vpop.f32.mrf.mxu0  ;;  %v3214_v3 = vadd.f32 %v3213_v14, %v7433_v48 }
 0x959   : > { %v7893_v50 = vpop.eup %5185  ;;  %v3632_v21 = vadd.f32 %v7887_v31, %v7885_v10  ;;  %v3029_v45 = vadd.f32 %v7818_v47, %v7314_v13  ;;  %v3036_v60 = vadd.f32 %v3035_v24, %v7314_v13  ;;  %v3349_v29 = vpop.xlane.xlu2 %3348  ;;  %v7910_v14 = vadd.f32 %v7828_v36, %v3207_v12 }
 0x95a   : > { %v3623_v20 = vadd.f32 %v7893_v50, %v7891_v23  ;;  %v3124_v31 = vpop.f32.mrf.mxu1 }
 0x95b   : > { %v7915_v49 = vadd.f32 %v7835_v43, %v3029_v45  ;;  %v7917_v47 = vadd.f32 %v3124_v31, %v3036_v60  ;;  %v3212_v45 = vadd.f32 %v7865_v0, %v7433_v48 }
 0x95f   : > { %3384 = vmax.xlane.f32.xlu1 %v3383_v27  ;;  %v8733_v27 = vld [vmem:[#allocation46_spill] sm:$0xff] }
 0x960   : > { %3393 = vmax.xlane.f32.xlu2 %v3392_v42  ;;  %v3513_v42 = vmul.f32 1.442695, %v3425_v26  ;;  %v3432_v5 = vsub.f32 %v8733_v27, %v3352_v38  ;;  %v3525_v26 = vmul.f32 1.442695, %v3431_v56  ;;  %v3302_v38 = vpop.f32.mrf.mxu3  ;;  %v8735_v56 = vld [vmem:[#allocation64_spill] sm:$0xff] }
 0x961   : > { %v7912_v27 = vadd.f32 %v3302_v38, %v3214_v3  ;;  %v7936_v12 = vpop.xlane.xlu2 %3357  ;;  %v3429_v31 = vsub.f32 %v8735_v56, %v3349_v29  ;;  %v3034_v38 = vadd.f32 %v7874_v61, %v7314_v13  ;;  %v7958_v13 = vpop.xlane.xlu1 %3354 }
 0x962   : > { %v3527_v6 = vmul.f32 1.442695, %v3432_v5  ;;  %5187 = vpow2.f32 %v3513_v42  ;;  %v3389_v5 = vmax.f32 %v7915_v49, %v7910_v14  ;;  %8734 = vst [vmem:[#allocation55_spill] sm:$0xff] %v7936_v12  ;;  %v8736_v42 = vld [vmem:[#allocation44_spill] sm:$0xff] }
 0x963   : > { %5189 = vpow2.f32 %v3515_v35  ;;  %v3398_v24 = vmax.f32 %v7917_v47, %v7912_v27  ;;  %v3430_v3 = vsub.f32 %v8736_v42, %v3349_v29  ;;  %v7950_v29 = vadd.f32 %v3122_v41, %v3034_v38  ;;  %8737 = vst [vmem:[#allocation58_spill] sm:$0xff] %v7958_v13  ;;  %v3794_v42 = vld [vmem:[%s8713_s30 + $0x8] sm:$0xff] }
 0x964   : > { %5191 = vpow2.f32 %v3525_v26 }
 0x965   : > { %5193 = vpow2.f32 %v3527_v6  ;;  %v3521_v6 = vmul.f32 1.442695, %v3429_v31 }
 0x967   : > { %3624 = vadd.xlane.f32.xlu1 %v3623_v20  ;;  %v4825_v20 = vld [vmem:[%s8708_s0 + $0x8] sm:$0xff]  ;;  %5195 = vpow2.f32 %v3521_v6 }
 0x968   : > { %3633 = vadd.xlane.f32.xlu2 %v3632_v21  ;;  %4739 = vmatmul.msk.bf16.gmra.mxu0 %vm716_vm0, %v4825_v20  ;;  %v7928_v35 = vpop.eup %5187  ;;  %v8739_v6 = vld [vmem:[#allocation63_spill] sm:$0xff] }
 0x969   : > { %4743 = vmatmul.msk.bf16.gmra.mxu1 %vm716_vm0, %v4825_v20  ;;  %v7930_v36 = vpop.eup %5189  ;;  %v3523_v20 = vmul.f32 1.442695, %v3430_v3 }
 0x96a   : > { %v7932_v43 = vpop.eup %5191  ;;  %v3629_v60 = vadd.f32 %v7930_v36, %v7928_v35 }
 0x96b   : > { %v7934_v21 = vpop.eup %5193  ;;  %5197 = vpow2.f32 %v3523_v20 }
 0x96c   : > { %v3638_v26 = vadd.f32 %v7934_v21, %v7932_v43 }
 0x96d   : > { %v7954_v0 = vpop.eup %5195 }
 0x96f   : > { %3390 = vmax.xlane.f32.xlu1 %v3389_v5 }
 0x970   : > { %3399 = vmax.xlane.f32.xlu2 %v3398_v24  ;;  %v7948_v24 = vadd.f32 %v3300_v16, %v3212_v45 }
 0x971   : > { %v7956_v56 = vpop.eup %5197 }
 0x972   : > { %v3395_v48 = vmax.f32 %v7950_v29, %v7948_v24  ;;  %v3635_v16 = vadd.f32 %v7956_v56, %v7954_v0 }
 0x977   : > { %3630 = vadd.xlane.f32.xlu1 %v3629_v60 }
 0x978   : > { %3639 = vadd.xlane.f32.xlu2 %v3638_v26 }
 0x97b   : > { %v3598_v5 = vpop.xlane.xlu2 %3597 }
 0x97c   : > { %5199 = vrcp.f32 %v3598_v5 }
 0x97f   : > { %3396 = vmax.xlane.f32.xlu1 %v3395_v48  ;;  %v8742_v48 = vld [vmem:[#allocation40_spill] sm:$0xff] }
 0x982   : > { %v5200_v3 = vpop.eup %5199 }
 0x983   : > { %v7960_v61 = vpop.xlane.xlu2 %3363  ;;  %v7975_v20 = vmul.f32 %v5200_v3, %v8739_v6 }
 0x985   : > { %8740 = vst [vmem:[#allocation50_spill] sm:$0xff] %v7975_v20 }
 0x987   : > { %3636 = vadd.xlane.f32.xlu1 %v3635_v16  ;;  %v7981_v16 = vmul.f32 %v5200_v3, %v8742_v48 }
 0x989   : > { %8743 = vst [vmem:[#allocation68_spill] sm:$0xff] %v7981_v16 }
 0x98a   : > { %v3595_v31 = vpop.xlane.xlu1 %3594 }
 0x98b   : > { %v3604_v41 = vpop.xlane.xlu2 %3603  ;;  %5201 = vrcp.f32 %v3595_v31 }
 0x98c   : > { %5203 = vrcp.f32 %v3604_v41 }
 0x990   : > { %3808 = vperm.xlu2 %4941, %v3794_v42  }
 0x991   : > { %v5202_v45 = vpop.eup %5201 }
 0x992   : > { %v7969_v26 = vpop.xlane.xlu1 %3360  ;;  %v7972_v38 = vmul.f32 %v5202_v45, %v7665_v17  ;;  %v7978_v5 = vmul.f32 %v5202_v45, %v7670_v8  ;;  %v3796_v17 = vld [vmem:[%s8713_s30 + $0x18] sm:$0xff]  ;;  %v5204_v8 = vpop.eup %5203 }
 0x993   : > { %v7967_v60 = vpop.xlane.xlu2 %3369  ;;  %v7996_v31 = vmul.f32 %v5204_v8, %v7657_v7 }
 0x994   : > { %8738 = vst [vmem:[#allocation59_spill] sm:$0xff] %v7972_v38 }
 0x995   : > { %8741 = vst [vmem:[#allocation51_spill] sm:$0xff] %v7978_v5 }
 0x99a   : > { %v3601_v12 = vpop.xlane.xlu1 %3600 }
 0x99b   : > { %v3610_v13 = vpop.xlane.xlu2 %3609  ;;  %5205 = vrcp.f32 %v3601_v12  ;;  %v8002_v12 = vmul.f32 %v5204_v8, %v7661_v22 }
 0x99c   : > { %5207 = vrcp.f32 %v3610_v13 }
 0x9a0   : > { %3818 = vperm.xlu1 %4942, %v3796_v17  }
 0x9a1   : > { %v5206_v45 = vpop.eup %5205 }
 0x9a2   : > { %v7990_v3 = vpop.xlane.xlu1 %3366  ;;  %v7993_v48 = vmul.f32 %v5206_v45, %v7705_v33  ;;  %v7999_v42 = vmul.f32 %v5206_v45, %v7709_v30  ;;  %v5208_v33 = vpop.eup %5207 }
 0x9a3   : > { %v3376_v6 = vpop.xlane.xlu2 %3375  ;;  %v8014_v8 = vmul.f32 %v5208_v33, %v7701_v59  ;;  %v8020_v13 = vmul.f32 %v5208_v33, %v7703_v1 }
 0x9a4   : > { %8744 = vst [vmem:[#allocation71_spill] sm:$0xff] %v7999_v42 }
 0x9aa   : > { %v3607_v16 = vpop.xlane.xlu1 %3606 }
 0x9ab   : > { %v3616_v5 = vpop.xlane.xlu2 %3615  ;;  %5209 = vrcp.f32 %v3607_v16 }
 0x9b1   : > { %v5210_v38 = vpop.eup %5209 }
 0x9b2   : > { %v3373_v20 = vpop.xlane.xlu1 %3372  ;;  %v8011_v22 = vmul.f32 %v5210_v38, %v7751_v25  ;;  %v8017_v17 = vmul.f32 %v5210_v38, %v7755_v58  ;;  %v3447_v25 = vsub.f32 %v7739_v51, %v3376_v6 }
 0x9b3   : > { %v3382_v7 = vpop.xlane.xlu2 %3381  ;;  %v3445_v30 = vsub.f32 %v7785_v2, %v3373_v20  ;;  %v3446_v45 = vsub.f32 %v7780_v18, %v3373_v20  ;;  %v3448_v2 = vsub.f32 %v7734_v44, %v3376_v6 }
 0x9b4   : > { %v3557_v38 = vmul.f32 1.442695, %v3447_v25  ;;  %v3451_v20 = vsub.f32 %v7787_v39, %v3382_v7 }
 0x9b5   : > { %v3553_v16 = vmul.f32 1.442695, %v3445_v30  ;;  %v3555_v41 = vmul.f32 1.442695, %v3446_v45  ;;  %v3559_v1 = vmul.f32 1.442695, %v3448_v2  ;;  %v3452_v30 = vsub.f32 %v7782_v40, %v3382_v7 }
 0x9b7   : > { %5211 = vpow2.f32 %v3553_v16  ;;  %v3567_v25 = vmul.f32 1.442695, %v3452_v30 }
 0x9b8   : > { %5213 = vpow2.f32 %v3555_v41  ;;  %v3565_v41 = vmul.f32 1.442695, %v3451_v20 }
 0x9b9   : > { %5215 = vrcp.f32 %v3616_v5 }
 0x9ba   : > { %v3613_v58 = vpop.xlane.xlu1 %3612 }
 0x9bb   : > { %v3622_v59 = vpop.xlane.xlu2 %3621  ;;  %5217 = vrcp.f32 %v3613_v58 }
 0x9bc   : > { %5219 = vpow2.f32 %v3557_v38 }
 0x9bd   : > { %v8029_v33 = vpop.eup %5211  ;;  %5221 = vpow2.f32 %v3559_v1 }
 0x9be   : > { %8745 = vst [vmem:[#allocation72_spill] sm:$0xff] %v8029_v33  ;;  %v8032_v45 = vpop.eup %5213  ;;  %5223 = vpow2.f32 %v3565_v41 }
 0x9bf   : > { %8746 = vst [vmem:[#allocation49_spill] sm:$0xff] %v8032_v45  ;;  %v5216_v51 = vpop.eup %5215  ;;  %v3659_v44 = vadd.f32 %v8032_v45, %v8029_v33  ;;  %5225 = vpow2.f32 %v3567_v25 }
 0x9c0   : > { %v8044_v7 = vmul.f32 %v5216_v51, %v7745_v55  ;;  %v8050_v38 = vmul.f32 %v5216_v51, %v7747_v34  ;;  %5227 = vrcp.f32 %v3622_v59 }
 0x9c1   : > { %v5218_v6 = vpop.eup %5217  ;;  %3660 = vadd.xlane.f32.xlu2 %v3659_v44 }
 0x9c2   : > { %v3379_v5 = vpop.xlane.xlu1 %3378  ;;  %v8041_v40 = vmul.f32 %v5218_v6, %v7797_v9  ;;  %v8047_v58 = vmul.f32 %v5218_v6, %v7801_v37  ;;  %v8052_v1 = vpop.eup %5219  ;;  %v4826_v37 = vld [vmem:[%s8708_s0 + $0x10] sm:$0xff] }
 0x9c3   : > { %v8036_v16 = vpop.xlane.xlu2 %3387  ;;  %v3449_v39 = vsub.f32 %v7831_v15, %v3379_v5  ;;  %v3450_v2 = vsub.f32 %v7824_v53, %v3379_v5  ;;  %v8054_v30 = vpop.eup %5221  ;;  %4740 = vmatmul.msk.bf16.gmra.mxu0 %vm716_vm0, %v4826_v37  ;;  %4744 = vmatmul.msk.bf16.gmra.mxu1 %vm716_vm0, %v4826_v37 }
 0x9c4   : > { %v3662_v34 = vadd.f32 %v8054_v30, %v8052_v1  ;;  %v8069_v44 = vpop.eup %5223 }
 0x9c5   : > { %v3561_v20 = vmul.f32 1.442695, %v3449_v39  ;;  %v3563_v15 = vmul.f32 1.442695, %v3450_v2  ;;  %v8071_v6 = vpop.eup %5225 }
 0x9c6   : > { %v5228_v41 = vpop.eup %5227  ;;  %v3668_v39 = vadd.f32 %v8071_v6, %v8069_v44 }
 0x9c7   : > { %5229 = vpow2.f32 %v3561_v20  ;;  %v8082_v37 = vmul.f32 %v5228_v41, %v7793_v28  ;;  %v8095_v45 = vmul.f32 %v5228_v41, %v7795_v11  ;;  %v3443_v41 = vsub.f32 %v7691_v57, %v7967_v60 }
 0x9c8   : > { %5231 = vpow2.f32 %v3563_v15 }
 0x9c9   : > { %3663 = vadd.xlane.f32.xlu2 %v3662_v34 }
 0x9ca   : > { %v3619_v51 = vpop.xlane.xlu1 %3618 }
 0x9cb   : > { %v8067_v53 = vpop.xlane.xlu2 %3627  ;;  %5233 = vrcp.f32 %v3619_v51 }
 0x9cd   : > { %v8073_v59 = vpop.eup %5229 }
 0x9ce   : > { %v8075_v5 = vpop.eup %5231 }
 0x9cf   : > { %v3665_v25 = vadd.f32 %v8075_v5, %v8073_v59 }
 0x9d1   : > { %v5234_v2 = vpop.eup %5233  ;;  %3666 = vadd.xlane.f32.xlu0 %v3665_v25  ;;  %3669 = vadd.xlane.f32.xlu2 %v3668_v39 }
 0x9d2   : > { %v3385_v15 = vpop.xlane.xlu1 %3384  ;;  %v8089_v55 = vmul.f32 %v5234_v2, %v7845_v52  ;;  %v8092_v9 = vmul.f32 %v5234_v2, %v7848_v54  ;;  %v3455_v52 = vsub.f32 %v7833_v32, %v8036_v16  ;;  %v3456_v54 = vsub.f32 %v7826_v63, %v8036_v16  ;;  %v8747_v32 = vld [vmem:[#allocation69_spill] sm:$0xff] }
 0x9d3   : > { %v3394_v20 = vpop.xlane.xlu2 %3393  ;;  %v3453_v18 = vsub.f32 %v7877_v46, %v3385_v15  ;;  %v3454_v42 = vsub.f32 %v7870_v19, %v3385_v15  ;;  %v3549_v15 = vmul.f32 1.442695, %v3443_v41 }
 0x9d4   : > { %v3459_v34 = vsub.f32 %v7879_v4, %v3394_v20  ;;  %v3460_v51 = vsub.f32 %v7872_v62, %v3394_v20  ;;  %v3947_v62 = vpack.c.bf16 %v8082_v37, %v8089_v55  ;;  %v3948_v46 = vpack.c.bf16 %v8095_v45, %v8092_v9  ;;  %v8757_v37 = vld [vmem:[#allocation55_spill] sm:$0xff]  ;;  %v8759_v9 = vld [vmem:[#allocation65_spill] sm:$0xff] }
 0x9d5   : > { %v3569_v39 = vmul.f32 1.442695, %v3453_v18  ;;  %v3571_v33 = vmul.f32 1.442695, %v3454_v42  ;;  %v3573_v4 = vmul.f32 1.442695, %v3455_v52  ;;  %v3444_v20 = vsub.f32 %v8747_v32, %v7967_v60 }
 0x9d6   : > { %v3581_v28 = vmul.f32 1.442695, %v3459_v34  ;;  %v3583_v25 = vmul.f32 1.442695, %v3460_v51  ;;  %v3575_v42 = vmul.f32 1.442695, %v3456_v54  ;;  %v8756_v55 = vpack.c.bf16 %v8050_v38, %v8047_v58 }
 0x9d7   : > { %v3551_v57 = vmul.f32 1.442695, %v3444_v20  ;;  %v8763_v58 = vpack.c.bf16 %v8014_v8, %v8011_v22  ;;  %v8764_v38 = vpack.c.bf16 %v8020_v13, %v8017_v17  ;;  %v3882_v8 = vpop.f32.mrf.mxu0 }
 0x9d8   : > { %5235 = vpow2.f32 %v3581_v28 }
 0x9d9   : > { %5237 = vpow2.f32 %v3583_v25 }
 0x9da   : > { %5239 = vpow2.f32 %v3569_v39  ;;  %v8107_v19 = vpop.xlane.xlu1 %3624 }
 0x9db   : > { %5241 = vpow2.f32 %v3571_v33  ;;  %v8105_v11 = vpop.xlane.xlu2 %3633 }
 0x9dc   : > { %5243 = vpow2.f32 %v3573_v4 }
 0x9dd   : > { %5245 = vpow2.f32 %v3575_v42 }
 0x9de   : > { %v8109_v18 = vpop.eup %5235  ;;  %5247 = vpow2.f32 %v3549_v15  ;;  %v4827_v15 = vld [vmem:[%s8708_s0 + $0x18] sm:$0xff]  ;;  %s5514_s0 = scalar_lea.hbm %s8782_s15, 256 }
 0x9df   : > { %v8113_v2 = vpop.eup %5237  ;;  %5249 = vpow2.f32 %v3551_v57  ;;  %4741 = vmatmul.msk.bf16.gmra.mxu0 %vm716_vm0, %v4827_v15  ;;  %4745 = vmatmul.msk.bf16.gmra.mxu1 %vm716_vm0, %v4827_v15  ;;  %p5516_p12 = scmp.lt.s32.totalorder %s5514_s0, %s5510_s14 }
 0x9e0   : > { %v8117_v63 = vpop.eup %5239  ;;  %v3680_v33 = vadd.f32 %v8113_v2, %v8109_v18 }
 0x9e1   : > { %v8121_v16 = vpop.eup %5241  ;;  %p5517_p13 = por %p5516_p12, %p5515_p10 }
 0x9e2   : > { %v3671_v34 = vadd.f32 %v8121_v16, %v8117_v63  ;;  %3681 = vadd.xlane.f32.xlu2 %v3680_v33  ;;  %v3391_v51 = vpop.xlane.xlu1 %3390  ;;  %v8129_v54 = vpop.eup %5243  ;;  %v8748_v33 = vld [vmem:[#allocation73_spill] sm:$0xff] }
 0x9e3   : > { %v3400_v28 = vpop.xlane.xlu2 %3399  ;;  %v3457_v60 = vsub.f32 %v7915_v49, %v3391_v51  ;;  %v3458_v25 = vsub.f32 %v7910_v14, %v3391_v51  ;;  %v8131_v32 = vpop.eup %5245  ;;  %v8749_v14 = vld [vmem:[#allocation41_spill] sm:$0xff]  ;;  %p5518_p0 = pnand %p5517_p13, %p5513_p8 }
 0x9e4   : > { %3672 = vadd.xlane.f32.xlu0 %v3671_v34  ;;  %v3463_v39 = vsub.f32 %v7917_v47, %v3400_v28  ;;  %v3464_v52 = vsub.f32 %v7912_v27, %v3400_v28  ;;  %v3439_v34 = vsub.f32 %v8748_v33, %v7960_v61  ;;  %v3440_v49 = vsub.f32 %v8749_v14, %v7960_v61  ;;  %v8142_v57 = vpop.eup %5247 }
 0x9e5   : > { %v3577_v4 = vmul.f32 1.442695, %v3457_v60  ;;  %v3579_v42 = vmul.f32 1.442695, %v3458_v25  ;;  %v3674_v27 = vadd.f32 %v8131_v32, %v8129_v54  ;;  %v8144_v28 = vpop.eup %5249 }
 0x9e6   : > { %v3589_v41 = vmul.f32 1.442695, %v3463_v39  ;;  %v3591_v20 = vmul.f32 1.442695, %v3464_v52  ;;  %v3541_v51 = vmul.f32 1.442695, %v3439_v34 }
 0x9e7   : > { %5251 = vpow2.f32 %v3577_v4  ;;  %v3543_v60 = vmul.f32 1.442695, %v3440_v49 }
 0x9e8   : > { %5253 = vpow2.f32 %v3579_v42  ;;  %v3656_v42 = vadd.f32 %v8144_v28, %v8142_v57 }
 0x9e9   : > { %5255 = vpow2.f32 %v3589_v41 }
 0x9ea   : > { %5257 = vpow2.f32 %v3591_v20  ;;  %v3631_v47 = vpop.xlane.xlu1 %3630 }
 0x9eb   : > { %5259 = vpow2.f32 %v3541_v51  ;;  %v3640_v33 = vpop.xlane.xlu2 %3639 }
 0x9ec   : > { %3675 = vadd.xlane.f32.xlu0 %v3674_v27  ;;  %5261 = vpow2.f32 %v3543_v60 }
 0x9ed   : > { %v8148_v61 = vpop.eup %5251  ;;  %5263 = vrcp.f32 %v3640_v33 }
 0x9ee   : > { %v8150_v25 = vpop.eup %5253 }
 0x9ef   : > { %v8152_v39 = vpop.eup %5255  ;;  %v3677_v52 = vadd.f32 %v8150_v25, %v8148_v61 }
 0x9f0   : > { %v8156_v4 = vpop.eup %5257 }
 0x9f1   : > { %v3686_v41 = vadd.f32 %v8156_v4, %v8152_v39  ;;  %3678 = vadd.xlane.f32.xlu1 %v3677_v52  ;;  %v8164_v49 = vpop.eup %5259 }
 0x9f2   : > { %v3397_v20 = vpop.xlane.xlu1 %3396  ;;  %v8166_v27 = vpop.eup %5261 }
 0x9f3   : > { %3687 = vadd.xlane.f32.xlu2 %v3686_v41  ;;  %v3461_v34 = vsub.f32 %v7950_v29, %v3397_v20  ;;  %v3462_v14 = vsub.f32 %v7948_v24, %v3397_v20  ;;  %v3650_v60 = vadd.f32 %v8166_v27, %v8164_v49 }
 0x9f4   : > { %3657 = vadd.xlane.f32.xlu0 %v3656_v42  ;;  %v5264_v42 = vpop.eup %5263 }
 0x9f5   : > { %v3585_v15 = vmul.f32 1.442695, %v3461_v34  ;;  %v3587_v51 = vmul.f32 1.442695, %v3462_v14  ;;  %v3751_v33 = vmul.f32 %v5264_v42, %v7932_v43  ;;  %v3752_v34 = vmul.f32 %v5264_v42, %v7934_v21 }
 0x9f7   : > { %5265 = vpow2.f32 %v3585_v15 }
 0x9f8   : > { %5267 = vpow2.f32 %v3587_v51 }
 0x9fa   : > { %v3637_v52 = vpop.xlane.xlu1 %3636 }
 0x9fb   : > { %5269 = vrcp.f32 %v3637_v52 }
 0x9fc   : > { %3651 = vadd.xlane.f32.xlu0 %v3650_v60  ;;  %5271 = vrcp.f32 %v3631_v47 }
 0x9fd   : > { %v8170_v41 = vpop.eup %5265  ;;  %5273 = vrcp.f32 %v8105_v11  ;;  %v3798_v11 = vld [vmem:[%s8713_s30 + $0x28] sm:$0xff] }
 0x9fe   : > { %v8172_v29 = vpop.eup %5267  ;;  %5275 = vrcp.f32 %v8107_v19 }
 0x9ff   : > { %v3683_v24 = vadd.f32 %v8172_v29, %v8170_v41  ;;  %5277 = vrcp.f32 %v8067_v53  ;;  %v8751_v53 = vld [vmem:[#allocation60_spill] sm:$0xff] }
 0xa01   : > { %v5270_v20 = vpop.eup %5269  ;;  %3684 = vadd.xlane.f32.xlu1 %v3683_v24  ;;  %v3795_v24 = vld [vmem:[%s8713_s30 + $0x10] sm:$0xff] }
 0xa02   : > { %v3749_v14 = vmul.f32 %v5270_v20, %v7954_v0  ;;  %v3750_v15 = vmul.f32 %v5270_v20, %v7956_v56  ;;  %v5272_v52 = vpop.eup %5271  ;;  %v8750_v56 = vld [vmem:[#allocation54_spill] sm:$0xff] }
 0xa03   : > { %v5274_v47 = vpop.eup %5273  ;;  %v3745_v43 = vmul.f32 %v5272_v52, %v7928_v35  ;;  %v3746_v21 = vmul.f32 %v5272_v52, %v7930_v36 }
 0xa04   : > { %v3953_v51 = vpack.c.bf16 %v3751_v33, %v3749_v14  ;;  %v3954_v60 = vpack.c.bf16 %v3752_v34, %v3750_v15  ;;  %v3747_v0 = vmul.f32 %v5274_v47, %v7885_v10  ;;  %v3748_v42 = vmul.f32 %v5274_v47, %v8750_v56  ;;  %v5276_v33 = vpop.eup %5275  ;;  %v8752_v14 = vld [vmem:[#allocation61_spill] sm:$0xff]  ;;  %v3797_v47 = vld [vmem:[%s8713_s30 + $0x20] sm:$0xff] }
 0xa05   : > { %v5278_v34 = vpop.eup %5277  ;;  %v3741_v35 = vmul.f32 %v5276_v33, %v7891_v23  ;;  %v3742_v36 = vmul.f32 %v5276_v33, %v7893_v50  ;;  %v8753_v23 = vld [vmem:[#allocation57_spill] sm:$0xff]  ;;  %v8755_v56 = vpack.c.bf16 %v8044_v7, %v8041_v40  ;;  %v8762_v40 = vld [vmem:[#allocation47_spill] sm:$0xff] }
 0xa06   : > { %3971 = vmatpush.bf16.xpose.msrb.mxu0 %v3953_v51  ;;  %4000 = vmatpush.bf16.xpose.msrb.mxu1 %v3954_v60  ;;  %v3951_v19 = vpack.c.bf16 %v3747_v0, %v3745_v43  ;;  %v3952_v20 = vpack.c.bf16 %v3748_v42, %v3746_v21  ;;  %v3743_v10 = vmul.f32 %v5278_v34, %v8751_v53  ;;  %v3799_v51 = vld [vmem:[%s8713_s30 + $0x30] sm:$0xff] }
 0xa07   : > { %v3744_v15 = vmul.f32 %v5278_v34, %v8752_v14  ;;  %v3437_v50 = vsub.f32 %v8753_v23, %v7969_v26  ;;  %v8766_v14 = vld [vmem:[#allocation56_spill] sm:$0xff] }
 0xa08   : > { %v3949_v60 = vpack.c.bf16 %v3743_v10, %v3741_v35 }
 0xa09   : > { %v3950_v52 = vpack.c.bf16 %v3744_v15, %v3742_v36  ;;  %v3537_v21 = vmul.f32 1.442695, %v3437_v50  ;;  %v8765_v36 = vld [vmem:[#allocation70_spill] sm:$0xff]  ;;  %v3442_v15 = vsub.f32 %v8766_v14, %v7990_v3 }
 0xa0a   : > { %v3441_v53 = vsub.f32 %v8765_v36, %v7990_v3 }
 0xa0b   : > { %3828 = vperm.xlu2 %4941, %v3798_v11   ;;  %v8754_v11 = vld [vmem:[#allocation67_spill] sm:$0xff]  ;;  %5279 = vpow2.f32 %v3537_v21  ;;  %v3884_v21 = vpop.f32.mrf.mxu0 }
 0xa0c   : > { %v3438_v43 = vsub.f32 %v8754_v11, %v7969_v26  ;;  %v3545_v17 = vmul.f32 1.442695, %v3441_v53 }
 0xa0e   : > { %3972 = vmatpush.bf16.xpose.msrb.mxu0 %v3951_v19  ;;  %4001 = vmatpush.bf16.xpose.msrb.mxu1 %v3952_v20  ;;  %v3539_v0 = vmul.f32 1.442695, %v3438_v43  ;;  %v8761_v19 = vld [vmem:[#allocation53_spill] sm:$0xff] }
 0xa10   : > { %3813 = vperm.xlu0 %4940, %v3795_v24   ;;  %5281 = vpow2.f32 %v3539_v0  ;;  %v8760_v24 = vld [vmem:[#allocation58_spill] sm:$0xff]  ;;  %v3809_v0 = vpop.permute.xlu2 %3808 }
 0xa11   : > { %v3433_v20 = vsub.f32 %v8761_v19, %v8760_v24  ;;  %v8225_v33 = vpop.eup %5279  ;;  %v3434_v7 = vsub.f32 %v8762_v40, %v8760_v24  ;;  %v8776_v24 = vld [vmem:[#allocation42_spill] sm:$0xff] }
 0xa12   : > { %v3883_v19 = vadd.f32 %v3882_v8, %v8776_v24 }
 0xa13   : > { %v3529_v35 = vmul.f32 1.442695, %v3433_v20  ;;  %v3531_v10 = vmul.f32 1.442695, %v3434_v7 }
 0xa16   : > { %3973 = vmatpush.bf16.xpose.msrb.mxu0 %v3949_v60  ;;  %4002 = vmatpush.bf16.xpose.msrb.mxu1 %v3950_v52  ;;  %v8235_v34 = vpop.eup %5281  ;;  %v3547_v60 = vmul.f32 1.442695, %v3442_v15  ;;  %v8767_v52 = vpack.c.bf16 %v7996_v31, %v7993_v48  ;;  %v8770_v48 = vld [vmem:[#allocation50_spill] sm:$0xff]  ;;  %v3819_v15 = vpop.permute.xlu1 %3818 }
 0xa17   : > { %v3647_v22 = vadd.f32 %v8235_v34, %v8225_v33 }
 0xa18   : > { %3833 = vperm.xlu0 %4940, %v3799_v51   ;;  %v3911_v51 = vpop.f32.mrf.mxu1 }
 0xa19   : > { %v3912_v20 = vadd.f32 %v3911_v51, %v8776_v24 }
 0xa1a   : > { %3823 = vperm.xlu1 %4942, %v3797_v47   ;;  %v8768_v47 = vld [vmem:[#allocation71_spill] sm:$0xff] }
 0xa1b   : > { %v8769_v23 = vpack.c.bf16 %v8002_v12, %v8768_v47  ;;  %v8773_v12 = vld [vmem:[#allocation68_spill] sm:$0xff]  ;;  %v3887_v47 = vpop.f32.mrf.mxu0 }
 0xa1e   : > { %3974 = vmatpush.bf16.xpose.msrb.mxu0 %v3947_v62  ;;  %4003 = vmatpush.bf16.xpose.msrb.mxu1 %v3948_v46  ;;  %v8758_v62 = vld [vmem:[#allocation43_spill] sm:$0xff]  ;;  %v3436_v46 = vsub.f32 %v8759_v9, %v8757_v37  ;;  %v3885_v9 = vadd.f32 %v3884_v21, %v3809_v0 }
 0xa1f   : > { %v3435_v45 = vsub.f32 %v8758_v62, %v8757_v37  ;;  %v8774_v37 = vld [vmem:[#allocation51_spill] sm:$0xff] }
 0xa20   : > { %v3535_v26 = vmul.f32 1.442695, %v3436_v46  ;;  %v3913_v31 = vpop.f32.mrf.mxu1  ;;  %v8775_v62 = vpack.c.bf16 %v8773_v12, %v8774_v37  ;;  %v8273_v40 = vpack.c.bf16 %v3885_v9, %v3883_v19 }
 0xa21   : > { %v3533_v42 = vmul.f32 1.442695, %v3435_v45 }
 0xa23   : > { %5283 = vpow2.f32 %v3533_v42 }
 0xa24   : > { %5285 = vpow2.f32 %v3535_v26  ;;  %v3914_v26 = vadd.f32 %v3913_v31, %v3809_v0 }
 0xa25   : > { %5287 = vpow2.f32 %v3529_v35 }
 0xa26   : > { %3975 = vmatpush.bf16.xpose.msrb.mxu0 %v8755_v56  ;;  %4004 = vmatpush.bf16.xpose.msrb.mxu1 %v8756_v55  ;;  %5289 = vpow2.f32 %v3531_v10  ;;  %v8771_v56 = vld [vmem:[#allocation59_spill] sm:$0xff]  ;;  %v3800_v10 = vld [vmem:[%s8713_s30 + $0x38] sm:$0xff] }
 0xa27   : > { %5291 = vpow2.f32 %v3545_v17  ;;  %v8772_v55 = vpack.c.bf16 %v8770_v48, %v8771_v56  ;;  %v3889_v48 = vpop.f32.mrf.mxu0 }
 0xa28   : > { %5293 = vpow2.f32 %v3547_v60 }
 0xa29   : > { %v8243_v13 = vpop.eup %5283 }
 0xa2a   : > { %v8251_v3 = vpop.eup %5285 }
 0xa2b   : > { %v3644_v50 = vadd.f32 %v8251_v3, %v8243_v13  ;;  %v8255_v11 = vpop.eup %5287 }
 0xa2c   : > { %v8257_v43 = vpop.eup %5289 }
 0xa2d   : > { %v8265_v45 = vpop.eup %5291  ;;  %v3641_v46 = vadd.f32 %v8257_v43, %v8255_v11 }
 0xa2e   : > { %3976 = vmatpush.bf16.xpose.msrb.mxu0 %v8763_v58  ;;  %4005 = vmatpush.bf16.xpose.msrb.mxu1 %v8764_v38  ;;  %v8269_v42 = vpop.eup %5293  ;;  %v8277_v58 = vpack.c.bf16 %v3914_v26, %v3912_v20  ;;  %v3890_v26 = vadd.f32 %v3889_v48, %v3819_v15 }
 0xa2f   : > { %v3653_v7 = vadd.f32 %v8269_v42, %v8265_v45 }
 0xa34   : > { %3648 = vadd.xlane.f32.xlu2 %v3647_v22  ;;  %v8281_v38 = vpop.xlane.xlu2 %3660 }
 0xa36   : > { %3977 = vmatpush.bf16.xpose.msrb.mxu0 %v8767_v52  ;;  %4006 = vmatpush.bf16.xpose.msrb.mxu1 %v8769_v23  ;;  %v3916_v52 = vpop.f32.mrf.mxu1 }
 0xa3c   : > { %3645 = vadd.xlane.f32.xlu2 %v3644_v50  ;;  %v8283_v36 = vpop.xlane.xlu2 %3663 }
 0xa3e   : > { %3978 = vmatpush.bf16.xpose.msrb.mxu0 %v8772_v55  ;;  %4007 = vmatpush.bf16.xpose.msrb.mxu1 %v8775_v62  ;;  %v3918_v31 = vpop.f32.mrf.mxu1 }
 0xa3f   : > { %v3919_v20 = vadd.f32 %v3918_v31, %v3819_v15 }
 0xa42   : > { %3642 = vadd.xlane.f32.xlu0 %v3641_v46 }
 0xa44   : > { %3654 = vadd.xlane.f32.xlu1 %v3653_v7  ;;  %v3667_v35 = vpop.xlane.xlu0 %3666  ;;  %v3670_v14 = vpop.xlane.xlu2 %3669 }
 0xa45   : > { %3979 = vmatmul.bf16.vlgmr.msrb.gmra.mxu0 %v8273_v40  ;;  %4008 = vmatmul.bf16.vlgmr.msrb.gmra.mxu1 %v8277_v58 }
 0xa55   : > { %v3682_v8 = vpop.xlane.xlu2 %3681 }
 0xa57   : > { %v3673_v53 = vpop.xlane.xlu0 %3672 }
 0xa5d   : > { %3838 = vperm.xlu1 %4942, %v3800_v10  }
 0xa5f   : > { %v3676_v22 = vpop.xlane.xlu0 %3675 }
 0xa64   : > { %v3679_v51 = vpop.xlane.xlu1 %3678 }
 0xa66   : > { %v3688_v60 = vpop.xlane.xlu2 %3687 }
 0xa67   : > { %v8288_v17 = vpop.xlane.xlu0 %3657  ;;  %5295 = vrcp.f32 %v3688_v60 }
 0xa6d   : > { %v5296_v21 = vpop.eup %5295 }
 0xa6e   : > { %v3783_v56 = vmul.f32 %v5296_v21, %v8152_v39  ;;  %v3784_v55 = vmul.f32 %v5296_v21, %v8156_v4  ;;  %v3829_v48 = vpop.permute.xlu2 %3828 }
 0xa6f   : > { %v8290_v50 = vpop.xlane.xlu0 %3651 }
 0xa74   : > { %v3685_v23 = vpop.xlane.xlu1 %3684 }
 0xa75   : > { %5297 = vrcp.f32 %v3685_v23 }
 0xa76   : > { %5299 = vrcp.f32 %v3679_v51  ;;  %v3892_v51 = vpop.f32.mrf.mxu0 }
 0xa77   : > { %5301 = vrcp.f32 %v3682_v8 }
 0xa78   : > { %5303 = vrcp.f32 %v3676_v22 }
 0xa79   : > { %5305 = vrcp.f32 %v3673_v53 }
 0xa7a   : > { %5307 = vrcp.f32 %v3667_v35 }
 0xa7b   : > { %v5298_v0 = vpop.eup %5297  ;;  %5309 = vrcp.f32 %v3670_v14 }
 0xa7c   : > { %v3781_v12 = vmul.f32 %v5298_v0, %v8170_v41  ;;  %v3782_v37 = vmul.f32 %v5298_v0, %v8172_v29  ;;  %v5300_v46 = vpop.eup %5299  ;;  %v3921_v41 = vpop.f32.mrf.mxu1  ;;  %5311 = vrcp.f32 %v8283_v36 }
 0xa7d   : > { %v5302_v19 = vpop.eup %5301  ;;  %v3777_v39 = vmul.f32 %v5300_v46, %v8148_v61  ;;  %v3778_v4 = vmul.f32 %v5300_v46, %v8150_v25  ;;  %5313 = vrcp.f32 %v8281_v38 }
 0xa7e   : > { %v3969_v62 = vpack.c.bf16 %v3783_v56, %v3781_v12  ;;  %v3970_v9 = vpack.c.bf16 %v3784_v55, %v3782_v37  ;;  %v3779_v60 = vmul.f32 %v5302_v19, %v8109_v18  ;;  %v3780_v23 = vmul.f32 %v5302_v19, %v8113_v2  ;;  %v5304_v61 = vpop.eup %5303  ;;  %v3894_v31 = vpop.f32.mrf.mxu0  ;;  %v8778_v19 = vld [vmem:[#allocation49_spill] sm:$0xff] }
 0xa7f   : > { %v5306_v25 = vpop.eup %5305  ;;  %v3775_v53 = vmul.f32 %v5304_v61, %v8129_v54  ;;  %v3895_v54 = vadd.f32 %v3894_v31, %v3829_v48  ;;  %5315 = vrcp.f32 %v8288_v17 }
 0xa80   : > { %4029 = vmatpush.bf16.xpose.msra.mxu0 %v3969_v62  ;;  %4058 = vmatpush.bf16.xpose.msra.mxu1 %v3970_v9  ;;  %v3967_v15 = vpack.c.bf16 %v3779_v60, %v3777_v39  ;;  %v3968_v22 = vpack.c.bf16 %v3780_v23, %v3778_v4  ;;  %v3773_v18 = vmul.f32 %v5306_v25, %v8117_v63  ;;  %v5308_v0 = vpop.eup %5307 }
 0xa81   : > { %v3774_v2 = vmul.f32 %v5306_v25, %v8121_v16  ;;  %v5310_v35 = vpop.eup %5309  ;;  %v3769_v14 = vmul.f32 %v5308_v0, %v8073_v59  ;;  %v3770_v16 = vmul.f32 %v5308_v0, %v8075_v5  ;;  %v8777_v5 = vld [vmem:[#allocation72_spill] sm:$0xff]  ;;  %v8332_v0 = vstv %s4377_s25 }
 0xa82   : > { %v3814_v24 = vpop.permute.xlu0 %3813  ;;  %v3965_v56 = vpack.c.bf16 %v3775_v53, %v3773_v18  ;;  %v3771_v63 = vmul.f32 %v5310_v35, %v8069_v44  ;;  %v3772_v62 = vmul.f32 %v5310_v35, %v8071_v6 }
 0xa83   : > { %v3888_v7 = vadd.f32 %v3887_v47, %v3814_v24  ;;  %v3917_v10 = vadd.f32 %v3916_v52, %v3814_v24  ;;  %v3776_v52 = vmul.f32 %v5304_v61, %v8131_v32  ;;  %v5312_v24 = vpop.eup %5311 }
 0xa84   : > { %v3923_v21 = vpop.f32.mrf.mxu1  ;;  %v3963_v36 = vpack.c.bf16 %v3771_v63, %v3769_v14  ;;  %v5314_v44 = vpop.eup %5313  ;;  %v3767_v59 = vmul.f32 %v5312_v24, %v8052_v1  ;;  %v3768_v6 = vmul.f32 %v5312_v24, %v8054_v30 }
 0xa85   : > { %v8298_v8 = vpack.c.bf16 %v3890_v26, %v3888_v7  ;;  %v8300_v29 = vpack.c.bf16 %v3919_v20, %v3917_v10  ;;  %v3966_v55 = vpack.c.bf16 %v3776_v52, %v3774_v2  ;;  %v3924_v32 = vadd.f32 %v3923_v21, %v3829_v48  ;;  %v5316_v30 = vpop.eup %5315  ;;  %v5343_v48 = vld [vmem:[%s5853_s19] sm:$0xff] }
 0xa86   : > { %v3964_v26 = vpack.c.bf16 %v3772_v62, %v3770_v16  ;;  %v3765_v38 = vmul.f32 %v5314_v44, %v8777_v5  ;;  %v3766_v20 = vmul.f32 %v5314_v44, %v8778_v19  ;;  %v3897_v39 = vpop.f32.mrf.mxu0  ;;  %v3763_v61 = vmul.f32 %v5316_v30, %v8142_v57  ;;  %v5344_v16 = vld [vmem:[%s5853_s19 + $0x10] sm:$0xff] }
 0xa87   : > { %3984 = vmatmul.bf16.gmra.mxu0 %v8298_v8  ;;  %4013 = vmatmul.bf16.gmra.mxu1 %v8300_v29  ;;  %v3764_v17 = vmul.f32 %v5316_v30, %v8144_v28 }
 0xa88   : > { %4030 = vmatpush.bf16.xpose.msra.mxu0 %v3967_v15  ;;  %4059 = vmatpush.bf16.xpose.msra.mxu1 %v3968_v22  ;;  %v3961_v7 = vpack.c.bf16 %v3767_v59, %v3765_v38  ;;  %v3962_v10 = vpack.c.bf16 %v3768_v6, %v3766_v20 }
 0xa8a   : > { %v3834_v23 = vpop.permute.xlu0 %3833 }
 0xa8b   : > { %v3898_v59 = vadd.f32 %v3897_v39, %v3834_v23 }
 0xa8c   : > { %v3824_v47 = vpop.permute.xlu1 %3823  ;;  %v3926_v4 = vpop.f32.mrf.mxu1 }
 0xa8d   : > { %v3893_v12 = vadd.f32 %v3892_v51, %v3824_v47  ;;  %v3922_v37 = vadd.f32 %v3921_v41, %v3824_v47  ;;  %v3927_v44 = vadd.f32 %v3926_v4, %v3834_v23  ;;  %v5346_v4 = vld [vmem:[%s5853_s19 + $0x30] sm:$0xff]  ;;  %v5347_v23 = vld [vmem:[%s5853_s19 + $0x40] sm:$0xff] }
 0xa8e   : > { %v3899_v51 = vpop.f32.mrf.mxu0 }
 0xa8f   : > { %v8316_v9 = vpack.c.bf16 %v3895_v54, %v3893_v12  ;;  %v8318_v46 = vpack.c.bf16 %v3924_v32, %v3922_v37 }
 0xa90   : > { %4031 = vmatpush.bf16.xpose.msra.mxu0 %v3965_v56  ;;  %4060 = vmatpush.bf16.xpose.msra.mxu1 %v3966_v55 }
 0xa94   : > { %v3928_v60 = vpop.f32.mrf.mxu1 }
 0xa97   : > { %3989 = vmatmul.bf16.gmra.mxu0 %v8316_v9  ;;  %4018 = vmatmul.bf16.gmra.mxu1 %v8318_v46 }
 0xa98   : > { %4032 = vmatpush.bf16.xpose.msra.mxu0 %v3963_v36  ;;  %4061 = vmatpush.bf16.xpose.msra.mxu1 %v3964_v26 }
 0xaa0   : > { %4033 = vmatpush.bf16.xpose.msra.mxu0 %v3961_v7  ;;  %4062 = vmatpush.bf16.xpose.msra.mxu1 %v3962_v10  ;;  %v5345_v10 = vld [vmem:[%s5853_s19 + $0x20] sm:$0xff] }
 0xaa7   : > { %v3649_v1 = vpop.xlane.xlu2 %3648 }
 0xaaf   : > { %v3646_v31 = vpop.xlane.xlu2 %3645 }
 0xab5   : > { %v3643_v53 = vpop.xlane.xlu0 %3642 }
 0xab7   : > { %v3655_v41 = vpop.xlane.xlu1 %3654 }
 0xab8   : > { %5317 = vrcp.f32 %v3655_v41 }
 0xab9   : > { %5319 = vrcp.f32 %v3649_v1 }
 0xaba   : > { %5321 = vrcp.f32 %v8290_v50 }
 0xabb   : > { %5323 = vrcp.f32 %v3643_v53 }
 0xabc   : > { %5325 = vrcp.f32 %v3646_v31 }
 0xabe   : > { %v5318_v15 = vpop.eup %5317 }
 0xabf   : > { %v3761_v22 = vmul.f32 %v5318_v15, %v8265_v45  ;;  %v3762_v25 = vmul.f32 %v5318_v15, %v8269_v42  ;;  %v5320_v2 = vpop.eup %5319 }
 0xac0   : > { %v5322_v45 = vpop.eup %5321  ;;  %v3757_v28 = vmul.f32 %v5320_v2, %v8225_v33  ;;  %v3758_v42 = vmul.f32 %v5320_v2, %v8235_v34 }
 0xac1   : > { %v3959_v47 = vpack.c.bf16 %v3763_v61, %v3761_v22  ;;  %v3960_v18 = vpack.c.bf16 %v3764_v17, %v3762_v25  ;;  %v3759_v55 = vmul.f32 %v5322_v45, %v8164_v49  ;;  %v3760_v35 = vmul.f32 %v5322_v45, %v8166_v27  ;;  %v5324_v32 = vpop.eup %5323  ;;  %v5348_v25 = vld [vmem:[%s5853_s19 + $0x50] sm:$0xff] }
 0xac2   : > { %v3980_v52 = vpop.f32.mrf.mxu0  ;;  %v4009_v21 = vpop.f32.mrf.mxu1  ;;  %v3753_v49 = vmul.f32 %v5324_v32, %v8255_v11  ;;  %v3754_v27 = vmul.f32 %v5324_v32, %v8257_v43 }
 0xac3   : > { %v4010_v50 = vadd.f32 %v4009_v21, %v3980_v52  ;;  %4034 = vmatpush.bf16.xpose.msra.mxu0 %v3959_v47  ;;  %4063 = vmatpush.bf16.xpose.msra.mxu1 %v3960_v18  ;;  %v3957_v37 = vpack.c.bf16 %v3759_v55, %v3757_v28  ;;  %v3958_v54 = vpack.c.bf16 %v3760_v35, %v3758_v42  ;;  %v5326_v34 = vpop.eup %5325 }
 0xac4   : > { %v3755_v26 = vmul.f32 %v5326_v34, %v8243_v13  ;;  %v3756_v24 = vmul.f32 %v5326_v34, %v8251_v3 }
 0xac5   : > { %v4088_v57 = vmul.f32 %v8332_v0, %v4010_v50 }
 0xac6   : > { %v3955_v38 = vpack.c.bf16 %v3755_v26, %v3753_v49  ;;  %v3956_v19 = vpack.c.bf16 %v3756_v24, %v3754_v27 }
 0xac7   : > { %v4104_v56 = vadd.f32 %v5343_v48, %v4088_v57 }
 0xac9   : > { %4120 = vst [vmem:[%s8341_s27] sm:$0xff] %v4104_v56 }
 0xaca   : > { %v3982_v12 = vpop.f32.mrf.mxu0  ;;  %v4011_v14 = vpop.f32.mrf.mxu1 }
 0xacb   : > { %v4012_v33 = vadd.f32 %v4011_v14, %v3982_v12  ;;  %4035 = vmatpush.bf16.xpose.msra.mxu0 %v3957_v37  ;;  %4064 = vmatpush.bf16.xpose.msra.mxu1 %v3958_v54 }
 0xacd   : > { %v4090_v63 = vmul.f32 %v8332_v0, %v4012_v33 }
 0xacf   : > { %v4106_v62 = vadd.f32 %v5344_v16, %v4090_v63  ;;  %v3839_v36 = vpop.permute.xlu1 %3838 }
 0xad0   : > { %v3900_v6 = vadd.f32 %v3899_v51, %v3839_v36  ;;  %v3929_v5 = vadd.f32 %v3928_v60, %v3839_v36 }
 0xad1   : > { %4122 = vst [vmem:[%s8341_s27 + $0x10] sm:$0xff] %v4106_v62 }
 0xad2   : > { %v3937_v20 = vpack.c.bf16 %v3900_v6, %v3898_v59  ;;  %v3938_v7 = vpack.c.bf16 %v3929_v5, %v3927_v44 }
 0xad3   : > { %4036 = vmatpush.bf16.xpose.msra.mxu0 %v3955_v38  ;;  %4065 = vmatpush.bf16.xpose.msra.mxu1 %v3956_v19 }
 0xad4   : > { %3994 = vmatmul.bf16.gmra.mxu0 %v3937_v20  ;;  %4023 = vmatmul.bf16.gmra.mxu1 %v3938_v7 }
 0xae4   : > { %4037 = vmatmul.bf16.vlgmr.msra.gmra.mxu0 %v8273_v40  ;;  %4066 = vmatmul.bf16.vlgmr.msra.gmra.mxu1 %v8277_v58 }
 0xaf4   : > { %4042 = vmatmul.bf16.gmra.mxu0 %v8298_v8  ;;  %4071 = vmatmul.bf16.gmra.mxu1 %v8300_v29 }
 0xb04   : > { %v3985_v13 = vpop.f32.mrf.mxu0  ;;  %v4014_v3 = vpop.f32.mrf.mxu1  ;;  %4047 = vmatmul.bf16.gmra.mxu0 %v8316_v9  ;;  %4076 = vmatmul.bf16.gmra.mxu1 %v8318_v46 }
 0xb05   : > { %v4015_v11 = vadd.f32 %v4014_v3, %v3985_v13 }
 0xb07   : > { %v4092_v43 = vmul.f32 %v8332_v0, %v4015_v11 }
 0xb09   : > { %v4108_v40 = vadd.f32 %v5345_v10, %v4092_v43 }
 0xb0b   : > { %4124 = vst [vmem:[%s8341_s27 + $0x20] sm:$0xff] %v4108_v40 }
 0xb0c   : > { %v3987_v58 = vpop.f32.mrf.mxu0  ;;  %v4016_v39 = vpop.f32.mrf.mxu1 }
 0xb0d   : > { %v4017_v8 = vadd.f32 %v4016_v39, %v3987_v58 }
 0xb0f   : > { %v4094_v29 = vmul.f32 %v8332_v0, %v4017_v8 }
 0xb11   : > { %v4110_v41 = vadd.f32 %v5346_v4, %v4094_v29 }
 0xb13   : > { %4126 = vst [vmem:[%s8341_s27 + $0x30] sm:$0xff] %v4110_v41 }
 0xb14   : > { %v3990_v9 = vpop.f32.mrf.mxu0  ;;  %v4019_v46 = vpop.f32.mrf.mxu1  ;;  %4052 = vmatmul.bf16.gmra.mxu0 %v3937_v20  ;;  %4081 = vmatmul.bf16.gmra.mxu1 %v3938_v7 }
 0xb15   : > { %v4020_v51 = vadd.f32 %v4019_v46, %v3990_v9 }
 0xb17   : > { %v4096_v60 = vmul.f32 %v8332_v0, %v4020_v51 }
 0xb19   : > { %v4112_v1 = vadd.f32 %v5347_v23, %v4096_v60 }
 0xb1b   : > { %4128 = vst [vmem:[%s8341_s27 + $0x40] sm:$0xff] %v4112_v1 }
 0xb1c   : > { %v3992_v30 = vpop.f32.mrf.mxu0  ;;  %v4021_v15 = vpop.f32.mrf.mxu1 }
 0xb1d   : > { %v4022_v22 = vadd.f32 %v4021_v15, %v3992_v30 }
 0xb1f   : > { %v4098_v61 = vmul.f32 %v8332_v0, %v4022_v22 }
 0xb21   : > { %v4114_v17 = vadd.f32 %v5348_v25, %v4098_v61 }
 0xb23   : > { %4130 = vst [vmem:[%s8341_s27 + $0x50] sm:$0xff] %v4114_v17 }
 0xb24   : > { %5521 = shalt.err (!%p5518_p0)
}
 0xb25   : > { %s5634_s29 = smov 256   ;;  %s5635_s16 = smov 16   ;;  %v5349_v2 = vld [vmem:[%s5853_s19 + $0x60] sm:$0xff]  ;;  %v5350_v28 = vld [vmem:[%s5853_s19 + $0x70] sm:$0xff]  ;;  %v5351_v12 = vld [vmem:[%s5853_s19 + $0x8] sm:$0xff] }
 0xb26   : > { %4846 = dma.vmem_to_hbm [thread:$0]  (%p5806_p3), %s4157_s17, 2048, %s4159_s18, %s4137_s28, %s5634_s29, %s5634_s29, %s5635_s16  }
 0xb27   : > { %v5352_v34 = vld [vmem:[%s5853_s19 + $0x18] sm:$0xff]  ;;  %v5353_v36 = vld [vmem:[%s5853_s19 + $0x28] sm:$0xff]  ;;  %s8783_s21 = sld [smem:[#allocation83_spill]]  ;;  %s4175_s18 = sshll.u32 %s8341_s27, 4  ;;  %s4176_s18 = int_to_ptr.vmem [resolvable:$true] %s4175_s18 }
 0xb28   : > { %v5354_v5 = vld [vmem:[%s5853_s19 + $0x38] sm:$0xff]  ;;  %v5355_v3 = vld [vmem:[%s5853_s19 + $0x48] sm:$0xff]  ;;  %s4142_s20 = scalar_lea.sflag [#allocation14], %s5838_s6 }
 0xb29   : > { %v5356_v39 = vld [vmem:[%s5853_s19 + $0x58] sm:$0xff]  ;;  %v5357_v46 = vld [vmem:[%s5853_s19 + $0x68] sm:$0xff] }
 0xb2a   : > { %v5358_v15 = vld [vmem:[%s5853_s19 + $0x78] sm:$0xff] }
 0xb2d   : > { %s8784_s17 = smov %s8783_s21  ;;  %s4174_s24 = scalar_lea.hbm %s8783_s21, %s4828_s11 }
 0xb2e   : > { %s4177_s28 = sshll.u32 %s4174_s24, 4  ;;  %s5542_s25 = scalar_lea.hbm %s8784_s17, 256  ;;  %s4178_s28 = int_to_ptr.hbm [resolvable:$true] %s4177_s28 }
 0xb2f   : > { %s5536_s14 = sshra.s32 %s4178_s28, 4  ;;  %s5537_s14 = int_to_ptr.hbm [resolvable:$true] %s5536_s14 }
 0xb30   : > { %s5538_s9 = scalar_lea.hbm %s5537_s14, 128  ;;  %p5543_p2 = scmp.lt.s32.totalorder %s5537_s14, %s8784_s17 }
 0xb31   : > { %p5539_p5 = scmp.ne.s32.totalorder %s5537_s14, %s5538_s9  ;;  %p5544_p1 = scmp.lt.s32.totalorder %s5542_s25, %s5538_s9 }
 0xb33   : > { %p5540_p7 = pnand %p5539_p5, %p5806_p3  ;;  %p5545_p4 = por %p5544_p1, %p5543_p2 }
 0xb35   : > { %p5541_p9 = pneg %p5540_p7 }
 0xb37   : > { %p5546_p8 = pnand %p5545_p4, %p5541_p9 }
 0xb51   : > { %v3995_v53 = vpop.f32.mrf.mxu0  ;;  %v4024_v52 = vpop.f32.mrf.mxu1 }
 0xb52   : > { %v4025_v47 = vadd.f32 %v4024_v52, %v3995_v53 }
 0xb54   : > { %v4100_v18 = vmul.f32 %v8332_v0, %v4025_v47 }
 0xb56   : > { %v4116_v21 = vadd.f32 %v5349_v2, %v4100_v18 }
 0xb58   : > { %4132 = vst [vmem:[%s8341_s27 + $0x60] sm:$0xff] %v4116_v21 }
 0xb59   : > { %v3997_v31 = vpop.f32.mrf.mxu0  ;;  %v4026_v50 = vpop.f32.mrf.mxu1 }
 0xb5a   : > { %v4027_v45 = vadd.f32 %v4026_v50, %v3997_v31 }
 0xb5c   : > { %v4102_v57 = vmul.f32 %v8332_v0, %v4027_v45 }
 0xb5e   : > { %v4118_v42 = vadd.f32 %v5350_v28, %v4102_v57 }
 0xb60   : > { %4134 = vst [vmem:[%s8341_s27 + $0x70] sm:$0xff] %v4118_v42 }
 0xb61   : > { %v4038_v48 = vpop.f32.mrf.mxu0  ;;  %v4067_v56 = vpop.f32.mrf.mxu1 }
 0xb62   : > { %v4068_v55 = vadd.f32 %v4067_v56, %v4038_v48 }
 0xb64   : > { %v4089_v35 = vmul.f32 %v8332_v0, %v4068_v55 }
 0xb66   : > { %v4105_v37 = vadd.f32 %v5351_v12, %v4089_v35 }
 0xb68   : > { %4121 = vst [vmem:[%s8341_s27 + $0x8] sm:$0xff] %v4105_v37 }
 0xb69   : > { %v4040_v54 = vpop.f32.mrf.mxu0  ;;  %v4069_v32 = vpop.f32.mrf.mxu1 }
 0xb6a   : > { %v4070_v14 = vadd.f32 %v4069_v32, %v4040_v54 }
 0xb6c   : > { %v4091_v33 = vmul.f32 %v8332_v0, %v4070_v14 }
 0xb6e   : > { %v4107_v63 = vadd.f32 %v5352_v34, %v4091_v33 }
 0xb70   : > { %4123 = vst [vmem:[%s8341_s27 + $0x18] sm:$0xff] %v4107_v63 }
 0xb71   : > { %v4043_v49 = vpop.f32.mrf.mxu0  ;;  %v4072_v27 = vpop.f32.mrf.mxu1 }
 0xb72   : > { %v4073_v16 = vadd.f32 %v4072_v27, %v4043_v49 }
 0xb74   : > { %v4093_v62 = vmul.f32 %v8332_v0, %v4073_v16 }
 0xb76   : > { %v4109_v26 = vadd.f32 %v5353_v36, %v4093_v62 }
 0xb78   : > { %4125 = vst [vmem:[%s8341_s27 + $0x28] sm:$0xff] %v4109_v26 }
 0xb79   : > { %v4045_v24 = vpop.f32.mrf.mxu0  ;;  %v4074_v44 = vpop.f32.mrf.mxu1 }
 0xb7a   : > { %v4075_v59 = vadd.f32 %v4074_v44, %v4045_v24 }
 0xb7c   : > { %v4095_v6 = vmul.f32 %v8332_v0, %v4075_v59 }
 0xb7e   : > { %v4111_v38 = vadd.f32 %v5354_v5, %v4095_v6 }
 0xb80   : > { %4127 = vst [vmem:[%s8341_s27 + $0x38] sm:$0xff] %v4111_v38 }
 0xb81   : > { %v4048_v19 = vpop.f32.mrf.mxu0  ;;  %v4077_v20 = vpop.f32.mrf.mxu1 }
 0xb82   : > { %v4078_v7 = vadd.f32 %v4077_v20, %v4048_v19 }
 0xb84   : > { %v4097_v13 = vmul.f32 %v8332_v0, %v4078_v7 }
 0xb86   : > { %v4113_v11 = vadd.f32 %v5355_v3, %v4097_v13 }
 0xb88   : > { %4129 = vst [vmem:[%s8341_s27 + $0x48] sm:$0xff] %v4113_v11 }
 0xb89   : > { %v4050_v43 = vpop.f32.mrf.mxu0  ;;  %v4079_v10 = vpop.f32.mrf.mxu1 }
 0xb8a   : > { %v4080_v40 = vadd.f32 %v4079_v10, %v4050_v43 }
 0xb8c   : > { %v4099_v58 = vmul.f32 %v8332_v0, %v4080_v40 }
 0xb8e   : > { %v4115_v8 = vadd.f32 %v5356_v39, %v4099_v58 }
 0xb90   : > { %4131 = vst [vmem:[%s8341_s27 + $0x58] sm:$0xff] %v4115_v8 }
 0xb91   : > { %v4053_v29 = vpop.f32.mrf.mxu0  ;;  %v4082_v4 = vpop.f32.mrf.mxu1 }
 0xb92   : > { %v4083_v41 = vadd.f32 %v4082_v4, %v4053_v29 }
 0xb94   : > { %v4101_v9 = vmul.f32 %v8332_v0, %v4083_v41 }
 0xb96   : > { %v4117_v51 = vadd.f32 %v5357_v46, %v4101_v9 }
 0xb98   : > { %4133 = vst [vmem:[%s8341_s27 + $0x68] sm:$0xff] %v4117_v51 }
 0xb99   : > { %v4055_v60 = vpop.f32.mrf.mxu0  ;;  %v4084_v23 = vpop.f32.mrf.mxu1 }
 0xb9a   : > { %v4085_v1 = vadd.f32 %v4084_v23, %v4055_v60 }
 0xb9c   : > { %v4103_v30 = vmul.f32 %v8332_v0, %v4085_v1 }
 0xb9e   : > { %v4119_v22 = vadd.f32 %v5358_v15, %v4103_v30 }
 0xba0   : > { %4135 = vst [vmem:[%s8341_s27 + $0x78] sm:$0xff] %v4119_v22 }
 0xba1   : > { %5549 = shalt.err (!%p5546_p8)
}
 0xba2   : > { %4847 = dma.vmem_to_hbm [thread:$0]  (%p5806_p3), %s4176_s18, 2048, %s4178_s28, %s4142_s20, %s5634_s29, %s5634_s29, %s5635_s16  }
 0xba3 PF: > { %s8785_s6 = sld [smem:[#allocation22_spill]]  ;;  %p4868_p10 = pnand %p4358_p11, %p5766_p6 }
 0xba5   : > { %p4869_p12 = pneg %p4868_p10 }
 0xba9   : > { %s4192_s27 = sand.u32 1, %s8785_s6  }
 0xbaa   : > { %s4193_s0 = scalar_lea.sflag [#allocation4], %s4192_s27 }
 0xbab   : > { %5595 = dma.done.wait (%p4869_p12), %s4193_s0, 2048  }
 0xbac   : > { %5597 = vsyncadd (%p4869_p12), %s4193_s0, 4294965248  ;;  %s4203_s21 = scalar_lea.sflag [#allocation14], %s4192_s27 }
 0xbad   : > { %5599 = dma.done.wait (%p4869_p12), %s4203_s21, 2048  }
 0xbae   : > { %5601 = vsyncadd (%p4869_p12), %s4203_s21, 4294965248  ;;  %s41_s26 = sadd.s32 1, %s5624_s26   ;;  %s8787_s23 = sld [smem:[#allocation23_spill]] }
 0xbaf   : > { %p38_p13 = scmp.ge.s32.totalorder %s41_s26, 4   ;;  %s8788_s29 = sld [smem:[#allocation29_spill]] }
 0xbb0   : > { %s8789_s24 = sld [smem:[#allocation25_spill]]  ;;  %s8791_s21 = smov %s5608_s22 }
 0xbb1   : > { %s8790_s25 = sld [smem:[#allocation28_spill]]  ;;  %40 = sbr.rel (!%p38_p13) target bundleno = 23 (0x17), region = 168 }
 0xbb4   : > { %s8792_s22 = smov %s8787_s23 }
 0xbb5   : > { %s8793_s23 = smov %s8788_s29 }
 0xbb6   :  { %4209 = vsyncpa [#allocation3], 1 }
 0xbb7   :  { %4211 = vsyncpa [#allocation3 + $0x1], 1 }
 0xbb8   :  { %4212 = vsyncpa [#allocation7], 1 }
 0xbb9   :  { %4214 = vsyncpa [#allocation7 + $0x1], 1 }
 0xbba   :  { %4215 = vsyncpa [#allocation10], 1 }
 0xbbb   :  { %4216 = vsyncpa [#allocation4], 1 }
 0xbbc   :  { %4218 = vsyncpa [#allocation4 + $0x1], 1 }
 0xbbd   :  { %4219 = vsyncpa [#allocation14], 1 }
 0xbbe   :  { %4221 = vsyncpa [#allocation14 + $0x1], 1 }
 0xbbf   :  { %4222 = vsyncpa [#allocation5], 1 }
 0xbc0   :  { %4224 = vsyncpa [#allocation5 + $0x1], 1 }

</bundles_post_ra>
